<compile_context>
chip_gen: v7x
topology: tpu7x:2x2x1
jax: 0.10.0
libtpu: 0.0.40
codegen_flags: <defaults>
</compile_context>

<pallas_src>
import jax
import jax.numpy as jnp
from jax import lax
from jax.experimental import pallas as pl
from jax.experimental.pallas import tpu as pltpu


def _make_kernel(B, C, H, W, eps=1e-5):
    C_IN3, C_MID, N_CAT = 3, 16, 4          # conv3 in-ch, conv3 out-ch, concat ch
    K3, K9 = 3, 9
    P3, P9 = 1, 4
    S = B * H * W                            # flattened spatial extent (lanes)
    E3 = P3 * W + P3                         # flat halo extent for the 3x3 conv
    E9 = P9 * W + P9                         # flat halo extent for the 9x9 conv
    inv_n = 1.0 / float(S)                   # BN stats are over N*H*W

    def kernel(xf_ref, hi_ref, wi_ref, w3_ref, b3_ref, g_ref, bt_ref,
               w1_ref, b1_ref, w9_ref, b9_ref, out_ref, xe3_ref, re9_ref):
        xf = xf_ref[...]                                     # (C, S) f32
        hi = hi_ref[...]                                     # (1, S) int32 row index
        wi = wi_ref[...]                                     # (1, S) int32 col index

        # ---- torch.max / torch.mean over channel dim (lane-dense) --------
        max_r = jnp.max(xf, axis=0, keepdims=True)           # (1, S)
        avg_r = jnp.mean(xf, axis=0, keepdims=True)          # (1, S) == color_feat

        # Shift-validity masks shared by both convolutions ("same" padding).
        # A flat shift by dh*W + dw is only valid where h+dh and w+dw stay
        # in range; everything else (row/batch wrap + halo) is masked to 0.
        hm = {d: (hi >= -d) & (hi < H - d) for d in range(-P9, P9 + 1)}
        wm = {d: (wi >= -d) & (wi < W - d) for d in range(-P9, P9 + 1)}

        # ---- color_spatial: Conv2d(3,16,3,pad=1) via im2col + MXU --------
        xe3_ref[...] = jnp.zeros(xe3_ref.shape, jnp.float32)
        xe3_ref[:, E3:E3 + S] = xf[0:C_IN3, :]
        blocks3 = []
        for kh in range(K3):
            dh = kh - P3
            for kw in range(K3):
                dw = kw - P3
                off = E3 + dh * W + dw
                blocks3.append(jnp.where(hm[dh] & wm[dw],
                                         xe3_ref[:, off:off + S], 0.0))
        patch3 = jnp.concatenate(blocks3, axis=0)            # (27, S)
        f = jnp.dot(w3_ref[...], patch3,
                    preferred_element_type=jnp.float32) + b3_ref[...]   # (16, S)

        # BatchNorm2d (training-mode batch stats, biased var), vectorized over
        # all 16 channels, then folded with ReLU + 1x1 conv.
        mu = jnp.sum(f, axis=1, keepdims=True) * inv_n                  # (16, 1)
        var = jnp.sum((f - mu) * (f - mu), axis=1, keepdims=True) * inv_n
        scale = g_ref[...] * lax.rsqrt(var + eps)                       # (16, 1)
        shift = bt_ref[...] - mu * scale
        fr = jnp.maximum(scale * f + shift, 0.0)                        # ReLU (16, S)
        cs = jnp.dot(w1_ref[...], fr,
                     preferred_element_type=jnp.float32) + b1_ref[0]    # (1, S)

        # ---- cat([max, avg, color_feat, cs], C) -> Conv2d(4,1,9,pad=4) ----
        re9_ref[...] = jnp.zeros(re9_ref.shape, jnp.float32)
        re9_ref[0:1, E9:E9 + S] = max_r
        re9_ref[1:2, E9:E9 + S] = avg_r
        re9_ref[2:3, E9:E9 + S] = avg_r                                 # color_feat
        re9_ref[3:4, E9:E9 + S] = cs

        w9 = w9_ref[...]                                                # (1, 324)
        acc9 = jnp.zeros((1, S), jnp.float32)
        for kh in range(K9):                 # accumulate per-kh (36,S) im2col chunks
            dh = kh - P9
            blocks9 = []
            for kw in range(K9):
                dw = kw - P9
                off = E9 + dh * W + dw
                blocks9.append(jnp.where(hm[dh] & wm[dw],
                                         re9_ref[:, off:off + S], 0.0))
            chunk = jnp.concatenate(blocks9, axis=0)                    # (36, S)
            wk = w9[:, kh * (K9 * N_CAT):(kh + 1) * (K9 * N_CAT)]       # (1, 36)
            acc9 = acc9 + jnp.dot(wk, chunk, preferred_element_type=jnp.float32)

        out_ref[...] = jax.nn.sigmoid(acc9 + b9_ref[0])                 # (1, S)

    return kernel


def spatial_attention_pallas(x, params, eps=1e-5):
    B, C, H, W = x.shape
    assert C >= 3, "color_spatial branch needs at least 3 channels"
    S = B * H * W
    E3 = W + 1
    E9 = 4 * W + 4

    # Lane-dense activation layout: (C, B*H*W), flat index = b*H*W + h*W + w.
    x_flat = jnp.transpose(x.astype(jnp.float32), (1, 0, 2, 3)).reshape(C, S)
    p = jnp.arange(S, dtype=jnp.int32)
    h_idx = ((p // W) % H).reshape(1, S)
    w_idx = (p % W).reshape(1, S)

    # Weight layouts matched to the in-kernel im2col row order (kh, kw, ci).
    w3m = jnp.transpose(params["w3"], (0, 2, 3, 1)).reshape(16, 27).astype(jnp.float32)
    b3v = params["b3"].reshape(16, 1).astype(jnp.float32)
    gv = params["gamma"].reshape(16, 1).astype(jnp.float32)
    bv = params["beta"].reshape(16, 1).astype(jnp.float32)
    w1v = params["w1"].reshape(1, 16).astype(jnp.float32)
    b1s = params["b1"].reshape(1).astype(jnp.float32)
    w9m = jnp.transpose(params["w9"][0], (1, 2, 0)).reshape(1, 324).astype(jnp.float32)
    b9s = params["b9"].reshape(1).astype(jnp.float32)

    kern = _make_kernel(B, C, H, W, eps)
    vmem = pl.BlockSpec(memory_space=pltpu.MemorySpace.VMEM)
    smem = pl.BlockSpec(memory_space=pltpu.MemorySpace.SMEM)

    flops = 2 * (16 * 27 + 16 + 324) * S
    bytes_accessed = 4 * (C * S + 2 * S + 16 * 27 + 16 * 3 + 1 + 324 + 1 + S)

    out_flat = pl.pallas_call(
        kern,
        out_shape=jax.ShapeDtypeStruct((1, S), jnp.float32),
        in_specs=[vmem, vmem, vmem,            # x_flat, h_idx, w_idx
                  vmem, vmem, vmem, vmem,      # w3m, b3, gamma, beta
                  vmem, smem,                  # w1, b1
                  vmem, smem],                 # w9, b9
        out_specs=vmem,
        scratch_shapes=[
            pltpu.VMEM((3, S + 2 * E3), jnp.float32),   # halo-extended x[:, :3]
            pltpu.VMEM((4, S + 2 * E9), jnp.float32),   # halo-extended concat result
        ],
        cost_estimate=pl.CostEstimate(flops=flops, transcendentals=S + 16,
                                      bytes_accessed=bytes_accessed),
    )(x_flat, h_idx, w_idx, w3m, b3v, gv, bv, w1v, b1s, w9m, b9s)

    return out_flat.reshape(B, 1, H, W)


def spatial_attention_reference(x, p, eps=1e-5):
    """Pure-JAX reference mirroring the torch forward (training-mode BN)."""
    dn = ("NCHW", "OIHW", "NCHW")
    max_r = jnp.max(x, axis=1, keepdims=True)
    avg_r = jnp.mean(x, axis=1, keepdims=True)
    color_feat = avg_r
    x3 = x[:, :3]
    f = lax.conv_general_dilated(x3, p["w3"], (1, 1), [(1, 1), (1, 1)],
                                 dimension_numbers=dn) + p["b3"].reshape(1, -1, 1, 1)
    mu = jnp.mean(f, axis=(0, 2, 3), keepdims=True)
    var = jnp.mean((f - mu) ** 2, axis=(0, 2, 3), keepdims=True)
    f = (f - mu) * lax.rsqrt(var + eps) * p["gamma"].reshape(1, -1, 1, 1) \
        + p["beta"].reshape(1, -1, 1, 1)
    f = jnp.maximum(f, 0.0)
    cs = lax.conv_general_dilated(f, p["w1"], (1, 1), [(0, 0), (0, 0)],
                                  dimension_numbers=dn) + p["b1"].reshape(1, -1, 1, 1)
    result = jnp.concatenate([max_r, avg_r, color_feat, cs], axis=1)
    out = lax.conv_general_dilated(result, p["w9"], (1, 1), [(4, 4), (4, 4)],
                                   dimension_numbers=dn) + p["b9"].reshape(1, -1, 1, 1)
    return jax.nn.sigmoid(out)


if __name__ == "__main__":
    key = jax.random.PRNGKey(0)
    ks = jax.random.split(key, 7)

    # Deterministic parameter init (shapes from the torch module __init__).
    params = {
        "w3": jax.random.normal(ks[0], (16, 3, 3, 3), jnp.float32) * 0.2,   # Conv2d(3,16,3)
        "b3": jax.random.normal(ks[1], (16,), jnp.float32) * 0.1,
        "gamma": jnp.ones((16,), jnp.float32),                              # BatchNorm2d(16)
        "beta": jnp.zeros((16,), jnp.float32),
        "w1": jax.random.normal(ks[2], (1, 16, 1, 1), jnp.float32) * 0.2,   # Conv2d(16,1,1)
        "b1": jax.random.normal(ks[3], (1,), jnp.float32) * 0.1,
        "w9": jax.random.normal(ks[4], (1, 4, 9, 9), jnp.float32) * 0.1,    # Conv2d(4,1,9)
        "b9": jax.random.normal(ks[5], (1,), jnp.float32) * 0.1,
    }

    x = jax.random.normal(ks[6], (2, 4, 16, 16), jnp.float32)

    out = spatial_attention_pallas(x, params)
    out = jax.block_until_ready(out)

    ref = jax.block_until_ready(spatial_attention_reference(x, params))
    assert out.shape == (2, 1, 16, 16)
    assert jnp.allclose(out, ref, atol=5e-4, rtol=5e-4), \
        f"max abs diff = {float(jnp.max(jnp.abs(out - ref)))}"

    print("KERNEL_OK")
</pallas_src>

<mosaic_0001>
module attributes {stable_mosaic.version = 11 : i64} {
  func.func @kernel(%arg0: memref<4x512xf32, #tpu.memory_space<vmem>>, %arg1: memref<1x512xi32, #tpu.memory_space<vmem>>, %arg2: memref<1x512xi32, #tpu.memory_space<vmem>>, %arg3: memref<16x27xf32, #tpu.memory_space<vmem>>, %arg4: memref<16x1xf32, #tpu.memory_space<vmem>>, %arg5: memref<16x1xf32, #tpu.memory_space<vmem>>, %arg6: memref<16x1xf32, #tpu.memory_space<vmem>>, %arg7: memref<1x16xf32, #tpu.memory_space<vmem>>, %arg8: memref<1xf32, #tpu.memory_space<smem>>, %arg9: memref<1x324xf32, #tpu.memory_space<vmem>>, %arg10: memref<1xf32, #tpu.memory_space<smem>>, %arg11: memref<1x512xf32, #tpu.memory_space<vmem>>, %arg12: memref<3x546xf32, #tpu.memory_space<vmem>>, %arg13: memref<4x648xf32, #tpu.memory_space<vmem>>) attributes {dimension_semantics = [], scalar_prefetch = 0 : i64, scratch_operands = 2 : i64, tpu.core_type = #tpu.core_type<tc>} {
    %c0 = arith.constant 0 : index
    %c0_0 = arith.constant 0 : index
    %0 = vector.load %arg0[%c0, %c0_0] : memref<4x512xf32, #tpu.memory_space<vmem>>, vector<4x512xf32>
    %c0_1 = arith.constant 0 : index
    %c0_2 = arith.constant 0 : index
    %1 = vector.load %arg1[%c0_1, %c0_2] : memref<1x512xi32, #tpu.memory_space<vmem>>, vector<1x512xi32>
    %c0_3 = arith.constant 0 : index
    %c0_4 = arith.constant 0 : index
    %2 = vector.load %arg2[%c0_3, %c0_4] : memref<1x512xi32, #tpu.memory_space<vmem>>, vector<1x512xi32>
    %cst = arith.constant dense<0xFF800000> : vector<512xf32>
    %3 = vector.multi_reduction <maximumf>, %0, %cst [0] : vector<4x512xf32> to vector<512xf32>
    %4 = vector.shape_cast %3 : vector<512xf32> to vector<1x512xf32>
    %cst_5 = arith.constant dense<0.000000e+00> : vector<512xf32>
    %5 = vector.multi_reduction <add>, %0, %cst_5 [0] : vector<4x512xf32> to vector<512xf32>
    %6 = vector.shape_cast %5 : vector<512xf32> to vector<1x512xf32>
    %cst_6 = arith.constant 4.000000e+00 : f32
    %7 = vector.broadcast %cst_6 : f32 to vector<1x512xf32>
    %8 = arith.divf %6, %7 : vector<1x512xf32>
    %c4_i32 = arith.constant 4 : i32
    %9 = vector.broadcast %c4_i32 : i32 to vector<1x512xi32>
    %10 = arith.cmpi sge, %1, %9 : vector<1x512xi32>
    %c20_i32 = arith.constant 20 : i32
    %11 = vector.broadcast %c20_i32 : i32 to vector<1x512xi32>
    %12 = arith.cmpi slt, %1, %11 : vector<1x512xi32>
    %13 = arith.andi %10, %12 : vector<1x512xi1>
    %c3_i32 = arith.constant 3 : i32
    %14 = vector.broadcast %c3_i32 : i32 to vector<1x512xi32>
    %15 = arith.cmpi sge, %1, %14 : vector<1x512xi32>
    %c19_i32 = arith.constant 19 : i32
    %16 = vector.broadcast %c19_i32 : i32 to vector<1x512xi32>
    %17 = arith.cmpi slt, %1, %16 : vector<1x512xi32>
    %18 = arith.andi %15, %17 : vector<1x512xi1>
    %c2_i32 = arith.constant 2 : i32
    %19 = vector.broadcast %c2_i32 : i32 to vector<1x512xi32>
    %20 = arith.cmpi sge, %1, %19 : vector<1x512xi32>
    %c18_i32 = arith.constant 18 : i32
    %21 = vector.broadcast %c18_i32 : i32 to vector<1x512xi32>
    %22 = arith.cmpi slt, %1, %21 : vector<1x512xi32>
    %23 = arith.andi %20, %22 : vector<1x512xi1>
    %c1_i32 = arith.constant 1 : i32
    %24 = vector.broadcast %c1_i32 : i32 to vector<1x512xi32>
    %25 = arith.cmpi sge, %1, %24 : vector<1x512xi32>
    %c17_i32 = arith.constant 17 : i32
    %26 = vector.broadcast %c17_i32 : i32 to vector<1x512xi32>
    %27 = arith.cmpi slt, %1, %26 : vector<1x512xi32>
    %28 = arith.andi %25, %27 : vector<1x512xi1>
    %c0_i32 = arith.constant 0 : i32
    %29 = vector.broadcast %c0_i32 : i32 to vector<1x512xi32>
    %30 = arith.cmpi sge, %1, %29 : vector<1x512xi32>
    %c16_i32 = arith.constant 16 : i32
    %31 = vector.broadcast %c16_i32 : i32 to vector<1x512xi32>
    %32 = arith.cmpi slt, %1, %31 : vector<1x512xi32>
    %33 = arith.andi %30, %32 : vector<1x512xi1>
    %c-1_i32 = arith.constant -1 : i32
    %34 = vector.broadcast %c-1_i32 : i32 to vector<1x512xi32>
    %35 = arith.cmpi sge, %1, %34 : vector<1x512xi32>
    %c15_i32 = arith.constant 15 : i32
    %36 = vector.broadcast %c15_i32 : i32 to vector<1x512xi32>
    %37 = arith.cmpi slt, %1, %36 : vector<1x512xi32>
    %38 = arith.andi %35, %37 : vector<1x512xi1>
    %c-2_i32 = arith.constant -2 : i32
    %39 = vector.broadcast %c-2_i32 : i32 to vector<1x512xi32>
    %40 = arith.cmpi sge, %1, %39 : vector<1x512xi32>
    %c14_i32 = arith.constant 14 : i32
    %41 = vector.broadcast %c14_i32 : i32 to vector<1x512xi32>
    %42 = arith.cmpi slt, %1, %41 : vector<1x512xi32>
    %43 = arith.andi %40, %42 : vector<1x512xi1>
    %c-3_i32 = arith.constant -3 : i32
    %44 = vector.broadcast %c-3_i32 : i32 to vector<1x512xi32>
    %45 = arith.cmpi sge, %1, %44 : vector<1x512xi32>
    %c13_i32 = arith.constant 13 : i32
    %46 = vector.broadcast %c13_i32 : i32 to vector<1x512xi32>
    %47 = arith.cmpi slt, %1, %46 : vector<1x512xi32>
    %48 = arith.andi %45, %47 : vector<1x512xi1>
    %c-4_i32 = arith.constant -4 : i32
    %49 = vector.broadcast %c-4_i32 : i32 to vector<1x512xi32>
    %50 = arith.cmpi sge, %1, %49 : vector<1x512xi32>
    %c12_i32 = arith.constant 12 : i32
    %51 = vector.broadcast %c12_i32 : i32 to vector<1x512xi32>
    %52 = arith.cmpi slt, %1, %51 : vector<1x512xi32>
    %53 = arith.andi %50, %52 : vector<1x512xi1>
    %c4_i32_7 = arith.constant 4 : i32
    %54 = vector.broadcast %c4_i32_7 : i32 to vector<1x512xi32>
    %55 = arith.cmpi sge, %2, %54 : vector<1x512xi32>
    %c20_i32_8 = arith.constant 20 : i32
    %56 = vector.broadcast %c20_i32_8 : i32 to vector<1x512xi32>
    %57 = arith.cmpi slt, %2, %56 : vector<1x512xi32>
    %58 = arith.andi %55, %57 : vector<1x512xi1>
    %c3_i32_9 = arith.constant 3 : i32
    %59 = vector.broadcast %c3_i32_9 : i32 to vector<1x512xi32>
    %60 = arith.cmpi sge, %2, %59 : vector<1x512xi32>
    %c19_i32_10 = arith.constant 19 : i32
    %61 = vector.broadcast %c19_i32_10 : i32 to vector<1x512xi32>
    %62 = arith.cmpi slt, %2, %61 : vector<1x512xi32>
    %63 = arith.andi %60, %62 : vector<1x512xi1>
    %c2_i32_11 = arith.constant 2 : i32
    %64 = vector.broadcast %c2_i32_11 : i32 to vector<1x512xi32>
    %65 = arith.cmpi sge, %2, %64 : vector<1x512xi32>
    %c18_i32_12 = arith.constant 18 : i32
    %66 = vector.broadcast %c18_i32_12 : i32 to vector<1x512xi32>
    %67 = arith.cmpi slt, %2, %66 : vector<1x512xi32>
    %68 = arith.andi %65, %67 : vector<1x512xi1>
    %c1_i32_13 = arith.constant 1 : i32
    %69 = vector.broadcast %c1_i32_13 : i32 to vector<1x512xi32>
    %70 = arith.cmpi sge, %2, %69 : vector<1x512xi32>
    %c17_i32_14 = arith.constant 17 : i32
    %71 = vector.broadcast %c17_i32_14 : i32 to vector<1x512xi32>
    %72 = arith.cmpi slt, %2, %71 : vector<1x512xi32>
    %73 = arith.andi %70, %72 : vector<1x512xi1>
    %c0_i32_15 = arith.constant 0 : i32
    %74 = vector.broadcast %c0_i32_15 : i32 to vector<1x512xi32>
    %75 = arith.cmpi sge, %2, %74 : vector<1x512xi32>
    %c16_i32_16 = arith.constant 16 : i32
    %76 = vector.broadcast %c16_i32_16 : i32 to vector<1x512xi32>
    %77 = arith.cmpi slt, %2, %76 : vector<1x512xi32>
    %78 = arith.andi %75, %77 : vector<1x512xi1>
    %c-1_i32_17 = arith.constant -1 : i32
    %79 = vector.broadcast %c-1_i32_17 : i32 to vector<1x512xi32>
    %80 = arith.cmpi sge, %2, %79 : vector<1x512xi32>
    %c15_i32_18 = arith.constant 15 : i32
    %81 = vector.broadcast %c15_i32_18 : i32 to vector<1x512xi32>
    %82 = arith.cmpi slt, %2, %81 : vector<1x512xi32>
    %83 = arith.andi %80, %82 : vector<1x512xi1>
    %c-2_i32_19 = arith.constant -2 : i32
    %84 = vector.broadcast %c-2_i32_19 : i32 to vector<1x512xi32>
    %85 = arith.cmpi sge, %2, %84 : vector<1x512xi32>
    %c14_i32_20 = arith.constant 14 : i32
    %86 = vector.broadcast %c14_i32_20 : i32 to vector<1x512xi32>
    %87 = arith.cmpi slt, %2, %86 : vector<1x512xi32>
    %88 = arith.andi %85, %87 : vector<1x512xi1>
    %c-3_i32_21 = arith.constant -3 : i32
    %89 = vector.broadcast %c-3_i32_21 : i32 to vector<1x512xi32>
    %90 = arith.cmpi sge, %2, %89 : vector<1x512xi32>
    %c13_i32_22 = arith.constant 13 : i32
    %91 = vector.broadcast %c13_i32_22 : i32 to vector<1x512xi32>
    %92 = arith.cmpi slt, %2, %91 : vector<1x512xi32>
    %93 = arith.andi %90, %92 : vector<1x512xi1>
    %c-4_i32_23 = arith.constant -4 : i32
    %94 = vector.broadcast %c-4_i32_23 : i32 to vector<1x512xi32>
    %95 = arith.cmpi sge, %2, %94 : vector<1x512xi32>
    %c12_i32_24 = arith.constant 12 : i32
    %96 = vector.broadcast %c12_i32_24 : i32 to vector<1x512xi32>
    %97 = arith.cmpi slt, %2, %96 : vector<1x512xi32>
    %98 = arith.andi %95, %97 : vector<1x512xi1>
    %cst_25 = arith.constant 0.000000e+00 : f32
    %99 = vector.broadcast %cst_25 : f32 to vector<3x546xf32>
    %c0_26 = arith.constant 0 : index
    %c0_27 = arith.constant 0 : index
    %100 = vector.load %arg12[%c0_26, %c0_27] : memref<3x546xf32, #tpu.memory_space<vmem>>, vector<3x546xf32>
    tpu.vector_store %arg12[%c0_26, %c0_27], %99 {strides = array<i32>} : memref<3x546xf32, #tpu.memory_space<vmem>>, vector<3x546xf32>,
    %101 = vector.extract_strided_slice %0 {offsets = [0, 0], sizes = [3, 512], strides = [1, 1]} : vector<4x512xf32> to vector<3x512xf32>
    %c0_28 = arith.constant 0 : index
    %c17 = arith.constant 17 : index
    %102 = vector.load %arg12[%c0_28, %c17] : memref<3x546xf32, #tpu.memory_space<vmem>>, vector<3x512xf32>
    tpu.vector_store %arg12[%c0_28, %c17], %101 {strides = array<i32>} : memref<3x546xf32, #tpu.memory_space<vmem>>, vector<3x512xf32>,
    %103 = arith.andi %28, %73 : vector<1x512xi1>
    %c0_29 = arith.constant 0 : index
    %c0_30 = arith.constant 0 : index
    %104 = vector.load %arg12[%c0_29, %c0_30] : memref<3x546xf32, #tpu.memory_space<vmem>>, vector<3x512xf32>
    %cst_31 = arith.constant 0.000000e+00 : f32
    %105 = vector.shape_cast %103 : vector<1x512xi1> to vector<1x512xi1>
    %106 = vector.broadcast %105 : vector<1x512xi1> to vector<3x512xi1>
    %107 = vector.broadcast %cst_31 : f32 to vector<3x512xf32>
    %108 = arith.select %106, %104, %107 : vector<3x512xi1>, vector<3x512xf32>
    %109 = arith.andi %28, %78 : vector<1x512xi1>
    %c0_32 = arith.constant 0 : index
    %c1 = arith.constant 1 : index
    %110 = vector.load %arg12[%c0_32, %c1] : memref<3x546xf32, #tpu.memory_space<vmem>>, vector<3x512xf32>
    %cst_33 = arith.constant 0.000000e+00 : f32
    %111 = vector.shape_cast %109 : vector<1x512xi1> to vector<1x512xi1>
    %112 = vector.broadcast %111 : vector<1x512xi1> to vector<3x512xi1>
    %113 = vector.broadcast %cst_33 : f32 to vector<3x512xf32>
    %114 = arith.select %112, %110, %113 : vector<3x512xi1>, vector<3x512xf32>
    %115 = arith.andi %28, %83 : vector<1x512xi1>
    %c0_34 = arith.constant 0 : index
    %c2 = arith.constant 2 : index
    %116 = vector.load %arg12[%c0_34, %c2] : memref<3x546xf32, #tpu.memory_space<vmem>>, vector<3x512xf32>
    %cst_35 = arith.constant 0.000000e+00 : f32
    %117 = vector.shape_cast %115 : vector<1x512xi1> to vector<1x512xi1>
    %118 = vector.broadcast %117 : vector<1x512xi1> to vector<3x512xi1>
    %119 = vector.broadcast %cst_35 : f32 to vector<3x512xf32>
    %120 = arith.select %118, %116, %119 : vector<3x512xi1>, vector<3x512xf32>
    %121 = arith.andi %33, %73 : vector<1x512xi1>
    %c0_36 = arith.constant 0 : index
    %c16 = arith.constant 16 : index
    %122 = vector.load %arg12[%c0_36, %c16] : memref<3x546xf32, #tpu.memory_space<vmem>>, vector<3x512xf32>
    %cst_37 = arith.constant 0.000000e+00 : f32
    %123 = vector.shape_cast %121 : vector<1x512xi1> to vector<1x512xi1>
    %124 = vector.broadcast %123 : vector<1x512xi1> to vector<3x512xi1>
    %125 = vector.broadcast %cst_37 : f32 to vector<3x512xf32>
    %126 = arith.select %124, %122, %125 : vector<3x512xi1>, vector<3x512xf32>
    %127 = arith.andi %33, %78 : vector<1x512xi1>
    %c0_38 = arith.constant 0 : index
    %c17_39 = arith.constant 17 : index
    %128 = vector.load %arg12[%c0_38, %c17_39] : memref<3x546xf32, #tpu.memory_space<vmem>>, vector<3x512xf32>
    %cst_40 = arith.constant 0.000000e+00 : f32
    %129 = vector.shape_cast %127 : vector<1x512xi1> to vector<1x512xi1>
    %130 = vector.broadcast %129 : vector<1x512xi1> to vector<3x512xi1>
    %131 = vector.broadcast %cst_40 : f32 to vector<3x512xf32>
    %132 = arith.select %130, %128, %131 : vector<3x512xi1>, vector<3x512xf32>
    %133 = arith.andi %33, %83 : vector<1x512xi1>
    %c0_41 = arith.constant 0 : index
    %c18 = arith.constant 18 : index
    %134 = vector.load %arg12[%c0_41, %c18] : memref<3x546xf32, #tpu.memory_space<vmem>>, vector<3x512xf32>
    %cst_42 = arith.constant 0.000000e+00 : f32
    %135 = vector.shape_cast %133 : vector<1x512xi1> to vector<1x512xi1>
    %136 = vector.broadcast %135 : vector<1x512xi1> to vector<3x512xi1>
    %137 = vector.broadcast %cst_42 : f32 to vector<3x512xf32>
    %138 = arith.select %136, %134, %137 : vector<3x512xi1>, vector<3x512xf32>
    %139 = arith.andi %38, %73 : vector<1x512xi1>
    %c0_43 = arith.constant 0 : index
    %c32 = arith.constant 32 : index
    %140 = vector.load %arg12[%c0_43, %c32] : memref<3x546xf32, #tpu.memory_space<vmem>>, vector<3x512xf32>
    %cst_44 = arith.constant 0.000000e+00 : f32
    %141 = vector.shape_cast %139 : vector<1x512xi1> to vector<1x512xi1>
    %142 = vector.broadcast %141 : vector<1x512xi1> to vector<3x512xi1>
    %143 = vector.broadcast %cst_44 : f32 to vector<3x512xf32>
    %144 = arith.select %142, %140, %143 : vector<3x512xi1>, vector<3x512xf32>
    %145 = arith.andi %38, %78 : vector<1x512xi1>
    %c0_45 = arith.constant 0 : index
    %c33 = arith.constant 33 : index
    %146 = vector.load %arg12[%c0_45, %c33] : memref<3x546xf32, #tpu.memory_space<vmem>>, vector<3x512xf32>
    %cst_46 = arith.constant 0.000000e+00 : f32
    %147 = vector.shape_cast %145 : vector<1x512xi1> to vector<1x512xi1>
    %148 = vector.broadcast %147 : vector<1x512xi1> to vector<3x512xi1>
    %149 = vector.broadcast %cst_46 : f32 to vector<3x512xf32>
    %150 = arith.select %148, %146, %149 : vector<3x512xi1>, vector<3x512xf32>
    %151 = arith.andi %38, %83 : vector<1x512xi1>
    %c0_47 = arith.constant 0 : index
    %c34 = arith.constant 34 : index
    %152 = vector.load %arg12[%c0_47, %c34] : memref<3x546xf32, #tpu.memory_space<vmem>>, vector<3x512xf32>
    %cst_48 = arith.constant 0.000000e+00 : f32
    %153 = vector.shape_cast %151 : vector<1x512xi1> to vector<1x512xi1>
    %154 = vector.broadcast %153 : vector<1x512xi1> to vector<3x512xi1>
    %155 = vector.broadcast %cst_48 : f32 to vector<3x512xf32>
    %156 = arith.select %154, %152, %155 : vector<3x512xi1>, vector<3x512xf32>
    %157 = tpu.concatenate %108, %114, %120, %126, %132, %138, %144, %150, %156 in 0 : vector<3x512xf32>, vector<3x512xf32>, vector<3x512xf32>, vector<3x512xf32>, vector<3x512xf32>, vector<3x512xf32>, vector<3x512xf32>, vector<3x512xf32>, vector<3x512xf32> -> vector<27x512xf32>
    %c0_49 = arith.constant 0 : index
    %c0_50 = arith.constant 0 : index
    %158 = vector.load %arg3[%c0_49, %c0_50] : memref<16x27xf32, #tpu.memory_space<vmem>>, vector<16x27xf32>
    %cst_51 = arith.constant dense<0.000000e+00> : vector<16x512xf32>
    %159 = tpu.matmul %158, %157, %cst_51 {dimension_numbers = #tpu.dot_dimension_numbers<[1], [0], [0], [1], [0, 0, 1, 1], [], []>} : vector<16x27xf32>, vector<27x512xf32>, vector<16x512xf32> -> vector<16x512xf32>
    %c0_52 = arith.constant 0 : index
    %c0_53 = arith.constant 0 : index
    %160 = vector.load %arg4[%c0_52, %c0_53] : memref<16x1xf32, #tpu.memory_space<vmem>>, vector<16x1xf32>
    %161 = vector.broadcast %160 : vector<16x1xf32> to vector<16x512xf32>
    %162 = arith.addf %159, %161 : vector<16x512xf32>
    %cst_54 = arith.constant dense<0.000000e+00> : vector<16xf32>
    %163 = vector.multi_reduction <add>, %162, %cst_54 [1] : vector<16x512xf32> to vector<16xf32>
    %164 = vector.shape_cast %163 : vector<16xf32> to vector<16x1xf32>
    %cst_55 = arith.constant 0.001953125 : f32
    %165 = vector.broadcast %cst_55 : f32 to vector<16x1xf32>
    %166 = arith.mulf %164, %165 : vector<16x1xf32>
    %167 = vector.broadcast %166 : vector<16x1xf32> to vector<16x512xf32>
    %168 = arith.subf %162, %167 : vector<16x512xf32>
    %169 = vector.broadcast %166 : vector<16x1xf32> to vector<16x512xf32>
    %170 = arith.subf %162, %169 : vector<16x512xf32>
    %171 = arith.mulf %168, %170 : vector<16x512xf32>
    %cst_56 = arith.constant dense<0.000000e+00> : vector<16xf32>
    %172 = vector.multi_reduction <add>, %171, %cst_56 [1] : vector<16x512xf32> to vector<16xf32>
    %173 = vector.shape_cast %172 : vector<16xf32> to vector<16x1xf32>
    %cst_57 = arith.constant 0.001953125 : f32
    %174 = vector.broadcast %cst_57 : f32 to vector<16x1xf32>
    %175 = arith.mulf %173, %174 : vector<16x1xf32>
    %c0_58 = arith.constant 0 : index
    %c0_59 = arith.constant 0 : index
    %176 = vector.load %arg5[%c0_58, %c0_59] : memref<16x1xf32, #tpu.memory_space<vmem>>, vector<16x1xf32>
    %cst_60 = arith.constant 9.99999974E-6 : f32
    %177 = vector.broadcast %cst_60 : f32 to vector<16x1xf32>
    %178 = arith.addf %175, %177 : vector<16x1xf32>
    %179 = math.rsqrt %178 : vector<16x1xf32>
    %180 = arith.mulf %176, %179 : vector<16x1xf32>
    %c0_61 = arith.constant 0 : index
    %c0_62 = arith.constant 0 : index
    %181 = vector.load %arg6[%c0_61, %c0_62] : memref<16x1xf32, #tpu.memory_space<vmem>>, vector<16x1xf32>
    %182 = arith.mulf %166, %180 : vector<16x1xf32>
    %183 = arith.subf %181, %182 : vector<16x1xf32>
    %184 = vector.broadcast %180 : vector<16x1xf32> to vector<16x512xf32>
    %185 = arith.mulf %184, %162 : vector<16x512xf32>
    %186 = vector.broadcast %183 : vector<16x1xf32> to vector<16x512xf32>
    %187 = arith.addf %185, %186 : vector<16x512xf32>
    %cst_63 = arith.constant 0.000000e+00 : f32
    %188 = vector.broadcast %cst_63 : f32 to vector<16x512xf32>
    %189 = arith.maximumf %187, %188 : vector<16x512xf32>
    %c0_64 = arith.constant 0 : index
    %c0_65 = arith.constant 0 : index
    %190 = vector.load %arg7[%c0_64, %c0_65] : memref<1x16xf32, #tpu.memory_space<vmem>>, vector<1x16xf32>
    %cst_66 = arith.constant dense<0.000000e+00> : vector<1x512xf32>
    %191 = tpu.matmul %190, %189, %cst_66 {dimension_numbers = #tpu.dot_dimension_numbers<[1], [0], [0], [1], [0, 0, 1, 1], [], []>} : vector<1x16xf32>, vector<16x512xf32>, vector<1x512xf32> -> vector<1x512xf32>
    %c0_67 = arith.constant 0 : index
    %192 = memref.load %arg8[%c0_67] : memref<1xf32, #tpu.memory_space<smem>>
    %193 = vector.broadcast %192 : f32 to vector<1x512xf32>
    %194 = arith.addf %191, %193 : vector<1x512xf32>
    %cst_68 = arith.constant 0.000000e+00 : f32
    %195 = vector.broadcast %cst_68 : f32 to vector<4x648xf32>
    %c0_69 = arith.constant 0 : index
    %c0_70 = arith.constant 0 : index
    %196 = vector.load %arg13[%c0_69, %c0_70] : memref<4x648xf32, #tpu.memory_space<vmem>>, vector<4x648xf32>
    tpu.vector_store %arg13[%c0_69, %c0_70], %195 {strides = array<i32>} : memref<4x648xf32, #tpu.memory_space<vmem>>, vector<4x648xf32>,
    %c0_71 = arith.constant 0 : index
    %c68 = arith.constant 68 : index
    %197 = vector.load %arg13[%c0_71, %c68] : memref<4x648xf32, #tpu.memory_space<vmem>>, vector<1x512xf32>
    tpu.vector_store %arg13[%c0_71, %c68], %4 {strides = array<i32>} : memref<4x648xf32, #tpu.memory_space<vmem>>, vector<1x512xf32>,
    %c1_72 = arith.constant 1 : index
    %c68_73 = arith.constant 68 : index
    %198 = vector.load %arg13[%c1_72, %c68_73] : memref<4x648xf32, #tpu.memory_space<vmem>>, vector<1x512xf32>
    tpu.vector_store %arg13[%c1_72, %c68_73], %8 {strides = array<i32>} : memref<4x648xf32, #tpu.memory_space<vmem>>, vector<1x512xf32>,
    %c2_74 = arith.constant 2 : index
    %c68_75 = arith.constant 68 : index
    %199 = vector.load %arg13[%c2_74, %c68_75] : memref<4x648xf32, #tpu.memory_space<vmem>>, vector<1x512xf32>
    tpu.vector_store %arg13[%c2_74, %c68_75], %8 {strides = array<i32>} : memref<4x648xf32, #tpu.memory_space<vmem>>, vector<1x512xf32>,
    %c3 = arith.constant 3 : index
    %c68_76 = arith.constant 68 : index
    %200 = vector.load %arg13[%c3, %c68_76] : memref<4x648xf32, #tpu.memory_space<vmem>>, vector<1x512xf32>
    tpu.vector_store %arg13[%c3, %c68_76], %194 {strides = array<i32>} : memref<4x648xf32, #tpu.memory_space<vmem>>, vector<1x512xf32>,
    %c0_77 = arith.constant 0 : index
    %c0_78 = arith.constant 0 : index
    %201 = vector.load %arg9[%c0_77, %c0_78] : memref<1x324xf32, #tpu.memory_space<vmem>>, vector<1x324xf32>
    %cst_79 = arith.constant 0.000000e+00 : f32
    %202 = vector.broadcast %cst_79 : f32 to vector<1x512xf32>
    %203 = arith.andi %13, %58 : vector<1x512xi1>
    %c0_80 = arith.constant 0 : index
    %c0_81 = arith.constant 0 : index
    %204 = vector.load %arg13[%c0_80, %c0_81] : memref<4x648xf32, #tpu.memory_space<vmem>>, vector<4x512xf32>
    %cst_82 = arith.constant 0.000000e+00 : f32
    %205 = vector.shape_cast %203 : vector<1x512xi1> to vector<1x512xi1>
    %206 = vector.broadcast %205 : vector<1x512xi1> to vector<4x512xi1>
    %207 = vector.broadcast %cst_82 : f32 to vector<4x512xf32>
    %208 = arith.select %206, %204, %207 : vector<4x512xi1>, vector<4x512xf32>
    %209 = arith.andi %13, %63 : vector<1x512xi1>
    %c0_83 = arith.constant 0 : index
    %c1_84 = arith.constant 1 : index
    %210 = vector.load %arg13[%c0_83, %c1_84] : memref<4x648xf32, #tpu.memory_space<vmem>>, vector<4x512xf32>
    %cst_85 = arith.constant 0.000000e+00 : f32
    %211 = vector.shape_cast %209 : vector<1x512xi1> to vector<1x512xi1>
    %212 = vector.broadcast %211 : vector<1x512xi1> to vector<4x512xi1>
    %213 = vector.broadcast %cst_85 : f32 to vector<4x512xf32>
    %214 = arith.select %212, %210, %213 : vector<4x512xi1>, vector<4x512xf32>
    %215 = arith.andi %13, %68 : vector<1x512xi1>
    %c0_86 = arith.constant 0 : index
    %c2_87 = arith.constant 2 : index
    %216 = vector.load %arg13[%c0_86, %c2_87] : memref<4x648xf32, #tpu.memory_space<vmem>>, vector<4x512xf32>
    %cst_88 = arith.constant 0.000000e+00 : f32
    %217 = vector.shape_cast %215 : vector<1x512xi1> to vector<1x512xi1>
    %218 = vector.broadcast %217 : vector<1x512xi1> to vector<4x512xi1>
    %219 = vector.broadcast %cst_88 : f32 to vector<4x512xf32>
    %220 = arith.select %218, %216, %219 : vector<4x512xi1>, vector<4x512xf32>
    %221 = arith.andi %13, %73 : vector<1x512xi1>
    %c0_89 = arith.constant 0 : index
    %c3_90 = arith.constant 3 : index
    %222 = vector.load %arg13[%c0_89, %c3_90] : memref<4x648xf32, #tpu.memory_space<vmem>>, vector<4x512xf32>
    %cst_91 = arith.constant 0.000000e+00 : f32
    %223 = vector.shape_cast %221 : vector<1x512xi1> to vector<1x512xi1>
    %224 = vector.broadcast %223 : vector<1x512xi1> to vector<4x512xi1>
    %225 = vector.broadcast %cst_91 : f32 to vector<4x512xf32>
    %226 = arith.select %224, %222, %225 : vector<4x512xi1>, vector<4x512xf32>
    %227 = arith.andi %13, %78 : vector<1x512xi1>
    %c0_92 = arith.constant 0 : index
    %c4 = arith.constant 4 : index
    %228 = vector.load %arg13[%c0_92, %c4] : memref<4x648xf32, #tpu.memory_space<vmem>>, vector<4x512xf32>
    %cst_93 = arith.constant 0.000000e+00 : f32
    %229 = vector.shape_cast %227 : vector<1x512xi1> to vector<1x512xi1>
    %230 = vector.broadcast %229 : vector<1x512xi1> to vector<4x512xi1>
    %231 = vector.broadcast %cst_93 : f32 to vector<4x512xf32>
    %232 = arith.select %230, %228, %231 : vector<4x512xi1>, vector<4x512xf32>
    %233 = arith.andi %13, %83 : vector<1x512xi1>
    %c0_94 = arith.constant 0 : index
    %c5 = arith.constant 5 : index
    %234 = vector.load %arg13[%c0_94, %c5] : memref<4x648xf32, #tpu.memory_space<vmem>>, vector<4x512xf32>
    %cst_95 = arith.constant 0.000000e+00 : f32
    %235 = vector.shape_cast %233 : vector<1x512xi1> to vector<1x512xi1>
    %236 = vector.broadcast %235 : vector<1x512xi1> to vector<4x512xi1>
    %237 = vector.broadcast %cst_95 : f32 to vector<4x512xf32>
    %238 = arith.select %236, %234, %237 : vector<4x512xi1>, vector<4x512xf32>
    %239 = arith.andi %13, %88 : vector<1x512xi1>
    %c0_96 = arith.constant 0 : index
    %c6 = arith.constant 6 : index
    %240 = vector.load %arg13[%c0_96, %c6] : memref<4x648xf32, #tpu.memory_space<vmem>>, vector<4x512xf32>
    %cst_97 = arith.constant 0.000000e+00 : f32
    %241 = vector.shape_cast %239 : vector<1x512xi1> to vector<1x512xi1>
    %242 = vector.broadcast %241 : vector<1x512xi1> to vector<4x512xi1>
    %243 = vector.broadcast %cst_97 : f32 to vector<4x512xf32>
    %244 = arith.select %242, %240, %243 : vector<4x512xi1>, vector<4x512xf32>
    %245 = arith.andi %13, %93 : vector<1x512xi1>
    %c0_98 = arith.constant 0 : index
    %c7 = arith.constant 7 : index
    %246 = vector.load %arg13[%c0_98, %c7] : memref<4x648xf32, #tpu.memory_space<vmem>>, vector<4x512xf32>
    %cst_99 = arith.constant 0.000000e+00 : f32
    %247 = vector.shape_cast %245 : vector<1x512xi1> to vector<1x512xi1>
    %248 = vector.broadcast %247 : vector<1x512xi1> to vector<4x512xi1>
    %249 = vector.broadcast %cst_99 : f32 to vector<4x512xf32>
    %250 = arith.select %248, %246, %249 : vector<4x512xi1>, vector<4x512xf32>
    %251 = arith.andi %13, %98 : vector<1x512xi1>
    %c0_100 = arith.constant 0 : index
    %c8 = arith.constant 8 : index
    %252 = vector.load %arg13[%c0_100, %c8] : memref<4x648xf32, #tpu.memory_space<vmem>>, vector<4x512xf32>
    %cst_101 = arith.constant 0.000000e+00 : f32
    %253 = vector.shape_cast %251 : vector<1x512xi1> to vector<1x512xi1>
    %254 = vector.broadcast %253 : vector<1x512xi1> to vector<4x512xi1>
    %255 = vector.broadcast %cst_101 : f32 to vector<4x512xf32>
    %256 = arith.select %254, %252, %255 : vector<4x512xi1>, vector<4x512xf32>
    %257 = tpu.concatenate %208, %214, %220, %226, %232, %238, %244, %250, %256 in 0 : vector<4x512xf32>, vector<4x512xf32>, vector<4x512xf32>, vector<4x512xf32>, vector<4x512xf32>, vector<4x512xf32>, vector<4x512xf32>, vector<4x512xf32>, vector<4x512xf32> -> vector<36x512xf32>
    %258 = vector.extract_strided_slice %201 {offsets = [0, 0], sizes = [1, 36], strides = [1, 1]} : vector<1x324xf32> to vector<1x36xf32>
    %cst_102 = arith.constant dense<0.000000e+00> : vector<1x512xf32>
    %259 = tpu.matmul %258, %257, %cst_102 {dimension_numbers = #tpu.dot_dimension_numbers<[1], [0], [0], [1], [0, 0, 1, 1], [], []>} : vector<1x36xf32>, vector<36x512xf32>, vector<1x512xf32> -> vector<1x512xf32>
    %260 = arith.addf %202, %259 : vector<1x512xf32>
    %261 = arith.andi %18, %58 : vector<1x512xi1>
    %c0_103 = arith.constant 0 : index
    %c16_104 = arith.constant 16 : index
    %262 = vector.load %arg13[%c0_103, %c16_104] : memref<4x648xf32, #tpu.memory_space<vmem>>, vector<4x512xf32>
    %cst_105 = arith.constant 0.000000e+00 : f32
    %263 = vector.shape_cast %261 : vector<1x512xi1> to vector<1x512xi1>
    %264 = vector.broadcast %263 : vector<1x512xi1> to vector<4x512xi1>
    %265 = vector.broadcast %cst_105 : f32 to vector<4x512xf32>
    %266 = arith.select %264, %262, %265 : vector<4x512xi1>, vector<4x512xf32>
    %267 = arith.andi %18, %63 : vector<1x512xi1>
    %c0_106 = arith.constant 0 : index
    %c17_107 = arith.constant 17 : index
    %268 = vector.load %arg13[%c0_106, %c17_107] : memref<4x648xf32, #tpu.memory_space<vmem>>, vector<4x512xf32>
    %cst_108 = arith.constant 0.000000e+00 : f32
    %269 = vector.shape_cast %267 : vector<1x512xi1> to vector<1x512xi1>
    %270 = vector.broadcast %269 : vector<1x512xi1> to vector<4x512xi1>
    %271 = vector.broadcast %cst_108 : f32 to vector<4x512xf32>
    %272 = arith.select %270, %268, %271 : vector<4x512xi1>, vector<4x512xf32>
    %273 = arith.andi %18, %68 : vector<1x512xi1>
    %c0_109 = arith.constant 0 : index
    %c18_110 = arith.constant 18 : index
    %274 = vector.load %arg13[%c0_109, %c18_110] : memref<4x648xf32, #tpu.memory_space<vmem>>, vector<4x512xf32>
    %cst_111 = arith.constant 0.000000e+00 : f32
    %275 = vector.shape_cast %273 : vector<1x512xi1> to vector<1x512xi1>
    %276 = vector.broadcast %275 : vector<1x512xi1> to vector<4x512xi1>
    %277 = vector.broadcast %cst_111 : f32 to vector<4x512xf32>
    %278 = arith.select %276, %274, %277 : vector<4x512xi1>, vector<4x512xf32>
    %279 = arith.andi %18, %73 : vector<1x512xi1>
    %c0_112 = arith.constant 0 : index
    %c19 = arith.constant 19 : index
    %280 = vector.load %arg13[%c0_112, %c19] : memref<4x648xf32, #tpu.memory_space<vmem>>, vector<4x512xf32>
    %cst_113 = arith.constant 0.000000e+00 : f32
    %281 = vector.shape_cast %279 : vector<1x512xi1> to vector<1x512xi1>
    %282 = vector.broadcast %281 : vector<1x512xi1> to vector<4x512xi1>
    %283 = vector.broadcast %cst_113 : f32 to vector<4x512xf32>
    %284 = arith.select %282, %280, %283 : vector<4x512xi1>, vector<4x512xf32>
    %285 = arith.andi %18, %78 : vector<1x512xi1>
    %c0_114 = arith.constant 0 : index
    %c20 = arith.constant 20 : index
    %286 = vector.load %arg13[%c0_114, %c20] : memref<4x648xf32, #tpu.memory_space<vmem>>, vector<4x512xf32>
    %cst_115 = arith.constant 0.000000e+00 : f32
    %287 = vector.shape_cast %285 : vector<1x512xi1> to vector<1x512xi1>
    %288 = vector.broadcast %287 : vector<1x512xi1> to vector<4x512xi1>
    %289 = vector.broadcast %cst_115 : f32 to vector<4x512xf32>
    %290 = arith.select %288, %286, %289 : vector<4x512xi1>, vector<4x512xf32>
    %291 = arith.andi %18, %83 : vector<1x512xi1>
    %c0_116 = arith.constant 0 : index
    %c21 = arith.constant 21 : index
    %292 = vector.load %arg13[%c0_116, %c21] : memref<4x648xf32, #tpu.memory_space<vmem>>, vector<4x512xf32>
    %cst_117 = arith.constant 0.000000e+00 : f32
    %293 = vector.shape_cast %291 : vector<1x512xi1> to vector<1x512xi1>
    %294 = vector.broadcast %293 : vector<1x512xi1> to vector<4x512xi1>
    %295 = vector.broadcast %cst_117 : f32 to vector<4x512xf32>
    %296 = arith.select %294, %292, %295 : vector<4x512xi1>, vector<4x512xf32>
    %297 = arith.andi %18, %88 : vector<1x512xi1>
    %c0_118 = arith.constant 0 : index
    %c22 = arith.constant 22 : index
    %298 = vector.load %arg13[%c0_118, %c22] : memref<4x648xf32, #tpu.memory_space<vmem>>, vector<4x512xf32>
    %cst_119 = arith.constant 0.000000e+00 : f32
    %299 = vector.shape_cast %297 : vector<1x512xi1> to vector<1x512xi1>
    %300 = vector.broadcast %299 : vector<1x512xi1> to vector<4x512xi1>
    %301 = vector.broadcast %cst_119 : f32 to vector<4x512xf32>
    %302 = arith.select %300, %298, %301 : vector<4x512xi1>, vector<4x512xf32>
    %303 = arith.andi %18, %93 : vector<1x512xi1>
    %c0_120 = arith.constant 0 : index
    %c23 = arith.constant 23 : index
    %304 = vector.load %arg13[%c0_120, %c23] : memref<4x648xf32, #tpu.memory_space<vmem>>, vector<4x512xf32>
    %cst_121 = arith.constant 0.000000e+00 : f32
    %305 = vector.shape_cast %303 : vector<1x512xi1> to vector<1x512xi1>
    %306 = vector.broadcast %305 : vector<1x512xi1> to vector<4x512xi1>
    %307 = vector.broadcast %cst_121 : f32 to vector<4x512xf32>
    %308 = arith.select %306, %304, %307 : vector<4x512xi1>, vector<4x512xf32>
    %309 = arith.andi %18, %98 : vector<1x512xi1>
    %c0_122 = arith.constant 0 : index
    %c24 = arith.constant 24 : index
    %310 = vector.load %arg13[%c0_122, %c24] : memref<4x648xf32, #tpu.memory_space<vmem>>, vector<4x512xf32>
    %cst_123 = arith.constant 0.000000e+00 : f32
    %311 = vector.shape_cast %309 : vector<1x512xi1> to vector<1x512xi1>
    %312 = vector.broadcast %311 : vector<1x512xi1> to vector<4x512xi1>
    %313 = vector.broadcast %cst_123 : f32 to vector<4x512xf32>
    %314 = arith.select %312, %310, %313 : vector<4x512xi1>, vector<4x512xf32>
    %315 = tpu.concatenate %266, %272, %278, %284, %290, %296, %302, %308, %314 in 0 : vector<4x512xf32>, vector<4x512xf32>, vector<4x512xf32>, vector<4x512xf32>, vector<4x512xf32>, vector<4x512xf32>, vector<4x512xf32>, vector<4x512xf32>, vector<4x512xf32> -> vector<36x512xf32>
    %316 = vector.extract_strided_slice %201 {offsets = [0, 36], sizes = [1, 36], strides = [1, 1]} : vector<1x324xf32> to vector<1x36xf32>
    %cst_124 = arith.constant dense<0.000000e+00> : vector<1x512xf32>
    %317 = tpu.matmul %316, %315, %cst_124 {dimension_numbers = #tpu.dot_dimension_numbers<[1], [0], [0], [1], [0, 0, 1, 1], [], []>} : vector<1x36xf32>, vector<36x512xf32>, vector<1x512xf32> -> vector<1x512xf32>
    %318 = arith.addf %260, %317 : vector<1x512xf32>
    %319 = arith.andi %23, %58 : vector<1x512xi1>
    %c0_125 = arith.constant 0 : index
    %c32_126 = arith.constant 32 : index
    %320 = vector.load %arg13[%c0_125, %c32_126] : memref<4x648xf32, #tpu.memory_space<vmem>>, vector<4x512xf32>
    %cst_127 = arith.constant 0.000000e+00 : f32
    %321 = vector.shape_cast %319 : vector<1x512xi1> to vector<1x512xi1>
    %322 = vector.broadcast %321 : vector<1x512xi1> to vector<4x512xi1>
    %323 = vector.broadcast %cst_127 : f32 to vector<4x512xf32>
    %324 = arith.select %322, %320, %323 : vector<4x512xi1>, vector<4x512xf32>
    %325 = arith.andi %23, %63 : vector<1x512xi1>
    %c0_128 = arith.constant 0 : index
    %c33_129 = arith.constant 33 : index
    %326 = vector.load %arg13[%c0_128, %c33_129] : memref<4x648xf32, #tpu.memory_space<vmem>>, vector<4x512xf32>
    %cst_130 = arith.constant 0.000000e+00 : f32
    %327 = vector.shape_cast %325 : vector<1x512xi1> to vector<1x512xi1>
    %328 = vector.broadcast %327 : vector<1x512xi1> to vector<4x512xi1>
    %329 = vector.broadcast %cst_130 : f32 to vector<4x512xf32>
    %330 = arith.select %328, %326, %329 : vector<4x512xi1>, vector<4x512xf32>
    %331 = arith.andi %23, %68 : vector<1x512xi1>
    %c0_131 = arith.constant 0 : index
    %c34_132 = arith.constant 34 : index
    %332 = vector.load %arg13[%c0_131, %c34_132] : memref<4x648xf32, #tpu.memory_space<vmem>>, vector<4x512xf32>
    %cst_133 = arith.constant 0.000000e+00 : f32
    %333 = vector.shape_cast %331 : vector<1x512xi1> to vector<1x512xi1>
    %334 = vector.broadcast %333 : vector<1x512xi1> to vector<4x512xi1>
    %335 = vector.broadcast %cst_133 : f32 to vector<4x512xf32>
    %336 = arith.select %334, %332, %335 : vector<4x512xi1>, vector<4x512xf32>
    %337 = arith.andi %23, %73 : vector<1x512xi1>
    %c0_134 = arith.constant 0 : index
    %c35 = arith.constant 35 : index
    %338 = vector.load %arg13[%c0_134, %c35] : memref<4x648xf32, #tpu.memory_space<vmem>>, vector<4x512xf32>
    %cst_135 = arith.constant 0.000000e+00 : f32
    %339 = vector.shape_cast %337 : vector<1x512xi1> to vector<1x512xi1>
    %340 = vector.broadcast %339 : vector<1x512xi1> to vector<4x512xi1>
    %341 = vector.broadcast %cst_135 : f32 to vector<4x512xf32>
    %342 = arith.select %340, %338, %341 : vector<4x512xi1>, vector<4x512xf32>
    %343 = arith.andi %23, %78 : vector<1x512xi1>
    %c0_136 = arith.constant 0 : index
    %c36 = arith.constant 36 : index
    %344 = vector.load %arg13[%c0_136, %c36] : memref<4x648xf32, #tpu.memory_space<vmem>>, vector<4x512xf32>
    %cst_137 = arith.constant 0.000000e+00 : f32
    %345 = vector.shape_cast %343 : vector<1x512xi1> to vector<1x512xi1>
    %346 = vector.broadcast %345 : vector<1x512xi1> to vector<4x512xi1>
    %347 = vector.broadcast %cst_137 : f32 to vector<4x512xf32>
    %348 = arith.select %346, %344, %347 : vector<4x512xi1>, vector<4x512xf32>
    %349 = arith.andi %23, %83 : vector<1x512xi1>
    %c0_138 = arith.constant 0 : index
    %c37 = arith.constant 37 : index
    %350 = vector.load %arg13[%c0_138, %c37] : memref<4x648xf32, #tpu.memory_space<vmem>>, vector<4x512xf32>
    %cst_139 = arith.constant 0.000000e+00 : f32
    %351 = vector.shape_cast %349 : vector<1x512xi1> to vector<1x512xi1>
    %352 = vector.broadcast %351 : vector<1x512xi1> to vector<4x512xi1>
    %353 = vector.broadcast %cst_139 : f32 to vector<4x512xf32>
    %354 = arith.select %352, %350, %353 : vector<4x512xi1>, vector<4x512xf32>
    %355 = arith.andi %23, %88 : vector<1x512xi1>
    %c0_140 = arith.constant 0 : index
    %c38 = arith.constant 38 : index
    %356 = vector.load %arg13[%c0_140, %c38] : memref<4x648xf32, #tpu.memory_space<vmem>>, vector<4x512xf32>
    %cst_141 = arith.constant 0.000000e+00 : f32
    %357 = vector.shape_cast %355 : vector<1x512xi1> to vector<1x512xi1>
    %358 = vector.broadcast %357 : vector<1x512xi1> to vector<4x512xi1>
    %359 = vector.broadcast %cst_141 : f32 to vector<4x512xf32>
    %360 = arith.select %358, %356, %359 : vector<4x512xi1>, vector<4x512xf32>
    %361 = arith.andi %23, %93 : vector<1x512xi1>
    %c0_142 = arith.constant 0 : index
    %c39 = arith.constant 39 : index
    %362 = vector.load %arg13[%c0_142, %c39] : memref<4x648xf32, #tpu.memory_space<vmem>>, vector<4x512xf32>
    %cst_143 = arith.constant 0.000000e+00 : f32
    %363 = vector.shape_cast %361 : vector<1x512xi1> to vector<1x512xi1>
    %364 = vector.broadcast %363 : vector<1x512xi1> to vector<4x512xi1>
    %365 = vector.broadcast %cst_143 : f32 to vector<4x512xf32>
    %366 = arith.select %364, %362, %365 : vector<4x512xi1>, vector<4x512xf32>
    %367 = arith.andi %23, %98 : vector<1x512xi1>
    %c0_144 = arith.constant 0 : index
    %c40 = arith.constant 40 : index
    %368 = vector.load %arg13[%c0_144, %c40] : memref<4x648xf32, #tpu.memory_space<vmem>>, vector<4x512xf32>
    %cst_145 = arith.constant 0.000000e+00 : f32
    %369 = vector.shape_cast %367 : vector<1x512xi1> to vector<1x512xi1>
    %370 = vector.broadcast %369 : vector<1x512xi1> to vector<4x512xi1>
    %371 = vector.broadcast %cst_145 : f32 to vector<4x512xf32>
    %372 = arith.select %370, %368, %371 : vector<4x512xi1>, vector<4x512xf32>
    %373 = tpu.concatenate %324, %330, %336, %342, %348, %354, %360, %366, %372 in 0 : vector<4x512xf32>, vector<4x512xf32>, vector<4x512xf32>, vector<4x512xf32>, vector<4x512xf32>, vector<4x512xf32>, vector<4x512xf32>, vector<4x512xf32>, vector<4x512xf32> -> vector<36x512xf32>
    %374 = vector.extract_strided_slice %201 {offsets = [0, 72], sizes = [1, 36], strides = [1, 1]} : vector<1x324xf32> to vector<1x36xf32>
    %cst_146 = arith.constant dense<0.000000e+00> : vector<1x512xf32>
    %375 = tpu.matmul %374, %373, %cst_146 {dimension_numbers = #tpu.dot_dimension_numbers<[1], [0], [0], [1], [0, 0, 1, 1], [], []>} : vector<1x36xf32>, vector<36x512xf32>, vector<1x512xf32> -> vector<1x512xf32>
    %376 = arith.addf %318, %375 : vector<1x512xf32>
    %377 = arith.andi %28, %58 : vector<1x512xi1>
    %c0_147 = arith.constant 0 : index
    %c48 = arith.constant 48 : index
    %378 = vector.load %arg13[%c0_147, %c48] : memref<4x648xf32, #tpu.memory_space<vmem>>, vector<4x512xf32>
    %cst_148 = arith.constant 0.000000e+00 : f32
    %379 = vector.shape_cast %377 : vector<1x512xi1> to vector<1x512xi1>
    %380 = vector.broadcast %379 : vector<1x512xi1> to vector<4x512xi1>
    %381 = vector.broadcast %cst_148 : f32 to vector<4x512xf32>
    %382 = arith.select %380, %378, %381 : vector<4x512xi1>, vector<4x512xf32>
    %383 = arith.andi %28, %63 : vector<1x512xi1>
    %c0_149 = arith.constant 0 : index
    %c49 = arith.constant 49 : index
    %384 = vector.load %arg13[%c0_149, %c49] : memref<4x648xf32, #tpu.memory_space<vmem>>, vector<4x512xf32>
    %cst_150 = arith.constant 0.000000e+00 : f32
    %385 = vector.shape_cast %383 : vector<1x512xi1> to vector<1x512xi1>
    %386 = vector.broadcast %385 : vector<1x512xi1> to vector<4x512xi1>
    %387 = vector.broadcast %cst_150 : f32 to vector<4x512xf32>
    %388 = arith.select %386, %384, %387 : vector<4x512xi1>, vector<4x512xf32>
    %389 = arith.andi %28, %68 : vector<1x512xi1>
    %c0_151 = arith.constant 0 : index
    %c50 = arith.constant 50 : index
    %390 = vector.load %arg13[%c0_151, %c50] : memref<4x648xf32, #tpu.memory_space<vmem>>, vector<4x512xf32>
    %cst_152 = arith.constant 0.000000e+00 : f32
    %391 = vector.shape_cast %389 : vector<1x512xi1> to vector<1x512xi1>
    %392 = vector.broadcast %391 : vector<1x512xi1> to vector<4x512xi1>
    %393 = vector.broadcast %cst_152 : f32 to vector<4x512xf32>
    %394 = arith.select %392, %390, %393 : vector<4x512xi1>, vector<4x512xf32>
    %395 = arith.andi %28, %73 : vector<1x512xi1>
    %c0_153 = arith.constant 0 : index
    %c51 = arith.constant 51 : index
    %396 = vector.load %arg13[%c0_153, %c51] : memref<4x648xf32, #tpu.memory_space<vmem>>, vector<4x512xf32>
    %cst_154 = arith.constant 0.000000e+00 : f32
    %397 = vector.shape_cast %395 : vector<1x512xi1> to vector<1x512xi1>
    %398 = vector.broadcast %397 : vector<1x512xi1> to vector<4x512xi1>
    %399 = vector.broadcast %cst_154 : f32 to vector<4x512xf32>
    %400 = arith.select %398, %396, %399 : vector<4x512xi1>, vector<4x512xf32>
    %401 = arith.andi %28, %78 : vector<1x512xi1>
    %c0_155 = arith.constant 0 : index
    %c52 = arith.constant 52 : index
    %402 = vector.load %arg13[%c0_155, %c52] : memref<4x648xf32, #tpu.memory_space<vmem>>, vector<4x512xf32>
    %cst_156 = arith.constant 0.000000e+00 : f32
    %403 = vector.shape_cast %401 : vector<1x512xi1> to vector<1x512xi1>
    %404 = vector.broadcast %403 : vector<1x512xi1> to vector<4x512xi1>
    %405 = vector.broadcast %cst_156 : f32 to vector<4x512xf32>
    %406 = arith.select %404, %402, %405 : vector<4x512xi1>, vector<4x512xf32>
    %407 = arith.andi %28, %83 : vector<1x512xi1>
    %c0_157 = arith.constant 0 : index
    %c53 = arith.constant 53 : index
    %408 = vector.load %arg13[%c0_157, %c53] : memref<4x648xf32, #tpu.memory_space<vmem>>, vector<4x512xf32>
    %cst_158 = arith.constant 0.000000e+00 : f32
    %409 = vector.shape_cast %407 : vector<1x512xi1> to vector<1x512xi1>
    %410 = vector.broadcast %409 : vector<1x512xi1> to vector<4x512xi1>
    %411 = vector.broadcast %cst_158 : f32 to vector<4x512xf32>
    %412 = arith.select %410, %408, %411 : vector<4x512xi1>, vector<4x512xf32>
    %413 = arith.andi %28, %88 : vector<1x512xi1>
    %c0_159 = arith.constant 0 : index
    %c54 = arith.constant 54 : index
    %414 = vector.load %arg13[%c0_159, %c54] : memref<4x648xf32, #tpu.memory_space<vmem>>, vector<4x512xf32>
    %cst_160 = arith.constant 0.000000e+00 : f32
    %415 = vector.shape_cast %413 : vector<1x512xi1> to vector<1x512xi1>
    %416 = vector.broadcast %415 : vector<1x512xi1> to vector<4x512xi1>
    %417 = vector.broadcast %cst_160 : f32 to vector<4x512xf32>
    %418 = arith.select %416, %414, %417 : vector<4x512xi1>, vector<4x512xf32>
    %419 = arith.andi %28, %93 : vector<1x512xi1>
    %c0_161 = arith.constant 0 : index
    %c55 = arith.constant 55 : index
    %420 = vector.load %arg13[%c0_161, %c55] : memref<4x648xf32, #tpu.memory_space<vmem>>, vector<4x512xf32>
    %cst_162 = arith.constant 0.000000e+00 : f32
    %421 = vector.shape_cast %419 : vector<1x512xi1> to vector<1x512xi1>
    %422 = vector.broadcast %421 : vector<1x512xi1> to vector<4x512xi1>
    %423 = vector.broadcast %cst_162 : f32 to vector<4x512xf32>
    %424 = arith.select %422, %420, %423 : vector<4x512xi1>, vector<4x512xf32>
    %425 = arith.andi %28, %98 : vector<1x512xi1>
    %c0_163 = arith.constant 0 : index
    %c56 = arith.constant 56 : index
    %426 = vector.load %arg13[%c0_163, %c56] : memref<4x648xf32, #tpu.memory_space<vmem>>, vector<4x512xf32>
    %cst_164 = arith.constant 0.000000e+00 : f32
    %427 = vector.shape_cast %425 : vector<1x512xi1> to vector<1x512xi1>
    %428 = vector.broadcast %427 : vector<1x512xi1> to vector<4x512xi1>
    %429 = vector.broadcast %cst_164 : f32 to vector<4x512xf32>
    %430 = arith.select %428, %426, %429 : vector<4x512xi1>, vector<4x512xf32>
    %431 = tpu.concatenate %382, %388, %394, %400, %406, %412, %418, %424, %430 in 0 : vector<4x512xf32>, vector<4x512xf32>, vector<4x512xf32>, vector<4x512xf32>, vector<4x512xf32>, vector<4x512xf32>, vector<4x512xf32>, vector<4x512xf32>, vector<4x512xf32> -> vector<36x512xf32>
    %432 = vector.extract_strided_slice %201 {offsets = [0, 108], sizes = [1, 36], strides = [1, 1]} : vector<1x324xf32> to vector<1x36xf32>
    %cst_165 = arith.constant dense<0.000000e+00> : vector<1x512xf32>
    %433 = tpu.matmul %432, %431, %cst_165 {dimension_numbers = #tpu.dot_dimension_numbers<[1], [0], [0], [1], [0, 0, 1, 1], [], []>} : vector<1x36xf32>, vector<36x512xf32>, vector<1x512xf32> -> vector<1x512xf32>
    %434 = arith.addf %376, %433 : vector<1x512xf32>
    %435 = arith.andi %33, %58 : vector<1x512xi1>
    %c0_166 = arith.constant 0 : index
    %c64 = arith.constant 64 : index
    %436 = vector.load %arg13[%c0_166, %c64] : memref<4x648xf32, #tpu.memory_space<vmem>>, vector<4x512xf32>
    %cst_167 = arith.constant 0.000000e+00 : f32
    %437 = vector.shape_cast %435 : vector<1x512xi1> to vector<1x512xi1>
    %438 = vector.broadcast %437 : vector<1x512xi1> to vector<4x512xi1>
    %439 = vector.broadcast %cst_167 : f32 to vector<4x512xf32>
    %440 = arith.select %438, %436, %439 : vector<4x512xi1>, vector<4x512xf32>
    %441 = arith.andi %33, %63 : vector<1x512xi1>
    %c0_168 = arith.constant 0 : index
    %c65 = arith.constant 65 : index
    %442 = vector.load %arg13[%c0_168, %c65] : memref<4x648xf32, #tpu.memory_space<vmem>>, vector<4x512xf32>
    %cst_169 = arith.constant 0.000000e+00 : f32
    %443 = vector.shape_cast %441 : vector<1x512xi1> to vector<1x512xi1>
    %444 = vector.broadcast %443 : vector<1x512xi1> to vector<4x512xi1>
    %445 = vector.broadcast %cst_169 : f32 to vector<4x512xf32>
    %446 = arith.select %444, %442, %445 : vector<4x512xi1>, vector<4x512xf32>
    %447 = arith.andi %33, %68 : vector<1x512xi1>
    %c0_170 = arith.constant 0 : index
    %c66 = arith.constant 66 : index
    %448 = vector.load %arg13[%c0_170, %c66] : memref<4x648xf32, #tpu.memory_space<vmem>>, vector<4x512xf32>
    %cst_171 = arith.constant 0.000000e+00 : f32
    %449 = vector.shape_cast %447 : vector<1x512xi1> to vector<1x512xi1>
    %450 = vector.broadcast %449 : vector<1x512xi1> to vector<4x512xi1>
    %451 = vector.broadcast %cst_171 : f32 to vector<4x512xf32>
    %452 = arith.select %450, %448, %451 : vector<4x512xi1>, vector<4x512xf32>
    %453 = arith.andi %33, %73 : vector<1x512xi1>
    %c0_172 = arith.constant 0 : index
    %c67 = arith.constant 67 : index
    %454 = vector.load %arg13[%c0_172, %c67] : memref<4x648xf32, #tpu.memory_space<vmem>>, vector<4x512xf32>
    %cst_173 = arith.constant 0.000000e+00 : f32
    %455 = vector.shape_cast %453 : vector<1x512xi1> to vector<1x512xi1>
    %456 = vector.broadcast %455 : vector<1x512xi1> to vector<4x512xi1>
    %457 = vector.broadcast %cst_173 : f32 to vector<4x512xf32>
    %458 = arith.select %456, %454, %457 : vector<4x512xi1>, vector<4x512xf32>
    %459 = arith.andi %33, %78 : vector<1x512xi1>
    %c0_174 = arith.constant 0 : index
    %c68_175 = arith.constant 68 : index
    %460 = vector.load %arg13[%c0_174, %c68_175] : memref<4x648xf32, #tpu.memory_space<vmem>>, vector<4x512xf32>
    %cst_176 = arith.constant 0.000000e+00 : f32
    %461 = vector.shape_cast %459 : vector<1x512xi1> to vector<1x512xi1>
    %462 = vector.broadcast %461 : vector<1x512xi1> to vector<4x512xi1>
    %463 = vector.broadcast %cst_176 : f32 to vector<4x512xf32>
    %464 = arith.select %462, %460, %463 : vector<4x512xi1>, vector<4x512xf32>
    %465 = arith.andi %33, %83 : vector<1x512xi1>
    %c0_177 = arith.constant 0 : index
    %c69 = arith.constant 69 : index
    %466 = vector.load %arg13[%c0_177, %c69] : memref<4x648xf32, #tpu.memory_space<vmem>>, vector<4x512xf32>
    %cst_178 = arith.constant 0.000000e+00 : f32
    %467 = vector.shape_cast %465 : vector<1x512xi1> to vector<1x512xi1>
    %468 = vector.broadcast %467 : vector<1x512xi1> to vector<4x512xi1>
    %469 = vector.broadcast %cst_178 : f32 to vector<4x512xf32>
    %470 = arith.select %468, %466, %469 : vector<4x512xi1>, vector<4x512xf32>
    %471 = arith.andi %33, %88 : vector<1x512xi1>
    %c0_179 = arith.constant 0 : index
    %c70 = arith.constant 70 : index
    %472 = vector.load %arg13[%c0_179, %c70] : memref<4x648xf32, #tpu.memory_space<vmem>>, vector<4x512xf32>
    %cst_180 = arith.constant 0.000000e+00 : f32
    %473 = vector.shape_cast %471 : vector<1x512xi1> to vector<1x512xi1>
    %474 = vector.broadcast %473 : vector<1x512xi1> to vector<4x512xi1>
    %475 = vector.broadcast %cst_180 : f32 to vector<4x512xf32>
    %476 = arith.select %474, %472, %475 : vector<4x512xi1>, vector<4x512xf32>
    %477 = arith.andi %33, %93 : vector<1x512xi1>
    %c0_181 = arith.constant 0 : index
    %c71 = arith.constant 71 : index
    %478 = vector.load %arg13[%c0_181, %c71] : memref<4x648xf32, #tpu.memory_space<vmem>>, vector<4x512xf32>
    %cst_182 = arith.constant 0.000000e+00 : f32
    %479 = vector.shape_cast %477 : vector<1x512xi1> to vector<1x512xi1>
    %480 = vector.broadcast %479 : vector<1x512xi1> to vector<4x512xi1>
    %481 = vector.broadcast %cst_182 : f32 to vector<4x512xf32>
    %482 = arith.select %480, %478, %481 : vector<4x512xi1>, vector<4x512xf32>
    %483 = arith.andi %33, %98 : vector<1x512xi1>
    %c0_183 = arith.constant 0 : index
    %c72 = arith.constant 72 : index
    %484 = vector.load %arg13[%c0_183, %c72] : memref<4x648xf32, #tpu.memory_space<vmem>>, vector<4x512xf32>
    %cst_184 = arith.constant 0.000000e+00 : f32
    %485 = vector.shape_cast %483 : vector<1x512xi1> to vector<1x512xi1>
    %486 = vector.broadcast %485 : vector<1x512xi1> to vector<4x512xi1>
    %487 = vector.broadcast %cst_184 : f32 to vector<4x512xf32>
    %488 = arith.select %486, %484, %487 : vector<4x512xi1>, vector<4x512xf32>
    %489 = tpu.concatenate %440, %446, %452, %458, %464, %470, %476, %482, %488 in 0 : vector<4x512xf32>, vector<4x512xf32>, vector<4x512xf32>, vector<4x512xf32>, vector<4x512xf32>, vector<4x512xf32>, vector<4x512xf32>, vector<4x512xf32>, vector<4x512xf32> -> vector<36x512xf32>
    %490 = vector.extract_strided_slice %201 {offsets = [0, 144], sizes = [1, 36], strides = [1, 1]} : vector<1x324xf32> to vector<1x36xf32>
    %cst_185 = arith.constant dense<0.000000e+00> : vector<1x512xf32>
    %491 = tpu.matmul %490, %489, %cst_185 {dimension_numbers = #tpu.dot_dimension_numbers<[1], [0], [0], [1], [0, 0, 1, 1], [], []>} : vector<1x36xf32>, vector<36x512xf32>, vector<1x512xf32> -> vector<1x512xf32>
    %492 = arith.addf %434, %491 : vector<1x512xf32>
    %493 = arith.andi %38, %58 : vector<1x512xi1>
    %c0_186 = arith.constant 0 : index
    %c80 = arith.constant 80 : index
    %494 = vector.load %arg13[%c0_186, %c80] : memref<4x648xf32, #tpu.memory_space<vmem>>, vector<4x512xf32>
    %cst_187 = arith.constant 0.000000e+00 : f32
    %495 = vector.shape_cast %493 : vector<1x512xi1> to vector<1x512xi1>
    %496 = vector.broadcast %495 : vector<1x512xi1> to vector<4x512xi1>
    %497 = vector.broadcast %cst_187 : f32 to vector<4x512xf32>
    %498 = arith.select %496, %494, %497 : vector<4x512xi1>, vector<4x512xf32>
    %499 = arith.andi %38, %63 : vector<1x512xi1>
    %c0_188 = arith.constant 0 : index
    %c81 = arith.constant 81 : index
    %500 = vector.load %arg13[%c0_188, %c81] : memref<4x648xf32, #tpu.memory_space<vmem>>, vector<4x512xf32>
    %cst_189 = arith.constant 0.000000e+00 : f32
    %501 = vector.shape_cast %499 : vector<1x512xi1> to vector<1x512xi1>
    %502 = vector.broadcast %501 : vector<1x512xi1> to vector<4x512xi1>
    %503 = vector.broadcast %cst_189 : f32 to vector<4x512xf32>
    %504 = arith.select %502, %500, %503 : vector<4x512xi1>, vector<4x512xf32>
    %505 = arith.andi %38, %68 : vector<1x512xi1>
    %c0_190 = arith.constant 0 : index
    %c82 = arith.constant 82 : index
    %506 = vector.load %arg13[%c0_190, %c82] : memref<4x648xf32, #tpu.memory_space<vmem>>, vector<4x512xf32>
    %cst_191 = arith.constant 0.000000e+00 : f32
    %507 = vector.shape_cast %505 : vector<1x512xi1> to vector<1x512xi1>
    %508 = vector.broadcast %507 : vector<1x512xi1> to vector<4x512xi1>
    %509 = vector.broadcast %cst_191 : f32 to vector<4x512xf32>
    %510 = arith.select %508, %506, %509 : vector<4x512xi1>, vector<4x512xf32>
    %511 = arith.andi %38, %73 : vector<1x512xi1>
    %c0_192 = arith.constant 0 : index
    %c83 = arith.constant 83 : index
    %512 = vector.load %arg13[%c0_192, %c83] : memref<4x648xf32, #tpu.memory_space<vmem>>, vector<4x512xf32>
    %cst_193 = arith.constant 0.000000e+00 : f32
    %513 = vector.shape_cast %511 : vector<1x512xi1> to vector<1x512xi1>
    %514 = vector.broadcast %513 : vector<1x512xi1> to vector<4x512xi1>
    %515 = vector.broadcast %cst_193 : f32 to vector<4x512xf32>
    %516 = arith.select %514, %512, %515 : vector<4x512xi1>, vector<4x512xf32>
    %517 = arith.andi %38, %78 : vector<1x512xi1>
    %c0_194 = arith.constant 0 : index
    %c84 = arith.constant 84 : index
    %518 = vector.load %arg13[%c0_194, %c84] : memref<4x648xf32, #tpu.memory_space<vmem>>, vector<4x512xf32>
    %cst_195 = arith.constant 0.000000e+00 : f32
    %519 = vector.shape_cast %517 : vector<1x512xi1> to vector<1x512xi1>
    %520 = vector.broadcast %519 : vector<1x512xi1> to vector<4x512xi1>
    %521 = vector.broadcast %cst_195 : f32 to vector<4x512xf32>
    %522 = arith.select %520, %518, %521 : vector<4x512xi1>, vector<4x512xf32>
    %523 = arith.andi %38, %83 : vector<1x512xi1>
    %c0_196 = arith.constant 0 : index
    %c85 = arith.constant 85 : index
    %524 = vector.load %arg13[%c0_196, %c85] : memref<4x648xf32, #tpu.memory_space<vmem>>, vector<4x512xf32>
    %cst_197 = arith.constant 0.000000e+00 : f32
    %525 = vector.shape_cast %523 : vector<1x512xi1> to vector<1x512xi1>
    %526 = vector.broadcast %525 : vector<1x512xi1> to vector<4x512xi1>
    %527 = vector.broadcast %cst_197 : f32 to vector<4x512xf32>
    %528 = arith.select %526, %524, %527 : vector<4x512xi1>, vector<4x512xf32>
    %529 = arith.andi %38, %88 : vector<1x512xi1>
    %c0_198 = arith.constant 0 : index
    %c86 = arith.constant 86 : index
    %530 = vector.load %arg13[%c0_198, %c86] : memref<4x648xf32, #tpu.memory_space<vmem>>, vector<4x512xf32>
    %cst_199 = arith.constant 0.000000e+00 : f32
    %531 = vector.shape_cast %529 : vector<1x512xi1> to vector<1x512xi1>
    %532 = vector.broadcast %531 : vector<1x512xi1> to vector<4x512xi1>
    %533 = vector.broadcast %cst_199 : f32 to vector<4x512xf32>
    %534 = arith.select %532, %530, %533 : vector<4x512xi1>, vector<4x512xf32>
    %535 = arith.andi %38, %93 : vector<1x512xi1>
    %c0_200 = arith.constant 0 : index
    %c87 = arith.constant 87 : index
    %536 = vector.load %arg13[%c0_200, %c87] : memref<4x648xf32, #tpu.memory_space<vmem>>, vector<4x512xf32>
    %cst_201 = arith.constant 0.000000e+00 : f32
    %537 = vector.shape_cast %535 : vector<1x512xi1> to vector<1x512xi1>
    %538 = vector.broadcast %537 : vector<1x512xi1> to vector<4x512xi1>
    %539 = vector.broadcast %cst_201 : f32 to vector<4x512xf32>
    %540 = arith.select %538, %536, %539 : vector<4x512xi1>, vector<4x512xf32>
    %541 = arith.andi %38, %98 : vector<1x512xi1>
    %c0_202 = arith.constant 0 : index
    %c88 = arith.constant 88 : index
    %542 = vector.load %arg13[%c0_202, %c88] : memref<4x648xf32, #tpu.memory_space<vmem>>, vector<4x512xf32>
    %cst_203 = arith.constant 0.000000e+00 : f32
    %543 = vector.shape_cast %541 : vector<1x512xi1> to vector<1x512xi1>
    %544 = vector.broadcast %543 : vector<1x512xi1> to vector<4x512xi1>
    %545 = vector.broadcast %cst_203 : f32 to vector<4x512xf32>
    %546 = arith.select %544, %542, %545 : vector<4x512xi1>, vector<4x512xf32>
    %547 = tpu.concatenate %498, %504, %510, %516, %522, %528, %534, %540, %546 in 0 : vector<4x512xf32>, vector<4x512xf32>, vector<4x512xf32>, vector<4x512xf32>, vector<4x512xf32>, vector<4x512xf32>, vector<4x512xf32>, vector<4x512xf32>, vector<4x512xf32> -> vector<36x512xf32>
    %548 = vector.extract_strided_slice %201 {offsets = [0, 180], sizes = [1, 36], strides = [1, 1]} : vector<1x324xf32> to vector<1x36xf32>
    %cst_204 = arith.constant dense<0.000000e+00> : vector<1x512xf32>
    %549 = tpu.matmul %548, %547, %cst_204 {dimension_numbers = #tpu.dot_dimension_numbers<[1], [0], [0], [1], [0, 0, 1, 1], [], []>} : vector<1x36xf32>, vector<36x512xf32>, vector<1x512xf32> -> vector<1x512xf32>
    %550 = arith.addf %492, %549 : vector<1x512xf32>
    %551 = arith.andi %43, %58 : vector<1x512xi1>
    %c0_205 = arith.constant 0 : index
    %c96 = arith.constant 96 : index
    %552 = vector.load %arg13[%c0_205, %c96] : memref<4x648xf32, #tpu.memory_space<vmem>>, vector<4x512xf32>
    %cst_206 = arith.constant 0.000000e+00 : f32
    %553 = vector.shape_cast %551 : vector<1x512xi1> to vector<1x512xi1>
    %554 = vector.broadcast %553 : vector<1x512xi1> to vector<4x512xi1>
    %555 = vector.broadcast %cst_206 : f32 to vector<4x512xf32>
    %556 = arith.select %554, %552, %555 : vector<4x512xi1>, vector<4x512xf32>
    %557 = arith.andi %43, %63 : vector<1x512xi1>
    %c0_207 = arith.constant 0 : index
    %c97 = arith.constant 97 : index
    %558 = vector.load %arg13[%c0_207, %c97] : memref<4x648xf32, #tpu.memory_space<vmem>>, vector<4x512xf32>
    %cst_208 = arith.constant 0.000000e+00 : f32
    %559 = vector.shape_cast %557 : vector<1x512xi1> to vector<1x512xi1>
    %560 = vector.broadcast %559 : vector<1x512xi1> to vector<4x512xi1>
    %561 = vector.broadcast %cst_208 : f32 to vector<4x512xf32>
    %562 = arith.select %560, %558, %561 : vector<4x512xi1>, vector<4x512xf32>
    %563 = arith.andi %43, %68 : vector<1x512xi1>
    %c0_209 = arith.constant 0 : index
    %c98 = arith.constant 98 : index
    %564 = vector.load %arg13[%c0_209, %c98] : memref<4x648xf32, #tpu.memory_space<vmem>>, vector<4x512xf32>
    %cst_210 = arith.constant 0.000000e+00 : f32
    %565 = vector.shape_cast %563 : vector<1x512xi1> to vector<1x512xi1>
    %566 = vector.broadcast %565 : vector<1x512xi1> to vector<4x512xi1>
    %567 = vector.broadcast %cst_210 : f32 to vector<4x512xf32>
    %568 = arith.select %566, %564, %567 : vector<4x512xi1>, vector<4x512xf32>
    %569 = arith.andi %43, %73 : vector<1x512xi1>
    %c0_211 = arith.constant 0 : index
    %c99 = arith.constant 99 : index
    %570 = vector.load %arg13[%c0_211, %c99] : memref<4x648xf32, #tpu.memory_space<vmem>>, vector<4x512xf32>
    %cst_212 = arith.constant 0.000000e+00 : f32
    %571 = vector.shape_cast %569 : vector<1x512xi1> to vector<1x512xi1>
    %572 = vector.broadcast %571 : vector<1x512xi1> to vector<4x512xi1>
    %573 = vector.broadcast %cst_212 : f32 to vector<4x512xf32>
    %574 = arith.select %572, %570, %573 : vector<4x512xi1>, vector<4x512xf32>
    %575 = arith.andi %43, %78 : vector<1x512xi1>
    %c0_213 = arith.constant 0 : index
    %c100 = arith.constant 100 : index
    %576 = vector.load %arg13[%c0_213, %c100] : memref<4x648xf32, #tpu.memory_space<vmem>>, vector<4x512xf32>
    %cst_214 = arith.constant 0.000000e+00 : f32
    %577 = vector.shape_cast %575 : vector<1x512xi1> to vector<1x512xi1>
    %578 = vector.broadcast %577 : vector<1x512xi1> to vector<4x512xi1>
    %579 = vector.broadcast %cst_214 : f32 to vector<4x512xf32>
    %580 = arith.select %578, %576, %579 : vector<4x512xi1>, vector<4x512xf32>
    %581 = arith.andi %43, %83 : vector<1x512xi1>
    %c0_215 = arith.constant 0 : index
    %c101 = arith.constant 101 : index
    %582 = vector.load %arg13[%c0_215, %c101] : memref<4x648xf32, #tpu.memory_space<vmem>>, vector<4x512xf32>
    %cst_216 = arith.constant 0.000000e+00 : f32
    %583 = vector.shape_cast %581 : vector<1x512xi1> to vector<1x512xi1>
    %584 = vector.broadcast %583 : vector<1x512xi1> to vector<4x512xi1>
    %585 = vector.broadcast %cst_216 : f32 to vector<4x512xf32>
    %586 = arith.select %584, %582, %585 : vector<4x512xi1>, vector<4x512xf32>
    %587 = arith.andi %43, %88 : vector<1x512xi1>
    %c0_217 = arith.constant 0 : index
    %c102 = arith.constant 102 : index
    %588 = vector.load %arg13[%c0_217, %c102] : memref<4x648xf32, #tpu.memory_space<vmem>>, vector<4x512xf32>
    %cst_218 = arith.constant 0.000000e+00 : f32
    %589 = vector.shape_cast %587 : vector<1x512xi1> to vector<1x512xi1>
    %590 = vector.broadcast %589 : vector<1x512xi1> to vector<4x512xi1>
    %591 = vector.broadcast %cst_218 : f32 to vector<4x512xf32>
    %592 = arith.select %590, %588, %591 : vector<4x512xi1>, vector<4x512xf32>
    %593 = arith.andi %43, %93 : vector<1x512xi1>
    %c0_219 = arith.constant 0 : index
    %c103 = arith.constant 103 : index
    %594 = vector.load %arg13[%c0_219, %c103] : memref<4x648xf32, #tpu.memory_space<vmem>>, vector<4x512xf32>
    %cst_220 = arith.constant 0.000000e+00 : f32
    %595 = vector.shape_cast %593 : vector<1x512xi1> to vector<1x512xi1>
    %596 = vector.broadcast %595 : vector<1x512xi1> to vector<4x512xi1>
    %597 = vector.broadcast %cst_220 : f32 to vector<4x512xf32>
    %598 = arith.select %596, %594, %597 : vector<4x512xi1>, vector<4x512xf32>
    %599 = arith.andi %43, %98 : vector<1x512xi1>
    %c0_221 = arith.constant 0 : index
    %c104 = arith.constant 104 : index
    %600 = vector.load %arg13[%c0_221, %c104] : memref<4x648xf32, #tpu.memory_space<vmem>>, vector<4x512xf32>
    %cst_222 = arith.constant 0.000000e+00 : f32
    %601 = vector.shape_cast %599 : vector<1x512xi1> to vector<1x512xi1>
    %602 = vector.broadcast %601 : vector<1x512xi1> to vector<4x512xi1>
    %603 = vector.broadcast %cst_222 : f32 to vector<4x512xf32>
    %604 = arith.select %602, %600, %603 : vector<4x512xi1>, vector<4x512xf32>
    %605 = tpu.concatenate %556, %562, %568, %574, %580, %586, %592, %598, %604 in 0 : vector<4x512xf32>, vector<4x512xf32>, vector<4x512xf32>, vector<4x512xf32>, vector<4x512xf32>, vector<4x512xf32>, vector<4x512xf32>, vector<4x512xf32>, vector<4x512xf32> -> vector<36x512xf32>
    %606 = vector.extract_strided_slice %201 {offsets = [0, 216], sizes = [1, 36], strides = [1, 1]} : vector<1x324xf32> to vector<1x36xf32>
    %cst_223 = arith.constant dense<0.000000e+00> : vector<1x512xf32>
    %607 = tpu.matmul %606, %605, %cst_223 {dimension_numbers = #tpu.dot_dimension_numbers<[1], [0], [0], [1], [0, 0, 1, 1], [], []>} : vector<1x36xf32>, vector<36x512xf32>, vector<1x512xf32> -> vector<1x512xf32>
    %608 = arith.addf %550, %607 : vector<1x512xf32>
    %609 = arith.andi %48, %58 : vector<1x512xi1>
    %c0_224 = arith.constant 0 : index
    %c112 = arith.constant 112 : index
    %610 = vector.load %arg13[%c0_224, %c112] : memref<4x648xf32, #tpu.memory_space<vmem>>, vector<4x512xf32>
    %cst_225 = arith.constant 0.000000e+00 : f32
    %611 = vector.shape_cast %609 : vector<1x512xi1> to vector<1x512xi1>
    %612 = vector.broadcast %611 : vector<1x512xi1> to vector<4x512xi1>
    %613 = vector.broadcast %cst_225 : f32 to vector<4x512xf32>
    %614 = arith.select %612, %610, %613 : vector<4x512xi1>, vector<4x512xf32>
    %615 = arith.andi %48, %63 : vector<1x512xi1>
    %c0_226 = arith.constant 0 : index
    %c113 = arith.constant 113 : index
    %616 = vector.load %arg13[%c0_226, %c113] : memref<4x648xf32, #tpu.memory_space<vmem>>, vector<4x512xf32>
    %cst_227 = arith.constant 0.000000e+00 : f32
    %617 = vector.shape_cast %615 : vector<1x512xi1> to vector<1x512xi1>
    %618 = vector.broadcast %617 : vector<1x512xi1> to vector<4x512xi1>
    %619 = vector.broadcast %cst_227 : f32 to vector<4x512xf32>
    %620 = arith.select %618, %616, %619 : vector<4x512xi1>, vector<4x512xf32>
    %621 = arith.andi %48, %68 : vector<1x512xi1>
    %c0_228 = arith.constant 0 : index
    %c114 = arith.constant 114 : index
    %622 = vector.load %arg13[%c0_228, %c114] : memref<4x648xf32, #tpu.memory_space<vmem>>, vector<4x512xf32>
    %cst_229 = arith.constant 0.000000e+00 : f32
    %623 = vector.shape_cast %621 : vector<1x512xi1> to vector<1x512xi1>
    %624 = vector.broadcast %623 : vector<1x512xi1> to vector<4x512xi1>
    %625 = vector.broadcast %cst_229 : f32 to vector<4x512xf32>
    %626 = arith.select %624, %622, %625 : vector<4x512xi1>, vector<4x512xf32>
    %627 = arith.andi %48, %73 : vector<1x512xi1>
    %c0_230 = arith.constant 0 : index
    %c115 = arith.constant 115 : index
    %628 = vector.load %arg13[%c0_230, %c115] : memref<4x648xf32, #tpu.memory_space<vmem>>, vector<4x512xf32>
    %cst_231 = arith.constant 0.000000e+00 : f32
    %629 = vector.shape_cast %627 : vector<1x512xi1> to vector<1x512xi1>
    %630 = vector.broadcast %629 : vector<1x512xi1> to vector<4x512xi1>
    %631 = vector.broadcast %cst_231 : f32 to vector<4x512xf32>
    %632 = arith.select %630, %628, %631 : vector<4x512xi1>, vector<4x512xf32>
    %633 = arith.andi %48, %78 : vector<1x512xi1>
    %c0_232 = arith.constant 0 : index
    %c116 = arith.constant 116 : index
    %634 = vector.load %arg13[%c0_232, %c116] : memref<4x648xf32, #tpu.memory_space<vmem>>, vector<4x512xf32>
    %cst_233 = arith.constant 0.000000e+00 : f32
    %635 = vector.shape_cast %633 : vector<1x512xi1> to vector<1x512xi1>
    %636 = vector.broadcast %635 : vector<1x512xi1> to vector<4x512xi1>
    %637 = vector.broadcast %cst_233 : f32 to vector<4x512xf32>
    %638 = arith.select %636, %634, %637 : vector<4x512xi1>, vector<4x512xf32>
    %639 = arith.andi %48, %83 : vector<1x512xi1>
    %c0_234 = arith.constant 0 : index
    %c117 = arith.constant 117 : index
    %640 = vector.load %arg13[%c0_234, %c117] : memref<4x648xf32, #tpu.memory_space<vmem>>, vector<4x512xf32>
    %cst_235 = arith.constant 0.000000e+00 : f32
    %641 = vector.shape_cast %639 : vector<1x512xi1> to vector<1x512xi1>
    %642 = vector.broadcast %641 : vector<1x512xi1> to vector<4x512xi1>
    %643 = vector.broadcast %cst_235 : f32 to vector<4x512xf32>
    %644 = arith.select %642, %640, %643 : vector<4x512xi1>, vector<4x512xf32>
    %645 = arith.andi %48, %88 : vector<1x512xi1>
    %c0_236 = arith.constant 0 : index
    %c118 = arith.constant 118 : index
    %646 = vector.load %arg13[%c0_236, %c118] : memref<4x648xf32, #tpu.memory_space<vmem>>, vector<4x512xf32>
    %cst_237 = arith.constant 0.000000e+00 : f32
    %647 = vector.shape_cast %645 : vector<1x512xi1> to vector<1x512xi1>
    %648 = vector.broadcast %647 : vector<1x512xi1> to vector<4x512xi1>
    %649 = vector.broadcast %cst_237 : f32 to vector<4x512xf32>
    %650 = arith.select %648, %646, %649 : vector<4x512xi1>, vector<4x512xf32>
    %651 = arith.andi %48, %93 : vector<1x512xi1>
    %c0_238 = arith.constant 0 : index
    %c119 = arith.constant 119 : index
    %652 = vector.load %arg13[%c0_238, %c119] : memref<4x648xf32, #tpu.memory_space<vmem>>, vector<4x512xf32>
    %cst_239 = arith.constant 0.000000e+00 : f32
    %653 = vector.shape_cast %651 : vector<1x512xi1> to vector<1x512xi1>
    %654 = vector.broadcast %653 : vector<1x512xi1> to vector<4x512xi1>
    %655 = vector.broadcast %cst_239 : f32 to vector<4x512xf32>
    %656 = arith.select %654, %652, %655 : vector<4x512xi1>, vector<4x512xf32>
    %657 = arith.andi %48, %98 : vector<1x512xi1>
    %c0_240 = arith.constant 0 : index
    %c120 = arith.constant 120 : index
    %658 = vector.load %arg13[%c0_240, %c120] : memref<4x648xf32, #tpu.memory_space<vmem>>, vector<4x512xf32>
    %cst_241 = arith.constant 0.000000e+00 : f32
    %659 = vector.shape_cast %657 : vector<1x512xi1> to vector<1x512xi1>
    %660 = vector.broadcast %659 : vector<1x512xi1> to vector<4x512xi1>
    %661 = vector.broadcast %cst_241 : f32 to vector<4x512xf32>
    %662 = arith.select %660, %658, %661 : vector<4x512xi1>, vector<4x512xf32>
    %663 = tpu.concatenate %614, %620, %626, %632, %638, %644, %650, %656, %662 in 0 : vector<4x512xf32>, vector<4x512xf32>, vector<4x512xf32>, vector<4x512xf32>, vector<4x512xf32>, vector<4x512xf32>, vector<4x512xf32>, vector<4x512xf32>, vector<4x512xf32> -> vector<36x512xf32>
    %664 = vector.extract_strided_slice %201 {offsets = [0, 252], sizes = [1, 36], strides = [1, 1]} : vector<1x324xf32> to vector<1x36xf32>
    %cst_242 = arith.constant dense<0.000000e+00> : vector<1x512xf32>
    %665 = tpu.matmul %664, %663, %cst_242 {dimension_numbers = #tpu.dot_dimension_numbers<[1], [0], [0], [1], [0, 0, 1, 1], [], []>} : vector<1x36xf32>, vector<36x512xf32>, vector<1x512xf32> -> vector<1x512xf32>
    %666 = arith.addf %608, %665 : vector<1x512xf32>
    %667 = arith.andi %53, %58 : vector<1x512xi1>
    %c0_243 = arith.constant 0 : index
    %c128 = arith.constant 128 : index
    %668 = vector.load %arg13[%c0_243, %c128] : memref<4x648xf32, #tpu.memory_space<vmem>>, vector<4x512xf32>
    %cst_244 = arith.constant 0.000000e+00 : f32
    %669 = vector.shape_cast %667 : vector<1x512xi1> to vector<1x512xi1>
    %670 = vector.broadcast %669 : vector<1x512xi1> to vector<4x512xi1>
    %671 = vector.broadcast %cst_244 : f32 to vector<4x512xf32>
    %672 = arith.select %670, %668, %671 : vector<4x512xi1>, vector<4x512xf32>
    %673 = arith.andi %53, %63 : vector<1x512xi1>
    %c0_245 = arith.constant 0 : index
    %c129 = arith.constant 129 : index
    %674 = vector.load %arg13[%c0_245, %c129] : memref<4x648xf32, #tpu.memory_space<vmem>>, vector<4x512xf32>
    %cst_246 = arith.constant 0.000000e+00 : f32
    %675 = vector.shape_cast %673 : vector<1x512xi1> to vector<1x512xi1>
    %676 = vector.broadcast %675 : vector<1x512xi1> to vector<4x512xi1>
    %677 = vector.broadcast %cst_246 : f32 to vector<4x512xf32>
    %678 = arith.select %676, %674, %677 : vector<4x512xi1>, vector<4x512xf32>
    %679 = arith.andi %53, %68 : vector<1x512xi1>
    %c0_247 = arith.constant 0 : index
    %c130 = arith.constant 130 : index
    %680 = vector.load %arg13[%c0_247, %c130] : memref<4x648xf32, #tpu.memory_space<vmem>>, vector<4x512xf32>
    %cst_248 = arith.constant 0.000000e+00 : f32
    %681 = vector.shape_cast %679 : vector<1x512xi1> to vector<1x512xi1>
    %682 = vector.broadcast %681 : vector<1x512xi1> to vector<4x512xi1>
    %683 = vector.broadcast %cst_248 : f32 to vector<4x512xf32>
    %684 = arith.select %682, %680, %683 : vector<4x512xi1>, vector<4x512xf32>
    %685 = arith.andi %53, %73 : vector<1x512xi1>
    %c0_249 = arith.constant 0 : index
    %c131 = arith.constant 131 : index
    %686 = vector.load %arg13[%c0_249, %c131] : memref<4x648xf32, #tpu.memory_space<vmem>>, vector<4x512xf32>
    %cst_250 = arith.constant 0.000000e+00 : f32
    %687 = vector.shape_cast %685 : vector<1x512xi1> to vector<1x512xi1>
    %688 = vector.broadcast %687 : vector<1x512xi1> to vector<4x512xi1>
    %689 = vector.broadcast %cst_250 : f32 to vector<4x512xf32>
    %690 = arith.select %688, %686, %689 : vector<4x512xi1>, vector<4x512xf32>
    %691 = arith.andi %53, %78 : vector<1x512xi1>
    %c0_251 = arith.constant 0 : index
    %c132 = arith.constant 132 : index
    %692 = vector.load %arg13[%c0_251, %c132] : memref<4x648xf32, #tpu.memory_space<vmem>>, vector<4x512xf32>
    %cst_252 = arith.constant 0.000000e+00 : f32
    %693 = vector.shape_cast %691 : vector<1x512xi1> to vector<1x512xi1>
    %694 = vector.broadcast %693 : vector<1x512xi1> to vector<4x512xi1>
    %695 = vector.broadcast %cst_252 : f32 to vector<4x512xf32>
    %696 = arith.select %694, %692, %695 : vector<4x512xi1>, vector<4x512xf32>
    %697 = arith.andi %53, %83 : vector<1x512xi1>
    %c0_253 = arith.constant 0 : index
    %c133 = arith.constant 133 : index
    %698 = vector.load %arg13[%c0_253, %c133] : memref<4x648xf32, #tpu.memory_space<vmem>>, vector<4x512xf32>
    %cst_254 = arith.constant 0.000000e+00 : f32
    %699 = vector.shape_cast %697 : vector<1x512xi1> to vector<1x512xi1>
    %700 = vector.broadcast %699 : vector<1x512xi1> to vector<4x512xi1>
    %701 = vector.broadcast %cst_254 : f32 to vector<4x512xf32>
    %702 = arith.select %700, %698, %701 : vector<4x512xi1>, vector<4x512xf32>
    %703 = arith.andi %53, %88 : vector<1x512xi1>
    %c0_255 = arith.constant 0 : index
    %c134 = arith.constant 134 : index
    %704 = vector.load %arg13[%c0_255, %c134] : memref<4x648xf32, #tpu.memory_space<vmem>>, vector<4x512xf32>
    %cst_256 = arith.constant 0.000000e+00 : f32
    %705 = vector.shape_cast %703 : vector<1x512xi1> to vector<1x512xi1>
    %706 = vector.broadcast %705 : vector<1x512xi1> to vector<4x512xi1>
    %707 = vector.broadcast %cst_256 : f32 to vector<4x512xf32>
    %708 = arith.select %706, %704, %707 : vector<4x512xi1>, vector<4x512xf32>
    %709 = arith.andi %53, %93 : vector<1x512xi1>
    %c0_257 = arith.constant 0 : index
    %c135 = arith.constant 135 : index
    %710 = vector.load %arg13[%c0_257, %c135] : memref<4x648xf32, #tpu.memory_space<vmem>>, vector<4x512xf32>
    %cst_258 = arith.constant 0.000000e+00 : f32
    %711 = vector.shape_cast %709 : vector<1x512xi1> to vector<1x512xi1>
    %712 = vector.broadcast %711 : vector<1x512xi1> to vector<4x512xi1>
    %713 = vector.broadcast %cst_258 : f32 to vector<4x512xf32>
    %714 = arith.select %712, %710, %713 : vector<4x512xi1>, vector<4x512xf32>
    %715 = arith.andi %53, %98 : vector<1x512xi1>
    %c0_259 = arith.constant 0 : index
    %c136 = arith.constant 136 : index
    %716 = vector.load %arg13[%c0_259, %c136] : memref<4x648xf32, #tpu.memory_space<vmem>>, vector<4x512xf32>
    %cst_260 = arith.constant 0.000000e+00 : f32
    %717 = vector.shape_cast %715 : vector<1x512xi1> to vector<1x512xi1>
    %718 = vector.broadcast %717 : vector<1x512xi1> to vector<4x512xi1>
    %719 = vector.broadcast %cst_260 : f32 to vector<4x512xf32>
    %720 = arith.select %718, %716, %719 : vector<4x512xi1>, vector<4x512xf32>
    %721 = tpu.concatenate %672, %678, %684, %690, %696, %702, %708, %714, %720 in 0 : vector<4x512xf32>, vector<4x512xf32>, vector<4x512xf32>, vector<4x512xf32>, vector<4x512xf32>, vector<4x512xf32>, vector<4x512xf32>, vector<4x512xf32>, vector<4x512xf32> -> vector<36x512xf32>
    %722 = vector.extract_strided_slice %201 {offsets = [0, 288], sizes = [1, 36], strides = [1, 1]} : vector<1x324xf32> to vector<1x36xf32>
    %cst_261 = arith.constant dense<0.000000e+00> : vector<1x512xf32>
    %723 = tpu.matmul %722, %721, %cst_261 {dimension_numbers = #tpu.dot_dimension_numbers<[1], [0], [0], [1], [0, 0, 1, 1], [], []>} : vector<1x36xf32>, vector<36x512xf32>, vector<1x512xf32> -> vector<1x512xf32>
    %724 = arith.addf %666, %723 : vector<1x512xf32>
    %c0_262 = arith.constant 0 : index
    %725 = memref.load %arg10[%c0_262] : memref<1xf32, #tpu.memory_space<smem>>
    %726 = vector.broadcast %725 : f32 to vector<1x512xf32>
    %727 = arith.addf %724, %726 : vector<1x512xf32>
    %728 = arith.negf %727 : vector<1x512xf32>
    %729 = math.exp %728 : vector<1x512xf32>
    %cst_263 = arith.constant 1.000000e+00 : f32
    %730 = vector.broadcast %cst_263 : f32 to vector<1x512xf32>
    %731 = arith.addf %730, %729 : vector<1x512xf32>
    %732 = arith.divf %730, %731 : vector<1x512xf32>
    %c0_264 = arith.constant 0 : index
    %c0_265 = arith.constant 0 : index
    %733 = vector.load %arg11[%c0_264, %c0_265] : memref<1x512xf32, #tpu.memory_space<vmem>>, vector<1x512xf32>
    tpu.vector_store %arg11[%c0_264, %c0_265], %732 {strides = array<i32>} : memref<1x512xf32, #tpu.memory_space<vmem>>, vector<1x512xf32>,
    return
  }
}

</mosaic_0001>

<bundles_post_ra>
// kernel: tpu_custom_call.1
= control target key start
LH: loop header
LB: loop body
LE: loop exit
PB: predicated region body
PF: predicated region fallthrough
CT: control target
= control target key end

     0   :  { %s8045_s19 = smov 17   ;;  %v15485_v1 = vmov 0.0   ;;  %s15470_s0 = inlined_call_operand.vmem [shape: f32[4,512], index: 0, kind: input, shape index: {}]   ;;  %s15471_s1 = inlined_call_operand.vmem [shape: s32[1,512], index: 1, kind: input, shape index: {}]   ;;  %s15472_s2 = inlined_call_operand.vmem [shape: s32[1,512], index: 2, kind: input, shape index: {}]   ;;  %s15473_s3 = inlined_call_operand.vmem [shape: f32[16,27], index: 3, kind: input, shape index: {}]   ;;  %s15474_s4 = inlined_call_operand.vmem [shape: f32[16,1], index: 4, kind: input, shape index: {}]   ;;  %s15475_s5 = inlined_call_operand.vmem [shape: f32[16,1], index: 5, kind: input, shape index: {}]   ;;  %s15476_s6 = inlined_call_operand.vmem [shape: f32[16,1], index: 6, kind: input, shape index: {}]   ;;  %s15477_s7 = inlined_call_operand.vmem [shape: f32[1,16], index: 7, kind: input, shape index: {}]   ;;  %s15478_s8 = inlined_call_operand.<no memory space> [shape: f32[1], index: 8, kind: input, shape index: {}]   ;;  %s15479_s9 = inlined_call_operand.vmem [shape: f32[1,324], index: 9, kind: input, shape index: {}]   ;;  %s15480_s10 = inlined_call_operand.<no memory space> [shape: f32[1], index: 10, kind: input, shape index: {}]   ;;  %s15481_s11 = inlined_call_operand.hbm [shape: f32[1,512], index: 11, kind: output, shape index: {}]  }
   0x1   :  { %v8188_v0 = vld [vmem:[%s15470_s0] sm:$0xff]  ;;  %167 = vst [vmem:[#allocation2] sm:$0x77] %v15485_v1  ;;  %168 = vst [vmem:[#allocation2 + $0x8] sm:$0x77] %v15485_v1  ;;  %802 = vmatprep.mubr.f32.mxu0 %v15485_v1  ;;  %v8199_v2 = vld [vmem:[%s15470_s0 + $0x8] sm:$0xff]  ;;  %879 = vmatprep.mubr.f32.mxu1 %v15485_v1 }
   0x2   :  { %171 = vrot.lane.b32.xlu0 %v8188_v0, %s8045_s19  ;;  %1139 = vst [vmem:[#allocation3] sm:$0xff] %v15485_v1  ;;  %1140 = vst [vmem:[#allocation3 + $0x8] sm:$0xff] %v15485_v1 }
   0x3   :  { %18 = vsyncpa [#allocation7], 0  ;;  %vm169_vm0 = vcmask 272384   ;;  %v15504_v3 = vmov 0   ;;  %vm184_vm1 = vcmask 1042568   ;;  %vm185_vm2 = vcmask 1046532  }
   0x4   :  { %170 = vst.msk [vmem:[#allocation2 + $0x10] sm:$0x7] %vm169_vm0, %v15485_v1  ;;  %7270 = vset.pattern.permute.xlu0 %v15504_v3  ;;  %7271 = vset.pattern.permute.xlu1 %v15504_v3  ;;  %vm177_vm3 = vcmask 138240   ;;  %vm186_vm4 = vmor %vm185_vm2, %vm184_vm1  ;;  %vm15482_vm5 = vcmask 1043456   ;;  %vm189_vm6 = vcmask 133120   ;;  %s8048_s0 = smov 112   ;;  %v15483_v22 = vlaneseq }
   0x5   :  { %s8049_s22 = smov 126   ;;  %s8050_s23 = smov 127   ;;  %v707_v18 = vld [vmem:[%s15474_s4] sm:$0xff]  ;;  %v708_v19 = vld [vmem:[%s15474_s4 + $0x8] sm:$0xff]  ;;  %v16096_v23 = vmov 0  ;;  %v16099_v24 = vmov 0 }
   0x6   :  { %173 = vrot.lane.b32.xlu0 %v8199_v2, %s8045_s19  ;;  %s8051_s24 = smov 111   ;;  %s8052_s25 = smov 110   ;;  %v44_v20 = vld [vmem:[%s15472_s2] sm:$0xf]  ;;  %v8268_v25 = vshrl.u32 %v15483_v22, 7  ;;  %v16101_v26 = vmov 0 }
   0x7   :  { %s15578_s26 = smov 96   ;;  %s8054_s27 = smov 95   ;;  %v43_v21 = vld [vmem:[%s15471_s1] sm:$0xf]  ;;  %vm149_vm7 = vcmp.ge.s32.totalorder %v44_v20, 1  ;;  %vm150_vm8 = vcmp.lt.s32.totalorder %v44_v20, 17 }
   0x8   :  { %s15588_s28 = smov 94   ;;  %vm122_vm9 = vcmp.ge.s32.totalorder %v43_v21, 1  ;;  %vm123_vm10 = vcmp.lt.s32.totalorder %v43_v21, 17  ;;  %vm8259_vm11 = vmand %vm149_vm7, %vm150_vm8  ;;  %vm155_vm13 = vcmp.ge.s32.totalorder %v44_v20, 4294967295  ;;  %vm156_vm14 = vcmp.lt.s32.totalorder %v44_v20, 15  ;;  %s8058_s29 = smov 68  }
   0x9   :  { %v16097_v23 = vsel %vm8259_vm11, 4294967295, %v16096_v23  ;;  %vm8263_vm12 = vmand %vm122_vm9, %vm123_vm10  ;;  %vm125_vm15 = vcmp.ge.s32.totalorder %v43_v21, 0  ;;  %vm126_vm0 = vcmp.lt.s32.totalorder %v43_v21, 16  ;;  %vm152_vm1 = vcmp.ge.s32.totalorder %v44_v20, 0  ;;  %s15580_s30 = smov 92   ;;  %s15618_s12 = smov 56  }
   0xa   :  { %16098 = vst [vmem:[#allocation9_spill] sm:$0xff] %v16097_v23  ;;  %v16100_v24 = vsel %vm8263_vm12, 4294967295, %v16099_v24  ;;  %vm153_vm2 = vcmp.lt.s32.totalorder %v44_v20, 16  ;;  %v16104_v27 = vmov 0  ;;  %v8283_v28 = vsub.s32 1, %v8268_v25  ;;  %s8061_s13 = smov 20  }
   0xb   :  { %v8286_v29 = vsub.s32 0, %v8268_v25  ;;  %vm8288_vm7 = vmand %vm152_vm1, %vm153_vm2  ;;  %v16108_v30 = vmov 0  ;;  %v8302_v32 = vsub.s32 2, %v8268_v25  ;;  %v8305_v33 = vsub.s32 3, %v8268_v25  ;;  %s8062_s14 = smov 76   ;;  %s8063_s15 = smov 4  }
   0xc   :  { %v16109_v30 = vsel %vm8288_vm7, 4294967295, %v16108_v30  ;;  %vm128_vm10 = vcmp.ge.s32.totalorder %v43_v21, 4294967295  ;;  %v16111_v39 = vmov 0  ;;  %v16114_v46 = vmov 0  ;;  %s15642_s16 = smov 40   ;;  %s15692_s4 = smov 122  }
   0xd   :  { %16107 = vst [vmem:[#allocation12_spill] sm:$0xff] %v8286_v29  ;;  %16110 = vst [vmem:[#allocation13_spill] sm:$0xff] %v16109_v30  ;;  %v16117_v47 = vmov 0  ;;  %v16120_v54 = vmov 0  ;;  %v16123_v55 = vmov 0  ;;  %v16126_v59 = vmov 0 }
   0xe   :  { %v16141_v20 = vmov 0  ;;  %v16147_v58 = vmov 0  ;;  %s15576_s18 = smov 120   ;;  %s8070_s19 = smov 108  }
   0xf   :  { %s8071_s20 = smov 106   ;;  %s8073_s21 = smov 109  }
  0x10   :  { %s15584_s17 = smov 91  }
  0x74   :  { %v172_v4 = vpop.permute.xlu0 %171 }
  0x75   :  { %v175_v5 = vrot.slane %v172_v4, 4 }
  0x77   :  { %v178_v6 = vsel %vm177_vm3, %v175_v5, %v172_v4 }
  0x78   :  { %187 = vst.msk [vmem:[#allocation2] sm:$0x77] %vm186_vm4, %v178_v6  ;;  %v174_v7 = vpop.permute.xlu0 %173  ;;  %vm8274_vm4 = vmand %vm155_vm13, %vm156_vm14  ;;  %vm129_vm13 = vcmp.lt.s32.totalorder %v43_v21, 15  ;;  %v16138_v21 = vmov 0 }
  0x79   :  { %v176_v8 = vrot.slane %v174_v7, 4  ;;  %v16102_v26 = vsel %vm8274_vm4, 4294967295, %v16101_v26  ;;  %vm272_vm8 = vmand %vm8263_vm12, %vm8274_vm4 }
  0x7a   :  { %16103 = vst [vmem:[#allocation10_spill] sm:$0xff] %v16102_v26  ;;  %vm225_vm14 = vmand %vm8263_vm12, %vm8288_vm7  ;;  %v8341_v41 = vsel %vm272_vm8, 1, %v15504_v3 }
  0x7b   :  { %v179_v9 = vsel %vm15482_vm5, %v175_v5, %v176_v8  ;;  %190 = vst.msk [vmem:[#allocation2 + $0x10] sm:$0x7] %vm189_vm6, %v176_v8  ;;  %vm8278_vm6 = vmand %vm125_vm15, %vm126_vm0  ;;  %v8333_v40 = vsel %vm225_vm14, 1, %v15504_v3  ;;  %v281_v51 = vrot.slane %v8341_v41, %v8283_v28  ;;  %v16132_v8 = vmov 0 }
  0x7c   :  { %v180_v10 = vsel %vm177_vm3, %v179_v9, %v174_v7  ;;  %vm191_vm3 = vmand %vm8263_vm12, %vm8259_vm11  ;;  %v16105_v27 = vsel %vm8278_vm6, 4294967295, %v16104_v27  ;;  %v235_v50 = vrot.slane %v8333_v40, %v8283_v28  ;;  %v16129_v7 = vmov 0 }
  0x7d   :  { %188 = vst [vmem:[#allocation2 + $0x8] sm:$0x77] %v180_v10  ;;  %16106 = vst [vmem:[#allocation11_spill] sm:$0xff] %v16105_v27  ;;  %v194_v31 = vsel %vm191_vm3, 1, %v15504_v3  ;;  %v231_v10 = vrot.slane %v8333_v40, %v8286_v29 }
  0x7e   :  { %vm317_vm9 = vmand %vm8278_vm6, %vm8259_vm11  ;;  %v202_v34 = vrot.slane %v194_v31, %v8283_v28  ;;  %v198_v35 = vrot.slane %v194_v31, %v8286_v29  ;;  %v210_v42 = vrot.slane %v194_v31, %v8305_v33  ;;  %v206_v43 = vrot.slane %v194_v31, %v8302_v32 }
  0x7f   :  { %v8209_v12 = vld [vmem:[#allocation2] sm:$0x77]  ;;  %vm407_vm15 = vmand %vm8278_vm6, %vm8274_vm4  ;;  %v8322_v38 = vsel %vm317_vm9, 1, %v15504_v3 }
  0x80   :  { %v8217_v14 = vcombine.high %v8209_v12, %v8209_v12  ;;  %vm362_vm0 = vmand %vm8278_vm6, %vm8288_vm7  ;;  %v8346_v44 = vsel %vm407_vm15, 1, %v15504_v3  ;;  %v326_v45 = vrot.slane %v8322_v38, %v8283_v28  ;;  %vm8354_vm3 = vcmp.eq.s32.totalorder %v202_v34, 1 }
  0x81   :  { %vm8328_vm1 = vmand %vm128_vm10, %vm129_vm13  ;;  %v16115_v46 = vsel %vm8354_vm3, 4294967295, %v16114_v46  ;;  %vm8358_vm8 = vcmp.eq.s32.totalorder %v198_v35, 1  ;;  %v8371_v52 = vsel %vm362_vm0, 1, %v15504_v3  ;;  %v416_v53 = vrot.slane %v8346_v44, %v8283_v28 }
  0x82   :  { %v226_v11 = vld [vmem:[#allocation2 + $0x10] sm:$0x7]  ;;  %v16112_v39 = vsel %vm8328_vm1, 4294967295, %v16111_v39  ;;  %vm497_vm2 = vmand %vm8328_vm1, %vm8288_vm7  ;;  %16116 = vst [vmem:[#allocation15_spill] sm:$0xff] %v16115_v46  ;;  %v16118_v47 = vsel %vm8358_vm8, 4294967295, %v16117_v47  ;;  %vm8379_vm13 = vcmp.eq.s32.totalorder %v210_v42, 1  ;;  %v371_v60 = vrot.slane %v8371_v52, %v8283_v28 }
  0x83   :  { %347 = vrot.lane.b32.xlu0 %v226_v11, %s8048_s0  ;;  %302 = vrot.lane.b32.xlu1 %v226_v11, %s8049_s22  ;;  %16113 = vst [vmem:[#allocation14_spill] sm:$0xff] %v16112_v39  ;;  %16119 = vst [vmem:[#allocation16_spill] sm:$0xff] %v16118_v47  ;;  %v16121_v54 = vsel %vm8379_vm13, 4294967295, %v16120_v54  ;;  %vm8383_vm14 = vcmp.eq.s32.totalorder %v206_v43, 1  ;;  %v8388_v56 = vsel %vm497_vm2, 1, %v15504_v3  ;;  %vm8396_vm0 = vcmp.eq.s32.totalorder %v326_v45, 1 }
  0x84   :  { %v8211_v13 = vld [vmem:[#allocation2 + $0x8] sm:$0x77]  ;;  %vm452_vm9 = vmand %vm8328_vm1, %vm8259_vm11  ;;  %16122 = vst [vmem:[#allocation17_spill] sm:$0xff] %v16121_v54  ;;  %v16124_v55 = vsel %vm8383_vm14, 4294967295, %v16123_v55  ;;  %v16127_v59 = vsel %vm8396_vm0, 4294967295, %v16126_v59  ;;  %v322_v4 = vrot.slane %v8322_v38, %v8286_v29  ;;  %v330_v5 = vrot.slane %v8322_v38, %v8302_v32 }
  0x85   :  { %v7190_v15 = vpack.i.bf16 %v8211_v13, %v8217_v14  ;;  %v8227_v16 = vcombine.high %v8211_v13, %v8211_v13  ;;  %16125 = vst [vmem:[#allocation18_spill] sm:$0xff] %v16124_v55  ;;  %16128 = vst [vmem:[#allocation19_spill] sm:$0xff] %v16127_v59  ;;  %v8403_v61 = vsel %vm452_vm9, 1, %v15504_v3  ;;  %v334_v6 = vrot.slane %v8322_v38, %v8305_v33 }
  0x86   :  { %vm8415_vm2 = vcmp.eq.s32.totalorder %v235_v50, 1  ;;  %vm8419_vm15 = vcmp.eq.s32.totalorder %v281_v51, 1  ;;  %v506_v9 = vrot.slane %v8388_v56, %v8283_v28  ;;  %vm8429_vm10 = vcmp.eq.s32.totalorder %v416_v53, 1  ;;  %vm542_vm7 = vmand %vm8328_vm1, %vm8274_vm4 }
  0x87   :  { %257 = vrot.lane.b32.xlu0 %v226_v11, %s8050_s23  ;;  %392 = vrot.lane.b32.xlu1 %v226_v11, %s8051_s24  ;;  %v7230_v17 = vpack.i.bf16 %v8227_v16, %v8209_v12  ;;  %v16130_v7 = vsel %vm8415_vm2, 4294967295, %v16129_v7  ;;  %v16133_v8 = vsel %vm8419_vm15, 4294967295, %v16132_v8  ;;  %vm8443_vm5 = vcmp.eq.s32.totalorder %v371_v60, 1 }
  0x88   :  { %16131 = vst [vmem:[#allocation20_spill] sm:$0xff] %v16130_v7  ;;  %16134 = vst [vmem:[#allocation21_spill] sm:$0xff] %v16133_v8  ;;  %v16139_v21 = vsel %vm8443_vm5, 4294967295, %v16138_v21  ;;  %v243_v38 = vrot.slane %v8333_v40, %v8305_v33  ;;  %vm8469_vm6 = vcmp.eq.s32.totalorder %v330_v5, 1  ;;  %vm8473_vm12 = vcmp.eq.s32.totalorder %v334_v6, 1 }
  0x89   :  { %16140 = vst [vmem:[#allocation23_spill] sm:$0xff] %v16139_v21  ;;  %v16142_v20 = vsel %vm8469_vm6, 4294967295, %v16141_v20  ;;  %vm8481_vm11 = vcmp.eq.s32.totalorder %v322_v4, 1  ;;  %v289_v53 = vrot.slane %v8341_v41, %v8305_v33  ;;  %vm16150_vm9 = vcmask 1039360  }
  0x8a   :  { %16143 = vst [vmem:[#allocation24_spill] sm:$0xff] %v16142_v20  ;;  %v16148_v58 = vsel %vm8481_vm11, 4294967295, %v16147_v58  ;;  %vm16151_vm14 = vcmask 916480   ;;  %v16156_v34 = vmov 0 }
  0x8b   :  { %437 = vrot.lane.b32.xlu0 %v226_v11, %s8052_s25  ;;  %7191 = vrot.lane.b32.xlu1 %v7190_v15, %s8049_s22  ;;  %16149 = vst [vmem:[#allocation26_spill] sm:$0xff] %v16148_v58 }
  0x8f   :  { %7201 = vrot.lane.b32.xlu0 %v7190_v15, %s8050_s23  ;;  %7196 = vrot.lane.b32.xlu1 %v7190_v15, %s8048_s0 }
  0x93   :  { %7211 = vrot.lane.b32.xlu0 %v7190_v15, %s8052_s25  ;;  %7206 = vrot.lane.b32.xlu1 %v7190_v15, %s8051_s24 }
  0x97   :  { %7216 = vrot.lane.b32.xlu1 %v7190_v15, %s15578_s26  ;;  %7231 = vrot.lane.b32.xlu0 %v7230_v17, %s8048_s0 }
  0x9b   :  { %7221 = vrot.lane.b32.xlu1 %v7190_v15, %s8054_s27  ;;  %7236 = vrot.lane.b32.xlu0 %v7230_v17, %s8050_s23 }
  0x9f   :  { %527 = vrot.lane.b32.xlu0 %v226_v11, %s8054_s27  ;;  %7226 = vrot.lane.b32.xlu1 %v7230_v17, %s8049_s22 }
  0xa3   :  { %7256 = vrot.lane.b32.xlu0 %v7230_v17, %s15578_s26  ;;  %7241 = vrot.lane.b32.xlu1 %v7230_v17, %s8051_s24 }
  0xa7   :  { %7261 = vrot.lane.b32.xlu0 %v7230_v17, %s8054_s27  ;;  %7246 = vrot.lane.b32.xlu1 %v7230_v17, %s8052_s25 }
  0xab   :  { %7266 = vrot.lane.b32.xlu0 %v7230_v17, %s15588_s28  ;;  %482 = vrot.lane.b32.xlu1 %v226_v11, %s15578_s26  ;;  %v461_v17 = vrot.slane %v8403_v61, %v8283_v28 }
  0xad   :  { %vm8514_vm13 = vcmp.eq.s32.totalorder %v461_v17, 1 }
  0xaf   :  { %7251 = vrot.lane.b32.xlu1 %v7190_v15, %s15588_s28  ;;  %711 = vperm.xlu0 %7270, %v707_v18   ;;  %v16135_v15 = vmov 0  ;;  %v16159_v18 = vmov 0 }
  0xb0   :  { %v16136_v15 = vsel %vm8429_vm10, 4294967295, %v16135_v15 }
  0xb1   :  { %16137 = vst [vmem:[#allocation22_spill] sm:$0xff] %v16136_v15 }
  0xb3   :  { %572 = vrot.lane.b32.xlu1 %v226_v11, %s15588_s28  ;;  %v239_v11 = vrot.slane %v8333_v40, %v8302_v32 }
  0xb7   :  { %716 = vperm.xlu1 %7271, %v708_v19   ;;  %v16144_v19 = vmov 0 }
  0xb8   :  { %v16145_v19 = vsel %vm8473_vm12, 4294967295, %v16144_v19 }
  0xb9   :  { %16146 = vst [vmem:[#allocation25_spill] sm:$0xff] %v16145_v19 }
  0xf5   :  { %v8317_v36 = vpop.permute.xlu0 %347  ;;  %v8319_v37 = vpop.permute.xlu1 %302 }
  0xf9   :  { %v8362_v48 = vpop.permute.xlu0 %257  ;;  %v8364_v49 = vpop.permute.xlu1 %392 }
  0xfd   :  { %v8405_v62 = vpop.permute.xlu0 %437  ;;  %v8407_v63 = vpop.permute.xlu1 %7191 }
  0xfe   :  { %v15502_v42 = vunpack.i.h.bf16 %v8407_v63  ;;  %v15501_v43 = vunpack.i.l.bf16 %v8407_v63 }
 0x101   :  { %v8457_v45 = vpop.permute.xlu0 %7201  ;;  %v8459_v50 = vpop.permute.xlu1 %7196 }
 0x102   :  { %v15500_v60 = vunpack.i.h.bf16 %v8457_v45  ;;  %v15499_v22 = vunpack.i.l.bf16 %v8457_v45  ;;  %v7199_v40 = vunpack.i.h.bf16 %v8459_v50  ;;  %v7198_v1 = vunpack.i.l.bf16 %v8459_v50 }
 0x104   :  { %v261_v4 = vsel %vm16150_vm9, %v15499_v22, %v15500_v60  ;;  %v351_v51 = vsel %vm16151_vm14, %v7198_v1, %v7199_v40  ;;  %vm16152_vm9 = vcmask 1031168   ;;  %v16153_v60 = vmov 0 }
 0x105   :  { %v8503_v6 = vpop.permute.xlu0 %7211  ;;  %v8505_v50 = vpop.permute.xlu1 %7206  ;;  %v269_v5 = vsel %vm8415_vm2, %v261_v4, 0.0  ;;  %v306_v22 = vsel %vm16152_vm9, %v15501_v43, %v15502_v42  ;;  %v16154_v60 = vsel %vm8514_vm13, 4294967295, %v16153_v60  ;;  %v8526_v4 = vsel %vm542_vm7, 1, %v15504_v3 }
 0x106   :  { %16155 = vst [vmem:[#allocation27_spill] sm:$0xff] %v16154_v60  ;;  %v359_v35 = vsel %vm8396_vm0, %v351_v51, 0.0  ;;  %v15512_v43 = vunpack.i.h.bf16 %v8503_v6  ;;  %v15511_v17 = vunpack.i.l.bf16 %v8503_v6  ;;  %vm8534_vm14 = vcmp.eq.s32.totalorder %v506_v9, 1 }
 0x107   :  { %v16157_v34 = vsel %vm8534_vm14, 4294967295, %v16156_v34  ;;  %vm8538_vm2 = vcmp.eq.s32.totalorder %v231_v10, 1  ;;  %vm8542_vm7 = vcmp.eq.s32.totalorder %v239_v11, 1  ;;  %v16162_v3 = vmov 0 }
 0x108   :  { %16158 = vst [vmem:[#allocation28_spill] sm:$0xff] %v16157_v34  ;;  %v16160_v18 = vsel %vm8538_vm2, 4294967295, %v16159_v18  ;;  %v16163_v3 = vsel %vm8542_vm7, 4294967295, %v16162_v3  ;;  %v592_v51 = vrot.slane %v269_v5, 5  ;;  %v314_v9 = vsel %vm8419_vm15, %v306_v22, 0.0 }
 0x109   :  { %16161 = vst [vmem:[#allocation29_spill] sm:$0xff] %v16160_v18  ;;  %16164 = vst [vmem:[#allocation30_spill] sm:$0xff] %v16163_v3  ;;  %vm16165_vm9 = vcmask 900096   ;;  %v616_v31 = vrot.slane %v359_v35, 7  ;;  %v16166_v57 = vunpack.i.h.bf16 %v8505_v50  ;;  %v16167_v42 = vunpack.i.l.bf16 %v8505_v50  ;;  %v8566_v22 = vpop.permute.xlu1 %7216  ;;  %v7232_v39 = vpop.permute.xlu0 %7231 }
 0x10a   :  { %v441_v10 = vsel %vm16165_vm9, %v15511_v17, %v15512_v43  ;;  %vm16168_vm0 = vcmask 908288   ;;  %vm8570_vm9 = vcmp.eq.s32.totalorder %v243_v38, 1  ;;  %v16169_v17 = vmov 0 }
 0x10b   :  { %v396_v59 = vsel %vm16168_vm0, %v16167_v42, %v16166_v57  ;;  %v449_v7 = vsel %vm8429_vm10, %v441_v10, 0.0  ;;  %v16170_v17 = vsel %vm8570_vm9, 4294967295, %v16169_v17  ;;  %v7234_v43 = vunpack.i.h.bf16 %v7232_v39 }
 0x10c   :  { %16171 = vst [vmem:[#allocation31_spill] sm:$0xff] %v16170_v17  ;;  %v7233_v8 = vunpack.i.l.bf16 %v7232_v39  ;;  %v404_v57 = vsel %vm8443_vm5, %v396_v59, 0.0  ;;  %v604_v42 = vrot.slane %v314_v9, 2  ;;  %v16172_v38 = vsel %vm8354_vm3, %v8217_v14, 0.0 }
 0x10d   :  { %vm16173_vm0 = vcmask 1042432   ;;  %vm16174_vm10 = vcmask 916480   ;;  %v8591_v35 = vrot.slane %v449_v7, 1  ;;  %v16177_v59 = vrot.slane %v8341_v41, %v8286_v29 }
 0x10e   :  { %v673_v10 = vsel %vm16173_vm0, %v16172_v38, %v592_v51  ;;  %v352_v5 = vsel %vm16174_vm10, %v7199_v40, %v7234_v43  ;;  %vm16175_vm1 = vmmov %vm16174_vm10  ;;  %v16178_v9 = vmov 0  ;;  %vm8600_vm0 = vcmp.eq.s32.totalorder %v289_v53, 1 }
 0x10f   :  { %v353_v11 = vsel %vm16175_vm1, %v7234_v43, %v8317_v36  ;;  %vm16176_vm15 = vmmov %vm16175_vm1  ;;  %vm8596_vm5 = vcmp.eq.s32.totalorder %v16177_v59, 1  ;;  %v16181_v14 = vmov 0  ;;  %v16184_v40 = vunpack.i.h.bf16 %v8566_v22  ;;  %v7237_v43 = vpop.permute.xlu0 %7236 }
 0x110   :  { %v350_v39 = vsel %vm16176_vm15, %v7233_v8, %v7198_v1  ;;  %v16179_v9 = vsel %vm8596_vm5, 4294967295, %v16178_v9  ;;  %v16182_v14 = vsel %vm8600_vm0, 4294967295, %v16181_v14  ;;  %v16185_v51 = vunpack.i.l.bf16 %v8566_v22  ;;  %v8613_v8 = vpop.permute.xlu1 %7221 }
 0x111   :  { %16180 = vst [vmem:[#allocation32_spill] sm:$0xff] %v16179_v9  ;;  %16183 = vst [vmem:[#allocation33_spill] sm:$0xff] %v16182_v14  ;;  %vm16186_vm1 = vcmask 785408   ;;  %v360_v1 = vsel %vm8469_vm6, %v352_v5, 0.0  ;;  %v361_v7 = vsel %vm8473_vm12, %v353_v11, 0.0  ;;  %v628_v38 = vrot.slane %v404_v57, 4 }
 0x112   :  { %v486_v36 = vsel %vm16186_vm1, %v16185_v51, %v16184_v40  ;;  %v358_v53 = vsel %vm8481_vm11, %v350_v39, 0.0  ;;  %vm16187_vm10 = vcmask 1045504   ;;  %vm16188_vm15 = vcmask 1040384  }
 0x113   :  { %v678_v15 = vsel %vm16187_vm10, %v673_v10, %v604_v42  ;;  %v683_v21 = vsel %vm16188_vm15, %v604_v42, %v616_v31  ;;  %v16189_v40 = vrot.slane %v8371_v52, %v8302_v32  ;;  %v16190_v5 = vmov 0  ;;  %v528_v46 = vpop.permute.xlu0 %527 }
 0x114   :  { %v16193_v11 = vrot.slane %v8403_v61, %v8286_v29  ;;  %v16194_v57 = vmov 0  ;;  %v16197_v39 = vrot.slane %v8403_v61, %v8302_v32  ;;  %v16198_v10 = vmov 0  ;;  %v7227_v60 = vpop.permute.xlu1 %7226 }
 0x115   :  { %vm8623_vm1 = vcmp.eq.s32.totalorder %v16189_v40, 1  ;;  %v7239_v42 = vunpack.i.h.bf16 %v7237_v43  ;;  %v7238_v51 = vunpack.i.l.bf16 %v7237_v43  ;;  %vm16201_vm15 = vcmask 1043456  }
 0x116   :  { %v16191_v5 = vsel %vm8623_vm1, 4294967295, %v16190_v5  ;;  %vm8630_vm6 = vcmp.eq.s32.totalorder %v16193_v11, 1  ;;  %vm8637_vm10 = vcmp.eq.s32.totalorder %v16197_v39, 1  ;;  %v687_v40 = vsel %vm16201_vm15, %v683_v21, %v628_v38 }
 0x117   :  { %16192 = vst [vmem:[#allocation34_spill] sm:$0xff] %v16191_v5  ;;  %v16195_v57 = vsel %vm8630_vm6, 4294967295, %v16194_v57  ;;  %v16199_v10 = vsel %vm8637_vm10, 4294967295, %v16198_v10  ;;  %v16202_v59 = vrot.slane %v8371_v52, %v8286_v29  ;;  %v16203_v11 = vmov 0  ;;  %v7257_v34 = vpop.permute.xlu0 %7256 }
 0x118   :  { %16196 = vst [vmem:[#allocation35_spill] sm:$0xff] %v16195_v57  ;;  %16200 = vst [vmem:[#allocation36_spill] sm:$0xff] %v16199_v10  ;;  %v8650_v58 = vrot.slane %v360_v1, 7  ;;  %v8652_v20 = vrot.slane %v361_v7, 7  ;;  %vm16206_vm12 = vcmask 1046528   ;;  %v494_v31 = vsel %vm8514_vm13, %v486_v36, 0.0 }
 0x119   :  { %vm8646_vm11 = vcmp.eq.s32.totalorder %v16202_v59, 1  ;;  %v692_v39 = vsel %vm16206_vm12, %v687_v40, %v8591_v35  ;;  %v16207_v43 = vunpack.i.h.bf16 %v8613_v8  ;;  %v16208_v21 = vunpack.i.l.bf16 %v8613_v8 }
 0x11a   :  { %v16204_v11 = vsel %vm8646_vm11, 4294967295, %v16203_v11  ;;  %vm16209_vm15 = vcmask 777216   ;;  %v16210_v59 = vunpack.i.h.bf16 %v8457_v45  ;;  %vm16211_vm3 = vcmask 1039360  }
 0x11b   :  { %16205 = vst [vmem:[#allocation37_spill] sm:$0xff] %v16204_v11  ;;  %v531_v38 = vsel %vm16209_vm15, %v16208_v21, %v16207_v43  ;;  %vm16212_vm4 = vmmov %vm16211_vm3  ;;  %v16213_v7 = vunpack.i.l.bf16 %v8457_v45  ;;  %v6906_v21 = vpack.c.bf16 %v692_v39, %v678_v15  ;;  %v16219_v45 = vrot.slane %v8388_v56, %v8302_v32 }
 0x11c   :  { %v262_v19 = vsel %vm16211_vm3, %v16210_v59, %v7239_v42  ;;  %v263_v1 = vsel %vm16212_vm4, %v7239_v42, %v8362_v48  ;;  %vm16214_vm11 = vmmov %vm16211_vm3  ;;  %v539_v36 = vsel %vm8534_vm14, %v531_v38, 0.0  ;;  %v16215_v59 = vrot.slane %v8388_v56, %v8286_v29 }
 0x11d   :  { %v260_v40 = vsel %vm16214_vm11, %v7238_v51, %v16213_v7  ;;  %v270_v27 = vsel %vm8542_vm7, %v262_v19, 0.0  ;;  %v16216_v48 = vmov 0  ;;  %vm8687_vm11 = vcmp.eq.s32.totalorder %v16219_v45, 1  ;;  %6907 = vmatprep.subr.bf16.mxu0 %v6906_v21 }
 0x11e   :  { %v268_v43 = vsel %vm8538_vm2, %v260_v40, 0.0  ;;  %vm8680_vm12 = vcmp.eq.s32.totalorder %v16215_v59, 1  ;;  %v16220_v42 = vmov 0  ;;  %v16223_v19 = vrot.slane %v8388_v56, %v8305_v33 }
 0x11f   :  { %v16217_v48 = vsel %vm8680_vm12, 4294967295, %v16216_v48  ;;  %v16221_v42 = vsel %vm8687_vm11, 4294967295, %v16220_v42  ;;  %v16224_v51 = vmov 0  ;;  %v8698_v15 = vrot.slane %v358_v53, 7 }
 0x120   :  { %16218 = vst [vmem:[#allocation38_spill] sm:$0xff] %v16217_v48  ;;  %16222 = vst [vmem:[#allocation39_spill] sm:$0xff] %v16221_v42  ;;  %vm8694_vm4 = vcmp.eq.s32.totalorder %v16223_v19, 1  ;;  %v8700_v39 = vrot.slane %v539_v36, 3  ;;  %v7229_v38 = vunpack.i.h.bf16 %v7227_v60  ;;  %v7228_v7 = vunpack.i.l.bf16 %v7227_v60 }
 0x121   :  { %v16225_v51 = vsel %vm8694_vm4, 4294967295, %v16224_v51  ;;  %v8702_v40 = vrot.slane %v494_v31, 6  ;;  %v16227_v59 = vrot.slane %v8346_v44, %v8286_v29  ;;  %v16228_v45 = vmov 0 }
 0x122   :  { %16226 = vst [vmem:[#allocation40_spill] sm:$0xff] %v16225_v51  ;;  %v591_v56 = vrot.slane %v268_v43, 5  ;;  %v271_v19 = vsel %vm8570_vm9, %v263_v1, 0.0  ;;  %v8713_v53 = vrot.slane %v270_v27, 5  ;;  %v16231_v36 = vunpack.i.h.bf16 %v8407_v63 }
 0x123   :  { %vm8707_vm3 = vcmp.eq.s32.totalorder %v16227_v59, 1  ;;  %vm16232_vm15 = vcmask 1031168   ;;  %v16233_v31 = vunpack.i.l.bf16 %v8407_v63  ;;  %v7242_v59 = vpop.permute.xlu1 %7241  ;;  %v16235_v18 = vrot.slane %v8403_v61, %v8305_v33 }
 0x124   :  { %v16229_v45 = vsel %vm8707_vm3, 4294967295, %v16228_v45  ;;  %v8718_v60 = vsel %vm16232_vm15, %v16231_v36, %v7229_v38  ;;  %vm16234_vm14 = vmmov %vm16232_vm15  ;;  %v16236_v43 = vmov 0  ;;  %v16240_v1 = vrot.slane %v8371_v52, %v8305_v33 }
 0x125   :  { %16230 = vst [vmem:[#allocation41_spill] sm:$0xff] %v16229_v45  ;;  %v305_v21 = vsel %vm16234_vm14, %v7228_v7, %v16233_v31  ;;  %vm8726_vm13 = vcmp.eq.s32.totalorder %v16235_v18, 1  ;;  %vm16239_vm9 = vmmov %vm16234_vm14  ;;  %v16241_v63 = vmov 0  ;;  %v594_v7 = vrot.slane %v271_v19, 5 }
 0x126   :  { %v16237_v43 = vsel %vm8726_vm13, 4294967295, %v16236_v43  ;;  %v8732_v27 = vsel %vm16239_vm9, %v7229_v38, %v8319_v37  ;;  %vm8737_vm15 = vcmp.eq.s32.totalorder %v16240_v1, 1  ;;  %v7259_v36 = vunpack.i.h.bf16 %v7257_v34 }
 0x127   :  { %16238 = vst [vmem:[#allocation42_spill] sm:$0xff] %v16237_v43  ;;  %v16242_v63 = vsel %vm8737_vm15, 4294967295, %v16241_v63  ;;  %v7258_v31 = vunpack.i.l.bf16 %v7257_v34  ;;  %v7244_v17 = vunpack.i.h.bf16 %v7242_v59  ;;  %v7243_v61 = vunpack.i.l.bf16 %v7242_v59 }
 0x128   :  { %16243 = vst [vmem:[#allocation43_spill] sm:$0xff] %v16242_v63  ;;  %v313_v18 = vsel %vm8596_vm5, %v305_v21, 0.0  ;;  %v16244_v37 = vsel %vm8358_vm8, %v8209_v12, 0.0  ;;  %vm16245_vm14 = vcmask 1042432   ;;  %v316_v52 = vsel %vm8600_vm0, %v8732_v27, 0.0 }
 0x129   :  { %v672_v38 = vsel %vm16245_vm14, %v16244_v37, %v591_v56  ;;  %v16246_v19 = vrot.slane %v8346_v44, %v8305_v33  ;;  %v16247_v34 = vmov 0  ;;  %vm16250_vm2 = vnez %v16121_v54  ;;  %vm16252_vm5 = vmmov %vm16245_vm14 }
 0x12a   :  { %v16251_v21 = vsel %vm16250_vm2, %v8227_v16, 0.0  ;;  %v16253_v12 = vunpack.i.h.bf16 %v8566_v22  ;;  %vm16254_vm14 = vcmask 785408   ;;  %v16255_v27 = vunpack.i.l.bf16 %v8566_v22  ;;  %v7247_v22 = vpop.permute.xlu1 %7246 }
 0x12b   :  { %vm8754_vm9 = vcmp.eq.s32.totalorder %v16246_v19, 1  ;;  %v8763_v59 = vsel %vm16252_vm5, %v16251_v21, %v594_v7  ;;  %vm16256_vm0 = vmmov %vm16254_vm14  ;;  %v16257_v37 = vunpack.i.h.bf16 %v8505_v50  ;;  %vm16258_vm7 = vcmask 908288  }
 0x12c   :  { %v16248_v34 = vsel %vm8754_vm9, 4294967295, %v16247_v34  ;;  %v487_v56 = vsel %vm16254_vm14, %v16253_v12, %v7259_v36  ;;  %v485_v1 = vsel %vm16256_vm0, %v7258_v31, %v16255_v27  ;;  %vm16259_vm8 = vmmov %vm16258_vm7  ;;  %v16260_v7 = vunpack.i.l.bf16 %v8505_v50  ;;  %v7262_v12 = vpop.permute.xlu0 %7261 }
 0x12d   :  { %16249 = vst [vmem:[#allocation44_spill] sm:$0xff] %v16248_v34  ;;  %v8774_v19 = vsel %vm16258_vm7, %v16257_v37, %v7244_v17  ;;  %v398_v14 = vsel %vm16259_vm8, %v7244_v17, %v8364_v49  ;;  %vm16261_vm5 = vmmov %vm16258_vm7  ;;  %v493_v31 = vsel %vm8630_vm6, %v485_v1, 0.0  ;;  %v495_v27 = vsel %vm8637_vm10, %v487_v56, 0.0 }
 0x12e   :  { %v395_v21 = vsel %vm16261_vm5, %v7243_v61, %v16260_v7  ;;  %vm16262_vm0 = vnez %v16204_v11  ;;  %v7264_v17 = vunpack.i.h.bf16 %v7262_v12  ;;  %v7263_v37 = vunpack.i.l.bf16 %v7262_v12 }
 0x12f   :  { %v403_v49 = vsel %vm16262_vm0, %v395_v21, 0.0  ;;  %v7249_v54 = vunpack.i.h.bf16 %v7247_v22  ;;  %v16263_v50 = vrot.slane %v8341_v41, %v8302_v32  ;;  %v16264_v61 = vmov 0 }
 0x130   :  { %v16267_v1 = vrot.slane %v8346_v44, %v8302_v32  ;;  %v16268_v7 = vmov 0  ;;  %v7248_v56 = vunpack.i.l.bf16 %v7247_v22  ;;  %v8804_v16 = vrot.slane %v493_v31, 6 }
 0x131   :  { %vm8793_vm8 = vcmp.eq.s32.totalorder %v16263_v50, 1  ;;  %v8806_v21 = vrot.slane %v495_v27, 6  ;;  %v603_v12 = vrot.slane %v313_v18, 2  ;;  %v16271_v10 = vunpack.i.h.bf16 %v8613_v8  ;;  %v483_v27 = vpop.permute.xlu1 %482 }
 0x132   :  { %v16265_v61 = vsel %vm8793_vm8, 4294967295, %v16264_v61  ;;  %vm8800_vm14 = vcmp.eq.s32.totalorder %v16267_v1, 1  ;;  %vm16272_vm5 = vcmask 777216   ;;  %v16274_v57 = vunpack.i.l.bf16 %v8613_v8  ;;  %v7267_v8 = vpop.permute.xlu0 %7266 }
 0x133   :  { %16266 = vst [vmem:[#allocation45_spill] sm:$0xff] %v16265_v61  ;;  %v16269_v7 = vsel %vm8800_vm14, 4294967295, %v16268_v7  ;;  %v532_v41 = vsel %vm16272_vm5, %v16271_v10, %v7264_v17  ;;  %vm16273_vm7 = vmmov %vm16272_vm5  ;;  %v16276_v1 = vunpack.i.h.bf16 %v8503_v6  ;;  %vm16277_vm6 = vcmask 900096  }
 0x134   :  { %16270 = vst [vmem:[#allocation46_spill] sm:$0xff] %v16269_v7  ;;  %v533_v50 = vsel %vm16273_vm7, %v7264_v17, %v528_v46  ;;  %vm16275_vm10 = vmmov %vm16272_vm5  ;;  %v540_v22 = vsel %vm8687_vm11, %v532_v41, 0.0  ;;  %v16278_v10 = vunpack.i.l.bf16 %v8503_v6  ;;  %v16281_v17 = vmov 0 }
 0x135   :  { %v530_v44 = vsel %vm16275_vm10, %v7263_v37, %v16274_v57  ;;  %v442_v11 = vsel %vm16277_vm6, %v16276_v1, %v7249_v54  ;;  %v541_v18 = vsel %vm8694_vm4, %v533_v50, 0.0  ;;  %vm16279_vm7 = vmmov %vm16277_vm6  ;;  %v16280_v57 = vrot.slane %v8526_v4, %v8305_v33  ;;  %v7252_v9 = vpop.permute.xlu1 %7251 }
 0x136   :  { %v538_v31 = vsel %vm8680_vm12, %v530_v44, 0.0  ;;  %v440_v46 = vsel %vm16279_vm7, %v7248_v56, %v16278_v10  ;;  %v16284_v37 = vrot.slane %v8526_v4, %v8283_v28  ;;  %v16285_v41 = vmov 0 }
 0x137   :  { %vm8830_vm10 = vcmp.eq.s32.totalorder %v16280_v57, 1  ;;  %v8841_v50 = vrot.slane %v540_v22, 3  ;;  %v8843_v6 = vrot.slane %v538_v31, 3  ;;  %v7269_v56 = vunpack.i.h.bf16 %v7267_v8 }
 0x138   :  { %v16282_v17 = vsel %vm8830_vm10, 4294967295, %v16281_v17  ;;  %vm8837_vm6 = vcmp.eq.s32.totalorder %v16284_v37, 1  ;;  %v7268_v44 = vunpack.i.l.bf16 %v7267_v8  ;;  %v16288_v1 = vrot.slane %v8526_v4, %v8286_v29 }
 0x139   :  { %16283 = vst [vmem:[#allocation47_spill] sm:$0xff] %v16282_v17  ;;  %v16286_v41 = vsel %vm8837_vm6, 4294967295, %v16285_v41  ;;  %v16289_v10 = vmov 0  ;;  %vm16292_vm4 = vcmask 785408   ;;  %v448_v37 = vsel %vm8707_vm3, %v440_v46, 0.0 }
 0x13a   :  { %16287 = vst [vmem:[#allocation48_spill] sm:$0xff] %v16286_v41  ;;  %vm8848_vm7 = vcmp.eq.s32.totalorder %v16288_v1, 1  ;;  %v488_v57 = vsel %vm16292_vm4, %v7259_v36, %v483_v27  ;;  %v627_v51 = vrot.slane %v403_v49, 4  ;;  %vm16293_vm11 = vcmask 1045504  }
 0x13b   :  { %v16290_v10 = vsel %vm8848_vm7, 4294967295, %v16289_v10  ;;  %v677_v22 = vsel %vm16293_vm11, %v672_v38, %v603_v12  ;;  %v496_v31 = vsel %vm8726_vm13, %v488_v57, 0.0  ;;  %v639_v8 = vrot.slane %v448_v37, 1 }
 0x13c   :  { %16291 = vst [vmem:[#allocation49_spill] sm:$0xff] %v16290_v10  ;;  %vm16294_vm5 = vcmask 1040384   ;;  %v406_v1 = vsel %vm8737_vm15, %v398_v14, 0.0  ;;  %v654_v48 = vrot.slane %v496_v31, 6  ;;  %vm16295_vm4 = vcmask 1043456  }
 0x13d   :  { %v682_v42 = vsel %vm16294_vm5, %v603_v12, %v8698_v15  ;;  %vm16296_vm3 = vcmask 900096   ;;  %v606_v46 = vrot.slane %v316_v52, 2  ;;  %v16297_v38 = vrot.slane %v8526_v4, %v8302_v32 }
 0x13e   :  { %v686_v36 = vsel %vm16295_vm4, %v682_v42, %v627_v51  ;;  %v443_v49 = vsel %vm16296_vm3, %v7249_v54, %v8405_v62  ;;  %v16298_v27 = vmov 0  ;;  %v7254_v57 = vunpack.i.h.bf16 %v7252_v9 }
 0x13f   :  { %vm8868_vm11 = vcmp.eq.s32.totalorder %v16297_v38, 1  ;;  %v7253_v15 = vunpack.i.l.bf16 %v7252_v9  ;;  %vm16301_vm5 = vcmask 1046528   ;;  %v451_v14 = vsel %vm8754_vm9, %v443_v49, 0.0 }
 0x140   :  { %v16299_v27 = vsel %vm8868_vm11, 4294967295, %v16298_v27  ;;  %v691_v12 = vsel %vm16301_vm5, %v686_v36, %v639_v8  ;;  %v630_v42 = vrot.slane %v406_v1, 4  ;;  %v642_v51 = vrot.slane %v451_v14, 1  ;;  %v573_v36 = vpop.permute.xlu1 %572 }
 0x141   :  { %16300 = vst [vmem:[#allocation50_spill] sm:$0xff] %v16299_v27  ;;  %v6908_v37 = vpack.c.bf16 %v691_v12, %v677_v22  ;;  %vm16302_vm3 = vcmask 1045504   ;;  %vm16303_vm4 = vcmask 769024   ;;  %vm16306_vm15 = vcmask 1040384  }
 0x142   :  { %v680_v54 = vsel %vm16302_vm3, %v8763_v59, %v606_v46  ;;  %v577_v62 = vsel %vm16303_vm4, %v7254_v57, %v7269_v56  ;;  %vm16304_vm12 = vmmov %vm16303_vm4  ;;  %v685_v9 = vsel %vm16306_vm15, %v606_v46, %v8652_v20  ;;  %vm16307_vm5 = vcmask 1043456  }
 0x143   :  { %v575_v4 = vsel %vm16304_vm12, %v7268_v44, %v7253_v15  ;;  %vm16305_vm13 = vmmov %vm16303_vm4  ;;  %6909 = vmatpush1.bf16.msra.mxu0 %v6908_v37  ;;  %v689_v31 = vsel %vm16307_vm5, %v685_v9, %v630_v42  ;;  %v315_v22 = vsel %vm8793_vm8, %v8718_v60, 0.0  ;;  %v450_v1 = vsel %vm8800_vm14, %v442_v11, 0.0 }
 0x144   :  { %v576_v52 = vsel %vm16305_vm13, %v7253_v15, %v7254_v57  ;;  %v16308_v59 = vsel %vm8623_vm1, %v8774_v19, 0.0  ;;  %vm16309_vm13 = vcmask 1046528   ;;  %v605_v38 = vrot.slane %v315_v22, 2  ;;  %vm16313_vm3 = vmmov %vm16303_vm4 }
 0x145   :  { %v629_v44 = vrot.slane %v16308_v59, 4  ;;  %v694_v49 = vsel %vm16309_vm13, %v689_v31, %v642_v51  ;;  %v641_v20 = vrot.slane %v450_v1, 1  ;;  %vm16310_vm12 = vnez %v16124_v55 }
 0x146   :  { %v16311_v46 = vsel %vm16310_vm12, %v8211_v13, 0.0  ;;  %vm16312_vm15 = vcmask 1042432   ;;  %v6916_v57 = vpack.c.bf16 %v694_v49, %v680_v54  ;;  %v666_v15 = vrot.slane %v541_v18, 3 }
 0x147   :  { %v674_v60 = vsel %vm16312_vm15, %v16311_v46, %v8713_v53  ;;  %v578_v11 = vsel %vm16313_vm3, %v7269_v56, %v573_v36  ;;  %vm16314_vm4 = vcmask 1041408   ;;  %vm16315_vm5 = vcmask 1045504  }
 0x148   :  { %v699_v12 = vsel %vm16314_vm4, %v642_v51, %v654_v48  ;;  %v679_v19 = vsel %vm16315_vm5, %v674_v60, %v605_v38  ;;  %vm16316_vm1 = vcmask 1040384   ;;  %v586_v37 = vsel %vm8830_vm10, %v578_v11, 0.0  ;;  %6917 = vmatprep.subr.bf16.mxu1 %v6916_v57  ;;  %vm16319_vm3 = vmmov %vm16314_vm4 }
 0x149   :  { %v684_v14 = vsel %vm16316_vm1, %v605_v38, %v8650_v58  ;;  %v584_v42 = vsel %vm8837_vm6, %v576_v52, 0.0  ;;  %vm16317_vm13 = vcmask 1043456   ;;  %vm16318_vm15 = vcmask 1044480  }
 0x14a   :  { %v688_v13 = vsel %vm16317_vm13, %v684_v14, %v629_v44  ;;  %v704_v53 = vsel %vm16318_vm15, %v699_v12, %v666_v15  ;;  %v697_v48 = vsel %vm16319_vm3, %v8591_v35, %v8702_v40  ;;  %v583_v18 = vsel %vm8848_vm7, %v575_v4, 0.0  ;;  %vm16321_vm1 = vmmov %vm16318_vm15 }
 0x14b   :  { %vm16320_vm4 = vcmask 1046528   ;;  %v6920_v56 = vpack.c.bf16 %v586_v37, %v704_v53  ;;  %v702_v51 = vsel %vm16321_vm1, %v697_v48, %v8700_v39  ;;  %vm8056_vm5 = vmmov 1   ;;  %vm16325_vm13 = vmmov %vm16319_vm3 }
 0x14c   :  { %v693_v58 = vsel %vm16320_vm4, %v688_v13, %v641_v20  ;;  %vm16322_vm10 = vcmask 1042432   ;;  %v696_v52 = vsel %vm16325_vm13, %v639_v8, %v8804_v16  ;;  %v6910_v35 = vpack.c.bf16 %v584_v42, %v702_v51  ;;  %vm16326_vm15 = vmmov %vm16321_vm1 }
 0x14d   :  { %vm8919_vm6 = vmpackc.low %vm16322_vm10, %vm8056_vm5  ;;  %v6918_v9 = vpack.c.bf16 %v693_v58, %v679_v19  ;;  %v701_v40 = vsel %vm16326_vm15, %v696_v52, %v8843_v6  ;;  %v585_v31 = vsel %vm8868_vm11, %v577_v62, 0.0  ;;  %v698_v39 = vsel %vm16319_vm3, %v641_v20, %v8806_v21  ;;  %v705_v6 = vld [vmem:[%s15473_s3] sm:$0xff]  ;;  %v706_v62 = vld [vmem:[%s15473_s3 + $0x8] sm:$0xff]  ;;  %s8072_s3 = smov 104  }
 0x14e   :  { %v6913_v4 = vpack.c.bf16 %v583_v18, %v701_v40  ;;  %6912 = vmatprep.subr.msk.bf16.mxu0 %vm8919_vm6, %v6910_v35  ;;  %vm16327_vm10 = vmmov %vm16321_vm1  ;;  %vm15699_vm4 = vcmask 220160   ;;  %v16328_v21 = vmov 0.0   ;;  %v48_v1 = vcombine.high %v8199_v2, %v8199_v2 }
 0x14f   :  { %6919 = vmatpush1.bf16.msra.mxu1 %v6918_v9  ;;  %v703_v16 = vsel %vm16327_vm10, %v698_v39, %v8841_v50  ;;  %v47_v50 = vcombine.high %v8188_v0, %v8188_v0 }
 0x150   :  { %6915 = vmatpush1.bf16.msk.msra.mxu0 %vm8919_vm6, %v6913_v4  ;;  %6922 = vmatprep.subr.msk.bf16.mxu1 %vm8919_vm6, %v6920_v56  ;;  %v6923_v8 = vpack.c.bf16 %v585_v31, %v703_v16 }
 0x153   :  { %6925 = vmatpush1.bf16.msk.msra.mxu1 %vm8919_vm6, %v6923_v8  ;;  %6840 = vmatmul.mubr.msk.f32.vlgmr.msra.gmra.mrb[0].mxu0 %vm15699_vm4, %v705_v6  ;;  %vm16329_vm6 = vcmask 1043456  }
 0x154   :  { %808 = vmatprep.mubr.f32.mxu0 %v16328_v21  ;;  %v52_v22 = vsel %vm16329_vm6, %v8188_v0, -inf  ;;  %vm16330_vm1 = vmmov %vm16329_vm6 }
 0x155   :  { %v66_v59 = vsel %vm16330_vm1, %v8199_v2, -inf  ;;  %v53_v44 = vrot.slane %v52_v22, 4  ;;  %vm16331_vm5 = vmmov %vm16330_vm1 }
 0x156   :  { %6844 = vmatmul.mubr.msk.f32.vlgmr.msra.gmra.mrb[0].mxu1 %vm15699_vm4, %v705_v6  ;;  %v67_v36 = vrot.slane %v66_v59, 4  ;;  %v59_v49 = vsel %vm16331_vm5, %v47_v50, -inf  ;;  %vm16332_vm13 = vmmov %vm16330_vm1 }
 0x157   :  { %6841 = vmatmul.mubr.msk.f32.gmra.mrb[2].mxu0 %vm15699_vm4, %v706_v62  ;;  %885 = vmatprep.mubr.f32.mxu1 %v16328_v21  ;;  %v73_v38 = vsel %vm16332_vm13, %v48_v1, -inf  ;;  %v54_v20 = vmax.f32 %v52_v22, %v53_v44  ;;  %v60_v46 = vrot.slane %v59_v49, 4  ;;  %vm16333_vm15 = vmmov %vm16330_vm1 }
 0x158   :  { %1061 = vmatprep.mubr.f32.mxu0 %v16328_v21  ;;  %v68_v60 = vmax.f32 %v66_v59, %v67_v36  ;;  %v74_v57 = vrot.slane %v73_v38, 4  ;;  %v80_v14 = vsel %vm16333_vm15, %v8188_v0, 0.0  ;;  %vm16334_vm3 = vmmov %vm16330_vm1 }
 0x159   :  { %v55_v15 = vrot.slane %v54_v20, 2  ;;  %v61_v11 = vmax.f32 %v59_v49, %v60_v46  ;;  %v94_v48 = vsel %vm16334_vm3, %v8199_v2, 0.0  ;;  %v81_v18 = vrot.slane %v80_v14, 4  ;;  %vm16335_vm10 = vmmov %vm16330_vm1 }
 0x15a   :  { %6845 = vmatmul.mubr.msk.f32.gmra.mrb[2].mxu1 %vm15699_vm4, %v706_v62  ;;  %v69_v12 = vrot.slane %v68_v60, 2  ;;  %v75_v19 = vmax.f32 %v73_v38, %v74_v57  ;;  %v95_v52 = vrot.slane %v94_v48, 4  ;;  %v87_v9 = vsel %vm16335_vm10, %v47_v50, 0.0  ;;  %vm16336_vm6 = vmmov %vm16330_vm1 }
 0x15b   :  { %1132 = vmatprep.mubr.f32.mxu1 %v16328_v21  ;;  %v56_v37 = vmax.f32 %v54_v20, %v55_v15  ;;  %v62_v42 = vrot.slane %v61_v11, 2  ;;  %v101_v35 = vsel %vm16336_vm6, %v48_v1, 0.0  ;;  %v82_v40 = vadd.f32 %v81_v18, %v80_v14  ;;  %vm16338_vm5 = vmmov %vm16334_vm3 }
 0x15c   :  { %v70_v13 = vmax.f32 %v68_v60, %v69_v12  ;;  %v76_v53 = vrot.slane %v75_v19, 2  ;;  %v88_v16 = vrot.slane %v87_v9, 4  ;;  %v96_v6 = vadd.f32 %v95_v52, %v94_v48 }
 0x15d   :  { %v57_v58 = vrot.slane %v56_v37, 1  ;;  %v63_v56 = vmax.f32 %v61_v11, %v62_v42  ;;  %v102_v8 = vrot.slane %v101_v35, 4  ;;  %v8057_v62 = vmov 1966171168  }
 0x15e   :  { %v71_v51 = vrot.slane %v70_v13, 1  ;;  %v77_v54 = vmax.f32 %v75_v19, %v76_v53  ;;  %v1151_v22 = vunpack.c.l.s4 %v8057_v62  ;;  %v83_v49 = vrot.slane %v82_v40, 2 }
 0x15f   :  { %v58_v4 = vmax.f32 %v56_v37, %v57_v58  ;;  %v64_v0 = vrot.slane %v63_v56, 1  ;;  %v89_v38 = vadd.f32 %v88_v16, %v87_v9  ;;  %v97_v50 = vrot.slane %v96_v6, 2 }
 0x160   :  { %v72_v31 = vmax.f32 %v70_v13, %v71_v51  ;;  %v78_v39 = vrot.slane %v77_v54, 1  ;;  %v1152_v36 = vunpack.c.0.s8 %v1151_v22  ;;  %v103_v20 = vadd.f32 %v102_v8, %v101_v35 }
 0x161   :  { %v65_v21 = vmax.f32 %v63_v56, %v64_v0  ;;  %v84_v57 = vadd.f32 %v83_v49, %v82_v40  ;;  %v90_v15 = vrot.slane %v89_v38, 2  ;;  %v98_v11 = vadd.f32 %v97_v50, %v96_v6 }
 0x162   :  { %v79_v2 = vmax.f32 %v77_v54, %v78_v39  ;;  %v8972_v1 = vsub.s32 %v1152_v36, %v8268_v25  ;;  %v104_v12 = vrot.slane %v103_v20, 2  ;;  %v712_v39 = vpop.permute.xlu0 %711  ;;  %vm1141_vm1 = vcmask 64516  }
 0x163   :  { %v1148_v59 = vcombine.low %v58_v4, %v65_v21  ;;  %v85_v14 = vrot.slane %v84_v57, 1  ;;  %v91_v37 = vadd.f32 %v90_v15, %v89_v38  ;;  %v99_v42 = vrot.slane %v98_v11, 1  ;;  %vm1142_vm13 = vmor %vm1141_vm1, %vm16338_vm5 }
 0x164   :  { %v1149_v44 = vcombine.low %v72_v31, %v79_v2  ;;  %16337 = vst [vmem:[#allocation51_spill] sm:$0xff] %v8972_v1  ;;  %v105_v13 = vadd.f32 %v104_v12, %v103_v20  ;;  %v717_v2 = vpop.permute.xlu1 %716  ;;  %vm1175_vm10 = vcmask 556032   ;;  %vm15698_vm1 = vcmask 130048  }
 0x165   :  { %v1156_v46 = vrot.slane %v1148_v59, %v8972_v1  ;;  %v86_v53 = vadd.f32 %v85_v14, %v84_v57  ;;  %v92_v48 = vrot.slane %v91_v37, 1  ;;  %v100_v18 = vadd.f32 %v99_v42, %v98_v11 }
 0x166   :  { %v1163_v60 = vrot.slane %v1149_v44, %v8972_v1  ;;  %v106_v58 = vrot.slane %v105_v13, 1 }
 0x167   :  { %v93_v56 = vadd.f32 %v92_v48, %v91_v37  ;;  %v109_v51 = vmul.f32 0.25, %v86_v53  ;;  %v111_v54 = vmul.f32 0.25, %v100_v18  ;;  %v9006_v53 = vld [vmem:[%s15479_s9] sm:$0x7] }
 0x168   :  { %v1164_v19 = vcombine.low %v1156_v46, %v1163_v60  ;;  %v107_v25 = vadd.f32 %v106_v58, %v105_v13  ;;  %v2184_v48 = vrot.slane %v9006_v53, %v8286_v29  ;;  %v9018_v58 = vld [vmem:[#allocation3] sm:$0xff] }
 0x169   :  { %v110_v52 = vmul.f32 0.25, %v93_v56  ;;  %16339 = vst [vmem:[#allocation52_spill] sm:$0xff] %v9018_v58  ;;  %1143 = vst.msk [vmem:[#allocation3 + $0x10] sm:$0xff] %vm1142_vm13, %v9018_v58 }
 0x16a   :  { %v112_v9 = vmul.f32 0.25, %v107_v25  ;;  %v1171_v13 = vrot.slane %v1164_v19, %v8972_v1  ;;  %v3550_v19 = vrot.slane %v9006_v53, %v8283_v28 }
 0x16b   :  { %v1187_v35 = vcombine.low %v109_v51, %v110_v52  ;;  %v16340_v51 = vlaneseq }
 0x16c   :  { %v1188_v40 = vcombine.low %v111_v54, %v112_v9 }
 0x16d   :  { %v1195_v4 = vrot.slane %v1187_v35, %v8972_v1  ;;  %vm1179_vm15 = vcmp.ge.s32.totalorder %v16340_v51, 68  ;;  %vm1180_vm3 = vcmp.lt.s32.totalorder %v16340_v51, 580 }
 0x16e   :  { %v1202_v0 = vrot.slane %v1188_v40, %v8972_v1  ;;  %vm9036_vm6 = vmand %vm1179_vm15, %vm1180_vm3 }
 0x170   :  { %v1203_v31 = vcombine.low %v1195_v4, %v1202_v0  ;;  %v9341_v63 = vld [vmem:[#allocation3 + $0x14] sm:$0xf] }
 0x172   :  { %v1210_v18 = vrot.slane %v1203_v31, %v8972_v1 }
 0x226   :  { %v804_v16 = vpop.f32.mrb[0].mxu0 }
 0x227   :  { %v8978_v6 = vadd.f32 %v804_v16, %v712_v39  ;;  %v806_v8 = vpop.f32.mrb[1].mxu0 }
 0x228   :  { %v8980_v21 = vadd.f32 %v806_v8, %v712_v39 }
 0x229   :  { %v881_v62 = vpop.f32.mrb[0].mxu1 }
 0x22a   :  { %v892_v22 = vadd.f32 %v8980_v21, %v8978_v6  ;;  %v8984_v59 = vadd.f32 %v881_v62, %v712_v39  ;;  %v883_v44 = vpop.f32.mrb[1].mxu1  ;;  %v810_v36 = vpop.f32.mrb[2].mxu0 }
 0x22b   :  { %v8986_v49 = vadd.f32 %v810_v36, %v717_v2  ;;  %v812_v38 = vpop.f32.mrb[3].mxu0  ;;  %v8988_v50 = vadd.f32 %v883_v44, %v712_v39 }
 0x22c   :  { %v8990_v20 = vadd.f32 %v812_v38, %v717_v2  ;;  %v893_v46 = vadd.f32 %v892_v22, %v8984_v59 }
 0x22d   :  { %v887_v60 = vpop.f32.mrb[2].mxu1 }
 0x22e   :  { %v897_v57 = vadd.f32 %v8990_v20, %v8986_v49  ;;  %v8995_v15 = vadd.f32 %v887_v60, %v717_v2  ;;  %v889_v11 = vpop.f32.mrb[3].mxu1  ;;  %v894_v12 = vadd.f32 %v893_v46, %v8988_v50 }
 0x22f   :  { %v8998_v14 = vadd.f32 %v889_v11, %v717_v2 }
 0x230   :  { %895 = vadd.xlane.f32.xlu1 %v894_v12  ;;  %v898_v37 = vadd.f32 %v897_v57, %v8995_v15 }
 0x232   :  { %v899_v42 = vadd.f32 %v898_v37, %v8998_v14 }
 0x234   :  { %900 = vadd.xlane.f32.xlu0 %v899_v42 }
 0x241   :  { %1172 = vrot.lane.b32.xlu1 %v1171_v13, %s8058_s29 }
 0x245   :  { %2185 = vrot.lane.b32.xlu1 %v2184_v48, %s15580_s30 }
 0x249   :  { %2974 = vrot.lane.b32.xlu1 %v2184_v48, %s15618_s12 }
 0x24a   :  { %1211 = vrot.lane.b32.xlu0 %v1210_v18, %s8058_s29 }
 0x24d   :  { %3551 = vrot.lane.b32.xlu1 %v2184_v48, %s8061_s13 }
 0x24e   :  { %3553 = vrot.lane.b32.xlu0 %v3550_v19, %s8061_s13  ;;  %s8074_s13 = smov 107  }
 0x252   :  { %4128 = vrot.lane.b32.xlu0 %v3550_v19, %s8048_s0 }
 0x2bd   :  { %v896_v56 = vpop.xlane.xlu1 %895 }
 0x2be   :  { %v9022_v25 = vmul.f32 0.001953125, %v896_v56 }
 0x2c0   :  { %v904_v54 = vsub.f32 %v8978_v6, %v9022_v25  ;;  %v905_v52 = vsub.f32 %v8980_v21, %v9022_v25  ;;  %v906_v9 = vsub.f32 %v8984_v59, %v9022_v25  ;;  %v907_v40 = vsub.f32 %v8988_v50, %v9022_v25 }
 0x2c1   :  { %v901_v35 = vpop.xlane.xlu0 %900  ;;  %v1173_v4 = vpop.permute.xlu1 %1172 }
 0x2c2   :  { %v9034_v0 = vmul.f32 0.001953125, %v901_v35  ;;  %v912_v31 = vmul.f32 %v904_v54, %v904_v54  ;;  %v913_v39 = vmul.f32 %v905_v52, %v905_v52  ;;  %v914_v16 = vmul.f32 %v906_v9, %v906_v9 }
 0x2c3   :  { %v1174_v2 = vrot.slane %v1173_v4, 7  ;;  %v915_v38 = vmul.f32 %v907_v40, %v907_v40  ;;  %v9060_v35 = vrot.slane %v9006_v53, %v8302_v32 }
 0x2c4   :  { %v920_v62 = vadd.f32 %v913_v39, %v912_v31  ;;  %v908_v22 = vsub.f32 %v8986_v49, %v9034_v0  ;;  %v909_v44 = vsub.f32 %v8990_v20, %v9034_v0  ;;  %v910_v36 = vsub.f32 %v8995_v15, %v9034_v0 }
 0x2c5   :  { %v1176_v46 = vsel %vm1175_vm10, %v1174_v2, %v1173_v4  ;;  %v1212_v60 = vpop.permute.xlu0 %1211  ;;  %v911_v11 = vsub.f32 %v8998_v14, %v9034_v0  ;;  %16343 = vst [vmem:[#allocation53_spill] sm:$0xff] %v9060_v35  ;;  %v9063_v40 = vpop.permute.xlu1 %2185 }
 0x2c6   :  { %v921_v57 = vadd.f32 %v920_v62, %v914_v16  ;;  %v916_v12 = vmul.f32 %v908_v22, %v908_v22  ;;  %v917_v37 = vmul.f32 %v909_v44, %v909_v44  ;;  %1182 = vst.msk [vmem:[#allocation3] ss:$4 sm:$0x1f] %vm9036_vm6, %v1176_v46  ;;  %v1213_v42 = vrot.slane %v1212_v60, 7  ;;  %16344 = vst [vmem:[#allocation54_spill] sm:$0xff] %v9063_v40 }
 0x2c7   :  { %v918_v48 = vmul.f32 %v910_v36, %v910_v36  ;;  %v919_v54 = vmul.f32 %v911_v11, %v911_v11  ;;  %v932_v36 = vld [vmem:[%s15475_s5] sm:$0xff] }
 0x2c8   :  { %v922_v13 = vadd.f32 %v921_v57, %v915_v38  ;;  %v925_v18 = vadd.f32 %v917_v37, %v916_v12  ;;  %v1214_v56 = vsel %vm1175_vm10, %v1213_v42, %v1212_v60  ;;  %v933_v60 = vld [vmem:[%s15475_s5 + $0x8] sm:$0xff]  ;;  %v940_v37 = vld [vmem:[%s15476_s6] sm:$0xff]  ;;  %s8075_s5 = smov 105  }
 0x2c9   :  { %1217 = vst.msk [vmem:[#allocation3 + $0x1] ss:$4 sm:$0x1f] %vm9036_vm6, %v1214_v56  ;;  %1219 = vst.msk [vmem:[#allocation3 + $0x2] ss:$4 sm:$0x1f] %vm9036_vm6, %v1214_v56  ;;  %v9065_v4 = vpop.permute.xlu0 %3553  ;;  %v9067_v31 = vpop.permute.xlu1 %2974 }
 0x2ca   :  { %923 = vadd.xlane.f32.xlu0 %v922_v13  ;;  %v926_v52 = vadd.f32 %v925_v18, %v918_v48  ;;  %16345 = vst [vmem:[#allocation55_spill] sm:$0xff] %v9067_v31  ;;  %v941_v42 = vld [vmem:[%s15476_s6 + $0x8] sm:$0xff]  ;;  %s15586_s6 = smov 93  }
 0x2cc   :  { %v927_v9 = vadd.f32 %v926_v52, %v919_v54 }
 0x2cd   :  { %v9069_v39 = vpop.permute.xlu0 %4128  ;;  %v9071_v16 = vpop.permute.xlu1 %3551 }
 0x2ce   :  { %928 = vadd.xlane.f32.xlu1 %v927_v9  ;;  %16346 = vst [vmem:[#allocation56_spill] sm:$0xff] %v9069_v39 }
 0x2df   :  { %5981 = vrot.lane.b32.xlu1 %v3550_v19, %s8063_s15 }
 0x2e0   :  { %4701 = vrot.lane.b32.xlu0 %v3550_v19, %s8062_s14 }
 0x2e4   :  { %5339 = vrot.lane.b32.xlu0 %v3550_v19, %s15642_s16 }
 0x2e8   :  { %5983 = vrot.lane.b32.xlu0 %v9060_v35, %s8063_s15  ;;  %s15582_s15 = smov 90  }
 0x357   :  { %v924_v2 = vpop.xlane.xlu0 %923 }
 0x358   :  { %v930_v62 = vmul.f32 0.001953125, %v924_v2 }
 0x35a   :  { %v934_v22 = vadd.f32 1e-05, %v930_v62 }
 0x35b   :  { %v929_v19 = vpop.xlane.xlu1 %928  ;;  %v9087_v56 = vpop.permute.xlu0 %4701 }
 0x35c   :  { %7993 = vrsqrt.f32 %v934_v22  ;;  %v931_v44 = vmul.f32 0.001953125, %v929_v19  ;;  %16347 = vst [vmem:[#allocation57_spill] sm:$0xff] %v9087_v56 }
 0x35e   :  { %v935_v53 = vadd.f32 1e-05, %v931_v44 }
 0x35f   :  { %v9089_v54 = vpop.permute.xlu0 %5339  ;;  %v9093_v52 = vpop.permute.xlu1 %5981 }
 0x360   :  { %7995 = vrsqrt.f32 %v935_v53  ;;  %16348 = vst [vmem:[#allocation58_spill] sm:$0xff] %v9089_v54 }
 0x366   :  { %v7994_v38 = vpop.eup %7993 }
 0x367   :  { %v938_v46 = vmul.f32 %v7994_v38, %v932_v36 }
 0x369   :  { %948 = vperm.xlu0 %7270, %v938_v46   ;;  %v942_v12 = vmul.f32 %v938_v46, %v9022_v25  ;;  %v9091_v25 = vpop.permute.xlu0 %5983 }
 0x36a   :  { %v7996_v57 = vpop.eup %7995 }
 0x36b   :  { %v939_v11 = vmul.f32 %v7996_v57, %v933_v60  ;;  %v944_v48 = vsub.f32 %v940_v37, %v942_v12 }
 0x36d   :  { %953 = vperm.xlu1 %7271, %v939_v11   ;;  %v943_v13 = vmul.f32 %v939_v11, %v9034_v0 }
 0x36f   :  { %v945_v18 = vsub.f32 %v941_v42, %v943_v13 }
 0x371   :  { %966 = vperm.xlu1 %7271, %v944_v48   ;;  %971 = vperm.xlu0 %7270, %v945_v18  }
 0x3e8   :  { %v949_v9 = vpop.permute.xlu0 %948 }
 0x3e9   :  { %v956_v62 = vmul.f32 %v949_v9, %v8978_v6  ;;  %v958_v22 = vmul.f32 %v949_v9, %v8984_v59  ;;  %v957_v36 = vmul.f32 %v949_v9, %v8980_v21  ;;  %v959_v46 = vmul.f32 %v949_v9, %v8988_v50 }
 0x3ec   :  { %v954_v2 = vpop.permute.xlu1 %953 }
 0x3ed   :  { %v960_v0 = vmul.f32 %v954_v2, %v8986_v49  ;;  %v962_v19 = vmul.f32 %v954_v2, %v8995_v15  ;;  %v961_v38 = vmul.f32 %v954_v2, %v8990_v20  ;;  %v963_v60 = vmul.f32 %v954_v2, %v8998_v14  ;;  %v990_v2 = vld [vmem:[%s15477_s7] sm:$0x1]  ;;  %s15690_s7 = smov 123  }
 0x3f0   :  { %v972_v44 = vpop.permute.xlu0 %971  ;;  %v967_v53 = vpop.permute.xlu1 %966 }
 0x3f1   :  { %v978_v57 = vadd.f32 %v972_v44, %v960_v0  ;;  %v980_v11 = vadd.f32 %v972_v44, %v962_v19  ;;  %v974_v12 = vadd.f32 %v967_v53, %v956_v62  ;;  %v976_v6 = vadd.f32 %v967_v53, %v958_v22 }
 0x3f2   :  { %v975_v37 = vadd.f32 %v967_v53, %v957_v36  ;;  %v979_v59 = vadd.f32 %v972_v44, %v961_v38  ;;  %v977_v42 = vadd.f32 %v967_v53, %v959_v46  ;;  %v981_v49 = vadd.f32 %v972_v44, %v963_v60 }
 0x3f3   :  { %v986_v13 = vmax.f32 %v978_v57, 0.0  ;;  %v988_v15 = vmax.f32 %v980_v11, 0.0  ;;  %v982_v48 = vmax.f32 %v974_v12, 0.0  ;;  %v984_v18 = vmax.f32 %v976_v6, 0.0 }
 0x3f4   :  { %v983_v51 = vmax.f32 %v975_v37, 0.0  ;;  %v987_v21 = vmax.f32 %v979_v59, 0.0  ;;  %v985_v54 = vmax.f32 %v977_v42, 0.0  ;;  %v989_v20 = vmax.f32 %v981_v49, 0.0 }
 0x3f5   :  { %v6928_v56 = vpack.c.bf16 %v986_v13, %v982_v48  ;;  %v6932_v50 = vpack.c.bf16 %v988_v15, %v984_v18 }
 0x3f6   :  { %v6926_v9 = vpack.c.bf16 %v987_v21, %v983_v51  ;;  %v6930_v14 = vpack.c.bf16 %v989_v20, %v985_v54  ;;  %v992_v51 = vstv %s15478_s8  ;;  %s15696_s8 = smov 121  }
 0x3f8   :  { %6927 = vmatprep.subr.bf16.mxu0 %v6926_v9  ;;  %6931 = vmatprep.subr.bf16.mxu1 %v6930_v14 }
 0x3f9   :  { %6929 = vmatpush1.bf16.msra.mxu0 %v6928_v56  ;;  %6933 = vmatpush1.bf16.msra.mxu1 %v6932_v50 }
 0x3fc   :  { %6846 = vmatmul.mubr.msk.f32.vlgmr.msra.gmra.mrb[4].mxu0 %vm15698_vm1, %v990_v2  ;;  %6847 = vmatmul.mubr.msk.f32.vlgmr.msra.gmra.mrb[4].mxu1 %vm15698_vm1, %v990_v2 }
 0x3fd   :  { %2266 = vmatprep.mubr.f32.mxu0 %v9018_v58  ;;  %2337 = vmatprep.mubr.f32.mxu1 %v9018_v58 }
 0x4cf   :  { %v1063_v54 = vpop.f32.mrb[4].mxu0  ;;  %v1134_v56 = vpop.f32.mrb[4].mxu1 }
 0x4d0   :  { %v1064_v62 = vadd.f32 %v1063_v54, %v992_v51  ;;  %v1135_v22 = vadd.f32 %v1134_v56, %v992_v51  ;;  %v1065_v0 = vpop.f32.mrb[5].mxu0  ;;  %v1136_v19 = vpop.f32.mrb[5].mxu1 }
 0x4d1   :  { %v1066_v44 = vadd.f32 %v1065_v0, %v992_v51  ;;  %v1137_v53 = vadd.f32 %v1136_v19, %v992_v51 }
 0x4d3   :  { %v1224_v36 = vcombine.low %v1064_v62, %v1066_v44  ;;  %v1225_v38 = vcombine.low %v1135_v22, %v1137_v53 }
 0x4d5   :  { %v1232_v46 = vrot.slane %v1224_v36, %v8972_v1  ;;  %v1239_v60 = vrot.slane %v1225_v38, %v8972_v1 }
 0x4d7   :  { %v1240_v57 = vcombine.low %v1232_v46, %v1239_v60 }
 0x4d9   :  { %v1247_v11 = vrot.slane %v1240_v57, %v8972_v1 }
 0x4db   :  { %1248 = vrot.lane.b32.xlu1 %v1247_v11, %s8058_s29  ;;  %s15688_s29 = smov 124  }
 0x54d   :  { %v1249_v12 = vpop.permute.xlu1 %1248 }
 0x54e   :  { %v1250_v6 = vrot.slane %v1249_v12, 7 }
 0x550   :  { %v1251_v37 = vsel %vm1175_vm10, %v1250_v6, %v1249_v12 }
 0x551   :  { %1254 = vst.msk [vmem:[#allocation3 + $0x3] ss:$4 sm:$0x1f] %vm9036_vm6, %v1251_v37 }
 0x558   :  { %v9120_v59 = vld [vmem:[#allocation3 + $0x10] sm:$0xf]  ;;  %v9134_v8 = vld [vmem:[#allocation3] sm:$0xff]  ;;  %v9140_v42 = vld [vmem:[#allocation3 + $0x8] sm:$0xff] }
 0x559   :  { %1500 = vrot.lane.b32.xlu0 %v9120_v59, %s15690_s7  ;;  %1366 = vrot.lane.b32.xlu1 %v9120_v59, %s8049_s22  ;;  %16349 = vst [vmem:[#allocation59_spill] sm:$0xff] %v9134_v8  ;;  %v2503_v49 = vld [vmem:[#allocation3 + $0x10] sm:$0xf]  ;;  %v9303_v6 = vld [vmem:[#allocation3 + $0x4] sm:$0xff]  ;;  %v9331_v17 = vcombine.high %v9134_v8, %v9134_v8 }
 0x55a   :  { %v3139_v13 = vld [vmem:[#allocation3 + $0x10] sm:$0xf]  ;;  %16369 = vst [vmem:[#allocation79_spill] sm:$0xff] %v9303_v6  ;;  %v7272_v10 = vpack.i.bf16 %v9303_v6, %v9341_v63 }
 0x55b   :  { %v3720_v15 = vld [vmem:[#allocation3 + $0x10] sm:$0xf]  ;;  %16375 = vst [vmem:[#allocation85_spill] sm:$0xff] %v9331_v17  ;;  %v9355_v5 = vpack.i.bf16 %v9331_v17, %v9134_v8 }
 0x55c   :  { %v9204_v48 = vld [vmem:[#allocation3 + $0x10] sm:$0xf] }
 0x55d   :  { %1590 = vrot.lane.b32.xlu0 %v9120_v59, %s15696_s8  ;;  %1455 = vrot.lane.b32.xlu1 %v9120_v59, %s15688_s29  ;;  %v9301_v12 = vld [vmem:[#allocation3 + $0x10] sm:$0xf] }
 0x561   :  { %1744 = vrot.lane.b32.xlu0 %v9120_v59, %s8048_s0  ;;  %1545 = vrot.lane.b32.xlu1 %v9120_v59, %s15692_s4 }
 0x565   :  { %1832 = vrot.lane.b32.xlu0 %v9120_v59, %s8052_s25  ;;  %1627 = vrot.lane.b32.xlu1 %v9134_v8, %s15576_s18 }
 0x569   :  { %1921 = vrot.lane.b32.xlu0 %v9120_v59, %s8070_s19  ;;  %1631 = vrot.lane.b32.xlu1 %v9140_v42, %s15576_s18 }
 0x56d   :  { %2011 = vrot.lane.b32.xlu0 %v9120_v59, %s8071_s20  ;;  %1635 = vrot.lane.b32.xlu1 %v9120_v59, %s15576_s18  ;;  %s15594_s18 = smov 88  }
 0x571   :  { %2093 = vrot.lane.b32.xlu0 %v9134_v8, %s8072_s3  ;;  %1788 = vrot.lane.b32.xlu1 %v9120_v59, %s8051_s24 }
 0x575   :  { %2097 = vrot.lane.b32.xlu0 %v9140_v42, %s8072_s3  ;;  %1876 = vrot.lane.b32.xlu1 %v9120_v59, %s8073_s21 }
 0x579   :  { %2101 = vrot.lane.b32.xlu0 %v9120_v59, %s8072_s3  ;;  %1966 = vrot.lane.b32.xlu1 %v9120_v59, %s8074_s13 }
 0x57d   :  { %2538 = vrot.lane.b32.xlu0 %v2503_v49, %s15578_s26  ;;  %2056 = vrot.lane.b32.xlu1 %v9120_v59, %s8075_s5  ;;  %s15590_s26 = smov 89  }
 0x581   :  { %2626 = vrot.lane.b32.xlu0 %v2503_v49, %s15588_s28  ;;  %2582 = vrot.lane.b32.xlu1 %v2503_v49, %s8054_s27  ;;  %s8085_s28 = smov 78  }
 0x585   :  { %2715 = vrot.lane.b32.xlu0 %v2503_v49, %s15580_s30  ;;  %2670 = vrot.lane.b32.xlu1 %v2503_v49, %s15586_s6  ;;  %s15592_s30 = smov 79   ;;  %s15600_s6 = smov 75  }
 0x589   :  { %2805 = vrot.lane.b32.xlu0 %v2503_v49, %s15582_s15  ;;  %2760 = vrot.lane.b32.xlu1 %v2503_v49, %s15584_s17  ;;  %s15596_s15 = smov 77   ;;  %s15598_s17 = smov 80  }
 0x58d   :  { %2887 = vrot.lane.b32.xlu0 %v9134_v8, %s15594_s18  ;;  %2850 = vrot.lane.b32.xlu1 %v2503_v49, %s15590_s26  ;;  %s15602_s26 = smov 73  }
 0x591   :  { %2891 = vrot.lane.b32.xlu0 %v9140_v42, %s15594_s18  ;;  %3219 = vrot.lane.b32.xlu1 %v3139_v13, %s15592_s30  ;;  %s15604_s30 = smov 64  }
 0x595   :  { %2895 = vrot.lane.b32.xlu0 %v2503_v49, %s15594_s18  ;;  %3287 = vrot.lane.b32.xlu1 %v3139_v13, %s15596_s15  ;;  %s15616_s18 = smov 74   ;;  %s15606_s15 = smov 62  }
 0x599   :  { %3174 = vrot.lane.b32.xlu0 %v3139_v13, %s15598_s17  ;;  %3333 = vrot.lane.b32.xlu1 %v3139_v13, %s15600_s6  ;;  %s15612_s17 = smov 72   ;;  %s15608_s6 = smov 60  }
 0x59d   :  { %3264 = vrot.lane.b32.xlu0 %v3139_v13, %s8085_s28  ;;  %3423 = vrot.lane.b32.xlu1 %v3139_v13, %s15602_s26  ;;  %s15610_s26 = smov 58  }
 0x5a1   :  { %3310 = vrot.lane.b32.xlu0 %v3139_v13, %s8062_s14  ;;  %3755 = vrot.lane.b32.xlu1 %v3720_v15, %s15604_s30  ;;  %s15614_s30 = smov 63  }
 0x5a5   :  { %3378 = vrot.lane.b32.xlu0 %v3139_v13, %s15616_s18  ;;  %3845 = vrot.lane.b32.xlu1 %v3720_v15, %s15606_s15  ;;  %s8094_s15 = smov 61   ;;  %s15626_s18 = smov 45  }
 0x5a9   :  { %3460 = vrot.lane.b32.xlu0 %v9134_v8, %s15612_s17  ;;  %3891 = vrot.lane.b32.xlu1 %v3720_v15, %s15608_s6  ;;  %s15620_s6 = smov 59  }
 0x5ad   :  { %3464 = vrot.lane.b32.xlu0 %v9140_v42, %s15612_s17  ;;  %3959 = vrot.lane.b32.xlu1 %v3720_v15, %s15610_s26  ;;  %s15622_s26 = smov 47  }
 0x5b1   :  { %3468 = vrot.lane.b32.xlu0 %v3139_v13, %s15612_s17  ;;  %4041 = vrot.lane.b32.xlu1 %v9134_v8, %s15618_s12  ;;  %s8097_s17 = smov 57   ;;  %v9319_v13 = vcombine.high %v9140_v42, %v9140_v42 }
 0x5b3   :  { %16372 = vst [vmem:[#allocation82_spill] sm:$0xff] %v9319_v13  ;;  %v9339_v39 = vpack.i.bf16 %v9319_v13, %v9140_v42 }
 0x5b5   :  { %3800 = vrot.lane.b32.xlu0 %v3720_v15, %s15614_s30  ;;  %4045 = vrot.lane.b32.xlu1 %v9140_v42, %s15618_s12  ;;  %s15624_s30 = smov 48  }
 0x5b9   :  { %3868 = vrot.lane.b32.xlu0 %v3720_v15, %s8094_s15  ;;  %4049 = vrot.lane.b32.xlu1 %v3720_v15, %s15618_s12  ;;  %s15628_s12 = smov 43  }
 0x5bd   :  { %3914 = vrot.lane.b32.xlu0 %v3720_v15, %s15620_s6  ;;  %4365 = vrot.lane.b32.xlu1 %v9134_v8, %s15622_s26  ;;  %s8101_s6 = smov 46   ;;  %s15630_s26 = smov 44  }
 0x5c1   :  { %4004 = vrot.lane.b32.xlu0 %v3720_v15, %s8097_s17  ;;  %4328 = vrot.lane.b32.xlu1 %v9204_v48, %s15624_s30  ;;  %s15632_s30 = smov 41  }
 0x5c5   :  { %4433 = vrot.lane.b32.xlu0 %v9134_v8, %s15626_s18  ;;  %4479 = vrot.lane.b32.xlu1 %v9134_v8, %s15628_s12  ;;  %s15634_s18 = smov 31   ;;  %s8105_s12 = smov 42  }
 0x5c9   :  { %4410 = vrot.lane.b32.xlu0 %v9134_v8, %s8101_s6  ;;  %4456 = vrot.lane.b32.xlu1 %v9134_v8, %s15630_s26  ;;  %s15636_s26 = smov 32  }
 0x5cb   :  { %v9217_v18 = vpop.permute.xlu0 %1500  ;;  %v9219_v21 = vpop.permute.xlu1 %1366 }
 0x5cc   :  { %16350 = vst [vmem:[#allocation60_spill] sm:$0xff] %v9219_v21 }
 0x5cd   :  { %4569 = vrot.lane.b32.xlu0 %v9134_v8, %s15632_s30  ;;  %4938 = vrot.lane.b32.xlu1 %v9134_v8, %s15634_s18  ;;  %s15638_s30 = smov 29   ;;  %s15640_s18 = smov 25  }
 0x5cf   :  { %v9225_v20 = vpop.permute.xlu0 %1590  ;;  %v9227_v50 = vpop.permute.xlu1 %1455 }
 0x5d0   :  { %16351 = vst [vmem:[#allocation61_spill] sm:$0xff] %v9227_v50 }
 0x5d1   :  { %4524 = vrot.lane.b32.xlu0 %v9134_v8, %s8105_s12  ;;  %4893 = vrot.lane.b32.xlu1 %v9134_v8, %s15636_s26  ;;  %s15644_s26 = smov 26  }
 0x5d3   :  { %v9233_v9 = vpop.permute.xlu0 %1744  ;;  %v9235_v14 = vpop.permute.xlu1 %1545 }
 0x5d4   :  { %16352 = vst [vmem:[#allocation62_spill] sm:$0xff] %v9235_v14 }
 0x5d5   :  { %5028 = vrot.lane.b32.xlu0 %v9134_v8, %s15638_s30  ;;  %4614 = vrot.lane.b32.xlu1 %v9134_v8, %s15642_s16  ;;  %s15646_s30 = smov 30  }
 0x5d7   :  { %v9241_v2 = vpop.permute.xlu0 %1832  ;;  %v9243_v51 = vpop.permute.xlu1 %1627 }
 0x5d8   :  { %16353 = vst [vmem:[#allocation63_spill] sm:$0xff] %v9241_v2  ;;  %16354 = vst [vmem:[#allocation64_spill] sm:$0xff] %v9243_v51 }
 0x5d9   :  { %4618 = vrot.lane.b32.xlu0 %v9140_v42, %s15642_s16  ;;  %5207 = vrot.lane.b32.xlu1 %v9134_v8, %s15640_s18  ;;  %s15648_s18 = smov 15  }
 0x5db   :  { %v9249_v54 = vpop.permute.xlu0 %1921  ;;  %v9251_v56 = vpop.permute.xlu1 %1631 }
 0x5dc   :  { %16355 = vst [vmem:[#allocation65_spill] sm:$0xff] %v9249_v54  ;;  %16356 = vst [vmem:[#allocation66_spill] sm:$0xff] %v9251_v56 }
 0x5dd   :  { %4622 = vrot.lane.b32.xlu0 %v9204_v48, %s15642_s16  ;;  %5162 = vrot.lane.b32.xlu1 %v9134_v8, %s15644_s26  ;;  %s15650_s16 = smov 27   ;;  %s15652_s26 = smov 16  }
 0x5df   :  { %v9257_v62 = vpop.permute.xlu0 %2011  ;;  %v9259_v22 = vpop.permute.xlu1 %1635 }
 0x5e0   :  { %16357 = vst [vmem:[#allocation67_spill] sm:$0xff] %v9257_v62  ;;  %16358 = vst [vmem:[#allocation68_spill] sm:$0xff] %v9259_v22 }
 0x5e1   :  { %4983 = vrot.lane.b32.xlu0 %v9134_v8, %s15646_s30  ;;  %5575 = vrot.lane.b32.xlu1 %v9134_v8, %s15648_s18  ;;  %s15654_s30 = smov 28   ;;  %s15667_s18 = smov 24  }
 0x5e3   :  { %v9265_v0 = vpop.permute.xlu0 %2093  ;;  %v9267_v19 = vpop.permute.xlu1 %1788 }
 0x5e4   :  { %16359 = vst [vmem:[#allocation69_spill] sm:$0xff] %v9265_v0  ;;  %16360 = vst [vmem:[#allocation70_spill] sm:$0xff] %v9267_v19 }
 0x5e5   :  { %5118 = vrot.lane.b32.xlu0 %v9134_v8, %s15650_s16  ;;  %5531 = vrot.lane.b32.xlu1 %v9134_v8, %s15652_s26  ;;  %s8116_s16 = smov 13   ;;  %s15656_s26 = smov 9  }
 0x5e7   :  { %v9273_v44 = vpop.permute.xlu0 %2097  ;;  %v9275_v53 = vpop.permute.xlu1 %1876 }
 0x5e8   :  { %16361 = vst [vmem:[#allocation71_spill] sm:$0xff] %v9273_v44  ;;  %16362 = vst [vmem:[#allocation72_spill] sm:$0xff] %v9275_v53  ;;  %v9687_v53 = vld [vmem:[#allocation3 + $0xc] sm:$0xff] }
 0x5e9   :  { %5073 = vrot.lane.b32.xlu0 %v9134_v8, %s15654_s30  ;;  %5252 = vrot.lane.b32.xlu1 %v9134_v8, %s15667_s18  ;;  %s15660_s30 = smov 10   ;;  %16479 = vst [vmem:[#allocation151_spill] sm:$0xff] %v9687_v53 }
 0x5eb   :  { %v9281_v36 = vpop.permute.xlu0 %2101  ;;  %v9283_v38 = vpop.permute.xlu1 %1966 }
 0x5ec   :  { %16363 = vst [vmem:[#allocation73_spill] sm:$0xff] %v9281_v36  ;;  %16364 = vst [vmem:[#allocation74_spill] sm:$0xff] %v9283_v38 }
 0x5ed   :  { %5665 = vrot.lane.b32.xlu0 %v9134_v8, %s8116_s16  ;;  %5845 = vrot.lane.b32.xlu1 %v9134_v8, %s15656_s26  ;;  %s8119_s26 = smov 14  }
 0x5ef   :  { %v9289_v46 = vpop.permute.xlu0 %2538  ;;  %v9291_v60 = vpop.permute.xlu1 %2056 }
 0x5f0   :  { %16365 = vst [vmem:[#allocation75_spill] sm:$0xff] %v9289_v46  ;;  %16366 = vst [vmem:[#allocation76_spill] sm:$0xff] %v9291_v60 }
 0x5f1   :  { %5256 = vrot.lane.b32.xlu0 %v9140_v42, %s15667_s18  ;;  %5800 = vrot.lane.b32.xlu1 %v9134_v8, %s15660_s30  ;;  %s15680_s30 = smov 11  }
 0x5f3   :  { %v9297_v57 = vpop.permute.xlu0 %2626  ;;  %v9299_v11 = vpop.permute.xlu1 %2582 }
 0x5f4   :  { %16367 = vst [vmem:[#allocation77_spill] sm:$0xff] %v9297_v57  ;;  %16368 = vst [vmem:[#allocation78_spill] sm:$0xff] %v9299_v11 }
 0x5f5   :  { %5260 = vrot.lane.b32.xlu0 %v9301_v12, %s15667_s18  ;;  %6249 = vrot.lane.b32.xlu1 %v9303_v6, %s8049_s22  ;;  %s15676_s18 = smov 12  }
 0x5f7   :  { %v9309_v37 = vpop.permute.xlu0 %2715  ;;  %v9311_v49 = vpop.permute.xlu1 %2670 }
 0x5f8   :  { %16370 = vst [vmem:[#allocation80_spill] sm:$0xff] %v9309_v37  ;;  %16371 = vst [vmem:[#allocation81_spill] sm:$0xff] %v9311_v49 }
 0x5f9   :  { %5620 = vrot.lane.b32.xlu0 %v9134_v8, %s8119_s26  ;;  %6381 = vrot.lane.b32.xlu1 %v9303_v6, %s15690_s7 }
 0x5fb   :  { %v9321_v15 = vpop.permute.xlu0 %2805  ;;  %v9323_v1 = vpop.permute.xlu1 %2760 }
 0x5fc   :  { %16373 = vst [vmem:[#allocation83_spill] sm:$0xff] %v9321_v15  ;;  %16374 = vst [vmem:[#allocation84_spill] sm:$0xff] %v9323_v1 }
 0x5fd   :  { %5755 = vrot.lane.b32.xlu0 %v9134_v8, %s15680_s30  ;;  %6337 = vrot.lane.b32.xlu1 %v9303_v6, %s15688_s29  ;;  %s15694_s30 = smov 8  }
 0x5ff   :  { %v9333_v27 = vpop.permute.xlu0 %2887  ;;  %v9335_v43 = vpop.permute.xlu1 %2850 }
 0x600   :  { %16376 = vst [vmem:[#allocation86_spill] sm:$0xff] %v9333_v27  ;;  %16377 = vst [vmem:[#allocation87_spill] sm:$0xff] %v9335_v43 }
 0x601   :  { %5710 = vrot.lane.b32.xlu0 %v9134_v8, %s15676_s18  ;;  %7288 = vrot.lane.b32.xlu1 %v9339_v39, %s8050_s23  ;;  %s8122_s18 = smov 125  }
 0x603   :  { %v9347_v35 = vpop.permute.xlu0 %2891  ;;  %v9349_v41 = vpop.permute.xlu1 %3219 }
 0x604   :  { %16378 = vst [vmem:[#allocation88_spill] sm:$0xff] %v9347_v35  ;;  %16379 = vst [vmem:[#allocation89_spill] sm:$0xff] %v9349_v41 }
 0x605   :  { %7273 = vrot.lane.b32.xlu0 %v7272_v10, %s8050_s23  ;;  %7298 = vrot.lane.b32.xlu1 %v9355_v5, %s8049_s22 }
 0x607   :  { %v9360_v45 = vpop.permute.xlu0 %2895  ;;  %v9362_v7 = vpop.permute.xlu1 %3287 }
 0x608   :  { %16380 = vst [vmem:[#allocation90_spill] sm:$0xff] %v9360_v45  ;;  %16381 = vst [vmem:[#allocation91_spill] sm:$0xff] %v9362_v7  ;;  %v9379_v7 = vld [vmem:[#allocation3 + $0x10] sm:$0xf]  ;;  %v16434_v45 = vmov 0 }
 0x609   :  { %7278 = vrot.lane.b32.xlu0 %v7272_v10, %s8122_s18  ;;  %7313 = vrot.lane.b32.xlu1 %v9339_v39, %s8122_s18 }
 0x60b   :  { %v9367_v34 = vpop.permute.xlu0 %3174  ;;  %v9369_v61 = vpop.permute.xlu1 %3333 }
 0x60c   :  { %16382 = vst [vmem:[#allocation92_spill] sm:$0xff] %v9367_v34  ;;  %16383 = vst [vmem:[#allocation93_spill] sm:$0xff] %v9369_v61 }
 0x60d   :  { %5894 = vrot.lane.b32.xlu0 %v9140_v42, %s15694_s30  ;;  %7323 = vrot.lane.b32.xlu1 %v9355_v5, %s15688_s29 }
 0x60f   :  { %v9375_v55 = vpop.permute.xlu0 %3264  ;;  %v9377_v31 = vpop.permute.xlu1 %3423 }
 0x610   :  { %16384 = vst [vmem:[#allocation94_spill] sm:$0xff] %v9375_v55  ;;  %16385 = vst [vmem:[#allocation95_spill] sm:$0xff] %v9377_v31 }
 0x611   :  { %5898 = vrot.lane.b32.xlu0 %v9379_v7, %s15694_s30  ;;  %7338 = vrot.lane.b32.xlu1 %v9339_v39, %s15690_s7 }
 0x613   :  { %v9385_v10 = vpop.permute.xlu0 %3310  ;;  %v9387_v61 = vpop.permute.xlu1 %3755 }
 0x614   :  { %16386 = vst [vmem:[#allocation96_spill] sm:$0xff] %v9385_v10  ;;  %16387 = vst [vmem:[#allocation97_spill] sm:$0xff] %v9387_v61 }
 0x615   :  { %5890 = vrot.lane.b32.xlu0 %v9134_v8, %s15694_s30  ;;  %7343 = vrot.lane.b32.xlu1 %v9355_v5, %s15692_s4  ;;  %s16483_s30 = smov 90  }
 0x617   :  { %v9393_v41 = vpop.permute.xlu0 %3378  ;;  %v9395_v31 = vpop.permute.xlu1 %3845 }
 0x618   :  { %16388 = vst [vmem:[#allocation98_spill] sm:$0xff] %v9393_v41  ;;  %16389 = vst [vmem:[#allocation99_spill] sm:$0xff] %v9395_v31  ;;  %v9415_v31 = vcombine.high %v9303_v6, %v9303_v6 }
 0x619   :  { %6469 = vrot.lane.b32.xlu0 %v9303_v6, %s15696_s8  ;;  %7358 = vrot.lane.b32.xlu1 %v9339_v39, %s15696_s8 }
 0x61a   :  { %16394 = vst [vmem:[#allocation104_spill] sm:$0xff] %v9415_v31  ;;  %v7292_v1 = vpack.i.bf16 %v9415_v31, %v9120_v59 }
 0x61b   :  { %v9401_v43 = vpop.permute.xlu0 %3460  ;;  %v9403_v3 = vpop.permute.xlu1 %3891 }
 0x61c   :  { %16390 = vst [vmem:[#allocation100_spill] sm:$0xff] %v9401_v43  ;;  %16391 = vst [vmem:[#allocation101_spill] sm:$0xff] %v9403_v3 }
 0x61d   :  { %6425 = vrot.lane.b32.xlu0 %v9303_v6, %s15692_s4  ;;  %7368 = vrot.lane.b32.xlu1 %v9339_v39, %s8048_s0 }
 0x61f   :  { %v9409_v61 = vpop.permute.xlu0 %3464  ;;  %v9411_v41 = vpop.permute.xlu1 %3959 }
 0x620   :  { %16392 = vst [vmem:[#allocation102_spill] sm:$0xff] %v9409_v61  ;;  %16393 = vst [vmem:[#allocation103_spill] sm:$0xff] %v9411_v41 }
 0x621   :  { %7373 = vrot.lane.b32.xlu1 %v9355_v5, %s8051_s24  ;;  %7283 = vrot.lane.b32.xlu0 %v9355_v5, %s8050_s23 }
 0x623   :  { %v9421_v3 = vpop.permute.xlu0 %3468  ;;  %v9423_v43 = vpop.permute.xlu1 %4041 }
 0x624   :  { %16395 = vst [vmem:[#allocation105_spill] sm:$0xff] %v9421_v3  ;;  %16396 = vst [vmem:[#allocation106_spill] sm:$0xff] %v9423_v43 }
 0x625   :  { %7388 = vrot.lane.b32.xlu1 %v9339_v39, %s8052_s25  ;;  %7293 = vrot.lane.b32.xlu0 %v7292_v1, %s8050_s23 }
 0x627   :  { %v9430_v41 = vpop.permute.xlu0 %3800  ;;  %v9432_v61 = vpop.permute.xlu1 %4045 }
 0x628   :  { %16397 = vst [vmem:[#allocation107_spill] sm:$0xff] %v9430_v41  ;;  %16398 = vst [vmem:[#allocation108_spill] sm:$0xff] %v9432_v61 }
 0x629   :  { %7393 = vrot.lane.b32.xlu1 %v9355_v5, %s8073_s21  ;;  %7303 = vrot.lane.b32.xlu0 %v9339_v39, %s8049_s22 }
 0x62b   :  { %v9438_v3 = vpop.permute.xlu0 %3868  ;;  %v9440_v43 = vpop.permute.xlu1 %4049 }
 0x62c   :  { %16399 = vst [vmem:[#allocation109_spill] sm:$0xff] %v9438_v3  ;;  %16400 = vst [vmem:[#allocation110_spill] sm:$0xff] %v9440_v43 }
 0x62d   :  { %7408 = vrot.lane.b32.xlu1 %v9339_v39, %s8070_s19  ;;  %7308 = vrot.lane.b32.xlu0 %v9355_v5, %s8122_s18 }
 0x62f   :  { %v9446_v59 = vpop.permute.xlu0 %3914  ;;  %v9448_v41 = vpop.permute.xlu1 %4365 }
 0x630   :  { %16401 = vst [vmem:[#allocation111_spill] sm:$0xff] %v9446_v59  ;;  %16402 = vst [vmem:[#allocation112_spill] sm:$0xff] %v9448_v41 }
 0x631   :  { %7413 = vrot.lane.b32.xlu1 %v9355_v5, %s8074_s13  ;;  %7318 = vrot.lane.b32.xlu0 %v7292_v1, %s8122_s18 }
 0x633   :  { %v9453_v61 = vpop.permute.xlu0 %4004  ;;  %v9455_v3 = vpop.permute.xlu1 %4328 }
 0x634   :  { %16403 = vst [vmem:[#allocation113_spill] sm:$0xff] %v9453_v61  ;;  %16404 = vst [vmem:[#allocation114_spill] sm:$0xff] %v9455_v3  ;;  %v16419_v61 = vmov 0 }
 0x635   :  { %7428 = vrot.lane.b32.xlu1 %v9339_v39, %s8071_s20  ;;  %7328 = vrot.lane.b32.xlu0 %v9339_v39, %s15688_s29  ;;  %s16413_s29 = smov 96  }
 0x637   :  { %v9461_v43 = vpop.permute.xlu0 %4433  ;;  %v9463_v59 = vpop.permute.xlu1 %4479 }
 0x638   :  { %16405 = vst [vmem:[#allocation115_spill] sm:$0xff] %v9461_v43  ;;  %16406 = vst [vmem:[#allocation116_spill] sm:$0xff] %v9463_v59 }
 0x639   :  { %7433 = vrot.lane.b32.xlu1 %v9355_v5, %s8075_s5  ;;  %7333 = vrot.lane.b32.xlu0 %v9355_v5, %s15690_s7  ;;  %s16414_s7 = smov 120  }
 0x63b   :  { %v9469_v1 = vpop.permute.xlu0 %4410  ;;  %v9471_v41 = vpop.permute.xlu1 %4456 }
 0x63c   :  { %16407 = vst [vmem:[#allocation117_spill] sm:$0xff] %v9469_v1  ;;  %16408 = vst [vmem:[#allocation118_spill] sm:$0xff] %v9471_v41 }
 0x63d   :  { %2095 = vrot.lane.b32.xlu1 %v9331_v17, %s8072_s3  ;;  %7348 = vrot.lane.b32.xlu0 %v9339_v39, %s15692_s4  ;;  %s16508_s4 = smov 88  }
 0x63f   :  { %v9477_v3 = vpop.permute.xlu0 %4569  ;;  %v9479_v43 = vpop.permute.xlu1 %4938 }
 0x640   :  { %16409 = vst [vmem:[#allocation119_spill] sm:$0xff] %v9477_v3  ;;  %16410 = vst [vmem:[#allocation120_spill] sm:$0xff] %v9479_v43  ;;  %v9496_v43 = vld [vmem:[%s15471_s1] sm:$0xf] }
 0x641   :  { %2099 = vrot.lane.b32.xlu1 %v9319_v13, %s8072_s3  ;;  %7353 = vrot.lane.b32.xlu0 %v9355_v5, %s15696_s8  ;;  %vm113_vm5 = vcmp.ge.s32.totalorder %v9496_v43, 4  ;;  %vm114_vm13 = vcmp.lt.s32.totalorder %v9496_v43, 20  ;;  %vm137_vm10 = vcmp.ge.s32.totalorder %v9496_v43, 4294967292  ;;  %vm138_vm6 = vcmp.lt.s32.totalorder %v9496_v43, 12  ;;  %s16492_s8 = smov 89   ;;  %s16635_s3 = smov 72  }
 0x642   :  { %vm9513_vm1 = vmand %vm113_vm5, %vm114_vm13  ;;  %vm116_vm2 = vcmp.ge.s32.totalorder %v9496_v43, 3  ;;  %vm117_vm12 = vcmp.lt.s32.totalorder %v9496_v43, 19 }
 0x643   :  { %v9485_v59 = vpop.permute.xlu0 %4524  ;;  %v9487_v1 = vpop.permute.xlu1 %4893  ;;  %vm9525_vm11 = vmand %vm137_vm10, %vm138_vm6  ;;  %vm3555_vm10 = vcmask 162816  }
 0x644   :  { %16411 = vst [vmem:[#allocation121_spill] sm:$0xff] %v9485_v59  ;;  %16412 = vst [vmem:[#allocation122_spill] sm:$0xff] %v9487_v1  ;;  %v9503_v59 = vld [vmem:[%s15472_s2] sm:$0xf]  ;;  %s16427_s2 = smov 94   ;;  %v9581_v27 = vsel %vm3555_vm10, %v9071_v16, %v9065_v4  ;;  %v16443_v4 = vmov 0 }
 0x645   :  { %7448 = vrot.lane.b32.xlu1 %v9339_v39, %s16413_s29  ;;  %1629 = vrot.lane.b32.xlu0 %v9331_v17, %s16414_s7  ;;  %vm140_vm15 = vcmp.ge.s32.totalorder %v9503_v59, 4  ;;  %vm141_vm3 = vcmp.lt.s32.totalorder %v9503_v59, 20  ;;  %vm146_vm6 = vcmp.ge.s32.totalorder %v9503_v59, 2  ;;  %vm147_vm7 = vcmp.lt.s32.totalorder %v9503_v59, 18  ;;  %16437 = vst [vmem:[#allocation134_spill] sm:$0xff] %v9581_v27 }
 0x646   :  { %vm9521_vm4 = vmand %vm140_vm15, %vm141_vm3  ;;  %vm143_vm15 = vcmp.ge.s32.totalorder %v9503_v59, 3  ;;  %vm144_vm3 = vcmp.lt.s32.totalorder %v9503_v59, 19  ;;  %v16446_v16 = vmov 0  ;;  %vm159_vm0 = vcmp.lt.s32.totalorder %v9503_v59, 14 }
 0x647   :  { %v9507_v1 = vpop.permute.xlu0 %5028  ;;  %v9509_v41 = vpop.permute.xlu1 %4614  ;;  %v16420_v61 = vsel %vm9521_vm4, 4294967295, %v16419_v61  ;;  %vm1256_vm5 = vmand %vm9513_vm1, %vm9521_vm4 }
 0x648   :  { %16415 = vst [vmem:[#allocation123_spill] sm:$0xff] %v9507_v1  ;;  %16416 = vst [vmem:[#allocation124_spill] sm:$0xff] %v9509_v41  ;;  %v16422_v41 = vmov 0 }
 0x649   :  { %7453 = vrot.lane.b32.xlu1 %v9355_v5, %s8054_s27  ;;  %1633 = vrot.lane.b32.xlu0 %v9319_v13, %s16414_s7  ;;  %16421 = vst [vmem:[#allocation125_spill] sm:$0xff] %v16420_v61  ;;  %v16423_v41 = vsel %vm9525_vm11, 4294967295, %v16422_v41  ;;  %vm6147_vm13 = vmand %vm9525_vm11, %vm9521_vm4  ;;  %vm161_vm11 = vcmp.ge.s32.totalorder %v9503_v59, 4294967293  ;;  %vm16468_vm4 = vnez %v16102_v26 }
 0x64a   :  { %16424 = vst [vmem:[#allocation126_spill] sm:$0xff] %v16423_v41  ;;  %vm9583_vm14 = vmand %vm146_vm6, %vm147_vm7  ;;  %vm158_vm7 = vcmp.ge.s32.totalorder %v9503_v59, 4294967294 }
 0x64b   :  { %v9529_v1 = vpop.permute.xlu0 %4618  ;;  %v9531_v58 = vpop.permute.xlu1 %5207 }
 0x64c   :  { %16425 = vst [vmem:[#allocation127_spill] sm:$0xff] %v9529_v1  ;;  %16426 = vst [vmem:[#allocation128_spill] sm:$0xff] %v9531_v58  ;;  %v16430_v58 = vmov 0  }
 0x64d   :  { %7468 = vrot.lane.b32.xlu1 %v9339_v39, %s16427_s2  ;;  %7363 = vrot.lane.b32.xlu0 %v9355_v5, %s8048_s0  ;;  %v1259_v47 = vsel %vm1256_vm5, 1, %v16430_v58  ;;  %v9553_v49 = vsel %vm6147_vm13, 1, %v16430_v58  ;;  %s16431_s0 = smov 93   ;;  %vm5985_vm5 = vcmask 31744   ;;  %vm9571_vm13 = vmand %vm143_vm15, %vm144_vm3 }
 0x64e   :  { %v1263_v55 = vrot.slane %v1259_v47, %v8286_v29  ;;  %v1271_v40 = vrot.slane %v1259_v47, %v8302_v32  ;;  %v16435_v45 = vsel %vm9571_vm13, 4294967295, %v16434_v45  ;;  %v6158_v60 = vrot.slane %v9553_v49, %v8283_v28 }
 0x64f   :  { %v9545_v10 = vpop.permute.xlu0 %4622  ;;  %v9547_v1 = vpop.permute.xlu1 %5162  ;;  %16436 = vst [vmem:[#allocation133_spill] sm:$0xff] %v16435_v45  ;;  %v6162_v35 = vrot.slane %v9553_v49, %v8302_v32 }
 0x650   :  { %16428 = vst [vmem:[#allocation129_spill] sm:$0xff] %v9545_v10  ;;  %16429 = vst [vmem:[#allocation130_spill] sm:$0xff] %v9547_v1  ;;  %v1267_v1 = vrot.slane %v1259_v47, %v8283_v28  ;;  %v1275_v10 = vrot.slane %v1259_v47, %v8305_v33  ;;  %v16438_v47 = vmov 0  ;;  %vm9609_vm10 = vcmp.eq.s32.totalorder %v1263_v55, 1 }
 0x651   :  { %7473 = vrot.lane.b32.xlu1 %v9355_v5, %s16431_s0  ;;  %7378 = vrot.lane.b32.xlu0 %v9339_v39, %s8051_s24  ;;  %v16439_v47 = vsel %vm9583_vm14, 4294967295, %v16438_v47  ;;  %s16442_s24 = smov 92   ;;  %vm9613_vm6 = vcmp.eq.s32.totalorder %v1271_v40, 1  ;;  %vm9629_vm9 = vcmp.eq.s32.totalorder %v6158_v60, 1  ;;  %v16456_v55 = vmov 0 }
 0x652   :  { %16440 = vst [vmem:[#allocation135_spill] sm:$0xff] %v16439_v47  ;;  %vm9597_vm15 = vcmp.eq.s32.totalorder %v1267_v1, 1  ;;  %vm9605_vm3 = vcmp.eq.s32.totalorder %v1275_v10, 1  ;;  %v16457_v55 = vsel %vm9629_vm9, 4294967295, %v16456_v55  ;;  %vm9633_vm8 = vcmp.eq.s32.totalorder %v6162_v35, 1  ;;  %vm9661_vm9 = vmand %vm158_vm7, %vm159_vm0 }
 0x653   :  { %v9565_v11 = vpop.permute.xlu0 %4983  ;;  %v9567_v34 = vpop.permute.xlu1 %5575  ;;  %v16444_v4 = vsel %vm9597_vm15, 4294967295, %v16443_v4  ;;  %v16447_v16 = vsel %vm9605_vm3, 4294967295, %v16446_v16  ;;  %16458 = vst [vmem:[#allocation142_spill] sm:$0xff] %v16457_v55  ;;  %v16459_v40 = vmov 0  ;;  %v16463_v10 = vmov 0  ;;  %vm9689_vm0 = vmand %vm116_vm2, %vm117_vm12 }
 0x654   :  { %16432 = vst [vmem:[#allocation131_spill] sm:$0xff] %v9565_v11  ;;  %16433 = vst [vmem:[#allocation132_spill] sm:$0xff] %v9567_v34  ;;  %v6166_v34 = vrot.slane %v9553_v49, %v8305_v33  ;;  %v9591_v11 = vsel %vm5985_vm5, %v9093_v52, %v9091_v25  ;;  %v16449_v25 = vmov 0  ;;  %v16452_v52 = vmov 0 }
 0x655   :  { %16441 = vst [vmem:[#allocation136_spill] sm:$0xff] %v9591_v11  ;;  %7488 = vrot.lane.b32.xlu1 %v9339_v39, %s16442_s24  ;;  %7383 = vrot.lane.b32.xlu0 %v9355_v5, %s8052_s25  ;;  %16445 = vst [vmem:[#allocation137_spill] sm:$0xff] %v16444_v4  ;;  %v16450_v25 = vsel %vm9609_vm10, 4294967295, %v16449_v25  ;;  %v16453_v52 = vsel %vm9613_vm6, 4294967295, %v16452_v52  ;;  %v16460_v40 = vsel %vm9633_vm8, 4294967295, %v16459_v40  ;;  %vm162_vm5 = vcmp.lt.s32.totalorder %v9503_v59, 13 }
 0x656   :  { %16448 = vst [vmem:[#allocation138_spill] sm:$0xff] %v16447_v16  ;;  %16451 = vst [vmem:[#allocation139_spill] sm:$0xff] %v16450_v25  ;;  %vm9643_vm14 = vcmp.eq.s32.totalorder %v6166_v34, 1  ;;  %s16466_s25 = smov 91   ;;  %vm16467_vm8 = vnez %v16109_v30  ;;  %v16469_v34 = vmov 0  ;;  %v9667_v35 = vpack.i.bf16 %v9140_v42, %v9331_v17 }
 0x657   :  { %v9619_v11 = vpop.permute.xlu0 %5118  ;;  %v9621_v27 = vpop.permute.xlu1 %5531  ;;  %16461 = vst [vmem:[#allocation143_spill] sm:$0xff] %v16460_v40  ;;  %v16464_v10 = vsel %vm9643_vm14, 4294967295, %v16463_v10  ;;  %v16470_v34 = vsel %vm9661_vm9, 4294967295, %v16469_v34  ;;  %v9671_v60 = vpack.i.bf16 %v9204_v48, %v9319_v13  ;;  %vm9677_vm13 = vmand %vm161_vm11, %vm162_vm5  ;;  %vm16489_vm7 = vnez %v16420_v61 }
 0x658   :  { %16454 = vst [vmem:[#allocation140_spill] sm:$0xff] %v9619_v11  ;;  %16455 = vst [vmem:[#allocation141_spill] sm:$0xff] %v9621_v27  ;;  %v16476_v11 = vmov 0  ;;  %vm16490_vm2 = vnez %v16435_v45  ;;  %vm16494_vm11 = vnez %v16439_v47  ;;  %vm16500_vm14 = vnez %v16423_v41 }
 0x659   :  { %16465 = vst [vmem:[#allocation144_spill] sm:$0xff] %v16464_v10  ;;  %7493 = vrot.lane.b32.xlu1 %v9355_v5, %s16466_s25  ;;  %7398 = vrot.lane.b32.xlu0 %v9339_v39, %s8073_s21  ;;  %16471 = vst [vmem:[#allocation145_spill] sm:$0xff] %v16470_v34  ;;  %v16477_v11 = vsel %vm9677_vm13, 4294967295, %v16476_v11  ;;  %vm16528_vm15 = vcmp.lt.s32.totalorder %v9503_v59, 12  ;;  %vm16529_vm12 = vcmp.ge.s32.totalorder %v9503_v59, 4294967292  ;;  %v16586_v4 = vmov 0 }
 0x65a   :  { %16472 = vst [vmem:[#allocation146_spill] sm:$0xff] %v9667_v35  ;;  %16473 = vst [vmem:[#allocation147_spill] sm:$0xff] %v9671_v60  ;;  %s16588_s21 = smov 75  }
 0x65b   :  { %v9673_v1 = vpop.permute.xlu0 %5073  ;;  %v9675_v27 = vpop.permute.xlu1 %5252  ;;  %16478 = vst [vmem:[#allocation150_spill] sm:$0xff] %v16477_v11  ;;  %vm16493_vm5 = vmand %vm9513_vm1, %vm16490_vm2 }
 0x65c   :  { %16474 = vst [vmem:[#allocation148_spill] sm:$0xff] %v9673_v1  ;;  %16475 = vst [vmem:[#allocation149_spill] sm:$0xff] %v9675_v27  ;;  %v9698_v27 = vpack.i.bf16 %v9301_v12, %v9319_v13  ;;  %v9713_v1 = vpack.i.bf16 %v9379_v7, %v9319_v13  ;;  %v9721_v12 = vcombine.high %v9687_v53, %v9687_v53  ;;  %v9752_v15 = vsel %vm16493_vm5, 1, %v16430_v58 }
 0x65d   :  { %7508 = vrot.lane.b32.xlu1 %v9339_v39, %s16483_s30  ;;  %7403 = vrot.lane.b32.xlu0 %v9355_v5, %s8070_s19  ;;  %v9740_v7 = vpack.i.bf16 %v9687_v53, %v9415_v31  ;;  %vm16496_vm3 = vmand %vm9513_vm1, %vm16494_vm11  ;;  %vm16498_vm5 = vnez %v16097_v23  ;;  %s16547_s19 = smov 80   ;;  %v16567_v44 = vrot.slane %v9752_v15, %v8302_v32 }
 0x65e   :  { %16482 = vst [vmem:[#allocation152_spill] sm:$0xff] %v9698_v27  ;;  %16484 = vst [vmem:[#allocation153_spill] sm:$0xff] %v9713_v1  ;;  %v9783_v55 = vpack.i.bf16 %v9721_v12, %v9687_v53  ;;  %v9803_v53 = vpack.i.bf16 %v9341_v63, %v9721_v12  ;;  %v16513_v63 = vrot.slane %v9553_v49, %v8286_v29 }
 0x65f   :  { %16485 = vst [vmem:[#allocation154_spill] sm:$0xff] %v9721_v12  ;;  %v9726_v27 = vpop.permute.xlu0 %5665  ;;  %v9728_v38 = vpop.permute.xlu1 %5845  ;;  %16491 = vst [vmem:[#allocation157_spill] sm:$0xff] %v9740_v7  ;;  %v16514_v12 = vmov 0 }
 0x660   :  { %16487 = vst [vmem:[#allocation155_spill] sm:$0xff] %v9726_v27  ;;  %16488 = vst [vmem:[#allocation156_spill] sm:$0xff] %v9728_v38  ;;  %v9767_v38 = vsel %vm16496_vm3, 1, %v16430_v58  ;;  %vm9861_vm6 = vcmp.eq.s32.totalorder %v16513_v63, 1 }
 0x661   :  { %7513 = vrot.lane.b32.xlu1 %v9355_v5, %s16492_s8  ;;  %7418 = vrot.lane.b32.xlu0 %v9339_v39, %s8074_s13  ;;  %16497 = vst [vmem:[#allocation158_spill] sm:$0xff] %v9767_v38  ;;  %vm16499_vm10 = vmand %vm9513_vm1, %vm16498_vm5  ;;  %v16515_v12 = vsel %vm9861_vm6, 4294967295, %v16514_v12  ;;  %s16602_s13 = smov 74  }
 0x662   :  { %v9775_v27 = vsel %vm16499_vm10, 1, %v16430_v58  ;;  %16501 = vst [vmem:[#allocation159_spill] sm:$0xff] %v9783_v55  ;;  %vm16504_vm3 = vmand %vm9513_vm1, %vm16467_vm8 }
 0x663   :  { %v9785_v40 = vpop.permute.xlu0 %5256  ;;  %v9787_v31 = vpop.permute.xlu1 %5800  ;;  %v9795_v7 = vsel %vm16504_vm3, 1, %v16430_v58  ;;  %16506 = vst [vmem:[#allocation163_spill] sm:$0xff] %v9803_v53  ;;  %vm16509_vm10 = vmand %vm9513_vm1, %vm16468_vm4 }
 0x664   :  { %16502 = vst [vmem:[#allocation160_spill] sm:$0xff] %v9785_v40  ;;  %16503 = vst [vmem:[#allocation161_spill] sm:$0xff] %v9787_v31  ;;  %v9828_v40 = vsel %vm16509_vm10, 1, %v16430_v58 }
 0x665   :  { %16505 = vst [vmem:[#allocation162_spill] sm:$0xff] %v9795_v7  ;;  %2889 = vrot.lane.b32.xlu1 %v9331_v17, %s16508_s4  ;;  %7423 = vrot.lane.b32.xlu0 %v9355_v5, %s8071_s20  ;;  %16510 = vst [vmem:[#allocation164_spill] sm:$0xff] %v9828_v40  ;;  %s16553_s20 = smov 79   ;;  %v16592_v16 = vrot.slane %v9828_v40, %v8302_v32 }
 0x666   :  { %vm16511_vm3 = vmand %vm9513_vm1, %vm9661_vm9  ;;  %16516 = vst [vmem:[#allocation165_spill] sm:$0xff] %v16515_v12 }
 0x667   :  { %v9836_v10 = vsel %vm16511_vm3, 1, %v16430_v58  ;;  %vm16512_vm10 = vmand %vm9513_vm1, %vm9677_vm13  ;;  %v9865_v53 = vpop.permute.xlu0 %5260  ;;  %v9867_v55 = vpop.permute.xlu1 %6249 }
 0x668   :  { %v9850_v31 = vsel %vm16512_vm10, 1, %v16430_v58  ;;  %16517 = vst [vmem:[#allocation166_spill] sm:$0xff] %v9865_v53  ;;  %16518 = vst [vmem:[#allocation167_spill] sm:$0xff] %v9867_v55  ;;  %v16530_v55 = vmov 0  ;;  %v16585_v53 = vrot.slane %v9767_v38, %v8286_v29 }
 0x669   :  { %vm16519_vm10 = vmand %vm9689_vm0, %vm16489_vm7  ;;  %2893 = vrot.lane.b32.xlu1 %v9319_v13, %s16508_s4  ;;  %7438 = vrot.lane.b32.xlu0 %v9339_v39, %s8075_s5  ;;  %s16609_s5 = smov 73   ;;  %s17026_s4 = smov 43  }
 0x66a   :  { %v9875_v1 = vsel %vm16519_vm10, 1, %v16430_v58  ;;  %vm16521_vm3 = vmand %vm9689_vm0, %vm16490_vm2 }
 0x66b   :  { %16520 = vst [vmem:[#allocation168_spill] sm:$0xff] %v9875_v1  ;;  %v9883_v49 = vsel %vm16521_vm3, 1, %v16430_v58  ;;  %vm16523_vm3 = vmand %vm9689_vm0, %vm16494_vm11  ;;  %v9963_v57 = vpop.permute.xlu0 %5620  ;;  %v9965_v22 = vpop.permute.xlu1 %6381 }
 0x66c   :  { %16522 = vst [vmem:[#allocation169_spill] sm:$0xff] %v9883_v49  ;;  %v9903_v37 = vsel %vm16523_vm3, 1, %v16430_v58  ;;  %vm16524_vm3 = vmand %vm16500_vm14, %vm16490_vm2 }
 0x66d   :  { %v9923_v63 = vsel %vm16524_vm3, 1, %v16430_v58  ;;  %vm16526_vm10 = vmand %vm9689_vm0, %vm16498_vm5  ;;  %16539 = vst [vmem:[#allocation174_spill] sm:$0xff] %v9963_v57  ;;  %7528 = vrot.lane.b32.xlu1 %v9339_v39, %s16547_s19  ;;  %7443 = vrot.lane.b32.xlu0 %v9355_v5, %s16413_s29 }
 0x66e   :  { %16525 = vst [vmem:[#allocation170_spill] sm:$0xff] %v9923_v63  ;;  %v9931_v19 = vsel %vm16526_vm10, 1, %v16430_v58  ;;  %vm9937_vm6 = vmand %vm16529_vm12, %vm16528_vm15  ;;  %vm16535_vm15 = vcmp.lt.s32.totalorder %v9496_v43, 18  ;;  %vm16536_vm12 = vcmp.ge.s32.totalorder %v9496_v43, 2 }
 0x66f   :  { %16527 = vst [vmem:[#allocation171_spill] sm:$0xff] %v9931_v19  ;;  %v16531_v55 = vsel %vm9937_vm6, 4294967295, %v16530_v55  ;;  %vm16533_vm10 = vmand %vm9689_vm0, %vm16467_vm8  ;;  %v10039_v36 = vpop.permute.xlu0 %5755  ;;  %v10041_v57 = vpop.permute.xlu1 %6337 }
 0x670   :  { %16532 = vst [vmem:[#allocation172_spill] sm:$0xff] %v16531_v55  ;;  %v9953_v59 = vsel %vm16533_vm10, 1, %v16430_v58  ;;  %vm9959_vm3 = vmand %vm16536_vm12, %vm16535_vm15 }
 0x671   :  { %16534 = vst [vmem:[#allocation173_spill] sm:$0xff] %v9953_v59  ;;  %16540 = vst [vmem:[#allocation175_spill] sm:$0xff] %v9965_v22  ;;  %7533 = vrot.lane.b32.xlu1 %v9355_v5, %s16553_s20  ;;  %7458 = vrot.lane.b32.xlu0 %v9339_v39, %s8054_s27  ;;  %s16570_s27 = smov 77  }
 0x672   :  { %vm16541_vm10 = vmand %vm9689_vm0, %vm16468_vm4  ;;  %16550 = vst [vmem:[#allocation180_spill] sm:$0xff] %v10039_v36 }
 0x673   :  { %v9979_v43 = vsel %vm16541_vm10, 1, %v16430_v58  ;;  %vm16543_vm15 = vmand %vm16500_vm14, %vm16498_vm5  ;;  %16551 = vst [vmem:[#allocation181_spill] sm:$0xff] %v10041_v57  ;;  %v10111_v57 = vpop.permute.xlu0 %5710  ;;  %v10113_v6 = vpop.permute.xlu1 %7288 }
 0x674   :  { %16542 = vst [vmem:[#allocation176_spill] sm:$0xff] %v9979_v43  ;;  %v9991_v56 = vsel %vm16543_vm15, 1, %v16430_v58  ;;  %vm16545_vm12 = vmand %vm9689_vm0, %vm9661_vm9  ;;  %v16582_v25 = vunpack.i.h.bf16 %v10113_v6 }
 0x675   :  { %16544 = vst [vmem:[#allocation177_spill] sm:$0xff] %v9991_v56  ;;  %v9999_v46 = vsel %vm16545_vm12, 1, %v16430_v58  ;;  %vm2071_vm10 = vmand %vm9689_vm0, %vm9937_vm6  ;;  %7548 = vrot.lane.b32.xlu1 %v9339_v39, %s8085_s28  ;;  %7463 = vrot.lane.b32.xlu0 %v9355_v5, %s16427_s2  ;;  %v16583_v56 = vunpack.i.l.bf16 %v10113_v6  ;;  %s16675_s2 = smov 64  }
 0x676   :  { %16546 = vst [vmem:[#allocation178_spill] sm:$0xff] %v9999_v46  ;;  %vm16548_vm15 = vmand %vm9689_vm0, %vm9677_vm13  ;;  %v10063_v22 = vsel %vm2071_vm10, 1, %v16430_v58 }
 0x677   :  { %v10019_v41 = vsel %vm16548_vm15, 1, %v16430_v58  ;;  %vm2552_vm12 = vmand %vm9959_vm3, %vm16490_vm2  ;;  %16552 = vst [vmem:[#allocation182_spill] sm:$0xff] %v10063_v22  ;;  %v10176_v23 = vpop.permute.xlu0 %7273  ;;  %v10178_v14 = vpop.permute.xlu1 %7298 }
 0x678   :  { %16549 = vst [vmem:[#allocation179_spill] sm:$0xff] %v10019_v41  ;;  %vm16555_vm10 = vmand %vm9959_vm3, %vm16489_vm7  ;;  %v10103_v35 = vsel %vm2552_vm12, 1, %v16430_v58 }
 0x679   :  { %v10092_v60 = vsel %vm16555_vm10, 1, %v16430_v58  ;;  %vm16557_vm15 = vmand %vm9513_vm1, %vm9937_vm6  ;;  %16559 = vst [vmem:[#allocation185_spill] sm:$0xff] %v10103_v35  ;;  %7553 = vrot.lane.b32.xlu1 %v9355_v5, %s16570_s27  ;;  %7478 = vrot.lane.b32.xlu0 %v9339_v39, %s16431_s0  ;;  %s16715_s0 = smov 62  }
 0x67a   :  { %16556 = vst [vmem:[#allocation183_spill] sm:$0xff] %v10092_v60  ;;  %v10100_v48 = vsel %vm16557_vm15, 1, %v16430_v58  ;;  %vm2640_vm0 = vmand %vm9959_vm3, %vm16498_vm5  ;;  %vm16619_vm5 = vcmask 1043456  }
 0x67b   :  { %16558 = vst [vmem:[#allocation184_spill] sm:$0xff] %v10100_v48  ;;  %16560 = vst [vmem:[#allocation186_spill] sm:$0xff] %v10111_v57  ;;  %v10157_v57 = vsel %vm2640_vm0, 1, %v16430_v58  ;;  %v10249_v22 = vpop.permute.xlu0 %7278  ;;  %v10251_v0 = vpop.permute.xlu1 %7313 }
 0x67c   :  { %vm16561_vm1 = vmand %vm9959_vm3, %vm16494_vm11  ;;  %16563 = vst [vmem:[#allocation188_spill] sm:$0xff] %v10157_v57  ;;  %v16629_v57 = vrot.slane %v9850_v31, %v8302_v32 }
 0x67d   :  { %v10127_v51 = vsel %vm16561_vm1, 1, %v16430_v58  ;;  %vm2685_vm12 = vmand %vm9959_vm3, %vm16467_vm8  ;;  %16565 = vst [vmem:[#allocation190_spill] sm:$0xff] %v10176_v23  ;;  %vm10209_vm1 = vcmp.eq.s32.totalorder %v16567_v44, 1  ;;  %7568 = vrot.lane.b32.xlu1 %v9339_v39, %s8062_s14  ;;  %7483 = vrot.lane.b32.xlu0 %v9355_v5, %s16442_s24  ;;  %vm16606_vm8 = vcmask 1022976   ;;  %s16819_s24 = smov 59  }
 0x67e   :  { %16562 = vst [vmem:[#allocation187_spill] sm:$0xff] %v10127_v51  ;;  %vm2730_vm15 = vmand %vm9959_vm3, %vm16468_vm4  ;;  %v10168_v12 = vsel %vm2685_vm12, 1, %v16430_v58 }
 0x67f   :  { %16564 = vst [vmem:[#allocation189_spill] sm:$0xff] %v10168_v12  ;;  %vm2775_vm0 = vmand %vm9959_vm3, %vm9661_vm9  ;;  %v10204_v3 = vsel %vm2730_vm15, 1, %v16430_v58  ;;  %v10302_v62 = vpop.permute.xlu0 %5894  ;;  %v10304_v50 = vpop.permute.xlu1 %7323 }
 0x680   :  { %vm2820_vm10 = vmand %vm9959_vm3, %vm9677_vm13  ;;  %16566 = vst [vmem:[#allocation191_spill] sm:$0xff] %v10204_v3  ;;  %v10227_v44 = vsel %vm2775_vm0, 1, %v16430_v58 }
 0x681   :  { %16571 = vst [vmem:[#allocation192_spill] sm:$0xff] %v10227_v44  ;;  %vm2865_vm12 = vmand %vm9959_vm3, %vm9937_vm6  ;;  %v10243_v30 = vsel %vm2820_vm10, 1, %v16430_v58  ;;  %vm16574_vm3 = vnez %v16100_v24  ;;  %vm10347_vm10 = vcmp.eq.s32.totalorder %v16585_v53, 1  ;;  %7573 = vrot.lane.b32.xlu1 %v9355_v5, %s16588_s21  ;;  %7498 = vrot.lane.b32.xlu0 %v9339_v39, %s16466_s25  ;;  %s16840_s25 = smov 58  }
 0x682   :  { %16572 = vst [vmem:[#allocation193_spill] sm:$0xff] %v10243_v30  ;;  %16573 = vst [vmem:[#allocation194_spill] sm:$0xff] %v10249_v22  ;;  %v10270_v26 = vsel %vm2865_vm12, 1, %v16430_v58  ;;  %v16587_v4 = vsel %vm10347_vm10, 4294967295, %v16586_v4  ;;  %v16652_v30 = vrot.slane %v9875_v1, %v8302_v32 }
 0x683   :  { %vm3136_vm15 = vmand %vm16574_vm3, %vm16489_vm7  ;;  %16575 = vst [vmem:[#allocation195_spill] sm:$0xff] %v10270_v26  ;;  %v10367_v2 = vpop.permute.xlu0 %5898  ;;  %v10369_v38 = vpop.permute.xlu1 %7338 }
 0x684   :  { %vm3189_vm0 = vmand %vm16574_vm3, %vm16490_vm2  ;;  %v10300_v48 = vsel %vm3136_vm15, 1, %v16430_v58  ;;  %16577 = vst [vmem:[#allocation197_spill] sm:$0xff] %v10302_v62  ;;  %v16579_v62 = vrot.slane %v9775_v27, %v8302_v32  ;;  %vm10392_vm15 = vcmp.eq.s32.totalorder %v16592_v16, 1  ;;  %v16598_v16 = vrot.slane %v9795_v7, %v8286_v29 }
 0x685   :  { %16576 = vst [vmem:[#allocation196_spill] sm:$0xff] %v10300_v48  ;;  %v10318_v21 = vsel %vm3189_vm0, 1, %v16430_v58  ;;  %vm16584_vm0 = vcmask 1039360   ;;  %16589 = vst [vmem:[#allocation199_spill] sm:$0xff] %v10367_v2  ;;  %v16595_v2 = vrot.slane %v9828_v40, %v8305_v33  ;;  %7588 = vrot.lane.b32.xlu1 %v9339_v39, %s16602_s13  ;;  %7503 = vrot.lane.b32.xlu0 %v9355_v5, %s16483_s30  ;;  %v16604_v40 = vunpack.i.h.bf16 %v10251_v0  ;;  %s16899_s30 = smov 48  }
 0x686   :  { %16578 = vst [vmem:[#allocation198_spill] sm:$0xff] %v10318_v21  ;;  %vm10323_vm12 = vcmp.eq.s32.totalorder %v16579_v62, 1  ;;  %v1326_v54 = vsel %vm16584_vm0, %v16583_v56, %v16582_v25  ;;  %vm16590_vm0 = vmand %vm16574_vm3, %vm16494_vm11  ;;  %v7300_v56 = vunpack.i.l.bf16 %v10178_v14  ;;  %v16599_v62 = vmov 0 }
 0x687   :  { %v10383_v53 = vsel %vm16590_vm0, 1, %v16430_v58  ;;  %v1334_v43 = vsel %vm10209_vm1, %v1326_v54, 0.0  ;;  %vm10399_vm14 = vcmp.eq.s32.totalorder %v16595_v2, 1  ;;  %vm10410_vm1 = vcmp.eq.s32.totalorder %v16598_v16, 1  ;;  %v10430_v46 = vpop.permute.xlu0 %5890  ;;  %v10432_v59 = vpop.permute.xlu1 %7343 }
 0x688   :  { %16591 = vst [vmem:[#allocation200_spill] sm:$0xff] %v10383_v53  ;;  %v16600_v62 = vsel %vm10410_vm1, 4294967295, %v16599_v62  ;;  %v1656_v41 = vrot.slane %v1334_v43, 4  ;;  %16603 = vst [vmem:[#allocation202_spill] sm:$0xff] %v10430_v46  ;;  %v16605_v7 = vunpack.i.l.bf16 %v10251_v0  ;;  %v7341_v54 = vunpack.i.h.bf16 %v10369_v38 }
 0x689   :  { %16601 = vst [vmem:[#allocation201_spill] sm:$0xff] %v16600_v62  ;;  %v16607_v43 = vunpack.i.h.bf16 %v10178_v14  ;;  %vm16608_vm0 = vcmask 1031168   ;;  %7593 = vrot.lane.b32.xlu1 %v9355_v5, %s16609_s5  ;;  %7518 = vrot.lane.b32.xlu0 %v9339_v39, %s16492_s8  ;;  %v16612_v16 = vrot.slane %v9836_v10, %v8286_v29  ;;  %v7345_v55 = vunpack.i.l.bf16 %v10432_v59  ;;  %s16931_s8 = smov 47  }
 0x68a   :  { %v1415_v2 = vsel %vm16606_vm8, %v16605_v7, %v16604_v40  ;;  %v7325_v40 = vunpack.i.l.bf16 %v10304_v50  ;;  %vm16627_vm8 = vcmask 1014784   ;;  %v16646_v25 = vrot.slane %v9883_v49, %v8286_v29 }
 0x68b   :  { %v10460_v46 = vsel %vm16608_vm0, %v7300_v56, %v16607_v43  ;;  %vm16610_vm0 = vmand %vm16574_vm3, %vm9661_vm9  ;;  %v1423_v7 = vsel %vm10323_vm12, %v1415_v2, 0.0  ;;  %vm10491_vm4 = vcmp.eq.s32.totalorder %v16612_v16, 1  ;;  %v16613_v56 = vmov 0  ;;  %v10495_v26 = vpop.permute.xlu0 %6469  ;;  %v10497_v36 = vpop.permute.xlu1 %7358 }
 0x68c   :  { %v10480_v43 = vsel %vm16610_vm0, 1, %v16430_v58  ;;  %v16614_v56 = vsel %vm10491_vm4, 4294967295, %v16613_v56  ;;  %16616 = vst [vmem:[#allocation205_spill] sm:$0xff] %v10495_v26  ;;  %vm16617_vm0 = vnez %v16453_v52  ;;  %vm16621_vm12 = vmand %vm16574_vm3, %vm9677_vm13  ;;  %v16626_v26 = vunpack.i.h.bf16 %v10304_v50 }
 0x68d   :  { %16611 = vst [vmem:[#allocation203_spill] sm:$0xff] %v10480_v43  ;;  %16615 = vst [vmem:[#allocation204_spill] sm:$0xff] %v16614_v56  ;;  %v16618_v3 = vsel %vm16617_vm0, %v9140_v42, 0.0  ;;  %v10514_v2 = vsel %vm16621_vm12, 1, %v16430_v58  ;;  %vm10534_vm12 = vcmp.eq.s32.totalorder %v16629_v57, 1  ;;  %3462 = vrot.lane.b32.xlu1 %v9331_v17, %s16635_s3  ;;  %7523 = vrot.lane.b32.xlu0 %v9355_v5, %s16547_s19  ;;  %v7361_v35 = vunpack.i.h.bf16 %v10497_v36  ;;  %s17062_s19 = smov 41  }
 0x68e   :  { %v10504_v34 = vsel %vm16619_vm5, %v16618_v3, %v1656_v41  ;;  %16622 = vst [vmem:[#allocation207_spill] sm:$0xff] %v10514_v2  ;;  %vm16623_vm5 = vcmask 1006592   ;;  %v16624_v3 = vunpack.i.l.bf16 %v10369_v38  ;;  %v10529_v11 = vsel %vm16627_vm8, %v7325_v40, %v16626_v26  ;;  %vm16636_vm8 = vmand %vm16574_vm3, %vm9937_vm6 }
 0x68f   :  { %16620 = vst [vmem:[#allocation206_spill] sm:$0xff] %v10504_v34  ;;  %v1506_v41 = vsel %vm16623_vm5, %v7341_v54, %v9217_v18  ;;  %vm16625_vm0 = vmmov %vm16623_vm5  ;;  %v16632_v18 = vrot.slane %v9850_v31, %v8305_v33  ;;  %v10557_v57 = vsel %vm16636_vm8, 1, %v16430_v58  ;;  %v16638_v40 = vrot.slane %v9752_v15, %v8283_v28  ;;  %v10580_v51 = vpop.permute.xlu0 %6425  ;;  %v10582_v60 = vpop.permute.xlu1 %7368 }
 0x690   :  { %v1505_v16 = vsel %vm16625_vm0, %v16624_v3, %v7341_v54  ;;  %16628 = vst [vmem:[#allocation208_spill] sm:$0xff] %v10529_v11  ;;  %16637 = vst [vmem:[#allocation209_spill] sm:$0xff] %v10557_v57  ;;  %v10559_v54 = vrot.slane %v1423_v7, 4  ;;  %v1514_v7 = vsel %vm10399_vm14, %v1506_v41, 0.0  ;;  %vm10597_vm14 = vcmp.eq.s32.totalorder %v16646_v25, 1 }
 0x691   :  { %vm10541_vm5 = vcmp.eq.s32.totalorder %v16632_v18, 1  ;;  %vm10564_vm0 = vcmp.eq.s32.totalorder %v16638_v40, 1  ;;  %v1513_v26 = vsel %vm10392_vm15, %v1505_v16, 0.0  ;;  %16641 = vst [vmem:[#allocation210_spill] sm:$0xff] %v10580_v51  ;;  %16642 = vst [vmem:[#allocation211_spill] sm:$0xff] %v10582_v60  ;;  %v16643_v18 = vrot.slane %v9752_v15, %v8286_v29  ;;  %v16649_v40 = vld [vmem:[#allocation11_spill] sm:$0xff]  ;;  %3466 = vrot.lane.b32.xlu1 %v9319_v13, %s16635_s3  ;;  %7538 = vrot.lane.b32.xlu0 %v9339_v39, %s16553_s20 }
 0x692   :  { %vm16650_vm15 = vnez %v16649_v40  ;;  %v10623_v51 = vrot.slane %v1513_v26, 4  ;;  %vm10628_vm8 = vcmp.eq.s32.totalorder %v16652_v30, 1  ;;  %v16653_v25 = vmov 0  ;;  %s17084_s20 = smov 56   ;;  %s17328_s3 = smov 27  }
 0x693   :  { %vm10587_vm3 = vcmp.eq.s32.totalorder %v16643_v18, 1  ;;  %v10621_v18 = vrot.slane %v1514_v7, 4  ;;  %v16654_v25 = vsel %vm10628_vm8, 4294967295, %v16653_v25  ;;  %v16656_v2 = vrot.slane %v9875_v1, %v8305_v33  ;;  %v10648_v16 = vpop.permute.xlu1 %7373  ;;  %v7284_v62 = vpop.permute.xlu0 %7283  ;;  %vm16664_vm9 = vmand %vm16650_vm15, %vm16489_vm7 }
 0x694   :  { %16651 = vst [vmem:[#allocation212_spill] sm:$0xff] %v10623_v51  ;;  %16655 = vst [vmem:[#allocation213_spill] sm:$0xff] %v16654_v25  ;;  %v16657_v11 = vmov 0  ;;  %v16660_v8 = vunpack.i.h.bf16 %v10432_v59  ;;  %vm16661_vm13 = vcmask 998400   ;;  %v10660_v7 = vsel %vm16664_vm9, 1, %v16430_v58 }
 0x695   :  { %vm10635_vm6 = vcmp.eq.s32.totalorder %v16656_v2, 1  ;;  %16663 = vst [vmem:[#allocation216_spill] sm:$0xff] %v10648_v16  ;;  %16665 = vst [vmem:[#allocation217_spill] sm:$0xff] %v10660_v7  ;;  %v7286_v26 = vunpack.i.h.bf16 %v7284_v62  ;;  %v7285_v57 = vunpack.i.l.bf16 %v7284_v62  ;;  %v16666_v2 = vrot.slane %v9752_v15, %v8305_v33  ;;  %7603 = vrot.lane.b32.xlu1 %v9355_v5, %s16675_s2  ;;  %7543 = vrot.lane.b32.xlu0 %v9355_v5, %s8085_s28  ;;  %s16695_s28 = smov 63  }
 0x696   :  { %v16658_v11 = vsel %vm10635_vm6, 4294967295, %v16657_v11  ;;  %v10646_v30 = vsel %vm16661_vm13, %v7345_v55, %v16660_v8  ;;  %v7375_v8 = vunpack.i.l.bf16 %v10648_v16  ;;  %v16669_v1 = vrot.slane %v9923_v63, %v8286_v29 }
 0x697   :  { %16659 = vst [vmem:[#allocation214_spill] sm:$0xff] %v16658_v11  ;;  %16662 = vst [vmem:[#allocation215_spill] sm:$0xff] %v10646_v30  ;;  %vm10667_vm13 = vcmp.eq.s32.totalorder %v16666_v2, 1  ;;  %vm16672_vm9 = vcmask 990208   ;;  %v16673_v21 = vunpack.i.l.bf16 %v10497_v36  ;;  %v7371_v15 = vunpack.i.h.bf16 %v10582_v60  ;;  %v10720_v30 = vpop.permute.xlu0 %7293 }
 0x698   :  { %vm10674_vm1 = vcmp.eq.s32.totalorder %v16669_v1, 1  ;;  %v1596_v55 = vsel %vm16672_vm9, %v7361_v35, %v9225_v20  ;;  %vm16674_vm7 = vmmov %vm16672_vm9  ;;  %v16678_v63 = vrot.slane %v9903_v37, %v8305_v33  ;;  %v16679_v1 = vmov 0  ;;  %16688 = vst [vmem:[#allocation221_spill] sm:$0xff] %v10720_v30 }
 0x699   :  { %v1595_v62 = vsel %vm16674_vm7, %v16673_v21, %v7361_v35  ;;  %v16676_v35 = vunpack.i.l.bf16 %v10113_v6  ;;  %vm16677_vm7 = vcmask 1039360   ;;  %v16683_v21 = vrot.slane %v9903_v37, %v8302_v32  ;;  %7618 = vrot.lane.b32.xlu1 %v9339_v39, %s16695_s28  ;;  %7558 = vrot.lane.b32.xlu0 %v9339_v39, %s16570_s27  ;;  %s17165_s27 = smov 31  }
 0x69a   :  { %vm10704_vm10 = vcmp.eq.s32.totalorder %v16678_v63, 1  ;;  %vm16682_vm9 = vmmov %vm16677_vm7  ;;  %v16684_v20 = vmov 0  ;;  %v16689_v12 = vunpack.i.h.bf16 %v10648_v16  ;;  %v16702_v7 = vrot.slane %v9931_v19, %v8286_v29  ;;  %v16711_v16 = vld [vmem:[#allocation158_spill] sm:$0xff] }
 0x69b   :  { %v1325_v2 = vsel %vm16677_vm7, %v7286_v26, %v16676_v35  ;;  %v16680_v1 = vsel %vm10704_vm10, 4294967295, %v16679_v1  ;;  %v1324_v51 = vsel %vm16682_vm9, %v7285_v57, %v7286_v26  ;;  %vm10714_vm4 = vcmp.eq.s32.totalorder %v16683_v21, 1  ;;  %v10718_v35 = vpop.permute.xlu1 %7388 }
 0x69c   :  { %16681 = vst [vmem:[#allocation218_spill] sm:$0xff] %v16680_v1  ;;  %v16685_v20 = vsel %vm10714_vm4, 4294967295, %v16684_v20  ;;  %16687 = vst [vmem:[#allocation220_spill] sm:$0xff] %v10718_v35  ;;  %v1604_v26 = vsel %vm10541_vm5, %v1596_v55, 0.0  ;;  %v1603_v21 = vsel %vm10534_vm12, %v1595_v62, 0.0  ;;  %vm16690_vm9 = vcmask 908288  }
 0x69d   :  { %16686 = vst [vmem:[#allocation219_spill] sm:$0xff] %v16685_v20  ;;  %v1790_v44 = vsel %vm16690_vm9, %v7375_v8, %v16689_v12  ;;  %vm16691_vm4 = vmand %vm16650_vm15, %vm16490_vm2  ;;  %vm16693_vm12 = vcmask 916480   ;;  %v1333_v12 = vsel %vm10564_vm0, %v1325_v2, 0.0  ;;  %v7295_v55 = vunpack.i.l.bf16 %v10720_v30  ;;  %7623 = vrot.lane.b32.xlu1 %v9355_v5, %s16715_s0  ;;  %7563 = vrot.lane.b32.xlu0 %v9355_v5, %s8062_s14  ;;  %s16774_s14 = smov 60  }
 0x69e   :  { %v10741_v56 = vsel %vm16691_vm4, 1, %v16430_v58  ;;  %vm3815_vm5 = vmand %vm16650_vm15, %vm16494_vm11  ;;  %v10749_v52 = vsel %vm16693_vm12, %v7371_v15, %v9233_v9  ;;  %v16696_v8 = vrot.slane %v9775_v27, %v8283_v28  ;;  %v16699_v9 = vunpack.i.l.bf16 %v10582_v60 }
 0x69f   :  { %16692 = vst [vmem:[#allocation222_spill] sm:$0xff] %v10741_v56  ;;  %16694 = vst [vmem:[#allocation223_spill] sm:$0xff] %v10749_v52  ;;  %v1332_v2 = vsel %vm10587_vm3, %v1324_v51, 0.0  ;;  %v7391_v57 = vunpack.i.h.bf16 %v10718_v35  ;;  %v10775_v42 = vrot.slane %v1604_v26, 4  ;;  %v10777_v45 = vrot.slane %v1603_v21, 4  ;;  %v10788_v24 = vpop.permute.xlu1 %7393  ;;  %v10790_v51 = vpop.permute.xlu0 %7303 }
 0x6a0   :  { %vm10762_vm4 = vcmp.eq.s32.totalorder %v16696_v8, 1  ;;  %vm16700_vm0 = vmmov %vm16693_vm12  ;;  %v1798_v8 = vsel %vm10597_vm14, %v1790_v44, 0.0  ;;  %vm10784_vm9 = vcmp.eq.s32.totalorder %v16702_v7, 1  ;;  %v10798_v26 = vsel %vm3815_vm5, 1, %v16430_v58 }
 0x6a1   :  { %v10769_v3 = vsel %vm16700_vm0, %v16699_v9, %v7371_v15  ;;  %16705 = vst [vmem:[#allocation225_spill] sm:$0xff] %v10798_v26  ;;  %v1655_v44 = vrot.slane %v1333_v12, 4  ;;  %v16706_v41 = vunpack.i.h.bf16 %v10720_v30  ;;  %v16707_v7 = vunpack.i.h.bf16 %v10176_v23  ;;  %vm16708_vm3 = vmmov %vm16677_vm7  ;;  %7638 = vrot.lane.b32.xlu1 %v9339_v39, %s8094_s15  ;;  %7578 = vrot.lane.b32.xlu0 %v9339_v39, %s16588_s21  ;;  %s17192_s21 = smov 29  }
 0x6a2   :  { %16701 = vst [vmem:[#allocation224_spill] sm:$0xff] %v10769_v3  ;;  %v16709_v9 = vunpack.i.h.bf16 %v10113_v6  ;;  %vm16710_vm14 = vmmov %vm16708_vm3  ;;  %v16712_v60 = vrot.slane %v16711_v16, %v8302_v32  ;;  %v16716_v6 = vrot.slane %v9775_v27, %v8286_v29  ;;  %v16723_v30 = vunpack.i.l.bf16 %v10718_v35 }
 0x6a3   :  { %v6215_v21 = vsel %vm16708_vm3, %v16707_v7, %v16706_v41  ;;  %v1654_v41 = vrot.slane %v1332_v2, 4  ;;  %v10836_v7 = vrot.slane %v1798_v8, 4  ;;  %v16726_v23 = vrot.slane %v9775_v27, %v8305_v33  ;;  %v7309_v56 = vpop.permute.xlu0 %7308 }
 0x6a4   :  { %v1327_v63 = vsel %vm16710_vm14, %v16709_v9, %v7295_v55  ;;  %vm10811_vm12 = vcmp.eq.s32.totalorder %v16712_v60, 1  ;;  %vm10827_vm0 = vcmp.eq.s32.totalorder %v16716_v6, 1  ;;  %v16720_v9 = vld [vmem:[#allocation63_spill] sm:$0xff]  ;;  %vm16721_vm14 = vcmask 900096   ;;  %v10869_v55 = vpop.permute.xlu1 %7408 }
 0x6a5   :  { %16719 = vst [vmem:[#allocation158_spill] sm:$0xff] %v10836_v7  ;;  %v10840_v12 = vsel %vm16721_vm14, %v7391_v57, %v16720_v9  ;;  %vm16724_vm5 = vmmov %vm16721_vm14  ;;  %vm10850_vm3 = vcmp.eq.s32.totalorder %v16726_v23, 1  ;;  %v16729_v8 = vrot.slane %v16711_v16, %v8283_v28  ;;  %v1335_v27 = vsel %vm10667_vm13, %v1327_v63, 0.0  ;;  %7643 = vrot.lane.b32.xlu1 %v9355_v5, %s16774_s14  ;;  %7583 = vrot.lane.b32.xlu0 %v9355_v5, %s16602_s13  ;;  %s17220_s13 = smov 32  }
 0x6a6   :  { %16722 = vst [vmem:[#allocation63_spill] sm:$0xff] %v10840_v12  ;;  %v10845_v6 = vsel %vm16724_vm5, %v16723_v30, %v7391_v57  ;;  %v6223_v30 = vsel %vm10674_vm1, %v6215_v21, 0.0  ;;  %v7395_v57 = vunpack.i.l.bf16 %v10788_v24  ;;  %16732 = vst [vmem:[#allocation227_spill] sm:$0xff] %v10869_v55  ;;  %v16735_v25 = vmov 0  ;;  %v16797_v12 = vld [vmem:[#allocation179_spill] sm:$0xff] }
 0x6a7   :  { %16725 = vst [vmem:[#allocation226_spill] sm:$0xff] %v10845_v6  ;;  %vm10857_vm7 = vcmp.eq.s32.totalorder %v16729_v8, 1  ;;  %v16733_v8 = vld [vmem:[#allocation173_spill] sm:$0xff]  ;;  %v16738_v61 = vrot.slane %v16711_v16, %v8305_v33  ;;  %v7306_v63 = vunpack.i.h.bf16 %v10790_v51  ;;  %v7305_v21 = vunpack.i.l.bf16 %v10790_v51  ;;  %v10948_v20 = vpop.permute.xlu0 %7318 }
 0x6a8   :  { %v16734_v3 = vrot.slane %v16733_v8, %v8305_v33  ;;  %v16741_v9 = vrot.slane %v16733_v8, %v8302_v32  ;;  %v16742_v23 = vmov 0  ;;  %vm16752_vm2 = vcmask 1043456   ;;  %v10946_v48 = vpop.permute.xlu1 %7413  ;;  %16770 = vst [vmem:[#allocation230_spill] sm:$0xff] %v10948_v20 }
 0x6a9   :  { %vm10881_vm1 = vcmp.eq.s32.totalorder %v16738_v61, 1  ;;  %v16749_v61 = vld [vmem:[#allocation137_spill] sm:$0xff]  ;;  %v7311_v11 = vunpack.i.h.bf16 %v7309_v56  ;;  %vm16762_vm6 = vcmask 1043456   ;;  %v1657_v7 = vrot.slane %v1335_v27, 4  ;;  %7658 = vrot.lane.b32.xlu1 %v9339_v39, %s16819_s24  ;;  %7598 = vrot.lane.b32.xlu0 %v9339_v39, %s16609_s5  ;;  %s17240_s5 = smov 30  }
 0x6aa   :  { %vm10874_vm5 = vcmp.eq.s32.totalorder %v16734_v3, 1  ;;  %vm10890_vm13 = vcmp.eq.s32.totalorder %v16741_v9, 1  ;;  %v16745_v3 = vld [vmem:[#allocation176_spill] sm:$0xff]  ;;  %vm16750_vm11 = vnez %v16749_v61  ;;  %v16760_v9 = vld [vmem:[#allocation59_spill] sm:$0xff]  ;;  %v7310_v58 = vunpack.i.l.bf16 %v7309_v56 }
 0x6ab   :  { %v16736_v25 = vsel %vm10874_vm5, 4294967295, %v16735_v25  ;;  %v16743_v23 = vsel %vm10890_vm13, 4294967295, %v16742_v23  ;;  %v16746_v26 = vrot.slane %v16745_v3, %v8286_v29  ;;  %v16751_v52 = vsel %vm16750_vm11, %v9331_v17, 0.0 }
 0x6ac   :  { %16737 = vst [vmem:[#allocation228_spill] sm:$0xff] %v16736_v25  ;;  %16744 = vst [vmem:[#allocation229_spill] sm:$0xff] %v16743_v23  ;;  %v10906_v51 = vsel %vm16752_vm2, %v16751_v52, %v1655_v44  ;;  %v16758_v44 = vld [vmem:[#allocation139_spill] sm:$0xff]  ;;  %v16766_v52 = vunpack.i.h.bf16 %v10788_v24  ;;  %vm16767_vm11 = vcmask 891904   ;;  %v16782_v27 = vmov 0  ;;  %v11005_v6 = vpop.permute.xlu1 %7428 }
 0x6ad   :  { %vm10897_vm14 = vcmp.eq.s32.totalorder %v16746_v26, 1  ;;  %16753 = vst [vmem:[#allocation137_spill] sm:$0xff] %v10906_v51  ;;  %v16754_v26 = vld [vmem:[#allocation177_spill] sm:$0xff]  ;;  %vm16759_vm2 = vnez %v16758_v44  ;;  %16796 = vst [vmem:[#allocation232_spill] sm:$0xff] %v11005_v6  ;;  %v16812_v60 = vunpack.i.h.bf16 %v10948_v20  ;;  %7663 = vrot.lane.b32.xlu1 %v9355_v5, %s16840_s25  ;;  %7608 = vrot.lane.b32.xlu0 %v9339_v39, %s16675_s2  ;;  %v16841_v61 = vrot.slane %v9850_v31, %v8283_v28  ;;  %s17376_s2 = smov 25  }
 0x6ae   :  { %v16755_v3 = vrot.slane %v16754_v26, %v8286_v29  ;;  %v16761_v17 = vsel %vm16759_vm2, %v16760_v9, 0.0  ;;  %v10936_v26 = vrot.slane %v6223_v30, 4  ;;  %v1879_v44 = vsel %vm16767_vm11, %v7395_v57, %v16766_v52  ;;  %v16772_v52 = vld [vmem:[#allocation60_spill] sm:$0xff] }
 0x6af   :  { %v10929_v8 = vsel %vm16762_vm6, %v16761_v17, %v1654_v41  ;;  %v7411_v9 = vunpack.i.h.bf16 %v10869_v55  ;;  %v16768_v41 = vunpack.i.l.bf16 %v10251_v0  ;;  %vm16769_vm6 = vcmask 1022976  }
 0x6b0   :  { %vm10917_vm8 = vcmp.eq.s32.totalorder %v16755_v3, 1  ;;  %16763 = vst [vmem:[#allocation139_spill] sm:$0xff] %v10929_v8  ;;  %16765 = vst [vmem:[#allocation59_spill] sm:$0xff] %v10936_v26  ;;  %vm16771_vm2 = vcmask 1031168   ;;  %v7415_v17 = vunpack.i.l.bf16 %v10946_v48  ;;  %v16777_v57 = vmov 0 }
 0x6b1   :  { %v1414_v35 = vsel %vm16769_vm6, %v7311_v11, %v16768_v41  ;;  %v1370_v30 = vsel %vm16771_vm2, %v7305_v21, %v7306_v63  ;;  %vm16773_vm15 = vmmov %vm16771_vm2  ;;  %v1413_v41 = vsel %vm16769_vm6, %v7310_v58, %v7311_v11  ;;  %v1887_v58 = vsel %vm10784_vm9, %v1879_v44, 0.0  ;;  %7678 = vrot.lane.b32.xlu1 %v9339_v39, %s8097_s17  ;;  %7613 = vrot.lane.b32.xlu0 %v9355_v5, %s16695_s28 }
 0x6b2   :  { %v1422_v56 = vsel %vm10762_vm4, %v1414_v35, 0.0  ;;  %v10958_v3 = vsel %vm16773_vm15, %v7306_v63, %v16772_v52  ;;  %v16775_v35 = vld [vmem:[#allocation178_spill] sm:$0xff]  ;;  %v16779_v11 = vunpack.i.h.bf16 %v10178_v14  ;;  %vm16780_vm15 = vmmov %vm16771_vm2  ;;  %v7320_v52 = vunpack.i.l.bf16 %v10948_v20 }
 0x6b3   :  { %v16776_v62 = vrot.slane %v16775_v35, %v8305_v33  ;;  %v16781_v26 = vrot.slane %v16775_v35, %v8302_v32  ;;  %vm16788_vm11 = vcmask 1043456   ;;  %v1378_v14 = vsel %vm10811_vm12, %v1370_v30, 0.0 }
 0x6b4   :  { %v1369_v63 = vsel %vm16780_vm15, %v16779_v11, %v7305_v21  ;;  %v16790_v21 = vld [vmem:[#allocation65_spill] sm:$0xff]  ;;  %vm16791_vm9 = vcmask 883712   ;;  %v16793_v11 = vunpack.i.l.bf16 %v10869_v55  ;;  %v1667_v35 = vrot.slane %v1422_v56, 4 }
 0x6b5   :  { %vm10970_vm4 = vcmp.eq.s32.totalorder %v16776_v62, 1  ;;  %vm10983_vm2 = vcmp.eq.s32.totalorder %v16781_v26, 1  ;;  %v16785_v62 = vld [vmem:[#allocation138_spill] sm:$0xff]  ;;  %v10998_v44 = vsel %vm16791_vm9, %v7411_v9, %v16790_v21  ;;  %vm16794_vm15 = vmmov %vm16791_vm9  ;;  %v16805_v56 = vunpack.i.h.bf16 %v10946_v48  ;;  %7683 = vrot.lane.b32.xlu1 %v9355_v5, %s16899_s30  ;;  %7628 = vrot.lane.b32.xlu0 %v9339_v39, %s16715_s0 }
 0x6b6   :  { %v16778_v57 = vsel %vm10970_vm4, 4294967295, %v16777_v57  ;;  %v16783_v27 = vsel %vm10983_vm2, 4294967295, %v16782_v27  ;;  %vm16786_vm6 = vnez %v16785_v62  ;;  %16792 = vst [vmem:[#allocation65_spill] sm:$0xff] %v10998_v44  ;;  %v11003_v26 = vsel %vm16794_vm15, %v16793_v11, %v7411_v9  ;;  %v11007_v62 = vpop.permute.xlu0 %7328 }
 0x6b7   :  { %16784 = vst [vmem:[#allocation60_spill] sm:$0xff] %v16783_v27  ;;  %v16787_v53 = vsel %vm16786_vm6, %v9319_v13, 0.0  ;;  %16795 = vst [vmem:[#allocation231_spill] sm:$0xff] %v11003_v26  ;;  %v1421_v9 = vsel %vm10827_vm0, %v1413_v41, 0.0  ;;  %vm16806_vm9 = vcmask 875520   ;;  %vm16808_vm15 = vcmask 1022976  }
 0x6b8   :  { %v10992_v15 = vsel %vm16788_vm11, %v16787_v53, %v1657_v7  ;;  %v16798_v53 = vrot.slane %v16797_v12, %v8286_v29  ;;  %v16801_v7 = vld [vmem:[#allocation164_spill] sm:$0xff]  ;;  %v1969_v11 = vsel %vm16806_vm9, %v7415_v17, %v16805_v56  ;;  %v7431_v12 = vunpack.i.h.bf16 %v11005_v6  ;;  %vm16814_vm0 = vmmov %vm16808_vm15 }
 0x6b9   :  { %16789 = vst [vmem:[#allocation138_spill] sm:$0xff] %v10992_v15  ;;  %v16802_v30 = vrot.slane %v16801_v7, %v8283_v28  ;;  %v11039_v13 = vrot.slane %v1887_v58, 4  ;;  %v16813_v41 = vunpack.i.h.bf16 %v10249_v22  ;;  %v1377_v58 = vsel %vm10857_vm7, %v1369_v63, 0.0  ;;  %v16904_v15 = vld [vmem:[#allocation62_spill] sm:$0xff]  ;;  %7633 = vrot.lane.b32.xlu0 %v9355_v5, %s8094_s15  ;;  %s16954_s15 = smov 45  }
 0x6ba   :  { %vm11012_vm11 = vcmp.eq.s32.totalorder %v16798_v53, 1  ;;  %v16807_v53 = vunpack.i.h.bf16 %v10251_v0  ;;  %v1977_v49 = vsel %vm10897_vm14, %v1969_v11, 0.0  ;;  %vm16839_vm14 = vcmask 867328  }
 0x6bb   :  { %vm11019_vm12 = vcmp.eq.s32.totalorder %v16802_v30, 1  ;;  %v16809_v30 = vrot.slane %v16801_v7, %v8286_v29  ;;  %v6303_v17 = vsel %vm16814_vm0, %v16813_v41, %v16812_v60  ;;  %v1379_v60 = vsel %vm10881_vm1, %v10958_v3, 0.0  ;;  %v11091_v3 = vpop.permute.xlu1 %7433 }
 0x6bc   :  { %v1416_v55 = vsel %vm16808_vm15, %v16807_v53, %v7320_v52  ;;  %v16815_v52 = vld [vmem:[#allocation162_spill] sm:$0xff]  ;;  %vm16823_vm15 = vcmask 1043456   ;;  %v16834_v53 = vmov 0  ;;  %v7331_v20 = vunpack.i.h.bf16 %v11007_v62 }
 0x6bd   :  { %vm11035_vm10 = vcmp.eq.s32.totalorder %v16809_v30, 1  ;;  %v1424_v0 = vsel %vm10850_vm3, %v1416_v55, 0.0  ;;  %v16816_v56 = vrot.slane %v16815_v52, %v8302_v32  ;;  %v16820_v47 = vrot.slane %v16815_v52, %v8283_v28  ;;  %v7334_v30 = vpop.permute.xlu0 %7333  ;;  %7648 = vrot.lane.b32.xlu0 %v9339_v39, %s16774_s14  ;;  %s17504_s14 = smov 15  }
 0x6be   :  { %v11077_v2 = vsel %vm16823_vm15, %v1378_v14, %v10559_v54  ;;  %v16825_v63 = vrot.slane %v16815_v52, %v8305_v33  ;;  %v16828_v54 = vld [vmem:[#allocation182_spill] sm:$0xff]  ;;  %v16830_v52 = vmov 0  ;;  %v11108_v16 = vsel %vm16823_vm15, %v1377_v58, %v1667_v35  ;;  %vm16845_vm15 = vmmov %vm16839_vm14  ;;  %v16927_v35 = vld [vmem:[#allocation73_spill] sm:$0xff] }
 0x6bf   :  { %vm11051_vm9 = vcmp.eq.s32.totalorder %v16816_v56, 1  ;;  %vm11064_vm3 = vcmp.eq.s32.totalorder %v16820_v47, 1  ;;  %16824 = vst [vmem:[#allocation164_spill] sm:$0xff] %v11077_v2  ;;  %v1666_v47 = vrot.slane %v1421_v9, 4  ;;  %v16829_v14 = vrot.slane %v16828_v54, %v8286_v29  ;;  %16837 = vst [vmem:[#allocation233_spill] sm:$0xff] %v11108_v16  ;;  %v16838_v56 = vld [vmem:[#allocation67_spill] sm:$0xff] }
 0x6c0   :  { %vm11082_vm7 = vcmp.eq.s32.totalorder %v16825_v63, 1  ;;  %v16833_v63 = vrot.slane %v16828_v54, %v8283_v28  ;;  %v6311_v9 = vsel %vm10917_vm8, %v6303_v17, 0.0  ;;  %v1669_v11 = vrot.slane %v1424_v0, 4 }
 0x6c1   :  { %vm11096_vm1 = vcmp.eq.s32.totalorder %v16829_v14, 1  ;;  %v11114_v14 = vsel %vm16839_vm14, %v7431_v12, %v16838_v56  ;;  %v7330_v22 = vunpack.i.l.bf16 %v11007_v62  ;;  %v7435_v26 = vunpack.i.l.bf16 %v11091_v3  ;;  %7653 = vrot.lane.b32.xlu0 %v9355_v5, %s16819_s24  ;;  %s17567_s24 = smov 16  }
 0x6c2   :  { %v16831_v52 = vsel %vm11096_vm1, 4294967295, %v16830_v52  ;;  %vm11103_vm0 = vcmp.eq.s32.totalorder %v16833_v63, 1  ;;  %v7336_v23 = vunpack.i.h.bf16 %v7334_v30  ;;  %vm11127_vm8 = vcmp.eq.s32.totalorder %v16841_v61, 1 }
 0x6c3   :  { %16832 = vst [vmem:[#allocation162_spill] sm:$0xff] %v16831_v52  ;;  %v16835_v53 = vsel %vm11103_vm0, 4294967295, %v16834_v53  ;;  %v16844_v62 = vunpack.i.l.bf16 %v11005_v6  ;;  %v7335_v0 = vunpack.i.l.bf16 %v7334_v30  ;;  %v16847_v58 = vrot.slane %v9850_v31, %v8286_v29  ;;  %v16973_v52 = vld [vmem:[#allocation201_spill] sm:$0xff] }
 0x6c4   :  { %16836 = vst [vmem:[#allocation182_spill] sm:$0xff] %v16835_v53  ;;  %v16848_v56 = vmov 0  ;;  %v11147_v44 = vrot.slane %v1977_v49, 4  ;;  %v11149_v25 = vrot.slane %v6311_v9, 4  ;;  %v16853_v31 = vunpack.i.l.bf16 %v10369_v38  ;;  %v11164_v49 = vpop.permute.xlu0 %7348 }
 0x6c5   :  { %v11134_v17 = vsel %vm16845_vm15, %v16844_v62, %v7431_v12  ;;  %vm11139_vm14 = vcmp.eq.s32.totalorder %v16847_v58, 1  ;;  %v16851_v12 = vunpack.i.h.bf16 %v11091_v3  ;;  %vm16852_vm15 = vcmask 859136   ;;  %v2096_v58 = vpop.permute.xlu1 %2095  ;;  %7668 = vrot.lane.b32.xlu0 %v9339_v39, %s16840_s25  ;;  %s17618_s25 = smov 24  }
 0x6c6   :  { %16846 = vst [vmem:[#allocation67_spill] sm:$0xff] %v11134_v17  ;;  %v16849_v56 = vsel %vm11139_vm14, 4294967295, %v16848_v56  ;;  %16850 = vst [vmem:[#allocation234_spill] sm:$0xff] %v11149_v25  ;;  %vm16854_vm6 = vcmask 1006592   ;;  %v16855_v6 = vrot.slane %v9836_v10, %v8302_v32  ;;  %v16856_v63 = vmov 0  ;;  %v16981_v17 = vld [vmem:[#allocation75_spill] sm:$0xff] }
 0x6c7   :  { %v2059_v30 = vsel %vm16852_vm15, %v7435_v26, %v16851_v12  ;;  %v1504_v62 = vsel %vm16854_vm6, %v7336_v23, %v16853_v31  ;;  %v16858_v9 = vrot.slane %v9836_v10, %v8305_v33  ;;  %vm16861_vm15 = vmmov %vm16854_vm6  ;;  %v16862_v26 = vrot.slane %v16828_v54, %v8302_v32  ;;  %v16880_v31 = vld [vmem:[#allocation69_spill] sm:$0xff] }
 0x6c8   :  { %vm11160_vm13 = vcmp.eq.s32.totalorder %v16855_v6, 1  ;;  %v1503_v38 = vsel %vm16861_vm15, %v7335_v0, %v7336_v23  ;;  %v16863_v12 = vmov 0  ;;  %vm16868_vm15 = vcmask 1043456  }
 0x6c9   :  { %v16857_v63 = vsel %vm11160_vm13, 4294967295, %v16856_v63  ;;  %vm11169_vm5 = vcmp.eq.s32.totalorder %v16858_v9, 1  ;;  %vm11177_vm6 = vcmp.eq.s32.totalorder %v16862_v26, 1  ;;  %vm16866_vm13 = vnez %v16587_v4  ;;  %7673 = vrot.lane.b32.xlu0 %v9355_v5, %s8097_s17  ;;  %s17083_s17 = smov 44  }
 0x6ca   :  { %v16864_v12 = vsel %vm11177_vm6, 4294967295, %v16863_v12  ;;  %v16867_v9 = vsel %vm16866_vm13, %v10460_v46, 0.0  ;;  %v16870_v26 = vunpack.i.h.bf16 %v10304_v50  ;;  %vm16871_vm14 = vcmask 1014784   ;;  %v16878_v50 = vld [vmem:[#allocation61_spill] sm:$0xff] }
 0x6cb   :  { %16865 = vst [vmem:[#allocation235_spill] sm:$0xff] %v16864_v12  ;;  %v11191_v23 = vsel %vm16868_vm15, %v16867_v9, %v1666_v47  ;;  %vm16872_vm6 = vmmov %vm16871_vm14  ;;  %v16873_v46 = vrot.slane %v16828_v54, %v8305_v33  ;;  %v16874_v4 = vmov 0  ;;  %v11212_v47 = vsel %vm16868_vm15, %v1379_v60, %v1669_v11  ;;  %v16886_v60 = vld [vmem:[#allocation71_spill] sm:$0xff] }
 0x6cc   :  { %16869 = vst [vmem:[#allocation236_spill] sm:$0xff] %v11191_v23  ;;  %v1459_v25 = vsel %vm16871_vm14, %v16870_v26, %v7330_v22  ;;  %v1460_v6 = vsel %vm16872_vm6, %v7330_v22, %v7331_v20  ;;  %16877 = vst [vmem:[#allocation238_spill] sm:$0xff] %v11212_v47  ;;  %v2067_v22 = vsel %vm11012_vm11, %v2059_v30, 0.0  ;;  %v1512_v26 = vsel %vm11019_vm12, %v1504_v62, 0.0  ;;  %v2100_v30 = vpop.permute.xlu1 %2099  ;;  %v7354_v62 = vpop.permute.xlu0 %7353 }
 0x6cd   :  { %vm11207_vm13 = vcmp.eq.s32.totalorder %v16873_v46, 1  ;;  %vm16879_vm14 = vmmov %vm16872_vm6  ;;  %vm16881_vm6 = vcmask 850944   ;;  %v16883_v54 = vrot.slane %v9836_v10, %v8283_v28  ;;  %v7351_v21 = vunpack.i.h.bf16 %v11164_v49  ;;  %v16983_v46 = vld [vmem:[#allocation66_spill] sm:$0xff] }
 0x6ce   :  { %v16875_v4 = vsel %vm11207_vm13, 4294967295, %v16874_v4  ;;  %v1461_v9 = vsel %vm16879_vm14, %v7331_v20, %v16878_v50  ;;  %v11222_v0 = vsel %vm16881_vm6, %v16880_v31, %v2096_v58  ;;  %v1511_v20 = vsel %vm11035_vm10, %v1503_v38, 0.0  ;;  %vm16887_vm15 = vmmov %vm16881_vm6  ;;  %v16889_v31 = vld [vmem:[#allocation184_spill] sm:$0xff]  ;;  %v16894_v38 = vld [vmem:[#allocation183_spill] sm:$0xff] }
 0x6cf   :  { %16876 = vst [vmem:[#allocation237_spill] sm:$0xff] %v16875_v4  ;;  %16882 = vst [vmem:[#allocation61_spill] sm:$0xff] %v11222_v0  ;;  %vm11227_vm2 = vcmp.eq.s32.totalorder %v16883_v54, 1  ;;  %v11235_v19 = vsel %vm16887_vm15, %v2096_v58, %v16886_v60  ;;  %v7350_v11 = vunpack.i.l.bf16 %v11164_v49  ;;  %v16890_v10 = vrot.slane %v16889_v31, %v8286_v29 }
 0x6d0   :  { %16888 = vst [vmem:[#allocation69_spill] sm:$0xff] %v11235_v19  ;;  %v16891_v50 = vmov 0  ;;  %v1468_v1 = vsel %vm11051_vm9, %v1460_v6, 0.0  ;;  %v16895_v58 = vrot.slane %v16894_v38, %v8302_v32  ;;  %v16896_v54 = vmov 0  ;;  %vm16907_vm14 = vmmov %vm16881_vm6 }
 0x6d1   :  { %vm11242_vm11 = vcmp.eq.s32.totalorder %v16890_v10, 1  ;;  %v1467_v10 = vsel %vm11064_vm3, %v1459_v25, 0.0  ;;  %v11261_v34 = vrot.slane %v2067_v22, 4  ;;  %v1679_v7 = vrot.slane %v1512_v26, 4 }
 0x6d2   :  { %v16892_v50 = vsel %vm11242_vm11, 4294967295, %v16891_v50  ;;  %vm11251_vm10 = vcmp.eq.s32.totalorder %v16895_v58, 1  ;;  %v7356_v6 = vunpack.i.h.bf16 %v7354_v62  ;;  %v16900_v58 = vld [vmem:[#allocation185_spill] sm:$0xff]  ;;  %v1469_v25 = vsel %vm11082_vm7, %v1461_v9, 0.0 }
 0x6d3   :  { %16893 = vst [vmem:[#allocation71_spill] sm:$0xff] %v16892_v50  ;;  %v16897_v54 = vsel %vm11251_vm10, 4294967295, %v16896_v54  ;;  %v16901_v2 = vrot.slane %v16900_v58, %v8286_v29  ;;  %v1678_v55 = vrot.slane %v1511_v20, 4  ;;  %v7355_v26 = vunpack.i.l.bf16 %v7354_v62  ;;  %v11292_v20 = vpop.permute.xlu1 %7448  ;;  %v1630_v62 = vpop.permute.xlu0 %1629 }
 0x6d4   :  { %16898 = vst [vmem:[#allocation184_spill] sm:$0xff] %v16897_v54  ;;  %vm16905_vm9 = vcmask 998400   ;;  %v11287_v8 = vsel %vm16907_vm14, %v16886_v60, %v2100_v30  ;;  %v16909_v41 = vunpack.i.l.bf16 %v10497_v36  ;;  %vm16910_vm7 = vcmask 990208  }
 0x6d5   :  { %vm11270_vm12 = vcmp.eq.s32.totalorder %v16901_v2, 1  ;;  %v1551_v47 = vsel %vm16905_vm9, %v7351_v21, %v16904_v15  ;;  %vm16906_vm3 = vmmov %vm16905_vm9  ;;  %16908 = vst [vmem:[#allocation183_spill] sm:$0xff] %v11287_v8  ;;  %v16911_v22 = vrot.slane %v16889_v31, %v8302_v32  ;;  %v16912_v43 = vmov 0  ;;  %v17063_v8 = vld [vmem:[#allocation191_spill] sm:$0xff] }
 0x6d6   :  { %v1550_v2 = vsel %vm16906_vm3, %v7350_v11, %v7351_v21  ;;  %v1594_v9 = vsel %vm16910_vm7, %v7356_v6, %v16909_v41  ;;  %v16915_v15 = vrot.slane %v16889_v31, %v8283_v28  ;;  %v16916_v60 = vmov 0  ;;  %vm16919_vm9 = vmmov %vm16910_vm7 }
 0x6d7   :  { %vm11297_vm6 = vcmp.eq.s32.totalorder %v16911_v22, 1  ;;  %v1602_v36 = vsel %vm11127_vm8, %v1594_v9, 0.0  ;;  %v1593_v21 = vsel %vm16919_vm9, %v7355_v26, %v7356_v6  ;;  %v7451_v41 = vunpack.i.h.bf16 %v11292_v20 }
 0x6d8   :  { %v16913_v43 = vsel %vm11297_vm6, 4294967295, %v16912_v43  ;;  %vm11304_vm15 = vcmp.eq.s32.totalorder %v16915_v15, 1  ;;  %v16920_v22 = vrot.slane %v16889_v31, %v8305_v33  ;;  %v16921_v51 = vmov 0  ;;  %v16932_v31 = vld [vmem:[#allocation146_spill] sm:$0xff] }
 0x6d9   :  { %16914 = vst [vmem:[#allocation185_spill] sm:$0xff] %v16913_v43  ;;  %v16917_v60 = vsel %vm11304_vm15, 4294967295, %v16916_v60  ;;  %v16924_v15 = vrot.slane %v16894_v38, %v8305_v33  ;;  %v16925_v16 = vmov 0  ;;  %vm16928_vm8 = vcmask 850944   ;;  %7693 = vrot.lane.b32.xlu1 %v16932_v31, %s16931_s8 }
 0x6da   :  { %16918 = vst [vmem:[#allocation62_spill] sm:$0xff] %v16917_v60  ;;  %vm11316_vm3 = vcmp.eq.s32.totalorder %v16920_v22, 1  ;;  %v11329_v6 = vsel %vm16928_vm8, %v2100_v30, %v16927_v35  ;;  %vm16930_vm7 = vnez %v16849_v56  ;;  %vm16933_vm9 = vcmask 1043456   ;;  %v16940_v35 = vld [vmem:[#allocation212_spill] sm:$0xff] }
 0x6db   :  { %v16922_v51 = vsel %vm11316_vm3, 4294967295, %v16921_v51  ;;  %vm11323_vm14 = vcmp.eq.s32.totalorder %v16924_v15, 1  ;;  %16929 = vst [vmem:[#allocation73_spill] sm:$0xff] %v11329_v6  ;;  %v1601_v26 = vsel %vm16930_vm7, %v1593_v21, 0.0  ;;  %v11338_v9 = vsel %vm16933_vm9, %v1467_v10, %v1679_v7  ;;  %vm16935_vm1 = vmmov %vm16933_vm9 }
 0x6dc   :  { %16923 = vst [vmem:[#allocation239_spill] sm:$0xff] %v16922_v51  ;;  %v16926_v16 = vsel %vm11323_vm14, 4294967295, %v16925_v16  ;;  %16934 = vst [vmem:[#allocation146_spill] sm:$0xff] %v11338_v9  ;;  %v11342_v22 = vsel %vm16935_vm1, %v1469_v25, %v10621_v18  ;;  %v16937_v15 = vunpack.i.h.bf16 %v10432_v59  ;;  %vm16938_vm8 = vcmask 998400   ;;  %v16944_v25 = vld [vmem:[#allocation64_spill] sm:$0xff] }
 0x6dd   :  { %16936 = vst [vmem:[#allocation240_spill] sm:$0xff] %v11342_v22  ;;  %vm16939_vm0 = vnez %v16857_v63  ;;  %v1559_v21 = vsel %vm11169_vm5, %v1551_v47, 0.0  ;;  %vm16941_vm7 = vmmov %vm16935_vm1  ;;  %v1691_v18 = vrot.slane %v1602_v36, 4  ;;  %v1690_v7 = vrot.slane %v1601_v26, 4  ;;  %v1634_v63 = vpop.permute.xlu0 %1633  ;;  %7703 = vrot.lane.b32.xlu1 %v16932_v31, %s16954_s15 }
 0x6de   :  { %v1549_v30 = vsel %vm16938_vm8, %v16937_v15, %v7350_v11  ;;  %v1558_v56 = vsel %vm16939_vm0, %v1550_v2, 0.0  ;;  %v11353_v23 = vsel %vm16941_vm7, %v1468_v1, %v16940_v35  ;;  %vm16945_vm1 = vcmask 982016   ;;  %v11362_v11 = vpop.permute.xlu1 %7453  ;;  %v16950_v15 = vld [vmem:[#allocation169_spill] sm:$0xff]  ;;  %v16964_v35 = vld [vmem:[#allocation188_spill] sm:$0xff] }
 0x6df   :  { %16942 = vst [vmem:[#allocation212_spill] sm:$0xff] %v11353_v23  ;;  %v11360_v59 = vsel %vm16945_vm1, %v16944_v25, %v1630_v62  ;;  %v16947_v61 = vunpack.i.l.bf16 %v11292_v20  ;;  %vm16948_vm5 = vcmask 785408   ;;  %v7455_v2 = vunpack.i.l.bf16 %v11362_v11  ;;  %v16955_v25 = vld [vmem:[#allocation187_spill] sm:$0xff] }
 0x6e0   :  { %16946 = vst [vmem:[#allocation64_spill] sm:$0xff] %v11360_v59  ;;  %v16951_v36 = vrot.slane %v16950_v15, %v8305_v33  ;;  %v16957_v10 = vmov 0  ;;  %v16965_v12 = vrot.slane %v16964_v35, %v8286_v29  ;;  %v16966_v6 = vmov 0 }
 0x6e1   :  { %v11367_v47 = vsel %vm16948_vm5, %v16947_v61, %v7451_v41  ;;  %v16956_v61 = vrot.slane %v16955_v25, %v8302_v32  ;;  %v16969_v4 = vmov 0  ;;  %vm16971_vm9 = vcmask 1043456  }
 0x6e2   :  { %16949 = vst [vmem:[#allocation241_spill] sm:$0xff] %v11367_v47  ;;  %vm11374_vm8 = vcmp.eq.s32.totalorder %v16951_v36, 1  ;;  %v16960_v36 = vld [vmem:[#allocation168_spill] sm:$0xff]  ;;  %vm11402_vm5 = vcmp.eq.s32.totalorder %v16965_v12, 1  ;;  %v11417_v0 = vsel %vm16971_vm9, %v1559_v21, %v10775_v42  ;;  %vm16974_vm13 = vnez %v16973_v52  ;;  %vm16977_vm4 = vmmov %vm16971_vm9  ;;  %v11465_v21 = vpop.permute.xlu1 %7468  ;;  %v17040_v47 = vld [vmem:[#allocation211_spill] sm:$0xff] }
 0x6e3   :  { %vm11388_vm7 = vcmp.eq.s32.totalorder %v16956_v61, 1  ;;  %v16961_v1 = vrot.slane %v16960_v36, %v8286_v29  ;;  %v16967_v6 = vsel %vm11402_vm5, 4294967295, %v16966_v6  ;;  %v16968_v61 = vrot.slane %v16950_v15, %v8283_v28  ;;  %16972 = vst [vmem:[#allocation187_spill] sm:$0xff] %v11417_v0  ;;  %v16975_v12 = vld [vmem:[#allocation208_spill] sm:$0xff]  ;;  %vm16979_vm5 = vmmov %vm16977_vm4  ;;  %v17079_v0 = vld [vmem:[#allocation173_spill] sm:$0xff] }
 0x6e4   :  { %v16958_v10 = vsel %vm11388_vm7, 4294967295, %v16957_v10  ;;  %v16976_v19 = vsel %vm16974_vm13, %v16975_v12, 0.0  ;;  %v16986_v52 = vunpack.i.h.bf16 %v11362_v11  ;;  %v16997_v12 = vld [vmem:[#allocation204_spill] sm:$0xff]  ;;  %v7471_v49 = vunpack.i.h.bf16 %v11465_v21 }
 0x6e5   :  { %16959 = vst [vmem:[#allocation169_spill] sm:$0xff] %v16958_v10  ;;  %vm11395_vm1 = vcmp.eq.s32.totalorder %v16961_v1, 1  ;;  %vm11409_vm0 = vcmp.eq.s32.totalorder %v16968_v61, 1  ;;  %v1557_v1 = vsel %vm11227_vm2, %v1549_v30, 0.0  ;;  %v11424_v53 = vsel %vm16977_vm4, %v16976_v19, %v1678_v55  ;;  %v17003_v42 = vld [vmem:[#allocation68_spill] sm:$0xff] }
 0x6e6   :  { %v16970_v4 = vsel %vm11409_vm0, 4294967295, %v16969_v4  ;;  %16978 = vst [vmem:[#allocation168_spill] sm:$0xff] %v11424_v53  ;;  %v11428_v61 = vsel %vm16979_vm5, %v1558_v56, %v10777_v45  ;;  %vm16982_vm0 = vcmask 785408   ;;  %vm16984_vm2 = vcmask 982016   ;;  %v17090_v10 = vld [vmem:[#allocation80_spill] sm:$0xff] }
 0x6e7   :  { %16980 = vst [vmem:[#allocation188_spill] sm:$0xff] %v11428_v61  ;;  %v11432_v27 = vsel %vm16982_vm0, %v7451_v41, %v16981_v17  ;;  %v11436_v30 = vsel %vm16984_vm2, %v1630_v62, %v16983_v46  ;;  %vm16987_vm4 = vcmask 777216   ;;  %v16988_v45 = vrot.slane %v16950_v15, %v8302_v32  ;;  %vm16994_vm0 = vmmov %vm16984_vm2 }
 0x6e8   :  { %16985 = vst [vmem:[#allocation201_spill] sm:$0xff] %v11436_v30  ;;  %v2584_v19 = vsel %vm16987_vm4, %v7455_v2, %v16986_v52  ;;  %v16991_v17 = vrot.slane %v16960_v36, %v8283_v28  ;;  %v11463_v56 = vsel %vm16994_vm0, %v16983_v46, %v1634_v63  ;;  %v7364_v2 = vpop.permute.xlu0 %7363  ;;  %v11468_v15 = vsel %vm16979_vm5, %v1557_v1, %v1691_v18  ;;  %v16999_v36 = vld [vmem:[#allocation215_spill] sm:$0xff]  ;;  %vm17001_vm4 = vmmov %vm16979_vm5  ;;  %v17037_v30 = vld [vmem:[#allocation77_spill] sm:$0xff] }
 0x6e9   :  { %vm11447_vm13 = vcmp.eq.s32.totalorder %v16988_v45, 1  ;;  %16995 = vst [vmem:[#allocation208_spill] sm:$0xff] %v11463_v56  ;;  %16996 = vst [vmem:[#allocation75_spill] sm:$0xff] %v11468_v15  ;;  %vm16998_vm2 = vnez %v16997_v12  ;;  %v17006_v1 = vrot.slane %v16955_v25, %v8305_v33  ;;  %v17007_v12 = vmov 0  ;;  %v17111_v15 = vld [vmem:[#allocation192_spill] sm:$0xff] }
 0x6ea   :  { %vm11454_vm9 = vcmp.eq.s32.totalorder %v16991_v17, 1  ;;  %v17000_v52 = vsel %vm16998_vm2, %v16999_v36, 0.0  ;;  %v2592_v17 = vsel %vm11270_vm12, %v2584_v19, 0.0  ;;  %vm17004_vm11 = vmmov %vm16994_vm0  ;;  %v7366_v19 = vunpack.i.h.bf16 %v7364_v2  ;;  %v11519_v36 = vpop.permute.xlu1 %7473 }
 0x6eb   :  { %v11475_v45 = vsel %vm17001_vm4, %v17000_v52, %v1690_v7  ;;  %v11481_v46 = vsel %vm17004_vm11, %v1634_v63, %v17003_v42  ;;  %vm11490_vm0 = vcmp.eq.s32.totalorder %v17006_v1, 1  ;;  %v7365_v63 = vunpack.i.l.bf16 %v7364_v2  ;;  %v17010_v42 = vld [vmem:[#allocation147_spill] sm:$0xff]  ;;  %17014 = vst [vmem:[#allocation68_spill] sm:$0xff] %v11519_v36 }
 0x6ec   :  { %17002 = vst [vmem:[#allocation66_spill] sm:$0xff] %v11475_v45  ;;  %17005 = vst [vmem:[#allocation204_spill] sm:$0xff] %v11481_v46  ;;  %v17008_v12 = vsel %vm11490_vm0, 4294967295, %v17007_v12  ;;  %7718 = vrot.lane.b32.xlu1 %v17010_v42, %s8101_s6  ;;  %v17011_v52 = vrot.slane %v9903_v37, %v8286_v29  ;;  %v11517_v7 = vrot.slane %v2592_v17, 4  ;;  %v7379_v56 = vpop.permute.xlu0 %7378  ;;  %v7475_v17 = vunpack.i.l.bf16 %v11519_v36  ;;  %v17019_v46 = vld [vmem:[#allocation145_spill] sm:$0xff] }
 0x6ed   :  { %17009 = vst [vmem:[#allocation215_spill] sm:$0xff] %v17008_v12  ;;  %v7381_v41 = vunpack.i.h.bf16 %v7379_v56  ;;  %v17016_v50 = vrot.slane %v9903_v37, %v8283_v28  ;;  %vm17020_vm2 = vnez %v17019_v46  ;;  %vm17021_vm4 = vnez %v16649_v40  ;;  %v17075_v40 = vld [vmem:[#allocation220_spill] sm:$0xff] }
 0x6ee   :  { %vm11506_vm11 = vcmp.eq.s32.totalorder %v17011_v52, 1  ;;  %v17022_v43 = vunpack.i.l.bf16 %v11465_v21  ;;  %vm17023_vm6 = vcmask 769024   ;;  %vm17025_vm3 = vcmask 916480  }
 0x6ef   :  { %vm11534_vm5 = vcmp.eq.s32.totalorder %v17016_v50, 1  ;;  %v1746_v59 = vsel %vm17025_vm3, %v7365_v63, %v7366_v19  ;;  %v7380_v37 = vunpack.i.l.bf16 %v7379_v56  ;;  %v17027_v50 = vld [vmem:[#allocation171_spill] sm:$0xff]  ;;  %v17029_v51 = vmov 0 }
 0x6f0   :  { %v11547_v2 = vsel %vm17023_vm6, %v17022_v43, %v7471_v49  ;;  %7723 = vrot.lane.b32.xlu1 %v16932_v31, %s17026_s4  ;;  %v17028_v52 = vrot.slane %v17027_v50, %v8283_v28  ;;  %v17031_v43 = vrot.slane %v17027_v50, %v8302_v32  ;;  %v17032_v61 = vmov 0 }
 0x6f1   :  { %17024 = vst [vmem:[#allocation147_spill] sm:$0xff] %v11547_v2  ;;  %v17034_v56 = vrot.slane %v17027_v50, %v8305_v33  ;;  %v17035_v63 = vmov 0  ;;  %vm17038_vm12 = vcmask 769024   ;;  %v17041_v54 = vunpack.i.l.bf16 %v17040_v47  ;;  %v17045_v50 = vld [vmem:[#allocation70_spill] sm:$0xff]  ;;  %v11595_v47 = vpop.permute.xlu1 %7488 }
 0x6f2   :  { %vm11557_vm15 = vcmp.eq.s32.totalorder %v17028_v52, 1  ;;  %vm11564_vm6 = vcmp.eq.s32.totalorder %v17031_v43, 1  ;;  %v11579_v60 = vsel %vm17038_vm12, %v7471_v49, %v17037_v30  ;;  %vm17042_vm10 = vcmask 916480   ;;  %v17047_v52 = vld [vmem:[#allocation216_spill] sm:$0xff]  ;;  %17051 = vst [vmem:[#allocation77_spill] sm:$0xff] %v11595_v47 }
 0x6f3   :  { %v17030_v51 = vsel %vm11557_vm15, 4294967295, %v17029_v51  ;;  %v17033_v61 = vsel %vm11564_vm6, 4294967295, %v17032_v61  ;;  %vm11571_vm3 = vcmp.eq.s32.totalorder %v17034_v56, 1  ;;  %17039 = vst [vmem:[#allocation171_spill] sm:$0xff] %v11579_v60  ;;  %v1747_v43 = vsel %vm17042_vm10, %v7366_v19, %v17041_v54  ;;  %v7384_v54 = vpop.permute.xlu0 %7383  ;;  %vm17053_vm10 = vmand %vm17021_vm4, %vm17020_vm2 }
 0x6f4   :  { %v17036_v63 = vsel %vm11571_vm3, 4294967295, %v17035_v63  ;;  %v17043_v53 = vunpack.i.h.bf16 %v11519_v36  ;;  %vm17044_vm14 = vcmask 760832   ;;  %vm17046_vm6 = vcmask 908288   ;;  %7733 = vrot.lane.b32.xlu1 %v16932_v31, %s17062_s19  ;;  %v17139_v36 = vld [vmem:[#allocation213_spill] sm:$0xff] }
 0x6f5   :  { %v1793_v56 = vsel %vm17046_vm6, %v7381_v41, %v17045_v50  ;;  %v17048_v18 = vunpack.i.h.bf16 %v17047_v52  ;;  %vm17049_vm3 = vmmov %vm17046_vm6  ;;  %v17052_v19 = vmov 0   ;;  %v17059_v50 = vmov 0 }
 0x6f6   :  { %v2673_v45 = vsel %vm17044_vm14, %v7475_v17, %v17043_v53  ;;  %v1801_v22 = vsel %vm11374_vm8, %v1793_v56, 0.0  ;;  %vm17050_vm12 = vmmov %vm17049_vm3  ;;  %v11603_v53 = vsel %vm17053_vm10, 1, %v17052_v19  ;;  %vm17055_vm14 = vnez %v16967_v6 }
 0x6f7   :  { %v1791_v30 = vsel %vm17049_vm3, %v17048_v18, %v7380_v37  ;;  %v1792_v49 = vsel %vm17050_vm12, %v7380_v37, %v7381_v41  ;;  %17054 = vst [vmem:[#allocation211_spill] sm:$0xff] %v11603_v53  ;;  %v1754_v18 = vsel %vm11395_vm1, %v1746_v59, 0.0  ;;  %v2681_v41 = vsel %vm17055_vm14, %v2673_v45, 0.0  ;;  %v17057_v37 = vld [vmem:[#allocation189_spill] sm:$0xff]  ;;  %v7399_v62 = vpop.permute.xlu0 %7398  ;;  %v17096_v53 = vld [vmem:[#allocation176_spill] sm:$0xff] }
 0x6f8   :  { %vm17056_vm8 = vnez %v16970_v4  ;;  %v17058_v52 = vrot.slane %v17057_v37, %v8302_v32  ;;  %v2123_v56 = vrot.slane %v1801_v22, 4  ;;  %v1800_v26 = vsel %vm11447_vm13, %v1792_v49, 0.0  ;;  %7743 = vrot.lane.b32.xlu1 %v16932_v31, %s17083_s17 }
 0x6f9   :  { %v1799_v17 = vsel %vm17056_vm8, %v1791_v30, 0.0  ;;  %v17064_v4 = vrot.slane %v17063_v8, %v8286_v29  ;;  %v1755_v22 = vsel %vm11454_vm9, %v1747_v43, 0.0  ;;  %v17067_v59 = vrot.slane %v17057_v37, %v8305_v33  ;;  %v17073_v43 = vld [vmem:[#allocation158_spill] sm:$0xff] }
 0x6fa   :  { %vm11617_vm6 = vcmp.eq.s32.totalorder %v17058_v52, 1  ;;  %v2121_v46 = vrot.slane %v1799_v17, 4  ;;  %v17068_v55 = vmov 0  ;;  %v7491_v45 = vunpack.i.h.bf16 %v11595_v47  ;;  %v11647_v52 = vpop.permute.xlu1 %7493 }
 0x6fb   :  { %v17060_v50 = vsel %vm11617_vm6, 4294967295, %v17059_v50  ;;  %vm11630_vm1 = vcmp.eq.s32.totalorder %v17064_v4, 1  ;;  %vm11639_vm13 = vcmp.eq.s32.totalorder %v17067_v59, 1  ;;  %v7386_v30 = vunpack.i.h.bf16 %v7384_v54  ;;  %17072 = vst [vmem:[#allocation243_spill] sm:$0xff] %v11647_v52 }
 0x6fc   :  { %17061 = vst [vmem:[#allocation70_spill] sm:$0xff] %v17060_v50  ;;  %v17069_v55 = vsel %vm11639_vm13, 4294967295, %v17068_v55  ;;  %v7385_v49 = vunpack.i.l.bf16 %v7384_v54  ;;  %v11645_v17 = vrot.slane %v2681_v41, 4  ;;  %vm17074_vm9 = vcmask 1043456   ;;  %7753 = vrot.lane.b32.xlu1 %v16932_v31, %s8105_s12  ;;  %v17145_v50 = vld [vmem:[#allocation219_spill] sm:$0xff] }
 0x6fd   :  { %17070 = vst [vmem:[#allocation216_spill] sm:$0xff] %v17069_v55  ;;  %v11651_v4 = vsel %vm17074_vm9, %v1754_v18, %v17073_v43  ;;  %v2122_v5 = vrot.slane %v1800_v26, 4  ;;  %v17076_v54 = vunpack.i.l.bf16 %v17075_v40  ;;  %vm17077_vm12 = vcmask 900096  }
 0x6fe   :  { %17071 = vst [vmem:[#allocation242_spill] sm:$0xff] %v11645_v17  ;;  %vm17078_vm10 = vmmov %vm17077_vm12  ;;  %v17080_v18 = vrot.slane %v17079_v0, %v8286_v29  ;;  %v7495_v26 = vunpack.i.l.bf16 %v11647_v52  ;;  %v7401_v40 = vunpack.i.h.bf16 %v7399_v62  ;;  %v7400_v59 = vunpack.i.l.bf16 %v7399_v62  ;;  %v17103_v17 = vld [vmem:[#allocation223_spill] sm:$0xff] }
 0x6ff   :  { %v1835_v41 = vsel %vm17077_vm12, %v7386_v30, %v17076_v54  ;;  %v1834_v2 = vsel %vm17078_vm10, %v7385_v49, %v7386_v30  ;;  %v17085_v30 = vld [vmem:[#allocation85_spill] sm:$0xff]  ;;  %vm17091_vm12 = vcmask 752640   ;;  %v17097_v60 = vrot.slane %v17096_v53, %v8305_v33 }
 0x700   :  { %vm11666_vm14 = vcmp.eq.s32.totalorder %v17080_v18, 1  ;;  %v1842_v19 = vsel %vm11506_vm11, %v1834_v2, 0.0  ;;  %4043 = vrot.lane.b32.xlu0 %v17085_v30, %s17084_s20  ;;  %v17086_v49 = vld [vmem:[#allocation193_spill] sm:$0xff]  ;;  %v11686_v1 = vsel %vm17091_vm12, %v7491_v45, %v17090_v10  ;;  %v17093_v2 = vunpack.i.l.bf16 %v11595_v47  ;;  %vm17094_vm11 = vmmov %vm17091_vm12  ;;  %v17106_v47 = vld [vmem:[#allocation72_spill] sm:$0xff]  ;;  %7763 = vrot.lane.b32.xlu1 %v16932_v31, %s17165_s27 }
 0x701   :  { %v17087_v54 = vrot.slane %v17086_v49, %v8286_v29  ;;  %17092 = vst [vmem:[#allocation158_spill] sm:$0xff] %v11686_v1  ;;  %vm11696_vm10 = vcmp.eq.s32.totalorder %v17097_v60, 1  ;;  %vm17100_vm8 = vcmask 1043456   ;;  %v17101_v49 = vld [vmem:[#allocation214_spill] sm:$0xff]  ;;  %v17126_v23 = vrot.slane %v17096_v53, %v8302_v32 }
 0x702   :  { %v11691_v62 = vsel %vm17094_vm11, %v17093_v2, %v7491_v45  ;;  %vm17102_vm3 = vnez %v17101_v49  ;;  %vm17105_vm12 = vmmov %vm17100_vm8  ;;  %vm17107_vm11 = vcmask 891904   ;;  %v17108_v2 = vunpack.i.h.bf16 %v10788_v24 }
 0x703   :  { %vm11680_vm9 = vcmp.eq.s32.totalorder %v17087_v54, 1  ;;  %17095 = vst [vmem:[#allocation220_spill] sm:$0xff] %v11691_v62  ;;  %v11701_v54 = vsel %vm17100_vm8, %v1755_v22, %v2121_v46  ;;  %v17104_v10 = vsel %vm17102_vm3, %v17103_v17, 0.0  ;;  %v1882_v45 = vsel %vm17107_vm11, %v7401_v40, %v17106_v47  ;;  %vm17109_vm15 = vmmov %vm17107_vm11  ;;  %v11723_v17 = vpop.permute.xlu1 %7508 }
 0x704   :  { %v11708_v37 = vsel %vm17105_vm12, %v17104_v10, %v2123_v56  ;;  %v1880_v60 = vsel %vm17109_vm15, %v17108_v2, %v7400_v59  ;;  %vm17110_vm2 = vmmov %vm17107_vm11  ;;  %v17112_v46 = vrot.slane %v17111_v15, %v8302_v32  ;;  %v17113_v22 = vmov 0  ;;  %17116 = vst [vmem:[#allocation85_spill] sm:$0xff] %v11723_v17  ;;  %v7404_v56 = vpop.permute.xlu0 %7403  ;;  %7773 = vrot.lane.b32.xlu1 %v16932_v31, %s17192_s21 }
 0x705   :  { %v1881_v9 = vsel %vm17110_vm2, %v7400_v59, %v7401_v40  ;;  %v17117_v49 = vrot.slane %v17096_v53, %v8283_v28  ;;  %v1843_v24 = vsel %vm11534_vm5, %v1835_v41, 0.0  ;;  %v17120_v59 = vrot.slane %v17079_v0, %v8283_v28  ;;  %v17141_v53 = vld [vmem:[#allocation224_spill] sm:$0xff] }
 0x706   :  { %vm11719_vm8 = vcmp.eq.s32.totalorder %v17112_v46, 1  ;;  %vm17123_vm2 = vnez %v17036_v63  ;;  %vm17124_vm12 = vnez %v17030_v51  ;;  %vm17125_vm11 = vnez %v17033_v61 }
 0x707   :  { %v17114_v22 = vsel %vm11719_vm8, 4294967295, %v17113_v22  ;;  %vm11728_vm3 = vcmp.eq.s32.totalorder %v17117_v49, 1  ;;  %vm11737_vm15 = vcmp.eq.s32.totalorder %v17120_v59, 1  ;;  %v1890_v10 = vsel %vm17123_vm2, %v1882_v45, 0.0 }
 0x708   :  { %17115 = vst [vmem:[#allocation173_spill] sm:$0xff] %v17114_v22  ;;  %v1888_v2 = vsel %vm17124_vm12, %v1880_v60, 0.0  ;;  %v1889_v46 = vsel %vm17125_vm11, %v1881_v9, 0.0  ;;  %vm11750_vm5 = vcmp.eq.s32.totalorder %v17126_v23, 1  ;;  %vm17129_vm4 = vcmask 1043456   ;;  %v17132_v9 = vld [vmem:[#allocation82_spill] sm:$0xff]  ;;  %7783 = vrot.lane.b32.xlu1 %v16932_v31, %s17220_s13 }
 0x709   :  { %v2168_v0 = vsel %vm17129_vm4, %v1842_v19, %v11039_v13  ;;  %v17130_v49 = vunpack.i.h.bf16 %v11647_v52  ;;  %vm17131_vm7 = vcmask 744448   ;;  %v2135_v45 = vrot.slane %v1890_v10, 4  ;;  %4047 = vrot.lane.b32.xlu0 %v17132_v9, %s17084_s20  ;;  %v7419_v10 = vpop.permute.xlu0 %7418  ;;  %v17136_v23 = vld [vmem:[#allocation63_spill] sm:$0xff]  ;;  %v17222_v22 = vld [vmem:[#allocation196_spill] sm:$0xff] }
 0x70a   :  { %v2133_v51 = vrot.slane %v1888_v2, 4  ;;  %v2134_v60 = vrot.slane %v1889_v46, 4  ;;  %v7511_v61 = vunpack.i.h.bf16 %v11723_v17  ;;  %v7406_v59 = vunpack.i.h.bf16 %v7404_v56  ;;  %v17134_v46 = vld [vmem:[#allocation218_spill] sm:$0xff] }
 0x70b   :  { %v2763_v63 = vsel %vm17131_vm7, %v7495_v26, %v17130_v49  ;;  %v7405_v13 = vunpack.i.l.bf16 %v7404_v56  ;;  %v11768_v26 = vpop.permute.xlu1 %7513  ;;  %vm17133_vm7 = vmmov %vm17129_vm4  ;;  %vm17135_vm4 = vnez %v17134_v46  ;;  %vm17140_vm11 = vnez %v17139_v36 }
 0x70c   :  { %v2169_v2 = vsel %vm17133_vm7, %v1843_v24, %v2133_v51  ;;  %v17137_v49 = vsel %vm17135_vm4, %v17136_v23, 0.0  ;;  %vm17138_vm12 = vmmov %vm17133_vm7  ;;  %v17142_v8 = vsel %vm17140_vm11, %v17141_v53, 0.0  ;;  %v2771_v19 = vsel %vm11630_vm1, %v2763_v63, 0.0  ;;  %v17147_v24 = vld [vmem:[#allocation226_spill] sm:$0xff]  ;;  %v17150_v23 = vld [vmem:[#allocation195_spill] sm:$0xff]  ;;  %7793 = vrot.lane.b32.xlu1 %v16932_v31, %s17240_s5 }
 0x70d   :  { %v2171_v52 = vsel %vm17138_vm12, %v17137_v49, %v2135_v45  ;;  %vm17143_vm2 = vmmov %vm17133_vm7  ;;  %vm17144_vm6 = vcmask 883712   ;;  %vm17146_vm0 = vnez %v17145_v50  ;;  %v17151_v45 = vrot.slane %v17150_v23, %v8286_v29  ;;  %v17155_v53 = vld [vmem:[#allocation179_spill] sm:$0xff]  ;;  %7688 = vrot.lane.b32.xlu0 %v9339_v39, %s16899_s30  ;;  %s17653_s30 = smov 11  }
 0x70e   :  { %v2166_v56 = vsel %vm17143_vm2, %v17142_v8, %v2122_v5  ;;  %v1924_v62 = vsel %vm17144_vm6, %v7405_v13, %v7406_v59  ;;  %v17148_v51 = vsel %vm17146_vm0, %v17147_v24, 0.0  ;;  %vm17149_vm7 = vmmov %vm17143_vm2  ;;  %v17152_v36 = vmov 0 }
 0x70f   :  { %v2170_v46 = vsel %vm17149_vm7, %v17148_v51, %v2134_v60  ;;  %vm11792_vm4 = vcmp.eq.s32.totalorder %v17151_v45, 1  ;;  %v17156_v8 = vrot.slane %v17155_v53, %v8283_v28  ;;  %v17159_v50 = vrot.slane %v17155_v53, %v8305_v33  ;;  %v2890_v55 = vpop.permute.xlu1 %2889 }
 0x710   :  { %v17153_v36 = vsel %vm11792_vm4, 4294967295, %v17152_v36  ;;  %v17162_v60 = vunpack.i.l.bf16 %v11723_v17  ;;  %vm17163_vm6 = vcmask 736256   ;;  %v7515_v24 = vunpack.i.l.bf16 %v11768_v26 }
 0x711   :  { %17154 = vst [vmem:[#allocation80_spill] sm:$0xff] %v17153_v36  ;;  %vm11799_vm2 = vcmp.eq.s32.totalorder %v17156_v8, 1  ;;  %vm11806_vm0 = vcmp.eq.s32.totalorder %v17159_v50, 1  ;;  %v6936_v51 = vpack.c.bf16 %v2168_v0, %v11651_v4  ;;  %v17166_v45 = vrot.slane %v17155_v53, %v8302_v32  ;;  %v17172_v4 = vld [vmem:[#allocation178_spill] sm:$0xff]  ;;  %7698 = vrot.lane.b32.xlu0 %v17010_v42, %s16931_s8  ;;  %s17691_s8 = smov 9  }
 0x712   :  { %v11816_v13 = vsel %vm17163_vm6, %v17162_v60, %v7511_v61  ;;  %v7421_v50 = vunpack.i.h.bf16 %v7419_v10  ;;  %v7420_v60 = vunpack.i.l.bf16 %v7419_v10  ;;  %v6934_v63 = vpack.c.bf16 %v2169_v2, %v11701_v54 }
 0x713   :  { %17164 = vst [vmem:[#allocation176_spill] sm:$0xff] %v11816_v13  ;;  %vm11828_vm1 = vcmp.eq.s32.totalorder %v17166_v45, 1  ;;  %v6942_v49 = vpack.c.bf16 %v2171_v52, %v11708_v37  ;;  %v17169_v1 = vrot.slane %v17150_v23, %v8302_v32  ;;  %v17170_v39 = vmov 0  ;;  %v17176_v45 = vld [vmem:[#allocation227_spill] sm:$0xff] }
 0x714   :  { %v17173_v0 = vrot.slane %v17172_v4, %v8283_v28  ;;  %v17174_v53 = vmov 0  ;;  %v17177_v10 = vunpack.i.l.bf16 %v17176_v45  ;;  %vm17178_vm7 = vcmask 883712   ;;  %v7424_v45 = vpop.permute.xlu0 %7423  ;;  %6935 = vmatprep.subr.bf16.mxu0 %v6934_v63 }
 0x715   :  { %vm11837_vm12 = vcmp.eq.s32.totalorder %v17169_v1, 1  ;;  %v1932_v37 = vsel %vm11666_vm14, %v1924_v62, 0.0  ;;  %v17179_v52 = vunpack.i.h.bf16 %v11768_v26  ;;  %vm17180_vm6 = vcmask 728064   ;;  %6943 = vmatprep.subr.bf16.mxu1 %v6942_v49  ;;  %6937 = vmatpush1.bf16.msra.mxu0 %v6936_v51 }
 0x716   :  { %v17171_v39 = vsel %vm11837_vm12, 4294967295, %v17170_v39  ;;  %vm11844_vm11 = vcmp.eq.s32.totalorder %v17173_v0, 1  ;;  %v11851_v54 = vsel %vm17178_vm7, %v7406_v59, %v17177_v10  ;;  %v6944_v2 = vpack.c.bf16 %v2170_v46, %v2166_v56  ;;  %v17184_v10 = vld [vmem:[#allocation74_spill] sm:$0xff]  ;;  %7708 = vrot.lane.b32.xlu0 %v17010_v42, %s16954_s15  ;;  %s17722_s15 = smov 10  }
 0x717   :  { %v17175_v53 = vsel %vm11844_vm11, 4294967295, %v17174_v53  ;;  %v2853_v1 = vsel %vm17180_vm6, %v7515_v24, %v17179_v52  ;;  %v17181_v0 = vrot.slane %v17172_v4, %v8286_v29  ;;  %vm17185_vm7 = vcmask 875520   ;;  %v17189_v4 = vld [vmem:[#allocation83_spill] sm:$0xff] }
 0x718   :  { %v2861_v59 = vsel %vm11680_vm9, %v2853_v1, 0.0  ;;  %v1972_v43 = vsel %vm17185_vm7, %v7421_v50, %v17184_v10  ;;  %v17186_v62 = vunpack.i.h.bf16 %v10946_v48  ;;  %vm17187_vm14 = vmmov %vm17185_vm7  ;;  %v11873_v46 = vrot.slane %v2771_v19, 4  ;;  %6945 = vmatpush1.bf16.msra.mxu1 %v6944_v2  ;;  %v7439_v2 = vpop.permute.xlu0 %7438 }
 0x719   :  { %vm11861_vm13 = vcmp.eq.s32.totalorder %v17181_v0, 1  ;;  %vm17188_vm6 = vmmov %vm17185_vm7  ;;  %vm17190_vm11 = vcmask 736256   ;;  %v1980_v18 = vsel %vm11696_vm10, %v1972_v43, 0.0  ;;  %v1933_v12 = vsel %vm11737_vm15, %v11851_v54, 0.0  ;;  %v17199_v43 = vld [vmem:[#allocation88_spill] sm:$0xff] }
 0x71a   :  { %v1970_v24 = vsel %vm17187_vm14, %v17186_v62, %v7420_v60  ;;  %v1971_v56 = vsel %vm17188_vm6, %v7420_v60, %v7421_v50  ;;  %v11877_v52 = vsel %vm17190_vm11, %v7511_v61, %v17189_v4  ;;  %vm17193_vm10 = vcmask 1043456   ;;  %v2894_v60 = vpop.permute.xlu1 %2893  ;;  %v17201_v62 = vld [vmem:[#allocation232_spill] sm:$0xff]  ;;  %7713 = vrot.lane.b32.xlu0 %v16932_v31, %s8101_s6  ;;  %s17264_s6 = smov 40  }
 0x71b   :  { %v1978_v19 = vsel %vm11728_vm3, %v1970_v24, 0.0  ;;  %v11897_v61 = vsel %vm17193_vm10, %v1932_v37, %v11147_v44  ;;  %v11899_v49 = vrot.slane %v2861_v59, 4  ;;  %v1979_v47 = vsel %vm11750_vm5, %v1971_v56, 0.0  ;;  %v17197_v44 = vld [vmem:[#allocation86_spill] sm:$0xff]  ;;  %4616 = vrot.lane.b32.xlu1 %v17085_v30, %s17264_s6 }
 0x71c   :  { %v7426_v51 = vunpack.i.h.bf16 %v7424_v45  ;;  %v7425_v50 = vunpack.i.l.bf16 %v7424_v45  ;;  %v17194_v0 = vrot.slane %v17111_v15, %v8305_v33  ;;  %v17195_v40 = vmov 0 }
 0x71d   :  { %v2147_v54 = vrot.slane %v1980_v18, 4  ;;  %vm17198_vm15 = vcmask 719872   ;;  %v7441_v59 = vunpack.i.h.bf16 %v7439_v2  ;;  %v7440_v41 = vunpack.i.l.bf16 %v7439_v2  ;;  %v17205_v18 = vld [vmem:[#allocation198_spill] sm:$0xff] }
 0x71e   :  { %vm11906_vm11 = vcmp.eq.s32.totalorder %v17194_v0, 1  ;;  %v11912_v37 = vsel %vm17198_vm15, %v17197_v44, %v2890_v55  ;;  %v2145_v10 = vrot.slane %v1978_v19, 4  ;;  %vm17200_vm5 = vmmov %vm17198_vm15  ;;  %v17202_v24 = vunpack.i.l.bf16 %v17201_v62  ;;  %7728 = vrot.lane.b32.xlu0 %v17010_v42, %s17026_s4  ;;  %v17407_v44 = vld [vmem:[#allocation52_spill] sm:$0xff]  ;;  %s17849_s4 = smov 122  }
 0x71f   :  { %v17196_v40 = vsel %vm11906_vm11, 4294967295, %v17195_v40  ;;  %v11916_v45 = vsel %vm17200_vm5, %v2890_v55, %v17199_v43  ;;  %vm17203_vm7 = vcmask 867328   ;;  %vm17204_vm14 = vmmov %vm17200_vm5  ;;  %v17206_v0 = vrot.slane %v17205_v18, %v8286_v29  ;;  %4620 = vrot.lane.b32.xlu1 %v17132_v9, %s17264_s6  ;;  %v17465_v9 = vld [vmem:[#allocation169_spill] sm:$0xff] }
 0x720   :  { %v2015_v56 = vsel %vm17203_vm7, %v7426_v51, %v17202_v24  ;;  %v11923_v4 = vsel %vm17204_vm14, %v17199_v43, %v2894_v60  ;;  %v17209_v19 = vrot.slane %v16900_v58, %v8283_v28  ;;  %v17212_v2 = vrot.slane %v16900_v58, %v8305_v33  ;;  %v17215_v24 = vld [vmem:[#allocation76_spill] sm:$0xff] }
 0x721   :  { %vm11928_vm6 = vcmp.eq.s32.totalorder %v17206_v0, 1  ;;  %v11946_v62 = vrot.slane %v1979_v47, 4  ;;  %vm17216_vm5 = vcmask 859136   ;;  %v17217_v1 = vunpack.i.h.bf16 %v11091_v3 }
 0x722   :  { %vm11935_vm10 = vcmp.eq.s32.totalorder %v17209_v19, 1  ;;  %vm11942_vm15 = vcmp.eq.s32.totalorder %v17212_v2, 1  ;;  %v2062_v0 = vsel %vm17216_vm5, %v7441_v59, %v17215_v24  ;;  %vm17218_vm7 = vmmov %vm17216_vm5  ;;  %vm17221_vm3 = vcmask 867328   ;;  %7738 = vrot.lane.b32.xlu0 %v17010_v42, %s17062_s19 }
 0x723   :  { %v2060_v63 = vsel %vm17218_vm7, %v17217_v1, %v7440_v41  ;;  %vm17219_vm14 = vmmov %vm17216_vm5  ;;  %v2014_v2 = vsel %vm17221_vm3, %v7425_v50, %v7426_v51  ;;  %v2070_v24 = vsel %vm11806_vm0, %v2062_v0, 0.0  ;;  %v11966_v1 = vpop.permute.xlu1 %7528  ;;  %v17223_v36 = vrot.slane %v17222_v22, %v8302_v32 }
 0x724   :  { %v2061_v19 = vsel %vm17219_vm14, %v7440_v41, %v7441_v59  ;;  %v2068_v3 = vsel %vm11799_vm2, %v2060_v63, 0.0  ;;  %v7444_v59 = vpop.permute.xlu0 %7443  ;;  %v2159_v41 = vrot.slane %v2070_v24, 4  ;;  %v17224_v47 = vmov 0 }
 0x725   :  { %v2069_v48 = vsel %vm11828_vm1, %v2061_v19, 0.0  ;;  %v2157_v13 = vrot.slane %v2068_v3, 4  ;;  %vm11973_vm5 = vcmp.eq.s32.totalorder %v17223_v36, 1  ;;  %v7531_v5 = vunpack.i.h.bf16 %v11966_v1  ;;  %v17233_v36 = vld [vmem:[#allocation90_spill] sm:$0xff] }
 0x726   :  { %v17225_v47 = vsel %vm11973_vm5, 4294967295, %v17224_v47  ;;  %v17227_v6 = vrot.slane %v16894_v38, %v8286_v29  ;;  %v17230_v8 = vrot.slane %v16894_v38, %v8283_v28  ;;  %vm17234_vm1 = vcmask 719872   ;;  %7748 = vrot.lane.b32.xlu0 %v17010_v42, %s17083_s17 }
 0x727   :  { %17226 = vst [vmem:[#allocation214_spill] sm:$0xff] %v17225_v47  ;;  %v11994_v50 = vsel %vm17234_vm1, %v2894_v60, %v17233_v36  ;;  %v17235_v19 = vrot.slane %v16900_v58, %v8302_v32  ;;  %vm17238_vm7 = vnez %v17175_v53  ;;  %vm17239_vm14 = vcmask 1043456   ;;  %v17357_v47 = vld [vmem:[#allocation75_spill] sm:$0xff] }
 0x728   :  { %vm11981_vm2 = vcmp.eq.s32.totalorder %v17227_v6, 1  ;;  %vm11988_vm0 = vcmp.eq.s32.totalorder %v17230_v8, 1  ;;  %v2023_v38 = vsel %vm17238_vm7, %v2015_v56, 0.0  ;;  %v2173_v3 = vsel %vm17239_vm14, %v1933_v12, %v2145_v10  ;;  %vm17241_vm1 = vmmov %vm17239_vm14  ;;  %v7459_v8 = vpop.permute.xlu0 %7458 }
 0x729   :  { %vm12002_vm3 = vcmp.eq.s32.totalorder %v17235_v19, 1  ;;  %v2022_v60 = vsel %vm11861_vm13, %v2014_v2, 0.0  ;;  %v2177_v58 = vsel %vm17241_vm1, %v2023_v38, %v2157_v13  ;;  %vm17242_vm9 = vnez %v16778_v57  ;;  %vm17244_vm7 = vmmov %vm17241_vm1  ;;  %v12022_v2 = vpop.permute.xlu1 %7533  ;;  %v17248_v57 = vld [vmem:[#allocation92_spill] sm:$0xff]  ;;  %v17253_v38 = vld [vmem:[#allocation65_spill] sm:$0xff] }
 0x72a   :  { %v17243_v53 = vsel %vm17242_vm9, %v11114_v14, 0.0  ;;  %v2158_v12 = vrot.slane %v2069_v48, 4  ;;  %v7446_v17 = vunpack.i.h.bf16 %v7444_v59  ;;  %v7445_v10 = vunpack.i.l.bf16 %v7444_v59  ;;  %vm17255_vm13 = vmmov %vm17244_vm7  ;;  %7758 = vrot.lane.b32.xlu0 %v17010_v42, %s8105_s12  ;;  %s17420_s12 = smov 28  }
 0x72b   :  { %v2179_v56 = vsel %vm17244_vm7, %v17243_v53, %v2159_v41  ;;  %v6938_v36 = vpack.c.bf16 %v2177_v58, %v2173_v3  ;;  %v17245_v19 = vrot.slane %v16955_v25, %v8286_v29  ;;  %vm17249_vm9 = vcmask 654336   ;;  %v17251_v41 = vld [vmem:[#allocation228_spill] sm:$0xff] }
 0x72c   :  { %v12033_v14 = vsel %vm17249_vm9, %v7531_v5, %v17248_v57  ;;  %v7535_v59 = vunpack.i.l.bf16 %v12022_v2  ;;  %vm17252_vm1 = vnez %v17251_v41  ;;  %v7461_v53 = vunpack.i.h.bf16 %v7459_v8 }
 0x72d   :  { %vm12027_vm12 = vcmp.eq.s32.totalorder %v17245_v19, 1  ;;  %17250 = vst [vmem:[#allocation223_spill] sm:$0xff] %v12033_v14  ;;  %v17254_v3 = vsel %vm17252_vm1, %v17253_v38, 0.0  ;;  %v7460_v0 = vunpack.i.l.bf16 %v7459_v8  ;;  %6939 = vmatprep.subr.bf16.mxu0 %v6938_v36  ;;  %v2176_v6 = vsel %vm17255_vm13, %v2022_v60, %v11261_v34  ;;  %v17265_v60 = vld [vmem:[#allocation200_spill] sm:$0xff]  ;;  %v7464_v14 = vpop.permute.xlu0 %7463 }
 0x72e   :  { %v2175_v58 = vsel %vm17244_vm7, %v17254_v3, %v2147_v54  ;;  %v17256_v57 = vrot.slane %v16964_v35, %v8305_v33  ;;  %v17259_v41 = vunpack.i.l.bf16 %v11966_v1  ;;  %vm17260_vm1 = vcmask 654336  }
 0x72f   :  { %v6946_v19 = vpack.c.bf16 %v2179_v56, %v2175_v58  ;;  %v17262_v54 = vunpack.i.h.bf16 %v12022_v2  ;;  %vm17263_vm7 = vcmask 646144   ;;  %v6940_v34 = vpack.c.bf16 %v2176_v6, %v11897_v61 }
 0x730   :  { %vm12047_vm9 = vcmp.eq.s32.totalorder %v17256_v57, 1  ;;  %v12054_v38 = vsel %vm17260_vm1, %v17259_v41, %v7531_v5  ;;  %v17266_v8 = vrot.slane %v17265_v60, %v8302_v32  ;;  %v17267_v36 = vmov 0  ;;  %v17276_v57 = vld [vmem:[#allocation78_spill] sm:$0xff] }
 0x731   :  { %17261 = vst [vmem:[#allocation72_spill] sm:$0xff] %v12054_v38  ;;  %v3222_v56 = vsel %vm17263_vm7, %v7535_v59, %v17262_v54  ;;  %v17270_v5 = vrot.slane %v16964_v35, %v8283_v28  ;;  %v17273_v61 = vunpack.i.l.bf16 %v11292_v20  ;;  %vm17274_vm7 = vcmask 785408   ;;  %6947 = vmatprep.subr.bf16.mxu1 %v6946_v19  ;;  %6941 = vmatpush1.bf16.msra.mxu0 %v6940_v34  ;;  %v17284_v19 = vld [vmem:[#allocation229_spill] sm:$0xff]  ;;  %v17295_v34 = vld [vmem:[#allocation67_spill] sm:$0xff]  ;;  %v17382_v20 = vld [vmem:[#allocation66_spill] sm:$0xff] }
 0x732   :  { %vm12067_vm13 = vcmp.eq.s32.totalorder %v17266_v8, 1  ;;  %vm17275_vm14 = vmmov %vm17274_vm7  ;;  %vm17277_vm4 = vcmask 777216   ;;  %v17278_v54 = vunpack.i.h.bf16 %v11362_v11  ;;  %v17281_v3 = vrot.slane %v16964_v35, %v8302_v32 }
 0x733   :  { %v17268_v36 = vsel %vm12067_vm13, 4294967295, %v17267_v36  ;;  %vm12074_vm1 = vcmp.eq.s32.totalorder %v17270_v5, 1  ;;  %v2541_v6 = vsel %vm17274_vm7, %v7446_v17, %v17273_v61  ;;  %v2540_v58 = vsel %vm17275_vm14, %v7445_v10, %v7446_v17  ;;  %vm17279_vm8 = vmmov %vm17277_vm4  ;;  %v12090_v5 = vpop.permute.xlu1 %7548  ;;  %v17286_v61 = vld [vmem:[#allocation231_spill] sm:$0xff] }
 0x734   :  { %17269 = vst [vmem:[#allocation192_spill] sm:$0xff] %v17268_v36  ;;  %v2587_v41 = vsel %vm17277_vm4, %v7461_v53, %v17276_v57  ;;  %v2585_v8 = vsel %vm17279_vm8, %v17278_v54, %v7460_v0  ;;  %17280 = vst [vmem:[#allocation218_spill] sm:$0xff] %v12090_v5  ;;  %vm12095_vm11 = vcmp.eq.s32.totalorder %v17281_v3, 1  ;;  %v3230_v17 = vsel %vm11928_vm6, %v3222_v56, 0.0 }
 0x735   :  { %v2595_v10 = vsel %vm11942_vm15, %v2587_v41, 0.0  ;;  %v2593_v11 = vsel %vm11935_vm10, %v2585_v8, 0.0  ;;  %vm17285_vm8 = vnez %v17284_v19  ;;  %vm17288_vm4 = vcmask 1043456   ;;  %v17293_v41 = vld [vmem:[#allocation60_spill] sm:$0xff]  ;;  %v17298_v19 = vld [vmem:[#allocation182_spill] sm:$0xff] }
 0x736   :  { %v17287_v57 = vsel %vm17285_vm8, %v17286_v61, 0.0  ;;  %v17289_v3 = vrot.slane %v16955_v25, %v8283_v28  ;;  %v2917_v43 = vrot.slane %v2595_v10, 4  ;;  %vm17292_vm6 = vcmask 777216   ;;  %vm17297_vm15 = vmmov %vm17288_vm4 }
 0x737   :  { %v2174_v35 = vsel %vm17288_vm4, %v17287_v57, %v11946_v62  ;;  %v2586_v56 = vsel %vm17292_vm6, %v7460_v0, %v7461_v53  ;;  %v2915_v55 = vrot.slane %v2593_v11, 4  ;;  %vm17294_vm10 = vnez %v17293_v41  ;;  %v17300_v62 = vld [vmem:[#allocation69_spill] sm:$0xff]  ;;  %vm17302_vm8 = vmmov %vm17288_vm4  ;;  %v12140_v11 = vpop.permute.xlu1 %7553 }
 0x738   :  { %vm12114_vm14 = vcmp.eq.s32.totalorder %v17289_v3, 1  ;;  %v17296_v54 = vsel %vm17294_vm10, %v17295_v34, 0.0  ;;  %vm17299_vm7 = vnez %v17298_v19  ;;  %v7551_v57 = vunpack.i.h.bf16 %v12090_v5  ;;  %v17306_v19 = vld [vmem:[#allocation61_spill] sm:$0xff] }
 0x739   :  { %v2178_v8 = vsel %vm17297_vm15, %v17296_v54, %v2158_v12  ;;  %v17301_v61 = vsel %vm17299_vm7, %v17300_v62, 0.0  ;;  %v15972_v10 = vunpack.i.l.bf16 %v12090_v5  ;;  %v7466_v3 = vunpack.i.h.bf16 %v7464_v14  ;;  %vm17308_vm15 = vmmov %vm17302_vm8 }
 0x73a   :  { %6848 = vmatprep.subr.msk.mxu0 %vm17302_vm8, %v17301_v61  ;;  %v6948_v25 = vpack.c.bf16 %v2178_v8, %v2174_v35  ;;  %vm15979_vm4 = vcmask 621568   ;;  %v2548_v12 = vsel %vm11981_vm2, %v2540_v58, 0.0  ;;  %v7465_v53 = vunpack.i.l.bf16 %v7464_v14  ;;  %v7479_v35 = vpop.permute.xlu0 %7478  ;;  %v17304_v8 = vld [vmem:[#allocation162_spill] sm:$0xff]  ;;  %vm17309_vm2 = vmmov %vm17302_vm8  ;;  %v17314_v58 = vld [vmem:[#allocation237_spill] sm:$0xff] }
 0x73b   :  { %vm15980_vm6 = vcmask 613376   ;;  %v2549_v41 = vsel %vm11988_vm0, %v2541_v6, 0.0  ;;  %v12144_v34 = vrot.slane %v3230_v17, 4  ;;  %v2594_v54 = vsel %vm12002_vm3, %v2586_v56, 0.0  ;;  %v17316_v17 = vld [vmem:[#allocation73_spill] sm:$0xff]  ;;  %vm17318_vm8 = vmmov %vm17309_vm2 }
 0x73c   :  { %6949 = vmatpush1.bf16.msra.mxu1 %v6948_v25  ;;  %vm17305_vm10 = vnez %v17304_v8  ;;  %v15975_v63 = vunpack.i.h.bf16 %v12140_v11  ;;  %v12155_v14 = vsel %vm17309_vm2, %v2549_v41, %v2915_v55  ;;  %v17310_v51 = vrot.slane %v17150_v23, %v8283_v28  ;;  %v17319_v55 = vld [vmem:[#allocation54_spill] sm:$0xff] }
 0x73d   :  { %17303 = vst [vmem:[#allocation63_spill] sm:$0xff] %v12144_v34  ;;  %v17307_v62 = vsel %vm17305_vm10, %v17306_v19, 0.0  ;;  %v17311_v6 = vmov 0  ;;  %vm17313_vm3 = vcmask 769024   ;;  %vm17315_vm7 = vnez %v17314_v58  ;;  %v17326_v58 = vld [vmem:[#allocation137_spill] sm:$0xff]  ;;  %v17358_v34 = vld [vmem:[#allocation146_spill] sm:$0xff] }
 0x73e   :  { %6849 = vmatpush1.msk.msra.mxu0 %vm17308_vm15, %v17307_v62  ;;  %vm12160_vm0 = vcmp.eq.s32.totalorder %v17310_v51, 1  ;;  %v2628_v24 = vsel %vm17313_vm3, %v7465_v53, %v7466_v3  ;;  %v17317_v56 = vsel %vm17315_vm7, %v17316_v17, 0.0  ;;  %v7555_v61 = vunpack.i.l.bf16 %v12140_v11  ;;  %v17325_v51 = vld [vmem:[#allocation233_spill] sm:$0xff]  ;;  %vm17330_vm7 = vmmov %vm17309_vm2 }
 0x73f   :  { %v17312_v6 = vsel %vm12160_vm0, 4294967295, %v17311_v6  ;;  %6851 = vmatprep.subr.msk.mxu1 %vm17318_vm8, %v17317_v56  ;;  %v7481_v25 = vunpack.i.h.bf16 %v7479_v35  ;;  %vm17320_vm10 = vcmask 293888   ;;  %vm17321_vm15 = vnez %v16926_v16  ;;  %v17329_v16 = vld [vmem:[#allocation152_spill] sm:$0xff]  ;;  %v17331_v56 = vld [vmem:[#allocation94_spill] sm:$0xff] }
 0x740   :  { %6850 = vmatmul.mubr.msk.f32.vlgmr.msra.gmra.mrb[6].mxu0 %vm17320_vm10, %v17319_v55  ;;  %v17322_v41 = vsel %vm17321_vm15, %v11432_v27, 0.0  ;;  %vm17323_vm3 = vcmask 637952   ;;  %v2636_v19 = vsel %vm12027_vm12, %v2628_v24, 0.0  ;;  %v7480_v62 = vunpack.i.l.bf16 %v7479_v35  ;;  %7808 = vrot.lane.b32.xlu1 %v17329_v16, %s17328_s3  ;;  %v17336_v24 = vld [vmem:[#allocation81_spill] sm:$0xff] }
 0x741   :  { %v12178_v8 = vsel %vm17309_vm2, %v17322_v41, %v2917_v43  ;;  %v12183_v53 = vsel %vm17323_vm3, %v15972_v10, %v7551_v57  ;;  %v17327_v17 = vpack.c.bf16 %v17325_v51, %v17326_v58  ;;  %v12194_v27 = vsel %vm17330_vm7, %v2548_v12, %v11517_v7  ;;  %vm17332_vm8 = vmmov %vm17323_vm3  ;;  %v17338_v58 = vld [vmem:[#allocation236_spill] sm:$0xff]  ;;  %v12210_v7 = vpop.permute.xlu1 %7568  ;;  %v12212_v12 = vpop.permute.xlu0 %7483  ;;  %2422 = vmatprep.mubr.f32.mxu0 %v17407_v44 }
 0x742   :  { %17324 = vst [vmem:[#allocation213_spill] sm:$0xff] %v12183_v53  ;;  %v2916_v43 = vrot.slane %v2594_v54, 4  ;;  %v12198_v41 = vsel %vm17332_vm8, %v7551_v57, %v17331_v56  ;;  %v17334_v13 = vunpack.i.l.bf16 %v11465_v21  ;;  %vm17335_vm12 = vcmask 769024   ;;  %17341 = vst [vmem:[#allocation219_spill] sm:$0xff] %v12210_v7  ;;  %v17342_v57 = vld [vmem:[#allocation191_spill] sm:$0xff]  ;;  %7768 = vrot.lane.b32.xlu0 %v17329_v16, %s17165_s27 }
 0x743   :  { %6951 = vmatprep.subr.bf16.mxu0 %v17327_v17  ;;  %17333 = vst [vmem:[#allocation224_spill] sm:$0xff] %v12198_v41  ;;  %vm17337_vm10 = vcmask 760832   ;;  %v17339_v17 = vld [vmem:[#allocation139_spill] sm:$0xff]  ;;  %v17343_v54 = vrot.slane %v17342_v57, %v8283_v28  ;;  %vm17353_vm8 = vcmask 629760   ;;  %v17364_v48 = vrot.slane %v17342_v57, %v8302_v32 }
 0x744   :  { %v2629_v35 = vsel %vm17335_vm12, %v7466_v3, %v17334_v13  ;;  %v2676_v51 = vsel %vm17337_vm10, %v7481_v25, %v17336_v24  ;;  %v17340_v0 = vpack.c.bf16 %v17338_v58, %v17339_v17  ;;  %v17346_v3 = vrot.slane %v17342_v57, %v8305_v33  ;;  %v17351_v13 = vld [vmem:[#allocation183_spill] sm:$0xff]  ;;  %vm17356_vm12 = vmmov %vm17337_vm10  ;;  %v17371_v57 = vld [vmem:[#allocation242_spill] sm:$0xff]  ;;  %7818 = vrot.lane.b32.xlu1 %v17329_v16, %s17376_s2 }
 0x745   :  { %vm12217_vm15 = vcmp.eq.s32.totalorder %v17343_v54, 1  ;;  %v3290_v58 = vsel %vm17353_vm8, %v7555_v61, %v15975_v63  ;;  %v2684_v17 = vsel %vm12047_vm9, %v2676_v51, 0.0  ;;  %v17354_v54 = vld [vmem:[#allocation68_spill] sm:$0xff]  ;;  %v2675_v38 = vsel %vm17337_vm10, %v7480_v62, %v7481_v25  ;;  %v17368_v25 = vld [vmem:[#allocation238_spill] sm:$0xff] }
 0x746   :  { %6953 = vmatpush1.bf16.msra.mxu0 %v17340_v0  ;;  %vm12224_vm2 = vcmp.eq.s32.totalorder %v17346_v3, 1  ;;  %v17349_v0 = vld [vmem:[#allocation235_spill] sm:$0xff]  ;;  %v17355_v10 = vunpack.i.h.bf16 %v17354_v54  ;;  %vm12255_vm9 = vcmp.eq.s32.totalorder %v17364_v48, 1  ;;  %vm17372_vm8 = vcmask 1043456   ;;  %v17373_v48 = vld [vmem:[#allocation164_spill] sm:$0xff]  ;;  %7778 = vrot.lane.b32.xlu0 %v17329_v16, %s17192_s21 }
 0x747   :  { %vm17350_vm3 = vnez %v17349_v0  ;;  %v17359_v0 = vpack.c.bf16 %v17357_v47, %v17358_v34  ;;  %v2929_v47 = vrot.slane %v2684_v17, 4  ;;  %v12271_v54 = vsel %vm17372_vm8, %v2636_v19, %v17371_v57  ;;  %v17374_v17 = vld [vmem:[#allocation206_spill] sm:$0xff]  ;;  %v17379_v19 = vld [vmem:[#allocation187_spill] sm:$0xff]  ;;  %v17386_v63 = vld [vmem:[#allocation184_spill] sm:$0xff] }
 0x748   :  { %v17352_v24 = vsel %vm17350_vm3, %v17351_v13, 0.0  ;;  %v2674_v3 = vsel %vm17356_vm12, %v17355_v10, %v7480_v62  ;;  %v17360_v13 = vld [vmem:[#allocation189_spill] sm:$0xff]  ;;  %v17369_v62 = vld [vmem:[#allocation138_spill] sm:$0xff]  ;;  %v17375_v10 = vpack.c.bf16 %v17373_v48, %v17374_v17  ;;  %v7571_v59 = vunpack.i.h.bf16 %v12210_v7  ;;  %v7499_v48 = vpop.permute.xlu0 %7498  ;;  %vm17390_vm12 = vmmov %vm17372_vm8  ;;  %7828 = vrot.lane.b32.xlu1 %v17329_v16, %s17420_s12 }
 0x749   :  { %6852 = vmatpush1.msk.msra.mxu1 %vm17330_vm7, %v17352_v24  ;;  %6955 = vmatprep.subr.bf16.mxu0 %v17359_v0  ;;  %v17361_v24 = vrot.slane %v17360_v13, %v8286_v29  ;;  %v2682_v34 = vsel %vm12074_vm1, %v2674_v3, 0.0  ;;  %vm17367_vm7 = vcmask 293888   ;;  %v17370_v51 = vpack.c.bf16 %v17368_v25, %v17369_v62  ;;  %v17377_v3 = vld [vmem:[#allocation16_spill] sm:$0xff] }
 0x74a   :  { %6853 = vmatmul.mubr.msk.f32.vlgmr.msra.gmra.mrb[6].mxu1 %vm17367_vm7, %v17319_v55  ;;  %v2683_v0 = vsel %vm12095_vm11, %v2675_v38, 0.0  ;;  %vm17378_vm1 = vnez %v17377_v3  ;;  %v17380_v62 = vld [vmem:[#allocation240_spill] sm:$0xff]  ;;  %v7486_v38 = vunpack.i.h.bf16 %v12212_v12  ;;  %v2637_v17 = vsel %vm12114_vm14, %v2629_v35, 0.0  ;;  %v17388_v3 = vld [vmem:[#allocation241_spill] sm:$0xff]  ;;  %v17396_v35 = vld [vmem:[#allocation215_spill] sm:$0xff]  ;;  %7788 = vrot.lane.b32.xlu0 %v17329_v16, %s17220_s13 }
 0x74b   :  { %vm12248_vm3 = vcmp.eq.s32.totalorder %v17361_v24, 1  ;;  %6959 = vmatprep.subr.bf16.mxu1 %v17370_v51  ;;  %v2927_v24 = vrot.slane %v2682_v34, 4  ;;  %v3298_v25 = vsel %vm17378_vm1, %v3290_v58, 0.0  ;;  %v17381_v51 = vpack.c.bf16 %v17379_v19, %v17380_v62  ;;  %v17383_v34 = vld [vmem:[#allocation168_spill] sm:$0xff]  ;;  %v17391_v62 = vld [vmem:[#allocation62_spill] sm:$0xff]  ;;  %vm17395_vm1 = vmmov %vm17390_vm12  ;;  %2493 = vmatprep.mubr.f32.mxu1 %v17407_v44 }
 0x74c   :  { %6961 = vmatpush1.bf16.msra.mxu1 %v17375_v10  ;;  %v17384_v57 = vpack.c.bf16 %v17382_v20, %v17383_v34  ;;  %v12291_v10 = vpop.permute.xlu1 %7573  ;;  %vm17387_vm11 = vnez %v17386_v63  ;;  %v7485_v19 = vunpack.i.l.bf16 %v12212_v12  ;;  %vm17392_vm8 = vnez %v17391_v62  ;;  %v17401_v12 = vld [vmem:[#allocation193_spill] sm:$0xff]  ;;  %v17405_v62 = vld [vmem:[#allocation96_spill] sm:$0xff] }
 0x74d   :  { %6963 = vmatprep.subr.bf16.mxu1 %v17381_v51  ;;  %17385 = vst [vmem:[#allocation226_spill] sm:$0xff] %v12291_v10  ;;  %v17389_v58 = vsel %vm17387_vm11, %v17388_v3, 0.0  ;;  %v17393_v51 = vld [vmem:[#allocation201_spill] sm:$0xff]  ;;  %v7575_v63 = vunpack.i.l.bf16 %v12291_v10  ;;  %vm17397_vm14 = vnez %v17396_v35  ;;  %vm17400_vm11 = vmmov %vm17395_vm1  ;;  %v17402_v3 = vrot.slane %v17401_v12, %v8305_v33 }
 0x74e   :  { %6957 = vmatpush1.bf16.msra.mxu0 %v17384_v57  ;;  %v12300_v55 = vsel %vm17390_vm12, %v17389_v58, %v2916_v43  ;;  %v17394_v20 = vsel %vm17392_vm8, %v17393_v51, 0.0  ;;  %v17398_v43 = vld [vmem:[#allocation171_spill] sm:$0xff]  ;;  %v2928_v58 = vrot.slane %v2683_v0, 4  ;;  %v12326_v51 = vsel %vm15979_vm4, %v7571_v59, %v17405_v62  ;;  %7798 = vrot.lane.b32.xlu0 %v17329_v16, %s17240_s5 }
 0x74f   :  { %6854 = vmatprep.subr.msk.mxu0 %vm17395_vm1, %v17394_v20  ;;  %v17399_v34 = vsel %vm17397_vm14, %v17398_v43, 0.0  ;;  %vm12320_vm12 = vcmp.eq.s32.totalorder %v17402_v3, 1  ;;  %17406 = vst [vmem:[#allocation195_spill] sm:$0xff] %v12326_v51  ;;  %v7501_v20 = vunpack.i.h.bf16 %v7499_v48  ;;  %v17408_v35 = vrot.slane %v17401_v12, %v8283_v28  ;;  %vm17421_vm14 = vmmov %vm17400_vm11 }
 0x750   :  { %v2965_v57 = vsel %vm17400_vm11, %v17399_v34, %v2929_v47  ;;  %v6968_v47 = vpack.c.bf16 %v12271_v54, %v12194_v27  ;;  %v17411_v0 = vrot.slane %v17401_v12, %v8302_v32  ;;  %v17414_v3 = vunpack.i.l.bf16 %v12210_v7  ;;  %v17416_v27 = vld [vmem:[#allocation188_spill] sm:$0xff]  ;;  %vm17433_vm7 = vmmov %vm17421_vm14 }
 0x751   :  { %vm12335_vm8 = vcmp.eq.s32.totalorder %v17408_v35, 1  ;;  %v17417_v54 = vld [vmem:[#allocation212_spill] sm:$0xff]  ;;  %v17419_v35 = vunpack.i.h.bf16 %v12291_v10  ;;  %v7500_v36 = vunpack.i.l.bf16 %v7499_v48  ;;  %v2963_v12 = vsel %vm17421_vm14, %v2637_v17, %v2927_v24  ;;  %v17429_v48 = vld [vmem:[#allocation239_spill] sm:$0xff]  ;;  %vm17440_vm13 = vmmov %vm17433_vm7 }
 0x752   :  { %vm12342_vm1 = vcmp.eq.s32.totalorder %v17411_v0, 1  ;;  %v12349_v62 = vsel %vm15979_vm4, %v17414_v3, %v7571_v59  ;;  %v17418_v51 = vpack.c.bf16 %v17416_v27, %v17417_v54  ;;  %v17422_v0 = vld [vmem:[#allocation207_spill] sm:$0xff]  ;;  %v17434_v24 = vld [vmem:[#allocation84_spill] sm:$0xff]  ;;  %vm17435_vm14 = vcmask 744448   ;;  %7803 = vrot.lane.b32.xlu0 %v16932_v31, %s17328_s3 }
 0x753   :  { %17415 = vst [vmem:[#allocation179_spill] sm:$0xff] %v12349_v62  ;;  %v3336_v53 = vsel %vm15980_vm6, %v7575_v63, %v17419_v35  ;;  %v17423_v7 = vrot.slane %v17422_v0, %v8286_v29  ;;  %vm17430_vm6 = vnez %v17429_v48  ;;  %v17431_v63 = vld [vmem:[#allocation204_spill] sm:$0xff]  ;;  %v2766_v17 = vsel %vm17435_vm14, %v7501_v20, %v17434_v24  ;;  %v17441_v0 = vld [vmem:[#allocation203_spill] sm:$0xff]  ;;  %v7504_v24 = vpop.permute.xlu0 %7503 }
 0x754   :  { %6965 = vmatpush1.bf16.msra.mxu1 %v17418_v51  ;;  %v17426_v51 = vrot.slane %v17360_v13, %v8283_v28  ;;  %v17432_v27 = vsel %vm17430_vm6, %v17431_v63, 0.0  ;;  %v17438_v54 = vld [vmem:[#allocation64_spill] sm:$0xff]  ;;  %v6966_v13 = vpack.c.bf16 %v2963_v12, %v12155_v14  ;;  %v17442_v48 = vrot.slane %v17441_v0, %v8302_v32  ;;  %v17450_v12 = vld [vmem:[#allocation243_spill] sm:$0xff] }
 0x755   :  { %vm12363_vm11 = vcmp.eq.s32.totalorder %v17423_v7, 1  ;;  %6857 = vmatprep.subr.msk.mxu1 %vm17433_vm7, %v17432_v27  ;;  %v17436_v7 = vld [vmem:[#allocation71_spill] sm:$0xff]  ;;  %v17443_v63 = vmov 0  ;;  %v12395_v27 = vpop.permute.xlu1 %7588  ;;  %v17492_v62 = vunpack.i.h.bf16 %v11768_v26  ;;  %v17501_v26 = vrot.slane %v17205_v18, %v8305_v33  ;;  %v17522_v59 = vld [vmem:[#allocation100_spill] sm:$0xff] }
 0x756   :  { %vm12370_vm4 = vcmp.eq.s32.totalorder %v17426_v51, 1  ;;  %vm17437_vm10 = vnez %v17436_v7  ;;  %v6974_v51 = vpack.c.bf16 %v2965_v57, %v12178_v8  ;;  %vm12391_vm5 = vcmp.eq.s32.totalorder %v17442_v48, 1  ;;  %7813 = vrot.lane.b32.xlu0 %v16932_v31, %s17376_s2 }
 0x757   :  { %v17439_v35 = vsel %vm17437_vm10, %v17438_v54, 0.0  ;;  %v17444_v63 = vsel %vm12391_vm5, 4294967295, %v17443_v63  ;;  %v17445_v7 = vrot.slane %v17111_v15, %v8283_v28  ;;  %v17446_v54 = vmov 0  ;;  %vm17452_vm10 = vmmov %vm17435_vm14 }
 0x758   :  { %6855 = vmatpush1.msk.msra.mxu0 %vm17440_vm13, %v17439_v35  ;;  %v12407_v8 = vrot.slane %v3298_v25, 4  ;;  %vm17449_vm13 = vcmask 752640   ;;  %v17451_v35 = vunpack.i.h.bf16 %v17450_v12  ;;  %vm17453_vm7 = vmmov %vm17452_vm10  ;;  %vm17454_vm14 = vcmask 293888  }
 0x759   :  { %vm12400_vm6 = vcmp.eq.s32.totalorder %v17445_v7, 1  ;;  %v12410_v57 = vsel %vm17449_vm13, %v7485_v19, %v7486_v38  ;;  %v2765_v0 = vsel %vm17453_vm7, %v7500_v36, %v7501_v20  ;;  %v8016_v7 = vld [vmem:[%s15479_s9] sm:$0x7]  ;;  %v17455_v25 = vrot.slane %v17111_v15, %v8286_v29  ;;  %v17460_v20 = vld [vmem:[#allocation77_spill] sm:$0xff]  ;;  %6967 = vmatprep.subr.bf16.mxu0 %v6966_v13  ;;  %s17476_s9 = smov 26   ;;  %v17524_v19 = vld [vmem:[#allocation102_spill] sm:$0xff] }
 0x75a   :  { %v17447_v54 = vsel %vm12400_vm6, 4294967295, %v17446_v54  ;;  %17448 = vst [vmem:[#allocation178_spill] sm:$0xff] %v12407_v8  ;;  %v2764_v48 = vsel %vm17452_vm10, %v17451_v35, %v7500_v36  ;;  %6856 = vmatmul.mubr.msk.f32.vlgmr.msra.gmra.mrb[6].mxu0 %vm17454_vm14, %v8016_v7  ;;  %v17461_v35 = vunpack.i.l.bf16 %v17460_v20  ;;  %vm17462_vm7 = vcmask 752640   ;;  %v17463_v8 = vld [vmem:[#allocation32_spill] sm:$0xff]  ;;  %v17467_v15 = vld [vmem:[#allocation147_spill] sm:$0xff]  ;;  %v17470_v20 = vld [vmem:[#allocation185_spill] sm:$0xff]  ;;  %7838 = vrot.lane.b32.xlu1 %v17329_v16, %s17476_s9 }
 0x75b   :  { %vm12425_vm13 = vcmp.eq.s32.totalorder %v17455_v25, 1  ;;  %vm17464_vm0 = vnez %v17463_v8  ;;  %vm17466_vm14 = vnez %v17465_v9  ;;  %vm17469_vm6 = vcmask 1043456   ;;  %3054 = vmatprep.mubr.f32.mxu0 %v17407_v44  ;;  %v17472_v8 = vld [vmem:[#allocation208_spill] sm:$0xff]  ;;  %6969 = vmatpush1.bf16.msra.mxu0 %v6968_v47  ;;  %v7519_v47 = vpop.permute.xlu0 %7518 }
 0x75c   :  { %v12435_v14 = vsel %vm17462_vm7, %v7486_v38, %v17461_v35  ;;  %v3344_v10 = vsel %vm17464_vm0, %v3336_v53, 0.0  ;;  %v17468_v25 = vsel %vm17466_vm14, %v17467_v15, 0.0  ;;  %v2774_v36 = vsel %vm12224_vm2, %v2766_v17, 0.0  ;;  %vm17474_vm0 = vmmov %vm17469_vm6  ;;  %7823 = vrot.lane.b32.xlu0 %v16932_v31, %s17420_s12 }
 0x75d   :  { %v2964_v5 = vsel %vm17469_vm6, %v17468_v25, %v2928_v58  ;;  %v2772_v38 = vsel %vm12217_vm15, %v2764_v48, 0.0  ;;  %vm17471_vm7 = vnez %v17470_v20  ;;  %v7591_v58 = vunpack.i.h.bf16 %v12395_v27  ;;  %v12463_v48 = vpop.permute.xlu1 %7593  ;;  %v17478_v25 = vld [vmem:[#allocation209_spill] sm:$0xff] }
 0x75e   :  { %v17473_v53 = vsel %vm17471_vm7, %v17472_v8, 0.0  ;;  %v6976_v9 = vpack.c.bf16 %v2964_v5, %v12300_v55  ;;  %v2773_v56 = vsel %vm12255_vm9, %v2765_v0, 0.0  ;;  %vm17475_vm15 = vcmask 293888   ;;  %7843 = vrot.lane.b32.xlu1 %v16932_v31, %s17504_s14 }
 0x75f   :  { %6858 = vmatpush1.msk.msra.mxu1 %vm17474_vm0, %v17473_v53  ;;  %v15987_v21 = vunpack.i.l.bf16 %v12395_v27  ;;  %v7506_v17 = vunpack.i.h.bf16 %v7504_v24  ;;  %v7505_v5 = vunpack.i.l.bf16 %v7504_v24  ;;  %v15989_v55 = vunpack.i.h.bf16 %v12463_v48  ;;  %v7524_v12 = vpop.permute.xlu0 %7523 }
 0x760   :  { %6975 = vmatprep.subr.bf16.mxu1 %v6974_v51  ;;  %6859 = vmatmul.mubr.msk.f32.vlgmr.msra.gmra.mrb[6].mxu1 %vm17475_vm15, %v8016_v7  ;;  %v7595_v35 = vunpack.i.l.bf16 %v12463_v48  ;;  %v7521_v61 = vunpack.i.h.bf16 %v7519_v47  ;;  %v12469_v0 = vrot.slane %v3344_v10, 4  ;;  %v2941_v51 = vrot.slane %v2774_v36, 4 }
 0x761   :  { %6977 = vmatpush1.bf16.msra.mxu1 %v6976_v9  ;;  %v2939_v7 = vrot.slane %v2772_v38, 4  ;;  %v7520_v15 = vunpack.i.l.bf16 %v7519_v47  ;;  %v17479_v20 = vrot.slane %v17478_v25, %v8286_v29  ;;  %3125 = vmatprep.mubr.f32.mxu1 %v17407_v44  ;;  %v2940_v8 = vrot.slane %v2773_v56, 4  ;;  %v17484_v38 = vld [vmem:[#allocation87_spill] sm:$0xff]  ;;  %v17489_v56 = vld [vmem:[#allocation85_spill] sm:$0xff] }
 0x762   :  { %17477 = vst [vmem:[#allocation227_spill] sm:$0xff] %v12469_v0  ;;  %vm17482_vm9 = vcmask 605184   ;;  %vm17483_vm6 = vcmask 596992   ;;  %vm17485_vm14 = vcmask 728064   ;;  %v17486_v9 = vrot.slane %v17222_v22, %v8286_v29  ;;  %7853 = vrot.lane.b32.xlu1 %v16932_v31, %s8116_s16  ;;  %7833 = vrot.lane.b32.xlu0 %v16932_v31, %s17476_s9 }
 0x763   :  { %vm12476_vm2 = vcmp.eq.s32.totalorder %v17479_v20, 1  ;;  %v12484_v10 = vsel %vm17482_vm9, %v15987_v21, %v7591_v58  ;;  %v3426_v36 = vsel %vm17483_vm6, %v7595_v35, %v15989_v55  ;;  %v2856_v53 = vsel %vm17485_vm14, %v7521_v61, %v17484_v38  ;;  %vm17493_vm15 = vmmov %vm17485_vm14  ;;  %v3463_v55 = vpop.permute.xlu1 %3462 }
 0x764   :  { %vm12494_vm7 = vcmp.eq.s32.totalorder %v17486_v9, 1  ;;  %v17490_v20 = vunpack.i.l.bf16 %v17489_v56  ;;  %vm17491_vm0 = vcmask 736256   ;;  %v2864_v21 = vsel %vm12320_vm12, %v2856_v53, 0.0  ;;  %vm17494_vm9 = vmmov %vm17485_vm14 }
 0x765   :  { %v2854_v35 = vsel %vm17493_vm15, %v17492_v62, %v7520_v15  ;;  %v2855_v38 = vsel %vm17494_vm9, %v7520_v15, %v7521_v61  ;;  %v17495_v9 = vrot.slane %v17205_v18, %v8283_v28  ;;  %v17498_v56 = vrot.slane %v17205_v18, %v8302_v32 }
 0x766   :  { %v2809_v13 = vsel %vm17491_vm0, %v7506_v17, %v17490_v20  ;;  %vm12524_vm12 = vcmp.eq.s32.totalorder %v17501_v26, 1  ;;  %v2808_v61 = vsel %vm17491_vm0, %v7505_v5, %v7506_v17  ;;  %v2953_v15 = vrot.slane %v2864_v21, 4  ;;  %vm17517_vm0 = vmmov %vm12425_vm13  ;;  %7863 = vrot.lane.b32.xlu1 %v16932_v31, %s17567_s24 }
 0x767   :  { %vm12510_vm6 = vcmp.eq.s32.totalorder %v17495_v9, 1  ;;  %vm12517_vm14 = vcmp.eq.s32.totalorder %v17498_v56, 1  ;;  %v2862_v53 = vsel %vm12335_vm8, %v2854_v35, 0.0  ;;  %v2863_v20 = vsel %vm12342_vm1, %v2855_v38, 0.0  ;;  %v17508_v56 = vld [vmem:[#allocation98_spill] sm:$0xff] }
 0x768   :  { %v17505_v9 = vrot.slane %v17150_v23, %v8305_v33  ;;  %vm17509_vm9 = vcmask 605184   ;;  %v3434_v43 = vsel %vm12363_vm11, %v3426_v36, 0.0  ;;  %v2951_v21 = vrot.slane %v2862_v53, 4  ;;  %v3467_v53 = vpop.permute.xlu1 %3466 }
 0x769   :  { %v12544_v17 = vsel %vm17509_vm9, %v7591_v58, %v17508_v56  ;;  %v17510_v34 = vrot.slane %v17478_v25, %v8302_v32  ;;  %v17511_v23 = vmov 0  ;;  %v2727_v5 = vsel %vm12370_vm4, %v12435_v14, 0.0 }
 0x76a   :  { %vm12538_vm15 = vcmp.eq.s32.totalorder %v17505_v9, 1  ;;  %v7526_v58 = vunpack.i.h.bf16 %v7524_v12  ;;  %v7525_v36 = vunpack.i.l.bf16 %v7524_v12  ;;  %v17513_v35 = vrot.slane %v17478_v25, %v8305_v33  ;;  %v7539_v9 = vpop.permute.xlu0 %7538  ;;  %7873 = vrot.lane.b32.xlu1 %v16932_v31, %s8119_s26 }
 0x76b   :  { %vm12553_vm8 = vcmp.eq.s32.totalorder %v17510_v34, 1  ;;  %vm17516_vm11 = vnez %v17447_v54  ;;  %v2816_v3 = vsel %vm17517_vm0, %v2808_v61, 0.0  ;;  %v2952_v14 = vrot.slane %v2863_v20, 4 }
 0x76c   :  { %v17512_v23 = vsel %vm12553_vm8, 4294967295, %v17511_v23  ;;  %vm12566_vm1 = vcmp.eq.s32.totalorder %v17513_v35, 1  ;;  %v2817_v26 = vsel %vm17516_vm11, %v2809_v13, 0.0  ;;  %vm17518_vm4 = vcmask 1043456  }
 0x76d   :  { %v2971_v56 = vsel %vm17518_vm4, %v2817_v26, %v2951_v21  ;;  %vm17519_vm9 = vnez %v17196_v40  ;;  %vm17521_vm13 = vmmov %vm17518_vm4  ;;  %v12580_v35 = vrot.slane %v3434_v43, 4  ;;  %vm17523_vm5 = vcmask 588800   ;;  %v17534_v43 = vld [vmem:[#allocation216_spill] sm:$0xff]  ;;  %v17536_v21 = vld [vmem:[#allocation158_spill] sm:$0xff] }
 0x76e   :  { %v17520_v12 = vsel %vm17519_vm9, %v11877_v52, 0.0  ;;  %v12584_v54 = vsel %vm17523_vm5, %v17522_v59, %v3463_v55  ;;  %vm17525_vm11 = vmmov %vm17523_vm5  ;;  %v17528_v52 = vrot.slane %v17222_v22, %v8283_v28  ;;  %v17529_v61 = vmov 0  ;;  %v17538_v26 = vld [vmem:[#allocation222_spill] sm:$0xff]  ;;  %5254 = vrot.lane.b32.xlu1 %v17085_v30, %s17618_s25 }
 0x76f   :  { %v2973_v34 = vsel %vm17521_vm13, %v17520_v12, %v2953_v15  ;;  %v12588_v13 = vsel %vm17525_vm11, %v3463_v55, %v17524_v19  ;;  %vm17527_vm0 = vmmov %vm17518_vm4  ;;  %v17531_v15 = vunpack.i.l.bf16 %v11966_v1  ;;  %vm17532_vm5 = vcmask 654336  }
 0x770   :  { %17526 = vst [vmem:[#allocation74_spill] sm:$0xff] %v12588_v13  ;;  %v2967_v40 = vsel %vm17527_vm0, %v2727_v5, %v2939_v7  ;;  %vm12596_vm13 = vcmp.eq.s32.totalorder %v17528_v52, 1  ;;  %vm17533_vm9 = vmmov %vm17532_vm5  ;;  %v7541_v7 = vunpack.i.h.bf16 %v7539_v9  ;;  %vm17535_vm11 = vnez %v17534_v43  ;;  %v17551_v13 = vld [vmem:[#allocation220_spill] sm:$0xff] }
 0x771   :  { %v17530_v61 = vsel %vm12596_vm13, 4294967295, %v17529_v61  ;;  %v12603_v20 = vsel %vm17532_vm5, %v7526_v58, %v17531_v15  ;;  %v12606_v55 = vsel %vm17533_vm9, %v7525_v36, %v7526_v58  ;;  %v17537_v5 = vsel %vm17535_vm11, %v17536_v21, 0.0  ;;  %vm17546_vm9 = vmmov %vm17527_vm0  ;;  %v17547_v21 = vld [vmem:[#allocation89_spill] sm:$0xff] }
 0x772   :  { %v2969_v59 = vsel %vm17527_vm0, %v17537_v5, %v2941_v51  ;;  %v17539_v12 = vrot.slane %v17538_v26, %v8302_v32  ;;  %v17540_v1 = vmov 0  ;;  %v17542_v58 = vrot.slane %v17538_v26, %v8305_v33  ;;  %vm17558_vm13 = vmmov %vm17527_vm0 }
 0x773   :  { %v17543_v36 = vmov 0  ;;  %v7540_v16 = vunpack.i.l.bf16 %v7539_v9  ;;  %v6970_v52 = vpack.c.bf16 %v2971_v56, %v2967_v40  ;;  %v6978_v15 = vpack.c.bf16 %v2973_v34, %v2969_v59  ;;  %v17554_v56 = vld [vmem:[#allocation173_spill] sm:$0xff]  ;;  %v17556_v34 = vld [vmem:[#allocation176_spill] sm:$0xff] }
 0x774   :  { %vm12618_vm4 = vcmp.eq.s32.totalorder %v17539_v12, 1  ;;  %vm12625_vm5 = vcmp.eq.s32.totalorder %v17542_v58, 1  ;;  %v17545_v51 = vsel %vm12248_vm3, %v12410_v57, 0.0  ;;  %vm17548_vm11 = vcmask 646144   ;;  %v17549_v58 = vld [vmem:[#allocation70_spill] sm:$0xff]  ;;  %v17559_v40 = vld [vmem:[#allocation217_spill] sm:$0xff] }
 0x775   :  { %v17541_v1 = vsel %vm12618_vm4, 4294967295, %v17540_v1  ;;  %v17544_v36 = vsel %vm12625_vm5, 4294967295, %v17543_v36  ;;  %v2966_v43 = vsel %vm17546_vm9, %v17545_v51, %v11873_v46  ;;  %v3225_v5 = vsel %vm17548_vm11, %v7541_v7, %v17547_v21  ;;  %vm17553_vm4 = vmmov %vm17527_vm0  ;;  %6971 = vmatprep.subr.bf16.mxu0 %v6970_v52  ;;  %6979 = vmatprep.subr.bf16.mxu1 %v6978_v15 }
 0x776   :  { %v2970_v12 = vsel %vm17527_vm0, %v2816_v3, %v11899_v49  ;;  %vm17550_vm10 = vnez %v17549_v58  ;;  %vm17555_vm5 = vnez %v17554_v56  ;;  %v17560_v46 = vrot.slane %v17559_v40, %v8286_v29  ;;  %v12656_v49 = vpop.permute.xlu1 %7603  ;;  %v12658_v3 = vpop.permute.xlu0 %7543 }
 0x777   :  { %v17552_v25 = vsel %vm17550_vm10, %v17551_v13, 0.0  ;;  %v17557_v41 = vsel %vm17555_vm5, %v17556_v34, 0.0  ;;  %v17561_v59 = vmov 0  ;;  %vm17565_vm10 = vmmov %vm17548_vm11  ;;  %v6972_v51 = vpack.c.bf16 %v2970_v12, %v2966_v43 }
 0x778   :  { %v2968_v9 = vsel %vm17553_vm4, %v17552_v25, %v2940_v8  ;;  %v2972_v57 = vsel %vm17558_vm13, %v17557_v41, %v2952_v14  ;;  %vm12652_vm3 = vcmp.eq.s32.totalorder %v17560_v46, 1  ;;  %v17564_v8 = vunpack.i.h.bf16 %v12022_v2  ;;  %vm17566_vm4 = vmmov %vm17565_vm10 }
 0x779   :  { %v17562_v59 = vsel %vm12652_vm3, 4294967295, %v17561_v59  ;;  %v3224_v14 = vsel %vm17566_vm4, %v7540_v16, %v7541_v7  ;;  %v17568_v21 = vrot.slane %v17265_v60, %v8286_v29  ;;  %vm17571_vm5 = vcmask 588800   ;;  %v17572_v7 = vld [vmem:[#allocation105_spill] sm:$0xff]  ;;  %6973 = vmatpush1.bf16.msra.mxu0 %v6972_v51 }
 0x77a   :  { %17563 = vst [vmem:[#allocation83_spill] sm:$0xff] %v17562_v59  ;;  %v3223_v13 = vsel %vm17565_vm10, %v17564_v8, %v7540_v16  ;;  %v12681_v56 = vsel %vm17571_vm5, %v17524_v19, %v3467_v53  ;;  %vm17573_vm9 = vmmov %vm17571_vm5  ;;  %v6980_v52 = vpack.c.bf16 %v2972_v57, %v2968_v9  ;;  %v3233_v43 = vsel %vm12524_vm12, %v3225_v5, 0.0  ;;  %v12707_v42 = vpop.permute.xlu1 %7618  ;;  %v7559_v5 = vpop.permute.xlu0 %7558  ;;  %v17584_v51 = vld [vmem:[#allocation225_spill] sm:$0xff] }
 0x77b   :  { %vm12672_vm13 = vcmp.eq.s32.totalorder %v17568_v21, 1  ;;  %v12685_v16 = vsel %vm17573_vm9, %v3467_v53, %v17572_v7  ;;  %v3231_v12 = vsel %vm12510_vm6, %v3223_v13, 0.0  ;;  %v3232_v19 = vsel %vm12517_vm14, %v3224_v14, 0.0 }
 0x77c   :  { %v15995_v34 = vunpack.i.h.bf16 %v12656_v49  ;;  %6981 = vmatpush1.bf16.msra.mxu1 %v6980_v52  ;;  %v7605_v53 = vunpack.i.l.bf16 %v12656_v49  ;;  %v7546_v41 = vunpack.i.h.bf16 %v12658_v3  ;;  %v7545_v15 = vunpack.i.l.bf16 %v12658_v3 }
 0x77d   :  { %vm17574_vm0 = vnez %v17312_v6  ;;  %vm17576_vm12 = vcmask 1043456   ;;  %v2909_v0 = vsel %vm12538_vm15, %v11994_v50, 0.0  ;;  %v17577_v9 = vrot.slane %v17265_v60, %v8283_v28 }
 0x77e   :  { %v17575_v62 = vsel %vm17574_vm0, %v11916_v45, 0.0  ;;  %v17580_v45 = vrot.slane %v17222_v22, %v8305_v33  ;;  %vm17583_vm15 = vmmov %vm17576_vm12  ;;  %v7621_v18 = vunpack.i.h.bf16 %v12707_v42  ;;  %v15994_v46 = vunpack.i.l.bf16 %v12707_v42 }
 0x77f   :  { %6860 = vmatprep.subr.msk.mxu0 %vm17576_vm12, %v17575_v62  ;;  %vm12712_vm14 = vcmp.eq.s32.totalorder %v17577_v9, 1  ;;  %6863 = vmatprep.subr.msk.mxu1 %vm17583_vm15, %v2909_v0  ;;  %v7561_v3 = vunpack.i.h.bf16 %v7559_v5  ;;  %v12734_v8 = vrot.slane %v3233_v43, 4  ;;  %v3488_v13 = vrot.slane %v3231_v12, 4  ;;  %v17592_v12 = vld [vmem:[#allocation80_spill] sm:$0xff]  ;;  %vm17595_vm0 = vmmov %vm17576_vm12 }
 0x780   :  { %vm12719_vm10 = vcmp.eq.s32.totalorder %v17580_v45, 1  ;;  %v7560_v14 = vunpack.i.l.bf16 %v7559_v5  ;;  %v17585_v21 = vrot.slane %v17584_v51, %v8286_v29  ;;  %v17586_v7 = vmov 0  ;;  %v17596_v5 = vld [vmem:[#allocation107_spill] sm:$0xff] }
 0x781   :  { %v17589_v52 = vrot.slane %v17265_v60, %v8305_v33  ;;  %v12752_v43 = vrot.slane %v3232_v19, 4  ;;  %vm17593_vm9 = vnez %v17592_v12  ;;  %vm17597_vm12 = vcmask 515072   ;;  %v17599_v60 = vld [vmem:[#allocation91_spill] sm:$0xff] }
 0x782   :  { %vm12741_vm4 = vcmp.eq.s32.totalorder %v17585_v21, 1  ;;  %v17594_v0 = vsel %vm17593_vm9, %v11912_v37, 0.0  ;;  %v3806_v9 = vsel %vm17597_vm12, %v7621_v18, %v17596_v5  ;;  %vm17598_vm15 = vmmov %vm17597_vm12  ;;  %vm17600_vm6 = vcmask 629760   ;;  %v12784_v5 = vpop.permute.xlu1 %7623 }
 0x783   :  { %v17587_v7 = vsel %vm12741_vm4, 4294967295, %v17586_v7  ;;  %vm12748_vm5 = vcmp.eq.s32.totalorder %v17589_v52, 1  ;;  %6861 = vmatpush1.msk.msra.mxu0 %vm17595_vm0, %v17594_v0  ;;  %v3805_v45 = vsel %vm17598_vm15, %v15994_v46, %v7621_v18  ;;  %v3293_v21 = vsel %vm17600_vm6, %v7561_v3, %v17599_v60  ;;  %vm17607_vm12 = vmmov %vm17600_vm6  ;;  %v17608_v0 = vld [vmem:[#allocation55_spill] sm:$0xff]  ;;  %17610 = vst [vmem:[#allocation232_spill] sm:$0xff] %v12784_v5  ;;  %v17614_v60 = vld [vmem:[#allocation17_spill] sm:$0xff] }
 0x784   :  { %17588 = vst [vmem:[#allocation86_spill] sm:$0xff] %v17587_v7  ;;  %vm17601_vm11 = vcmask 523264   ;;  %vm17603_vm8 = vcmask 637952   ;;  %vm17604_vm9 = vnez %v17171_v39  ;;  %v17606_v12 = vunpack.i.h.bf16 %v12140_v11  ;;  %v17637_v46 = vld [vmem:[#allocation93_spill] sm:$0xff] }
 0x785   :  { %v12769_v19 = vsel %vm17601_vm11, %v7605_v53, %v15995_v34  ;;  %v12772_v52 = vsel %vm17603_vm8, %v7545_v15, %v7546_v41  ;;  %v17605_v37 = vsel %vm17604_vm9, %v11923_v4, 0.0  ;;  %vm17609_vm6 = vcmask 293888   ;;  %v7564_v53 = vpop.permute.xlu0 %7563 }
 0x786   :  { %17602 = vst [vmem:[#allocation88_spill] sm:$0xff] %v12769_v19  ;;  %6864 = vmatpush1.msk.msra.mxu1 %vm17595_vm0, %v17605_v37  ;;  %v3291_v18 = vsel %vm17607_vm12, %v17606_v12, %v7560_v14  ;;  %6862 = vmatmul.mubr.msk.f32.vlgmr.msra.gmra.mrb[6].mxu0 %vm17609_vm6, %v17608_v0  ;;  %vm17611_vm8 = vnez %v17530_v61  ;;  %vm17612_vm11 = vnez %v17544_v36  ;;  %vm17613_vm15 = vnez %v17541_v1  ;;  %vm17616_vm0 = vmmov %vm17607_vm12  ;;  %v17619_v12 = vld [vmem:[#allocation15_spill] sm:$0xff]  ;;  %v12823_v50 = vpop.permute.xlu1 %7638 }
 0x787   :  { %v3186_v15 = vsel %vm17611_vm8, %v12603_v20, 0.0  ;;  %v3814_v39 = vsel %vm17612_vm11, %v3806_v9, 0.0  ;;  %v3813_v4 = vsel %vm17613_vm15, %v3805_v45, 0.0  ;;  %vm17615_vm9 = vnez %v17614_v60  ;;  %vm17617_vm12 = vmmov %vm17609_vm6  ;;  %v17621_v20 = vld [vmem:[#allocation18_spill] sm:$0xff]  ;;  %3635 = vmatprep.mubr.f32.mxu0 %v17407_v44 }
 0x788   :  { %v3301_v11 = vsel %vm17615_vm9, %v3293_v21, 0.0  ;;  %v3292_v37 = vsel %vm17616_vm0, %v7560_v14, %v7561_v3  ;;  %6865 = vmatmul.mubr.msk.f32.vlgmr.msra.gmra.mrb[6].mxu1 %vm17617_vm12, %v17608_v0  ;;  %vm17620_vm6 = vnez %v17619_v12  ;;  %vm17622_vm8 = vnez %v17621_v20  ;;  %v17623_v14 = vld [vmem:[#allocation218_spill] sm:$0xff] }
 0x789   :  { %v3299_v61 = vsel %vm17620_vm6, %v3291_v18, 0.0  ;;  %v3300_v36 = vsel %vm17622_vm8, %v3292_v37, 0.0  ;;  %v15993_v1 = vunpack.i.h.bf16 %v12784_v5  ;;  %v7625_v9 = vunpack.i.l.bf16 %v12784_v5  ;;  %3706 = vmatprep.mubr.f32.mxu1 %v17407_v44  ;;  %v7579_v3 = vpop.permute.xlu0 %7578  ;;  %v17678_v44 = vld [vmem:[#allocation214_spill] sm:$0xff] }
 0x78a   :  { %v17624_v45 = vunpack.i.l.bf16 %v17623_v14  ;;  %vm17625_vm11 = vcmask 637952   ;;  %v7566_v18 = vunpack.i.h.bf16 %v7564_v53  ;;  %v7565_v0 = vunpack.i.l.bf16 %v7564_v53  ;;  %v17630_v53 = vld [vmem:[#allocation82_spill] sm:$0xff] }
 0x78b   :  { %v3275_v60 = vsel %vm12672_vm13, %v12772_v52, 0.0  ;;  %v12819_v37 = vrot.slane %v3814_v39, 4  ;;  %v12821_v12 = vrot.slane %v3813_v4, 4  ;;  %v3500_v20 = vrot.slane %v3299_v61, 4  ;;  %5258 = vrot.lane.b32.xlu1 %v17630_v53, %s17618_s25  ;;  %v17632_v61 = vld [vmem:[#allocation109_spill] sm:$0xff] }
 0x78c   :  { %v3268_v21 = vsel %vm17625_vm11, %v7546_v41, %v17624_v45  ;;  %v3502_v25 = vrot.slane %v3301_v11, 4  ;;  %v3501_v14 = vrot.slane %v3300_v36, 4  ;;  %vm17628_vm15 = vcmask 506880  }
 0x78d   :  { %17626 = vst [vmem:[#allocation198_spill] sm:$0xff] %v12819_v37  ;;  %17627 = vst [vmem:[#allocation76_spill] sm:$0xff] %v12821_v12  ;;  %v12828_v41 = vsel %vm17628_vm15, %v7625_v9, %v15993_v1  ;;  %v7641_v58 = vunpack.i.h.bf16 %v12823_v50  ;;  %vm16003_vm13 = vcmask 490496   ;;  %vm16004_vm9 = vcmask 482304   ;;  %v17635_v1 = vld [vmem:[#allocation223_spill] sm:$0xff] }
 0x78e   :  { %17629 = vst [vmem:[#allocation196_spill] sm:$0xff] %v12828_v41  ;;  %vm17631_vm0 = vcmask 621568   ;;  %v15996_v39 = vunpack.i.l.bf16 %v12823_v50  ;;  %v7581_v4 = vunpack.i.h.bf16 %v7579_v3  ;;  %v7580_v11 = vunpack.i.l.bf16 %v7579_v3  ;;  %v17639_v3 = vld [vmem:[#allocation226_spill] sm:$0xff]  ;;  %v17663_v41 = vld [vmem:[#allocation33_spill] sm:$0xff]  ;;  %v17674_v12 = vld [vmem:[#allocation63_spill] sm:$0xff] }
 0x78f   :  { %v12834_v52 = vsel %vm17631_vm0, %v7565_v0, %v7566_v18  ;;  %vm17633_vm12 = vcmask 498688   ;;  %v3276_v9 = vsel %vm12712_vm14, %v3268_v21, 0.0  ;;  %vm17634_vm6 = vcmask 1043456   ;;  %v12856_v21 = vpop.permute.xlu1 %7643 }
 0x790   :  { %v3874_v36 = vsel %vm17633_vm12, %v7641_v58, %v17632_v61  ;;  %v3532_v45 = vsel %vm17634_vm6, %v3186_v15, %v3488_v13  ;;  %v3188_v0 = vsel %vm12719_vm10, %v17635_v1, 0.0  ;;  %vm17636_vm8 = vmmov %vm17633_vm12  ;;  %vm17638_vm11 = vcmask 613376   ;;  %17643 = vst [vmem:[#allocation90_spill] sm:$0xff] %v12856_v21  ;;  %v12858_v13 = vpop.permute.xlu0 %7583  ;;  %v17644_v15 = vld [vmem:[#allocation207_spill] sm:$0xff] }
 0x791   :  { %v3873_v22 = vsel %vm17636_vm8, %v15996_v39, %v7641_v58  ;;  %v3339_v34 = vsel %vm17638_vm11, %v7581_v4, %v17637_v46  ;;  %v17640_v2 = vunpack.i.h.bf16 %v17639_v3  ;;  %vm17641_vm15 = vmmov %vm17638_vm11  ;;  %v17645_v6 = vrot.slane %v17644_v15, %v8305_v33  ;;  %v17648_v58 = vld [vmem:[#allocation219_spill] sm:$0xff]  ;;  %v17654_v39 = vld [vmem:[#allocation153_spill] sm:$0xff] }
 0x792   :  { %vm17642_vm0 = vmmov %vm17634_vm6  ;;  %v17649_v3 = vunpack.i.l.bf16 %v17648_v58  ;;  %vm17650_vm10 = vcmask 621568   ;;  %7888 = vrot.lane.b32.xlu1 %v17654_v39, %s17653_s30  ;;  %v17656_v59 = vrot.slane %v17644_v15, %v8283_v28  ;;  %7848 = vrot.lane.b32.xlu0 %v17654_v39, %s17504_s14  ;;  %vm17720_vm3 = vcmask 596992  }
 0x793   :  { %v3337_v61 = vsel %vm17641_vm15, %v17640_v2, %v7580_v11  ;;  %v3536_v57 = vsel %vm17642_vm0, %v3276_v9, %v3500_v20  ;;  %vm12863_vm14 = vcmp.eq.s32.totalorder %v17645_v6, 1  ;;  %v17651_v20 = vld [vmem:[#allocation29_spill] sm:$0xff]  ;;  %v17655_v6 = vld [vmem:[#allocation224_spill] sm:$0xff]  ;;  %vm17664_vm15 = vnez %v17663_v41 }
 0x794   :  { %v12873_v2 = vsel %vm17650_vm10, %v7566_v18, %v17649_v3  ;;  %vm17652_vm12 = vnez %v17651_v20  ;;  %v3278_v19 = vsel %vm12748_vm5, %v17655_v6, 0.0  ;;  %vm12886_vm6 = vcmp.eq.s32.totalorder %v17656_v59, 1  ;;  %v17659_v18 = vld [vmem:[#allocation25_spill] sm:$0xff]  ;;  %v17661_v3 = vld [vmem:[#allocation24_spill] sm:$0xff]  ;;  %vm17665_vm5 = vmmov %vm17642_vm0 }
 0x795   :  { %vm17660_vm8 = vnez %v17659_v18  ;;  %vm17662_vm11 = vnez %v17661_v3  ;;  %v3347_v7 = vsel %vm17664_vm15, %v3339_v34, 0.0  ;;  %v3534_v62 = vsel %vm17665_vm5, %v3188_v0, %v12734_v8  ;;  %v17666_v6 = vld [vmem:[#allocation203_spill] sm:$0xff]  ;;  %v17671_v18 = vld [vmem:[#allocation21_spill] sm:$0xff]  ;;  %vm17676_vm15 = vmmov %vm17665_vm5 }
 0x796   :  { %v3882_v58 = vsel %vm17660_vm8, %v3874_v36, 0.0  ;;  %v3881_v9 = vsel %vm17662_vm11, %v3873_v22, 0.0  ;;  %v17667_v59 = vrot.slane %v17666_v6, %v8286_v29  ;;  %vm17670_vm10 = vcmask 613376   ;;  %vm17673_vm11 = vmmov %vm17665_vm5  ;;  %7898 = vrot.lane.b32.xlu1 %v17654_v39, %s17691_s8  ;;  %7858 = vrot.lane.b32.xlu0 %v17654_v39, %s8116_s16  ;;  %s17704_s16 = smov 12   ;;  %v17771_v20 = vld [vmem:[#allocation179_spill] sm:$0xff] }
 0x797   :  { %v3338_v36 = vsel %vm17670_vm10, %v7580_v11, %v7581_v4  ;;  %vm17672_vm8 = vnez %v17671_v18  ;;  %v6982_v41 = vpack.c.bf16 %v3536_v57, %v3532_v45  ;;  %v3538_v34 = vsel %vm17673_vm11, %v3278_v19, %v3502_v25  ;;  %v17680_v4 = vld [vmem:[#allocation72_spill] sm:$0xff] }
 0x798   :  { %vm12903_vm0 = vcmp.eq.s32.totalorder %v17667_v59, 1  ;;  %v3345_v22 = vsel %vm17672_vm8, %v3337_v61, 0.0  ;;  %v6990_v3 = vpack.c.bf16 %v3538_v34, %v3534_v62  ;;  %v17675_v8 = vsel %vm12494_vm7, %v12606_v55, 0.0  ;;  %v17677_v59 = vld [vmem:[#allocation178_spill] sm:$0xff]  ;;  %vm17682_vm8 = vmmov %vm17665_vm5  ;;  %v12925_v61 = vpop.permute.xlu1 %7658  ;;  %v7599_v55 = vpop.permute.xlu0 %7598 }
 0x799   :  { %v3531_v0 = vsel %vm17676_vm15, %v17675_v8, %v17674_v12  ;;  %v3535_v5 = vsel %vm17665_vm5, %v3275_v60, %v17677_v59  ;;  %vm17679_vm10 = vnez %v17678_v44  ;;  %v17683_v25 = vrot.slane %v17644_v15, %v8302_v32  ;;  %6983 = vmatprep.subr.bf16.mxu0 %v6982_v41  ;;  %v17686_v60 = vld [vmem:[#allocation192_spill] sm:$0xff]  ;;  %v17688_v12 = vld [vmem:[#allocation213_spill] sm:$0xff]  ;;  %vm17690_vm15 = vmmov %vm17665_vm5 }
 0x79a   :  { %v17681_v11 = vsel %vm17679_vm10, %v17680_v4, 0.0  ;;  %v6984_v19 = vpack.c.bf16 %v3535_v5, %v3531_v0  ;;  %vm17687_vm7 = vnez %v17686_v60  ;;  %v7645_v62 = vunpack.i.l.bf16 %v12856_v21  ;;  %6991 = vmatprep.subr.bf16.mxu1 %v6990_v3  ;;  %7908 = vrot.lane.b32.xlu1 %v17654_v39, %s17704_s16 }
 0x79b   :  { %v3533_v45 = vsel %vm17682_vm8, %v17681_v11, %v12752_v43  ;;  %vm12930_vm11 = vcmp.eq.s32.totalorder %v17683_v25, 1  ;;  %v17689_v44 = vsel %vm17687_vm7, %v17688_v12, 0.0  ;;  %v16006_v43 = vunpack.i.h.bf16 %v12856_v21  ;;  %v17695_v11 = vld [vmem:[#allocation111_spill] sm:$0xff]  ;;  %7868 = vrot.lane.b32.xlu0 %v17654_v39, %s17567_s24 }
 0x79c   :  { %v3537_v57 = vsel %vm17690_vm15, %v17689_v44, %v3501_v14  ;;  %v7586_v18 = vunpack.i.h.bf16 %v12858_v13  ;;  %v7585_v5 = vunpack.i.l.bf16 %v12858_v13  ;;  %v7661_v41 = vunpack.i.h.bf16 %v12925_v61  ;;  %v17692_v14 = vld [vmem:[#allocation45_spill] sm:$0xff]  ;;  %6985 = vmatpush1.bf16.msra.mxu0 %v6984_v19  ;;  %v17696_v25 = vld [vmem:[#allocation211_spill] sm:$0xff] }
 0x79d   :  { %v6992_v15 = vpack.c.bf16 %v3537_v57, %v3533_v45  ;;  %vm17693_vm10 = vnez %v17692_v14  ;;  %v16007_v8 = vunpack.i.l.bf16 %v12925_v61  ;;  %v7601_v0 = vunpack.i.h.bf16 %v7599_v55  ;;  %v17702_v44 = vld [vmem:[#allocation95_spill] sm:$0xff]  ;;  %v17706_v14 = vld [vmem:[#allocation44_spill] sm:$0xff] }
 0x79e   :  { %v3346_v34 = vsel %vm17693_vm10, %v3338_v36, 0.0  ;;  %v7600_v59 = vunpack.i.l.bf16 %v7599_v55  ;;  %v12951_v4 = vrot.slane %v3882_v58, 4  ;;  %v12953_v3 = vrot.slane %v3881_v9, 4  ;;  %v12969_v58 = vpop.permute.xlu1 %7663  ;;  %v7609_v9 = vpop.permute.xlu0 %7608  ;;  %7918 = vrot.lane.b32.xlu1 %v17654_v39, %s17722_s15 }
 0x79f   :  { %6993 = vmatpush1.bf16.msra.mxu1 %v6992_v15  ;;  %v12958_v13 = vsel %vm16003_vm13, %v7645_v62, %v16006_v43  ;;  %v3920_v45 = vsel %vm16004_vm9, %v7661_v41, %v17695_v11  ;;  %v17697_v36 = vrot.slane %v17696_v25, %v8286_v29  ;;  %v17698_v19 = vmov 0  ;;  %17701 = vst [vmem:[#allocation65_spill] sm:$0xff] %v12969_v58 }
 0x7a0   :  { %17694 = vst [vmem:[#allocation92_spill] sm:$0xff] %v12958_v13  ;;  %v12971_v55 = vrot.slane %v3347_v7, 4  ;;  %v12973_v60 = vrot.slane %v3345_v22, 4  ;;  %v3919_v12 = vsel %vm16004_vm9, %v16007_v8, %v7661_v41  ;;  %vm17703_vm7 = vcmask 596992   ;;  %7878 = vrot.lane.b32.xlu0 %v17654_v39, %s8119_s26  ;;  %s17822_s26 = smov 121  }
 0x7a1   :  { %vm12965_vm8 = vcmp.eq.s32.totalorder %v17697_v36, 1  ;;  %v3429_v57 = vsel %vm17703_vm7, %v7601_v0, %v17702_v44  ;;  %v12982_v62 = vrot.slane %v3346_v34, 4  ;;  %vm17705_vm15 = vcmask 605184   ;;  %vm17709_vm13 = vmmov %vm17703_vm7 }
 0x7a2   :  { %v17699_v19 = vsel %vm12965_vm8, 4294967295, %v17698_v19  ;;  %v12985_v15 = vsel %vm17705_vm15, %v7585_v5, %v7586_v18  ;;  %vm17707_vm10 = vnez %v17706_v14  ;;  %v17708_v22 = vunpack.i.h.bf16 %v12463_v48  ;;  %vm17713_vm9 = vmmov %vm17705_vm15  ;;  %v17714_v5 = vld [vmem:[#allocation46_spill] sm:$0xff] }
 0x7a3   :  { %17700 = vst [vmem:[#allocation228_spill] sm:$0xff] %v17699_v19  ;;  %v3928_v7 = vsel %vm17707_vm10, %v3920_v45, 0.0  ;;  %v17712_v34 = vunpack.i.l.bf16 %v12395_v27  ;;  %vm17715_vm15 = vnez %v17714_v5  ;;  %v3437_v48 = vsel %vm12863_vm14, %v3429_v57, 0.0  ;;  %v17716_v45 = vld [vmem:[#allocation150_spill] sm:$0xff] }
 0x7a4   :  { %v3427_v11 = vsel %vm17709_vm13, %v17708_v22, %v7600_v59  ;;  %v3927_v14 = vsel %vm17715_vm15, %v3919_v12, 0.0  ;;  %vm17717_vm13 = vnez %v17716_v45  ;;  %v17718_v22 = vld [vmem:[#allocation11_spill] sm:$0xff]  ;;  %v3428_v43 = vsel %vm17720_vm3, %v7600_v59, %v7601_v0  ;;  %7883 = vrot.lane.b32.xlu0 %v16932_v31, %s17653_s30 }
 0x7a5   :  { %v13000_v44 = vsel %vm17713_vm9, %v7586_v18, %v17712_v34  ;;  %vm17719_vm10 = vnez %v17718_v22  ;;  %v3435_v36 = vsel %vm12886_vm6, %v3427_v11, 0.0  ;;  %v16009_v27 = vunpack.i.h.bf16 %v12969_v58  ;;  %v13015_v34 = vpop.permute.xlu1 %7678 }
 0x7a6   :  { %vm3974_vm5 = vmand %vm17719_vm10, %vm17717_vm13  ;;  %v7665_v18 = vunpack.i.l.bf16 %v12969_v58  ;;  %v3389_v1 = vsel %vm12903_vm0, %v12985_v15, 0.0  ;;  %v13020_v12 = vrot.slane %v3928_v7, 4  ;;  %v7611_v57 = vunpack.i.h.bf16 %v7609_v9  ;;  %v7614_v15 = vpop.permute.xlu0 %7613 }
 0x7a7   :  { %v7610_v5 = vunpack.i.l.bf16 %v7609_v9  ;;  %v13024_v0 = vrot.slane %v3927_v14, 4  ;;  %v13026_v46 = vrot.slane %v3437_v48, 4  ;;  %v17724_v59 = vmov 0  }
 0x7a8   :  { %17721 = vst [vmem:[#allocation200_spill] sm:$0xff] %v13020_v12  ;;  %v13031_v11 = vsel %vm3974_vm5, 1, %v17724_v59  ;;  %v7681_v37 = vunpack.i.h.bf16 %v13015_v34  ;;  %v3436_v7 = vsel %vm12930_vm11, %v3428_v43, 0.0  ;;  %v3524_v9 = vrot.slane %v3435_v36, 4  ;;  %7893 = vrot.lane.b32.xlu0 %v16932_v31, %s17691_s8 }
 0x7a9   :  { %17723 = vst [vmem:[#allocation78_spill] sm:$0xff] %v13024_v0  ;;  %17725 = vst [vmem:[#allocation229_spill] sm:$0xff] %v13031_v11  ;;  %v17726_v8 = vrot.slane %v17559_v40, %v8302_v32  ;;  %vm16015_vm9 = vcmask 465920   ;;  %vm17729_vm14 = vcmask 474112   ;;  %vm17731_vm6 = vcmask 523264   ;;  %v17735_v0 = vld [vmem:[#allocation113_spill] sm:$0xff] }
 0x7aa   :  { %v13046_v39 = vsel %vm17729_vm14, %v7665_v18, %v16009_v27  ;;  %v13049_v48 = vsel %vm17731_vm6, %v7610_v5, %v7611_v57  ;;  %v3987_v47 = vrot.slane %v13031_v11, %v8302_v32  ;;  %v3991_v43 = vrot.slane %v13031_v11, %v8305_v33  ;;  %v17732_v18 = vld [vmem:[#allocation159_spill] sm:$0xff]  ;;  %vm17742_vm15 = vmmov %vm17731_vm6 }
 0x7ab   :  { %vm13039_vm3 = vcmp.eq.s32.totalorder %v17726_v8, 1  ;;  %17730 = vst [vmem:[#allocation231_spill] sm:$0xff] %v13046_v39  ;;  %v3775_v36 = vrot.slane %v17538_v26, %v8286_v29  ;;  %v3779_v13 = vrot.slane %v17538_v26, %v8283_v28  ;;  %v7616_v41 = vunpack.i.h.bf16 %v7614_v15  ;;  %7923 = vrot.lane.b32.xlu1 %v17732_v18, %s8050_s23  ;;  %vm17744_vm14 = vmmov %vm17731_vm6  ;;  %s17778_s23 = smov 8  }
 0x7ac   :  { %v3525_v27 = vrot.slane %v3436_v7, 4  ;;  %vm13062_vm0 = vcmp.eq.s32.totalorder %v3991_v43, 1  ;;  %v4010_v22 = vsel %vm16015_vm9, %v7681_v37, %v17735_v0  ;;  %v7615_v58 = vunpack.i.l.bf16 %v7614_v15  ;;  %v13084_v0 = vpop.permute.xlu1 %7683  ;;  %v17741_v15 = vld [vmem:[#allocation97_spill] sm:$0xff]  ;;  %7903 = vrot.lane.b32.xlu0 %v16932_v31, %s17704_s16 }
 0x7ad   :  { %vm13073_vm11 = vcmp.eq.s32.totalorder %v3987_v47, 1  ;;  %v17738_v7 = vunpack.i.l.bf16 %v13015_v34  ;;  %vm13080_vm5 = vcmp.eq.s32.totalorder %v3779_v13, 1  ;;  %v13088_v21 = vsel %vm17742_vm15, %v7611_v57, %v17741_v15 }
 0x7ae   :  { %v17743_v26 = vunpack.i.h.bf16 %v12656_v49  ;;  %v3768_v39 = vsel %vm13039_vm3, %v13049_v48, 0.0  ;;  %v17745_v13 = vunpack.i.l.bf16 %v12707_v42  ;;  %vm17746_vm6 = vcmask 515072   ;;  %v17749_v49 = vld [vmem:[#allocation20_spill] sm:$0xff] }
 0x7af   :  { %v4009_v43 = vsel %vm16015_vm9, %v17738_v7, %v7681_v37  ;;  %v4018_v7 = vsel %vm13062_vm0, %v4010_v22, 0.0  ;;  %vm13103_vm9 = vcmp.eq.s32.totalorder %v3775_v36, 1  ;;  %vm17750_vm15 = vnez %v17749_v49  ;;  %7928 = vrot.lane.b32.xlu1 %v17732_v18, %s8122_s18  ;;  %vm17751_vm0 = vmmov %vm17746_vm6  ;;  %v17752_v36 = vld [vmem:[#allocation195_spill] sm:$0xff]  ;;  %v17759_v18 = vld [vmem:[#allocation14_spill] sm:$0xff]  ;;  %s17831_s18 = smov 124  }
 0x7b0   :  { %v13093_v47 = vsel %vm17744_vm14, %v17743_v26, %v7610_v5  ;;  %v3804_v37 = vsel %vm17746_vm6, %v7616_v41, %v17745_v13  ;;  %v3322_v57 = vsel %vm17750_vm15, %v12873_v2, 0.0  ;;  %v3357_v5 = vrot.slane %v17666_v6, %v8283_v28  ;;  %v17753_v26 = vld [vmem:[#allocation31_spill] sm:$0xff]  ;;  %v13124_v2 = vpop.permute.xlu0 %7628  ;;  %7913 = vrot.lane.b32.xlu0 %v16932_v31, %s17722_s15  ;;  %v17783_v31 = vld [vmem:[#allocation74_spill] sm:$0xff] }
 0x7b1   :  { %v4017_v42 = vsel %vm13073_vm11, %v4009_v43, 0.0  ;;  %v3812_v22 = vsel %vm13080_vm5, %v3804_v37, 0.0  ;;  %v13119_v12 = vsel %vm17751_vm0, %v7615_v58, %v7616_v41  ;;  %vm17754_vm14 = vnez %v17753_v26  ;;  %v17757_v41 = vld [vmem:[#allocation125_spill] sm:$0xff]  ;;  %v17761_v13 = vld [vmem:[#allocation227_spill] sm:$0xff]  ;;  %v13159_v26 = vpop.permute.xlu1 %7693 }
 0x7b2   :  { %v3324_v15 = vsel %vm17754_vm14, %v17752_v36, 0.0  ;;  %vm3367_vm6 = vcmp.eq.s32.totalorder %v3357_v5, 1  ;;  %vm17755_vm15 = vcmask 1043456   ;;  %v3365_v11 = vrot.slane %v17666_v6, %v8305_v33  ;;  %v17769_v5 = vld [vmem:[#allocation30_spill] sm:$0xff] }
 0x7b3   :  { %v3540_v8 = vsel %vm17755_vm15, %v3322_v57, %v12973_v60  ;;  %vm17756_vm11 = vmmov %vm17755_vm15  ;;  %vm17758_vm5 = vnez %v17757_v41  ;;  %vm17760_vm0 = vnez %v17759_v18  ;;  %v3390_v43 = vsel %vm3367_vm6, %v13000_v44, 0.0 }
 0x7b4   :  { %v3542_v58 = vsel %vm17756_vm11, %v3324_v15, %v12971_v55  ;;  %vm4290_vm14 = vmand %vm17760_vm0, %vm17758_vm5  ;;  %v17762_v37 = vsel %vm17652_vm12, %v12834_v52, 0.0  ;;  %vm17765_vm8 = vnez %v17444_v63  ;;  %vm3369_vm5 = vcmp.eq.s32.totalorder %v3365_v11, 1 }
 0x7b5   :  { %vm17763_vm7 = vmmov %vm17756_vm11  ;;  %v17766_v55 = vsel %vm17765_vm8, %v12484_v10, 0.0  ;;  %vm17770_vm6 = vnez %v17769_v5  ;;  %v3392_v10 = vsel %vm3369_vm5, %v12544_v17, 0.0  ;;  %v16022_v17 = vunpack.i.h.bf16 %v13084_v0 }
 0x7b6   :  { %v3539_v60 = vsel %vm17763_vm7, %v17762_v37, %v17761_v13  ;;  %vm17764_vm15 = vmmov %vm17763_vm7  ;;  %v17772_v52 = vsel %vm17770_vm6, %v17771_v20, 0.0  ;;  %v13179_v11 = vrot.slane %v4018_v7, 4  ;;  %vm16032_vm5 = vcmask 392192   ;;  %v7634_v37 = vpop.permute.xlu0 %7633 }
 0x7b7   :  { %v3543_v6 = vsel %vm17764_vm15, %v3389_v1, %v12580_v35  ;;  %vm17767_vm11 = vmmov %vm17763_vm7  ;;  %v17774_v35 = vld [vmem:[#allocation157_spill] sm:$0xff]  ;;  %v13165_v1 = vsel %vm4290_vm14, 1, %v17724_v59  ;;  %v3828_v13 = vrot.slane %v17584_v51, %v8302_v32  ;;  %v17784_v5 = vsel %vm12566_vm1, %v12685_v16, 0.0 }
 0x7b8   :  { %v3545_v49 = vsel %vm17767_vm11, %v17766_v55, %v3525_v27  ;;  %vm17768_vm10 = vmmov %vm17763_vm7  ;;  %v6988_v44 = vpack.c.bf16 %v3543_v6, %v3539_v60  ;;  %7933 = vrot.lane.b32.xlu1 %v17774_v35, %s8049_s22  ;;  %v4298_v15 = vrot.slane %v13165_v1, %v8286_v29  ;;  %v7631_v60 = vunpack.i.h.bf16 %v13124_v2  ;;  %v17777_v6 = vld [vmem:[#allocation209_spill] sm:$0xff] }
 0x7b9   :  { %v3544_v57 = vsel %vm17768_vm10, %v3390_v43, %v3524_v9  ;;  %vm17773_vm12 = vmmov %vm17763_vm7  ;;  %v17775_v9 = vld [vmem:[#allocation133_spill] sm:$0xff]  ;;  %v3447_v55 = vrot.slane %v17777_v6, %v8283_v28  ;;  %vm16026_vm6 = vcmask 384000   ;;  %v16028_v20 = vunpack.i.h.bf16 %v13159_v26  ;;  %v17801_v6 = vld [vmem:[#allocation134_spill] sm:$0xff] }
 0x7ba   :  { %v3541_v36 = vsel %vm17773_vm12, %v17772_v52, %v12982_v62  ;;  %v6986_v63 = vpack.c.bf16 %v3544_v57, %v3540_v8  ;;  %vm17776_vm8 = vnez %v17775_v9  ;;  %v3546_v62 = vsel %vm17768_vm10, %v3392_v10, %v13026_v46  ;;  %vm17785_vm11 = vmmov %vm17768_vm10  ;;  %v17961_v9 = vld [vmem:[#allocation123_spill] sm:$0xff] }
 0x7bb   :  { %v6996_v27 = vpack.c.bf16 %v3545_v49, %v3541_v36  ;;  %vm4343_vm7 = vmand %vm17760_vm0, %vm17776_vm8  ;;  %v7685_v8 = vunpack.i.l.bf16 %v13084_v0  ;;  %v6994_v43 = vpack.c.bf16 %v3546_v62, %v3542_v58  ;;  %v7630_v46 = vunpack.i.l.bf16 %v13124_v2  ;;  %v17811_v36 = vld [vmem:[#allocation232_spill] sm:$0xff] }
 0x7bc   :  { %6987 = vmatprep.subr.bf16.mxu0 %v6986_v63  ;;  %v13193_v7 = vsel %vm4343_vm7, 1, %v17724_v59  ;;  %5892 = vrot.lane.b32.xlu1 %v17085_v30, %s17778_s23  ;;  %v13197_v58 = vrot.slane %v4017_v42, 4  ;;  %v13199_v49 = vrot.slane %v3812_v22, 4  ;;  %v3811_v2 = vsel %vm13103_vm9, %v13119_v12, 0.0  ;;  %v13219_v22 = vpop.permute.xlu1 %7703  ;;  %vm17787_vm7 = vmmov %vm17768_vm10 }
 0x7bd   :  { %6989 = vmatpush1.bf16.msra.mxu0 %v6988_v44  ;;  %6995 = vmatprep.subr.bf16.mxu1 %v6994_v43  ;;  %vm13204_vm14 = vcmp.eq.s32.totalorder %v4298_v15, 1  ;;  %v13213_v30 = vsel %vm16032_vm5, %v7685_v8, %v16022_v17  ;;  %vm3457_vm15 = vcmp.eq.s32.totalorder %v3447_v55, 1  ;;  %v4348_v42 = vrot.slane %v13193_v7, %v8286_v29  ;;  %vm17791_vm1 = vmmov %vm17787_vm7  ;;  %v13251_v15 = vpop.permute.xlu0 %7648  ;;  %v17794_v8 = vld [vmem:[#allocation163_spill] sm:$0xff] }
 0x7be   :  { %6997 = vmatpush1.bf16.msra.mxu1 %v6996_v27  ;;  %v4352_v19 = vrot.slane %v13193_v7, %v8283_v28  ;;  %vm13221_vm9 = vcmp.eq.s32.totalorder %v3828_v13, 1  ;;  %v3480_v44 = vsel %vm3457_vm15, %v17783_v31, 0.0  ;;  %vm17786_vm12 = vcmask 506880   ;;  %7938 = vrot.lane.b32.xlu0 %v17794_v8, %s8049_s22  ;;  %v17806_v31 = vld [vmem:[#allocation99_spill] sm:$0xff]  ;;  %s17810_s22 = smov 123  }
 0x7bf   :  { %6869 = vmatprep.subr.msk.mxu1 %vm17785_vm11, %v17784_v5  ;;  %v3850_v52 = vsel %vm17786_vm12, %v7630_v46, %v7631_v60  ;;  %6866 = vmatprep.subr.msk.mxu0 %vm17787_vm7, %v3480_v44  ;;  %vm13234_vm10 = vcmp.eq.s32.totalorder %v4348_v42, 1  ;;  %v7695_v63 = vunpack.i.l.bf16 %v13159_v26  ;;  %v7636_v10 = vunpack.i.h.bf16 %v7634_v37  ;;  %v17808_v5 = vld [vmem:[#allocation19_spill] sm:$0xff] }
 0x7c0   :  { %5896 = vrot.lane.b32.xlu1 %v17630_v53, %s17778_s23  ;;  %v17790_v38 = vsel %vm12476_vm2, %v12584_v54, 0.0  ;;  %vm13246_vm15 = vcmp.eq.s32.totalorder %v4352_v19, 1  ;;  %v7635_v27 = vunpack.i.l.bf16 %v7634_v37  ;;  %vm16025_vm11 = vcmask 367616   ;;  %vm17797_vm2 = vmmov %vm17791_vm1  ;;  %v17798_v54 = vld [vmem:[#allocation112_spill] sm:$0xff] }
 0x7c1   :  { %6867 = vmatpush1.msk.msra.mxu0 %vm17791_vm1, %v17790_v38  ;;  %v7705_v62 = vunpack.i.l.bf16 %v13219_v22  ;;  %vm17795_vm12 = vnez %v17512_v23  ;;  %v4376_v53 = vsel %vm16026_vm6, %v17798_v54, %v7695_v63  ;;  %v4377_v43 = vsel %vm16026_vm6, %v7695_v63, %v16028_v20  ;;  %v17816_v54 = vld [vmem:[#allocation115_spill] sm:$0xff] }
 0x7c2   :  { %v17796_v24 = vsel %vm17795_vm12, %v12681_v56, 0.0  ;;  %v17799_v13 = vunpack.i.l.bf16 %v12823_v50  ;;  %vm17800_vm7 = vcmask 498688   ;;  %vm17802_vm1 = vcmask 293888   ;;  %v17805_v50 = vld [vmem:[#allocation52_spill] sm:$0xff]  ;;  %7948 = vrot.lane.b32.xlu0 %v17794_v8, %s17810_s22 }
 0x7c3   :  { %6870 = vmatpush1.msk.msra.mxu1 %vm17797_vm2, %v17796_v24  ;;  %6868 = vmatmul.mubr.msk.f32.vlgmr.msra.gmra.mrb[6].mxu0 %vm17802_vm1, %v17801_v6  ;;  %v16020_v23 = vunpack.i.h.bf16 %v13219_v22  ;;  %v4068_v55 = vrot.slane %v3811_v2, 4  ;;  %v4384_v42 = vsel %vm13234_vm10, %v4376_v53, 0.0  ;;  %vm17803_vm12 = vmmov %vm17800_vm7  ;;  %v4385_v2 = vsel %vm13246_vm15, %v4377_v43, 0.0  ;;  %v17814_v24 = vld [vmem:[#allocation26_spill] sm:$0xff] }
 0x7c4   :  { %v3872_v37 = vsel %vm17800_vm7, %v7636_v10, %v17799_v13  ;;  %v3871_v19 = vsel %vm17803_vm12, %v7635_v27, %v7636_v10  ;;  %vm17804_vm2 = vmmov %vm17802_vm1  ;;  %4208 = vmatprep.mubr.f32.mxu0 %v17805_v50  ;;  %vm17807_vm7 = vcmask 506880   ;;  %vm17809_vm1 = vnez %v17808_v5  ;;  %7943 = vrot.lane.b32.xlu1 %v17774_v35, %s17810_s22 }
 0x7c5   :  { %6871 = vmatmul.mubr.msk.f32.vlgmr.msra.gmra.mrb[6].mxu1 %vm17804_vm2, %v17801_v6  ;;  %v3851_v44 = vsel %vm17807_vm7, %v7631_v60, %v17806_v31  ;;  %v3880_v63 = vsel %vm17809_vm1, %v3872_v37, 0.0  ;;  %v7651_v38 = vunpack.i.h.bf16 %v13251_v15  ;;  %v17812_v10 = vunpack.i.h.bf16 %v17811_v36  ;;  %vm17813_vm10 = vmmov %vm17807_vm7  ;;  %v17819_v36 = vld [vmem:[#allocation101_spill] sm:$0xff] }
 0x7c6   :  { %4279 = vmatprep.mubr.f32.mxu1 %v17805_v50  ;;  %v3858_v60 = vsel %vm13221_vm9, %v3850_v52, 0.0  ;;  %vm17815_vm12 = vnez %v17814_v24  ;;  %v4444_v53 = vsel %vm16025_vm11, %v17816_v54, %v7705_v62  ;;  %v13301_v43 = vrot.slane %v4384_v42, 4  ;;  %v13309_v52 = vpop.permute.xlu1 %7718  ;;  %v17825_v54 = vld [vmem:[#allocation76_spill] sm:$0xff]  ;;  %7958 = vrot.lane.b32.xlu0 %v17794_v8, %s17822_s26 }
 0x7c7   :  { %v3849_v27 = vsel %vm17813_vm10, %v17812_v10, %v7630_v46  ;;  %v3879_v16 = vsel %vm17815_vm12, %v3871_v19, 0.0  ;;  %v4445_v13 = vsel %vm16025_vm11, %v7705_v62, %v16020_v23  ;;  %v7650_v46 = vunpack.i.l.bf16 %v13251_v15  ;;  %v17817_v19 = vld [vmem:[#allocation35_spill] sm:$0xff]  ;;  %v7654_v10 = vpop.permute.xlu0 %7653 }
 0x7c8   :  { %v3737_v12 = vrot.slane %v17559_v40, %v8305_v33  ;;  %v13311_v37 = vrot.slane %v4385_v2, 4  ;;  %v4081_v6 = vrot.slane %v3880_v63, 4  ;;  %vm17818_vm9 = vnez %v17817_v19  ;;  %7953 = vrot.lane.b32.xlu1 %v17774_v35, %s17822_s26  ;;  %v17823_v2 = vld [vmem:[#allocation27_spill] sm:$0xff] }
 0x7c9   :  { %v4452_v31 = vsel %vm17818_vm9, %v4444_v53, 0.0  ;;  %v3832_v42 = vrot.slane %v17584_v51, %v8305_v33  ;;  %v4080_v5 = vrot.slane %v3879_v16, 4  ;;  %vm17820_vm15 = vcmask 490496  }
 0x7ca   :  { %v13319_v62 = vsel %vm17820_vm15, %v7651_v38, %v17819_v36  ;;  %vm3741_vm2 = vcmp.eq.s32.totalorder %v3737_v12, 1  ;;  %vm17821_vm7 = vcmask 1043456   ;;  %vm17824_vm1 = vnez %v17823_v2  ;;  %vm17827_vm9 = vmmov %vm17820_vm15  ;;  %v17828_v12 = vld [vmem:[#allocation198_spill] sm:$0xff]  ;;  %v17836_v2 = vld [vmem:[#allocation196_spill] sm:$0xff]  ;;  %7968 = vrot.lane.b32.xlu0 %v17794_v8, %s17831_s18 }
 0x7cb   :  { %v4118_v15 = vsel %vm17821_vm7, %v3858_v60, %v12953_v3  ;;  %v4453_v63 = vsel %vm17824_vm1, %v4445_v13, 0.0  ;;  %v3769_v24 = vsel %vm3741_vm2, %v13088_v21, 0.0  ;;  %vm3836_vm10 = vcmp.eq.s32.totalorder %v3832_v42, 1  ;;  %vm17826_vm12 = vmmov %vm17821_vm7 }
 0x7cc   :  { %v4114_v16 = vsel %vm17826_vm12, %v3768_v39, %v17825_v54  ;;  %v13336_v3 = vrot.slane %v4452_v31, 4  ;;  %v13339_v60 = vsel %vm17827_vm9, %v7650_v46, %v7651_v38  ;;  %v3859_v53 = vsel %vm3836_vm10, %v3851_v44, 0.0  ;;  %vm17829_vm15 = vmmov %vm17821_vm7  ;;  %v13349_v38 = vpop.permute.xlu1 %7723  ;;  %7963 = vrot.lane.b32.xlu1 %v17774_v35, %s17831_s18  ;;  %v17839_v54 = vld [vmem:[#allocation83_spill] sm:$0xff] }
 0x7cd   :  { %v7008_v13 = vpack.c.bf16 %v4118_v15, %v4114_v16  ;;  %v4115_v21 = vsel %vm17829_vm15, %v3769_v24, %v17828_v12  ;;  %vm17830_vm2 = vmmov %vm17821_vm7  ;;  %v7656_v19 = vunpack.i.h.bf16 %v7654_v10  ;;  %v7655_v48 = vunpack.i.l.bf16 %v7654_v10  ;;  %v7669_v12 = vpop.permute.xlu0 %7668  ;;  %v17898_v10 = vld [vmem:[#allocation106_spill] sm:$0xff] }
 0x7ce   :  { %v4119_v14 = vsel %vm17830_vm2, %v3859_v53, %v12951_v4  ;;  %vm16023_vm3 = vcmask 375808   ;;  %v3729_v39 = vrot.slane %v17559_v40, %v8283_v28  ;;  %v3824_v31 = vrot.slane %v17584_v51, %v8283_v28  ;;  %vm17838_vm10 = vmmov %vm17830_vm2  ;;  %7978 = vrot.lane.b32.xlu0 %v17794_v8, %s17849_s4 }
 0x7cf   :  { %v7006_v42 = vpack.c.bf16 %v4119_v14, %v4115_v21  ;;  %v7721_v44 = vunpack.i.h.bf16 %v13309_v52  ;;  %v17832_v36 = vunpack.i.l.bf16 %v12925_v61  ;;  %vm17833_vm7 = vcmask 482304   ;;  %v17841_v61 = vld [vmem:[#allocation88_spill] sm:$0xff]  ;;  %v17843_v21 = vld [vmem:[#allocation22_spill] sm:$0xff] }
 0x7d0   :  { %vm17834_vm1 = vmmov %vm17833_vm7  ;;  %v17837_v40 = vsel %vm12741_vm4, %v17836_v2, 0.0  ;;  %v16019_v51 = vunpack.i.l.bf16 %v13309_v52  ;;  %vm3739_vm12 = vcmp.eq.s32.totalorder %v3729_v39, 1  ;;  %vm3834_vm9 = vcmp.eq.s32.totalorder %v3824_v31, 1  ;;  %7973 = vrot.lane.b32.xlu1 %v17774_v35, %s17849_s4  ;;  %v17853_v35 = vld [vmem:[#allocation34_spill] sm:$0xff] }
 0x7d1   :  { %v3918_v4 = vsel %vm17833_vm7, %v7656_v19, %v17832_v36  ;;  %v3917_v15 = vsel %vm17834_vm1, %v7655_v48, %v7656_v19  ;;  %v4116_v24 = vsel %vm17838_vm10, %v17837_v40, %v4080_v5  ;;  %7007 = vmatprep.subr.bf16.mxu1 %v7006_v42  ;;  %vm17840_vm15 = vnez %v17839_v54  ;;  %v17845_v5 = vld [vmem:[#allocation41_spill] sm:$0xff]  ;;  %vm4547_vm1 = vmand %vm17760_vm0, %vm17717_vm13  ;;  %v13404_v40 = vpop.permute.xlu1 %7733 }
 0x7d2   :  { %v17842_v16 = vsel %vm17840_vm15, %v17841_v61, 0.0  ;;  %7009 = vmatpush1.bf16.msra.mxu1 %v7008_v13  ;;  %vm17844_vm4 = vnez %v17843_v21  ;;  %vm17846_vm7 = vnez %v17845_v5  ;;  %v3767_v48 = vsel %vm3739_vm12, %v13093_v47, 0.0  ;;  %vm17847_vm10 = vmmov %vm17830_vm2  ;;  %v17856_v5 = vld [vmem:[#allocation104_spill] sm:$0xff] }
 0x7d3   :  { %v4112_v53 = vsel %vm17830_vm2, %v17842_v16, %v4068_v55  ;;  %v3926_v14 = vsel %vm17844_vm4, %v3918_v4, 0.0  ;;  %v3925_v19 = vsel %vm17846_vm7, %v3917_v15, 0.0  ;;  %v3857_v42 = vsel %vm3834_vm9, %v3849_v27, 0.0  ;;  %vm17848_vm15 = vmmov %vm17830_vm2 }
 0x7d4   :  { %v4113_v39 = vsel %vm17847_vm10, %v3767_v48, %v13199_v49  ;;  %v4117_v55 = vsel %vm17848_vm15, %v3857_v42, %v4081_v6  ;;  %v7000_v13 = vpack.c.bf16 %v4116_v24, %v4112_v53  ;;  %vm16021_vm2 = vcmask 351232   ;;  %v17850_v49 = vld [vmem:[#allocation90_spill] sm:$0xff]  ;;  %6515 = vrot.lane.b32.xlu1 %v17856_v5, %s16414_s7  ;;  %v17857_v48 = vld [vmem:[#allocation49_spill] sm:$0xff]  ;;  %v17899_v5 = vld [vmem:[#allocation108_spill] sm:$0xff] }
 0x7d5   :  { %v6998_v31 = vpack.c.bf16 %v4117_v55, %v4113_v39  ;;  %v16018_v36 = vunpack.i.h.bf16 %v13349_v38  ;;  %v7725_v47 = vunpack.i.l.bf16 %v13349_v38  ;;  %v3942_v27 = vrot.slane %v17696_v25, %v8302_v32  ;;  %v17861_v55 = vld [vmem:[#allocation48_spill] sm:$0xff]  ;;  %v13456_v56 = vpop.permute.xlu1 %7743 }
 0x7d6   :  { %v13391_v4 = vrot.slane %v4453_v63, 4  ;;  %v17851_v6 = vunpack.i.h.bf16 %v17850_v49  ;;  %vm17852_vm12 = vcmask 490496   ;;  %vm17854_vm9 = vnez %v17853_v35  ;;  %v17855_v63 = vld [vmem:[#allocation116_spill] sm:$0xff]  ;;  %v17867_v49 = vld [vmem:[#allocation229_spill] sm:$0xff]  ;;  %17871 = vst [vmem:[#allocation60_spill] sm:$0xff] %v13456_v56 }
 0x7d7   :  { %v13402_v2 = vsel %vm4547_vm1, 1, %v17724_v59  ;;  %v13409_v8 = vsel %vm16023_vm3, %v16019_v51, %v7721_v44  ;;  %6999 = vmatprep.subr.bf16.mxu0 %v6998_v31  ;;  %v4490_v24 = vsel %vm16021_vm2, %v17855_v63, %v7725_v47  ;;  %v13418_v61 = vrot.slane %v3926_v14, 4  ;;  %v7674_v44 = vpop.permute.xlu0 %7673  ;;  %v17873_v51 = vld [vmem:[#allocation65_spill] sm:$0xff] }
 0x7d8   :  { %v13396_v15 = vsel %vm17852_vm12, %v17851_v6, %v7650_v46  ;;  %v4491_v46 = vsel %vm16021_vm2, %v7725_v47, %v16018_v36  ;;  %v4552_v54 = vrot.slane %v13402_v2, %v8286_v29  ;;  %v13420_v16 = vrot.slane %v3925_v19, 4  ;;  %7001 = vmatpush1.bf16.msra.mxu0 %v7000_v13  ;;  %v8017_v19 = vld [vmem:[#allocation3 + $0xc] sm:$0xff]  ;;  %v17872_v36 = vld [vmem:[#allocation154_spill] sm:$0xff] }
 0x7d9   :  { %v7671_v53 = vunpack.i.h.bf16 %v7669_v12  ;;  %v7670_v21 = vunpack.i.l.bf16 %v7669_v12  ;;  %vm17858_vm4 = vnez %v17857_v48  ;;  %vm13426_vm7 = vcmp.eq.s32.totalorder %v3942_v27, 1  ;;  %6517 = vrot.lane.b32.xlu0 %v8017_v19, %s16414_s7  ;;  %v17870_v48 = vld [vmem:[#allocation119_spill] sm:$0xff]  ;;  %6519 = vrot.lane.b32.xlu1 %v17872_v36, %s16414_s7  ;;  %v13513_v39 = vpop.permute.xlu1 %7753 }
 0x7da   :  { %v4498_v42 = vsel %vm17858_vm4, %v4490_v24, 0.0  ;;  %v4556_v14 = vrot.slane %v13402_v2, %v8283_v28  ;;  %vm16024_vm1 = vcmask 334848   ;;  %vm17862_vm10 = vnez %v17861_v55  ;;  %17892 = vst [vmem:[#allocation182_spill] sm:$0xff] %v13513_v39 }
 0x7db   :  { %v4499_v12 = vsel %vm17862_vm10, %v4491_v46, 0.0  ;;  %vm13435_vm15 = vcmp.eq.s32.totalorder %v4552_v54, 1  ;;  %v16027_v31 = vunpack.i.h.bf16 %v13404_v40  ;;  %v7735_v47 = vunpack.i.l.bf16 %v13404_v40  ;;  %v17868_v46 = vld [vmem:[#allocation103_spill] sm:$0xff] }
 0x7dc   :  { %vm13441_vm12 = vcmp.eq.s32.totalorder %v4556_v14, 1  ;;  %v3979_v6 = vrot.slane %v17867_v49, %v8286_v29  ;;  %v3983_v63 = vrot.slane %v17867_v49, %v8283_v28  ;;  %v7676_v24 = vunpack.i.h.bf16 %v7674_v44 }
 0x7dd   :  { %vm17869_vm4 = vcmask 474112   ;;  %v4580_v19 = vsel %vm16024_vm1, %v17870_v48, %v7735_v47  ;;  %v4581_v14 = vsel %vm16024_vm1, %v7735_v47, %v16027_v31  ;;  %v7675_v55 = vunpack.i.l.bf16 %v7674_v44  ;;  %v17881_v44 = vld [vmem:[#allocation172_spill] sm:$0xff]  ;;  %v17883_v47 = vld [vmem:[#allocation11_spill] sm:$0xff]  ;;  %v17889_v48 = vld [vmem:[#allocation53_spill] sm:$0xff] }
 0x7de   :  { %v3965_v54 = vsel %vm17869_vm4, %v7671_v53, %v17868_v46  ;;  %v17874_v23 = vunpack.i.h.bf16 %v17873_v51  ;;  %vm17875_vm10 = vmmov %vm17869_vm4  ;;  %vm13470_vm3 = vcmp.eq.s32.totalorder %v3983_v63, 1  ;;  %vm17882_vm1 = vnez %v17881_v44  ;;  %v8018_v31 = vld [vmem:[#allocation3 + $0x14] sm:$0xf]  ;;  %v4044_v63 = vpop.permute.xlu0 %4043 }
 0x7df   :  { %vm17876_vm2 = vmmov %vm17869_vm4  ;;  %vm13466_vm4 = vcmp.eq.s32.totalorder %v3979_v6, 1  ;;  %vm17884_vm11 = vnez %v17883_v47  ;;  %6521 = vrot.lane.b32.xlu0 %v8018_v31, %s16414_s7  ;;  %v4589_v51 = vsel %vm13441_vm12, %v4581_v14, 0.0  ;;  %v16029_v31 = vunpack.i.h.bf16 %v13456_v56  ;;  %v8019_v14 = vld [vmem:[#allocation3 + $0x4] sm:$0xff] }
 0x7e0   :  { %v13463_v49 = vsel %vm17875_vm10, %v17874_v23, %v7670_v21  ;;  %v3964_v46 = vsel %vm17876_vm2, %v7670_v21, %v7671_v53  ;;  %vm4019_vm6 = vmand %vm17884_vm11, %vm17882_vm1  ;;  %v4588_v23 = vsel %vm13435_vm15, %v4580_v19, 0.0  ;;  %v17885_v53 = vunpack.i.l.bf16 %v13015_v34  ;;  %6513 = vrot.lane.b32.xlu1 %v8019_v14, %s16414_s7 }
 0x7e1   :  { %vm17886_vm2 = vcmask 465920   ;;  %v7745_v13 = vunpack.i.l.bf16 %v13456_v56  ;;  %v13493_v19 = vrot.slane %v4498_v42, 4  ;;  %v13495_v27 = vrot.slane %v4499_v12, 4 }
 0x7e2   :  { %v4008_v21 = vsel %vm17886_vm2, %v7676_v24, %v17885_v53  ;;  %vm17887_vm10 = vmmov %vm17886_vm2  ;;  %vm16030_vm11 = vcmask 359424   ;;  %v4020_v34 = vsel %vm4019_vm6, 1, %v17724_v59  ;;  %v13505_v42 = vrot.slane %v4588_v23, 4 }
 0x7e3   :  { %v4007_v6 = vsel %vm17887_vm10, %v7675_v55, %v7676_v24  ;;  %v4016_v47 = vsel %vm13470_vm3, %v4008_v21, 0.0  ;;  %17888 = vst [vmem:[#allocation67_spill] sm:$0xff] %v13493_v19  ;;  %v3972_v24 = vsel %vm13426_vm7, %v3964_v46, 0.0  ;;  %v4024_v17 = vrot.slane %v4020_v34, %v8286_v29  ;;  %6599 = vrot.lane.b32.xlu0 %v17889_v48, %s16413_s29  ;;  %v17893_v46 = vld [vmem:[#allocation118_spill] sm:$0xff] }
 0x7e4   :  { %v4015_v20 = vsel %vm13466_vm4, %v4007_v6, 0.0  ;;  %v4028_v55 = vrot.slane %v4020_v34, %v8283_v28  ;;  %vm4051_vm3 = vcmask 457728   ;;  %v13507_v12 = vrot.slane %v4589_v51, 4  ;;  %v17890_v6 = vld [vmem:[#allocation145_spill] sm:$0xff]  ;;  %v17894_v51 = vld [vmem:[#allocation43_spill] sm:$0xff] }
 0x7e5   :  { %v4105_v53 = vrot.slane %v4016_v47, 4  ;;  %v4104_v21 = vrot.slane %v4015_v20, 4  ;;  %vm17891_vm6 = vnez %v17890_v6  ;;  %v13517_v14 = vsel %vm16030_vm11, %v17893_v46, %v7745_v13 }
 0x7e6   :  { %vm4502_vm15 = vmand %vm17760_vm0, %vm17891_vm6  ;;  %v13522_v23 = vsel %vm16030_vm11, %v7745_v13, %v16029_v31  ;;  %vm17895_vm7 = vnez %v17894_v51  ;;  %v3946_v47 = vrot.slane %v17696_v25, %v8305_v33  ;;  %vm13529_vm12 = vcmp.eq.s32.totalorder %v4024_v17, 1  ;;  %v4048_v51 = vpop.permute.xlu0 %4047  ;;  %v17903_v17 = vld [vmem:[#allocation78_spill] sm:$0xff] }
 0x7e7   :  { %v3905_v20 = vsel %vm17895_vm7, %v13319_v62, 0.0  ;;  %v13535_v46 = vsel %vm4051_vm3, %v17898_v10, %v4044_v63  ;;  %v13539_v36 = vsel %vm4051_vm3, %v4044_v63, %v17899_v5  ;;  %vm17900_vm4 = vcmask 1043456   ;;  %v17906_v63 = vld [vmem:[#allocation38_spill] sm:$0xff] }
 0x7e8   :  { %v4126_v13 = vsel %vm17900_vm4, %v3972_v24, %v13197_v58  ;;  %vm13543_vm2 = vcmp.eq.s32.totalorder %v4028_v55, 1  ;;  %vm3950_vm10 = vcmp.eq.s32.totalorder %v3946_v47, 1  ;;  %v17904_v31 = vsel %vm17854_vm9, %v13339_v60, 0.0  ;;  %vm17905_vm7 = vmmov %vm17900_vm4  ;;  %v17908_v55 = vld [vmem:[#allocation200_spill] sm:$0xff] }
 0x7e9   :  { %v4122_v10 = vsel %vm17905_vm7, %v17904_v31, %v17903_v17  ;;  %v13554_v6 = vsel %vm4502_vm15, 1, %v17724_v59  ;;  %v3973_v24 = vsel %vm3950_vm10, %v3965_v54, 0.0  ;;  %v4123_v56 = vsel %vm17900_vm4, %v3905_v20, %v17908_v55  ;;  %vm17909_vm5 = vmmov %vm17900_vm4  ;;  %v17915_v55 = vld [vmem:[#allocation110_spill] sm:$0xff]  ;;  %v17946_v58 = vld [vmem:[#allocation120_spill] sm:$0xff] }
 0x7ea   :  { %v7012_v19 = vpack.c.bf16 %v4126_v13, %v4122_v10  ;;  %v4127_v47 = vsel %vm17909_vm5, %v3973_v24, %v13179_v11  ;;  %v4507_v60 = vrot.slane %v13554_v6, %v8286_v29  ;;  %v4032_v35 = vrot.slane %v4020_v34, %v8302_v32  ;;  %v13575_v11 = vpop.permute.xlu1 %7763  ;;  %vm17922_vm10 = vmmov %vm17900_vm4  ;;  %v17928_v24 = vld [vmem:[#allocation92_spill] sm:$0xff] }
 0x7eb   :  { %v4036_v31 = vrot.slane %v4020_v34, %v8305_v33  ;;  %v4061_v54 = vsel %vm13543_vm2, %v13539_v36, 0.0  ;;  %v7010_v20 = vpack.c.bf16 %v4127_v47, %v4123_v56  ;;  %v4054_v13 = vsel %vm4051_vm3, %v17899_v5, %v4048_v51  ;;  %17910 = vst [vmem:[#allocation69_spill] sm:$0xff] %v13575_v11  ;;  %v13593_v47 = vpop.permute.xlu0 %7688 }
 0x7ec   :  { %v7755_v10 = vunpack.i.l.bf16 %v13513_v39  ;;  %vm13578_vm5 = vcmp.eq.s32.totalorder %v4032_v35, 1  ;;  %v4055_v62 = vsel %vm4051_vm3, %v4048_v51, %v17915_v55  ;;  %v16033_v56 = vunpack.i.h.bf16 %v13513_v39 }
 0x7ed   :  { %vm13582_vm9 = vcmp.eq.s32.totalorder %v4036_v31, 1  ;;  %7011 = vmatprep.subr.bf16.mxu1 %v7010_v20  ;;  %v3938_v5 = vrot.slane %v17696_v25, %v8283_v28  ;;  %vm13595_vm2 = vcmp.eq.s32.totalorder %v4507_v60, 1  ;;  %v4062_v51 = vsel %vm13578_vm5, %v4054_v13, 0.0  ;;  %v17918_v31 = vld [vmem:[#allocation228_spill] sm:$0xff]  ;;  %v17920_v20 = vld [vmem:[#allocation231_spill] sm:$0xff]  ;;  %v17926_v13 = vld [vmem:[#allocation37_spill] sm:$0xff] }
 0x7ee   :  { %v4063_v36 = vsel %vm13582_vm9, %v4055_v62, 0.0  ;;  %7013 = vmatpush1.bf16.msra.mxu1 %v7012_v19  ;;  %vm17919_vm3 = vnez %v17918_v31  ;;  %v13609_v25 = vld [vmem:[%s15471_s1] sm:$0xf]  ;;  %vm17927_vm5 = vnez %v17926_v13  ;;  %vm17933_vm6 = vcmask 343040  }
 0x7ef   :  { %v17921_v55 = vsel %vm17919_vm3, %v17920_v20, 0.0  ;;  %17923 = vst [vmem:[#allocation162_spill] sm:$0xff] %v13609_v25  ;;  %vm131_vm7 = vcmp.ge.s32.totalorder %v13609_v25, 4294967294  ;;  %v17924_v19 = vld [vmem:[#allocation23_spill] sm:$0xff]  ;;  %vm3948_vm9 = vcmp.eq.s32.totalorder %v3938_v5, 1  ;;  %v17929_v62 = vsel %vm17927_vm5, %v17928_v24, 0.0  ;;  %vm17930_vm3 = vmmov %vm17922_vm10 }
 0x7f0   :  { %v4124_v34 = vsel %vm17922_vm10, %v17921_v55, %v4104_v21  ;;  %vm17925_vm4 = vnez %v17924_v19  ;;  %v4120_v31 = vsel %vm17930_vm3, %v17929_v62, %v13420_v16  ;;  %vm17931_vm10 = vmmov %vm17930_vm3  ;;  %vm132_vm15 = vcmp.lt.s32.totalorder %v13609_v25, 14  ;;  %v17932_v21 = vld [vmem:[#allocation121_spill] sm:$0xff] }
 0x7f1   :  { %v3903_v60 = vsel %vm17925_vm4, %v13396_v15, 0.0  ;;  %6875 = vmatprep.subr.msk.mxu1 %vm17931_vm10, %v4063_v36  ;;  %v13625_v20 = vsel %vm17933_vm6, %v17932_v21, %v7755_v10  ;;  %v3971_v55 = vsel %vm3948_vm9, %v13463_v49, 0.0  ;;  %vm17934_vm4 = vmmov %vm17930_vm3  ;;  %v7004_v5 = vpack.c.bf16 %v4124_v34, %v4120_v31  ;;  %v17941_v24 = vld [vmem:[#allocation9_spill] sm:$0xff] }
 0x7f2   :  { %v4121_v15 = vsel %vm17934_vm4, %v3903_v60, %v13418_v61  ;;  %vm13630_vm11 = vmand %vm131_vm7, %vm132_vm15  ;;  %v16034_v36 = vunpack.i.h.bf16 %v13575_v11  ;;  %v7765_v13 = vunpack.i.l.bf16 %v13575_v11  ;;  %v4306_v49 = vrot.slane %v13165_v1, %v8302_v32  ;;  %v13643_v61 = vpop.permute.xlu1 %7773 }
 0x7f3   :  { %vm17937_vm5 = vmmov %vm17930_vm3  ;;  %17938 = vst [vmem:[#allocation61_spill] sm:$0xff] %v13643_v61  ;;  %v13648_v34 = vsel %vm17933_vm6, %v7755_v10, %v16033_v56  ;;  %vm16035_vm15 = vcmask 252928   ;;  %vm17942_vm9 = vnez %v17941_v24  ;;  %v7691_v10 = vunpack.i.h.bf16 %v13593_v47 }
 0x7f4   :  { %v4125_v16 = vsel %vm17937_vm5, %v3971_v55, %v4105_v53  ;;  %vm4916_vm3 = vmand %vm13630_vm11, %vm17776_vm8  ;;  %v7690_v21 = vunpack.i.l.bf16 %v13593_v47  ;;  %v17943_v55 = vld [vmem:[#allocation56_spill] sm:$0xff]  ;;  %v4949_v47 = vsel %vm16035_vm15, %v17946_v58, %v7765_v13  ;;  %v4950_v17 = vsel %vm16035_vm15, %v7765_v13, %v16034_v36 }
 0x7f5   :  { %v7002_v53 = vpack.c.bf16 %v4125_v16, %v4121_v15  ;;  %v13651_v60 = vsel %vm4916_vm3, 1, %v17724_v59  ;;  %vm17940_vm7 = vmmov %vm17934_vm4  ;;  %vm17944_vm4 = vcmask 293888   ;;  %v7699_v15 = vpop.permute.xlu0 %7698  ;;  %vm13679_vm3 = vcmp.eq.s32.totalorder %v4306_v49, 1  ;;  %v17954_v49 = vld [vmem:[#allocation114_spill] sm:$0xff] }
 0x7f6   :  { %17939 = vst [vmem:[#allocation237_spill] sm:$0xff] %v13651_v60  ;;  %6876 = vmatpush1.msk.msra.mxu1 %vm17940_vm7, %v4062_v51  ;;  %vm5006_vm10 = vmand %vm13630_vm11, %vm17942_vm9  ;;  %v4921_v62 = vrot.slane %v13651_v60, %v8286_v29  ;;  %v4925_v31 = vrot.slane %v13651_v60, %v8283_v28  ;;  %v7775_v13 = vunpack.i.l.bf16 %v13643_v61  ;;  %vm17962_vm9 = vcmask 236544  }
 0x7f7   :  { %6877 = vmatmul.mubr.msk.f32.vlgmr.msra.gmra.mrb[6].mxu1 %vm17944_vm4, %v17943_v55  ;;  %7003 = vmatprep.subr.bf16.mxu0 %v7002_v53  ;;  %v13670_v16 = vsel %vm5006_vm10, 1, %v17724_v59  ;;  %vm17953_vm10 = vmmov %vm17937_vm5  ;;  %vm17955_vm4 = vcmask 392192   ;;  %v7700_v48 = vunpack.i.l.bf16 %v7699_v15 }
 0x7f8   :  { %17945 = vst [vmem:[#allocation73_spill] sm:$0xff] %v13670_v16  ;;  %4852 = vmatprep.mubr.f32.mxu1 %v17805_v50  ;;  %7005 = vmatpush1.bf16.msra.mxu0 %v7004_v5  ;;  %v5011_v53 = vrot.slane %v13670_v16, %v8286_v29  ;;  %vm13685_vm6 = vcmp.eq.s32.totalorder %v4921_v62, 1  ;;  %vm13689_vm7 = vcmp.eq.s32.totalorder %v4925_v31, 1  ;;  %v5015_v58 = vrot.slane %v13670_v16, %v8283_v28  ;;  %vm17956_vm15 = vmmov %vm17955_vm4 }
 0x7f9   :  { %6872 = vmatprep.subr.msk.mxu0 %vm17953_vm10, %v4061_v54  ;;  %v13699_v36 = vsel %vm17955_vm4, %v7691_v10, %v17954_v49  ;;  %v13702_v62 = vsel %vm17956_vm15, %v7690_v21, %v7691_v10  ;;  %v4356_v31 = vrot.slane %v13193_v7, %v8302_v32  ;;  %v5039_v25 = vsel %vm17962_vm9, %v17961_v9, %v7775_v13  ;;  %vm17964_vm4 = vmmov %vm17962_vm9 }
 0x7fa   :  { %vm13704_vm5 = vcmp.eq.s32.totalorder %v5011_v53, 1  ;;  %vm13710_vm10 = vcmp.eq.s32.totalorder %v5015_v58, 1  ;;  %v17963_v49 = vunpack.i.h.bf16 %v13643_v61  ;;  %v4360_v10 = vrot.slane %v13193_v7, %v8305_v33  ;;  %v13725_v53 = vpop.permute.xlu1 %7783 }
 0x7fb   :  { %vm17965_vm15 = vnez %v17757_v41  ;;  %17966 = vst [vmem:[#allocation54_spill] sm:$0xff] %v13725_v53  ;;  %v4957_v58 = vsel %vm13685_vm6, %v4949_v47, 0.0  ;;  %v4958_v9 = vsel %vm13689_vm7, %v4950_v17, 0.0  ;;  %vm17968_vm9 = vcmask 1043456   ;;  %v7709_v41 = vpop.permute.xlu0 %7708 }
 0x7fc   :  { %v5040_v16 = vsel %vm17964_vm4, %v7775_v13, %v17963_v49  ;;  %vm4863_vm8 = vmand %vm13630_vm11, %vm17965_vm15  ;;  %v17967_v13 = vsel %vm13529_vm12, %v13535_v46, 0.0  ;;  %v5047_v7 = vsel %vm13704_vm5, %v5039_v25, 0.0  ;;  %v7701_v49 = vunpack.i.h.bf16 %v7699_v15 }
 0x7fd   :  { %6873 = vmatpush1.msk.msra.mxu0 %vm17968_vm9, %v17967_v13  ;;  %v5048_v61 = vsel %vm13710_vm10, %v5040_v16, 0.0  ;;  %vm13740_vm4 = vcmp.eq.s32.totalorder %v4356_v31, 1  ;;  %vm13744_vm6 = vcmp.eq.s32.totalorder %v4360_v10, 1  ;;  %vm17973_vm12 = vcmask 293888   ;;  %v17977_v31 = vld [vmem:[#allocation135_spill] sm:$0xff] }
 0x7fe   :  { %6874 = vmatmul.mubr.msk.f32.vlgmr.msra.gmra.mrb[6].mxu0 %vm17973_vm12, %v17943_v55  ;;  %v13751_v46 = vsel %vm4863_vm8, 1, %v17724_v59  ;;  %vm16046_vm5 = vcmask 261120   ;;  %v7785_v25 = vunpack.i.l.bf16 %v13725_v53  ;;  %v17974_v16 = vunpack.i.h.bf16 %v13159_v26  ;;  %v13784_v11 = vpop.permute.xlu1 %7793 }
 0x7ff   :  { %4781 = vmatprep.mubr.f32.mxu0 %v17805_v50  ;;  %vm17975_vm7 = vcmask 384000   ;;  %v4871_v15 = vrot.slane %v13751_v46, %v8286_v29  ;;  %v7711_v55 = vunpack.i.h.bf16 %v7709_v41  ;;  %vm17978_vm8 = vnez %v17977_v31  ;;  %17983 = vst [vmem:[#allocation152_spill] sm:$0xff] %v13784_v11 }
 0x800   :  { %v4378_v47 = vsel %vm17975_vm7, %v17974_v16, %v7700_v48  ;;  %vm17976_vm10 = vmmov %vm17975_vm7  ;;  %v13766_v54 = vrot.slane %v4957_v58, 4  ;;  %v17979_v10 = vunpack.i.h.bf16 %v13084_v0  ;;  %vm17980_vm12 = vcmask 392192  }
 0x801   :  { %v4379_v5 = vsel %vm17976_vm10, %v7700_v48, %v7701_v49  ;;  %vm4961_vm9 = vmand %vm13630_vm11, %vm17978_vm8  ;;  %v4386_v49 = vsel %vm13740_vm4, %v4378_v47, 0.0  ;;  %v13778_v48 = vrot.slane %v4958_v9, 4  ;;  %v13780_v16 = vrot.slane %v5047_v7, 4 }
 0x802   :  { %v13771_v13 = vsel %vm17980_vm12, %v17979_v10, %v7690_v21  ;;  %v4387_v58 = vsel %vm13744_vm6, %v4379_v5, 0.0  ;;  %v7710_v56 = vunpack.i.l.bf16 %v7709_v41  ;;  %v13786_v0 = vrot.slane %v5048_v61, 4  ;;  %v17985_v21 = vld [vmem:[#allocation122_spill] sm:$0xff]  ;;  %vm4388_vm4 = vmand %vm17760_vm0, %vm17978_vm8  ;;  %v7714_v41 = vpop.permute.xlu0 %7713 }
 0x803   :  { %17981 = vst [vmem:[#allocation233_spill] sm:$0xff] %v13778_v48  ;;  %17982 = vst [vmem:[#allocation137_spill] sm:$0xff] %v13780_v16  ;;  %v13790_v10 = vsel %vm16046_vm5, %v17985_v21, %v7785_v25  ;;  %v17987_v26 = vunpack.i.h.bf16 %v13725_v53  ;;  %v13798_v9 = vsel %vm4961_vm9, 1, %v17724_v59  ;;  %v13804_v61 = vrot.slane %v4386_v49, 4  ;;  %v4617_v49 = vpop.permute.xlu1 %4616  ;;  %v18010_v16 = vld [vmem:[#allocation117_spill] sm:$0xff] }
 0x804   :  { %17984 = vst [vmem:[#allocation94_spill] sm:$0xff] %v13786_v0  ;;  %17986 = vst [vmem:[#allocation81_spill] sm:$0xff] %v13790_v10  ;;  %vm13806_vm6 = vcmp.eq.s32.totalorder %v4871_v15, 1  ;;  %v17989_v7 = vmov 0  ;;  %v17991_v17 = vunpack.i.h.bf16 %v13219_v22  ;;  %vm17992_vm7 = vcmask 367616   ;;  %v17996_v15 = vld [vmem:[#allocation42_spill] sm:$0xff] }
 0x805   :  { %v13795_v51 = vsel %vm16046_vm5, %v7785_v25, %v17987_v26  ;;  %v17990_v7 = vsel %vm13806_vm6, 4294967295, %v17989_v7  ;;  %vm17993_vm10 = vmmov %vm17992_vm7  ;;  %v4644_v5 = vrot.slane %v4387_v58, 4  ;;  %v17994_v26 = vld [vmem:[#allocation36_spill] sm:$0xff]  ;;  %v4966_v31 = vrot.slane %v13798_v9, %v8286_v29  ;;  %v18000_v0 = vld [vmem:[#allocation131_spill] sm:$0xff] }
 0x806   :  { %17988 = vst [vmem:[#allocation236_spill] sm:$0xff] %v13795_v51  ;;  %v4446_v25 = vsel %vm17992_vm7, %v17991_v17, %v7710_v56  ;;  %v4447_v47 = vsel %vm17993_vm10, %v7710_v56, %v7711_v55  ;;  %vm17995_vm9 = vnez %v17994_v26  ;;  %vm4592_vm12 = vmand %vm17760_vm0, %vm17882_vm1  ;;  %vm17997_vm5 = vnez %v17996_v15  ;;  %v7729_v60 = vpop.permute.xlu0 %7728 }
 0x807   :  { %v4454_v21 = vsel %vm17995_vm9, %v4446_v25, 0.0  ;;  %v4455_v22 = vsel %vm17997_vm5, %v4447_v47, 0.0  ;;  %v7795_v17 = vunpack.i.l.bf16 %v13784_v11  ;;  %v13827_v56 = vsel %vm4388_vm4, 1, %v17724_v59 }
 0x808   :  { %v7716_v55 = vunpack.i.h.bf16 %v7714_v41  ;;  %vm16056_vm7 = vcmask 244736   ;;  %v4393_v25 = vrot.slane %v13827_v56, %v8286_v29  ;;  %v4401_v18 = vrot.slane %v13827_v56, %v8302_v32 }
 0x809   :  { %v4655_v26 = vrot.slane %v4454_v21, 4  ;;  %v7715_v15 = vunpack.i.l.bf16 %v7714_v41  ;;  %v4593_v47 = vsel %vm4592_vm12, 1, %v17724_v59  ;;  %v4656_v44 = vrot.slane %v4455_v22, 4 }
 0x80a   :  { %vm13837_vm5 = vcmp.eq.s32.totalorder %v4966_v31, 1  ;;  %v17998_v53 = vmov 0  ;;  %v4597_v58 = vrot.slane %v4593_v47, %v8286_v29  ;;  %v4601_v50 = vrot.slane %v4593_v47, %v8283_v28 }
 0x80b   :  { %v17999_v53 = vsel %vm13837_vm5, 4294967295, %v17998_v53  ;;  %v13845_v48 = vsel %vm16056_vm7, %v18000_v0, %v7795_v17  ;;  %v18002_v41 = vunpack.i.h.bf16 %v13784_v11  ;;  %vm13852_vm4 = vcmp.eq.s32.totalorder %v4401_v18, 1 }
 0x80c   :  { %18001 = vst [vmem:[#allocation139_spill] sm:$0xff] %v13845_v48  ;;  %v18006_v31 = vunpack.i.l.bf16 %v13309_v52  ;;  %vm18007_vm10 = vcmask 375808   ;;  %vm13859_vm9 = vcmp.eq.s32.totalorder %v4393_v25, 1  ;;  %vm13865_vm0 = vcmp.eq.s32.totalorder %v4597_v58, 1  ;;  %v18019_v52 = vld [vmem:[#allocation127_spill] sm:$0xff]  ;;  %v4621_v48 = vpop.permute.xlu1 %4620 }
 0x80d   :  { %v13850_v21 = vsel %vm16056_vm7, %v7795_v17, %v18002_v41  ;;  %vm18011_vm12 = vmmov %vm18007_vm10  ;;  %v18012_v11 = vmov 0  ;;  %v18014_v17 = vld [vmem:[#allocation124_spill] sm:$0xff]  ;;  %vm18015_vm7 = vcmask 326656   ;;  %vm13873_vm1 = vcmp.eq.s32.totalorder %v4601_v50, 1  ;;  %v18079_v41 = vld [vmem:[#allocation81_spill] sm:$0xff] }
 0x80e   :  { %18003 = vst [vmem:[#allocation191_spill] sm:$0xff] %v13850_v21  ;;  %v4423_v29 = vsel %vm18007_vm10, %v7716_v55, %v18006_v31  ;;  %v4421_v0 = vsel %vm18011_vm12, %v18010_v16, %v7715_v15  ;;  %v18013_v11 = vsel %vm13865_vm0, 4294967295, %v18012_v11  ;;  %v13871_v18 = vsel %vm18015_vm7, %v18014_v17, %v4617_v49  ;;  %vm18020_vm10 = vmmov %vm18015_vm7 }
 0x80f   :  { %18016 = vst [vmem:[#allocation235_spill] sm:$0xff] %v13871_v18  ;;  %v13879_v25 = vsel %vm18020_vm10, %v4617_v49, %v18019_v52  ;;  %v7731_v31 = vunpack.i.h.bf16 %v7729_v60  ;;  %v7730_v21 = vunpack.i.l.bf16 %v7729_v60  ;;  %v4431_v58 = vsel %vm13852_vm4, %v4423_v29, 0.0  ;;  %vm18021_vm7 = vmmov %vm18011_vm12 }
 0x810   :  { %v4310_v17 = vrot.slane %v13165_v1, %v8305_v33  ;;  %v4405_v50 = vrot.slane %v13827_v56, %v8305_v33  ;;  %v4422_v51 = vsel %vm18021_vm7, %v7715_v15, %v7716_v55  ;;  %v4429_v49 = vsel %vm13859_vm9, %v4421_v0, 0.0  ;;  %v18025_v0 = vld [vmem:[#allocation50_spill] sm:$0xff] }
 0x811   :  { %v18022_v60 = vunpack.i.h.bf16 %v13349_v38  ;;  %vm18023_vm12 = vcmask 351232   ;;  %v4605_v38 = vrot.slane %v4593_v47, %v8302_v32  ;;  %v4609_v15 = vrot.slane %v4593_v47, %v8305_v33 }
 0x812   :  { %vm18024_vm10 = vmmov %vm18023_vm12  ;;  %vm4314_vm4 = vcmp.eq.s32.totalorder %v4310_v17, 1  ;;  %vm4409_vm7 = vcmp.eq.s32.totalorder %v4405_v50, 1  ;;  %vm18026_vm9 = vnez %v18025_v0  ;;  %v4560_v47 = vrot.slane %v13402_v2, %v8302_v32 }
 0x813   :  { %v4492_v10 = vsel %vm18023_vm12, %v18022_v60, %v7730_v21  ;;  %v4493_v16 = vsel %vm18024_vm10, %v7730_v21, %v7731_v31  ;;  %v4342_v39 = vsel %vm4314_vm4, %v13699_v36, 0.0  ;;  %v4432_v55 = vsel %vm4409_vm7, %v13409_v8, 0.0  ;;  %v7739_v21 = vpop.permute.xlu0 %7738  ;;  %v18027_v60 = vld [vmem:[#allocation47_spill] sm:$0xff]  ;;  %v18032_v8 = vld [vmem:[#allocation129_spill] sm:$0xff] }
 0x814   :  { %v4500_v31 = vsel %vm18026_vm9, %v4492_v10, 0.0  ;;  %vm18028_vm12 = vnez %v18027_v60  ;;  %vm18029_vm10 = vcmask 1043456   ;;  %vm18031_vm4 = vcmask 326656   ;;  %v18049_v60 = vld [vmem:[#allocation10_spill] sm:$0xff] }
 0x815   :  { %v4501_v29 = vsel %vm18028_vm12, %v4493_v16, 0.0  ;;  %v4688_v18 = vsel %vm18029_vm10, %v4342_v39, %v4644_v5  ;;  %vm18030_vm8 = vmmov %vm18029_vm10  ;;  %v13915_v36 = vsel %vm18031_vm4, %v18019_v52, %v4621_v48  ;;  %v4564_v10 = vrot.slane %v13402_v2, %v8305_v33  ;;  %v13937_v39 = vpop.permute.xlu1 %7808 }
 0x816   :  { %v4692_v17 = vsel %vm18030_vm8, %v4432_v55, %v4656_v44  ;;  %vm18033_vm7 = vmmov %vm18031_vm4  ;;  %v7741_v16 = vunpack.i.h.bf16 %v7739_v21  ;;  %v7740_v0 = vunpack.i.l.bf16 %v7739_v21  ;;  %v4302_v44 = vrot.slane %v13165_v1, %v8283_v28 }
 0x817   :  { %v7022_v50 = vpack.c.bf16 %v4692_v17, %v4688_v18  ;;  %v13919_v22 = vsel %vm18033_vm7, %v4621_v48, %v18032_v8  ;;  %v13927_v5 = vrot.slane %v4500_v31, 4  ;;  %v13929_v18 = vrot.slane %v4501_v29, 4  ;;  %v7749_v24 = vpop.permute.xlu0 %7748 }
 0x818   :  { %vm13931_vm8 = vcmp.eq.s32.totalorder %v4605_v38, 1  ;;  %v4397_v48 = vrot.slane %v13827_v56, %v8283_v28  ;;  %vm13939_vm9 = vcmp.eq.s32.totalorder %v4609_v15, 1  ;;  %vm13943_vm12 = vcmp.eq.s32.totalorder %v4560_v47, 1 }
 0x819   :  { %7023 = vmatprep.subr.bf16.mxu1 %v7022_v50  ;;  %vm4312_vm10 = vcmp.eq.s32.totalorder %v4302_v44, 1  ;;  %vm18040_vm4 = vcmask 1043456   ;;  %v18041_v55 = vunpack.i.h.bf16 %v13404_v40  ;;  %vm18042_vm7 = vcmask 334848  }
 0x81a   :  { %v4691_v29 = vsel %vm18040_vm4, %v4431_v58, %v4655_v26  ;;  %v4340_v21 = vsel %vm4312_vm10, %v13771_v13, 0.0  ;;  %vm4407_vm15 = vcmp.eq.s32.totalorder %v4397_v48, 1  ;;  %v18043_v56 = vsel %vm13679_vm3, %v13702_v62, 0.0  ;;  %vm18044_vm0 = vmmov %vm18040_vm4 }
 0x81b   :  { %v4582_v38 = vsel %vm18042_vm7, %v18041_v55, %v7740_v0  ;;  %v4687_v15 = vsel %vm18044_vm0, %v18043_v56, %v13804_v61  ;;  %vm13958_vm5 = vcmp.eq.s32.totalorder %v4564_v10, 1  ;;  %vm18047_vm6 = vmmov %vm18042_vm7  ;;  %v4430_v58 = vsel %vm4407_vm15, %v4422_v51, 0.0  ;;  %v7759_v56 = vpop.permute.xlu0 %7758 }
 0x81c   :  { %v4583_v26 = vsel %vm18047_vm6, %v7740_v0, %v7741_v16  ;;  %vm18048_vm4 = vmmov %vm18044_vm0  ;;  %vm18050_vm10 = vnez %v18049_v60  ;;  %v7024_v13 = vpack.c.bf16 %v4691_v29, %v4687_v15  ;;  %v18052_v61 = vsel %vm13204_vm14, %v13213_v30, 0.0  ;;  %v18064_v15 = vld [vmem:[#allocation67_spill] sm:$0xff] }
 0x81d   :  { %v4686_v40 = vsel %vm18048_vm4, %v4340_v21, %v13311_v37  ;;  %vm5096_vm7 = vmand %vm13630_vm11, %vm18050_vm10  ;;  %v4590_v17 = vsel %vm13943_vm12, %v4582_v38, 0.0  ;;  %v4511_v47 = vrot.slane %v13554_v6, %v8283_v28  ;;  %v4635_v10 = vsel %vm13931_vm8, %v13915_v36, 0.0  ;;  %v18159_v36 = vld [vmem:[#allocation155_spill] sm:$0xff] }
 0x81e   :  { %vm18051_vm3 = vmmov %vm18044_vm0  ;;  %7025 = vmatpush1.bf16.msra.mxu1 %v7024_v13  ;;  %v13987_v30 = vsel %vm5096_vm7, 1, %v17724_v59  ;;  %v4636_v16 = vsel %vm13939_vm9, %v13919_v22, 0.0  ;;  %v4591_v0 = vsel %vm13958_vm5, %v4583_v26, 0.0  ;;  %v7750_v48 = vunpack.i.l.bf16 %v7749_v24 }
 0x81f   :  { %v4690_v62 = vsel %vm18051_vm3, %v4430_v58, %v13391_v4  ;;  %vm18053_vm6 = vmmov %vm18044_vm0  ;;  %v18055_v4 = vld [vmem:[#allocation28_spill] sm:$0xff]  ;;  %vm4521_vm14 = vcmp.eq.s32.totalorder %v4511_v47, 1  ;;  %v18057_v1 = vsel %vm13595_vm2, %v13625_v20, 0.0  ;;  %v14014_v55 = vrot.slane %v4590_v17, 4 }
 0x820   :  { %v4685_v51 = vsel %vm18053_vm6, %v18052_v61, %v13301_v43  ;;  %vm18054_vm15 = vmmov %vm18044_vm0  ;;  %v7014_v50 = vpack.c.bf16 %v4690_v62, %v4686_v40  ;;  %vm18056_vm0 = vnez %v18055_v4  ;;  %v7811_v43 = vunpack.i.h.bf16 %v13937_v39  ;;  %v18068_v40 = vld [vmem:[#allocation60_spill] sm:$0xff] }
 0x821   :  { %v4689_v37 = vsel %vm18054_vm15, %v4429_v49, %v13336_v3  ;;  %v4476_v57 = vsel %vm18056_vm0, %v13522_v23, 0.0  ;;  %v7810_v3 = vunpack.i.l.bf16 %v13937_v39  ;;  %v13991_v49 = vpop.permute.xlu1 %7818  ;;  %v5113_v23 = vrot.slane %v13987_v30, %v8305_v33  ;;  %vm18058_vm12 = vmmov %vm18051_vm3 }
 0x822   :  { %v7016_v8 = vpack.c.bf16 %v4689_v37, %v4685_v51  ;;  %7015 = vmatprep.subr.bf16.mxu0 %v7014_v50  ;;  %v4544_v44 = vsel %vm4521_vm14, %v13648_v34, 0.0  ;;  %v4697_v29 = vsel %vm18058_vm12, %v18057_v1, %v13505_v42  ;;  %vm5185_vm4 = vmand %vm13630_vm11, %vm17717_vm13  ;;  %v7751_v21 = vunpack.i.h.bf16 %v7749_v24  ;;  %v7769_v1 = vpop.permute.xlu0 %7768 }
 0x823   :  { %vm18059_vm5 = vmmov %vm18051_vm3  ;;  %vm18063_vm2 = vcmask 220160   ;;  %vm18065_vm6 = vnez %v17906_v63  ;;  %vm16066_vm0 = vcmask 203776   ;;  %v7821_v58 = vunpack.i.h.bf16 %v13991_v49 }
 0x824   :  { %7017 = vmatpush1.bf16.msra.mxu0 %v7016_v8  ;;  %v4694_v38 = vsel %vm18059_vm5, %v4476_v57, %v13495_v27  ;;  %vm18060_vm7 = vmmov %vm18051_vm3  ;;  %vm14020_vm3 = vcmp.eq.s32.totalorder %v5113_v23, 1  ;;  %v5131_v42 = vsel %vm18063_vm2, %v7810_v3, %v7811_v43  ;;  %v18066_v31 = vsel %vm18065_vm6, %v13517_v14, 0.0  ;;  %v18076_v23 = vld [vmem:[#allocation39_spill] sm:$0xff] }
 0x825   :  { %v4698_v34 = vsel %vm18060_vm7, %v4544_v44, %v13507_v12  ;;  %vm18067_vm15 = vmmov %vm18059_vm5  ;;  %v14034_v12 = vsel %vm5185_vm4, 1, %v17724_v59  ;;  %v18069_v24 = vunpack.i.h.bf16 %v18068_v40  ;;  %vm18070_vm14 = vcmask 359424   ;;  %v14047_v61 = vpop.permute.xlu1 %7828 }
 0x826   :  { %v7018_v35 = vpack.c.bf16 %v4698_v34, %v4694_v38  ;;  %v4693_v27 = vsel %vm18067_vm15, %v18066_v31, %v18064_v15  ;;  %v5202_v63 = vrot.slane %v14034_v12, %v8305_v33  ;;  %v7820_v14 = vunpack.i.l.bf16 %v13991_v49  ;;  %vm18071_vm12 = vmmov %vm18070_vm14  ;;  %v18084_v38 = vld [vmem:[#allocation236_spill] sm:$0xff]  ;;  %v18094_v31 = vld [vmem:[#allocation235_spill] sm:$0xff] }
 0x827   :  { %v7020_v26 = vpack.c.bf16 %v4697_v29, %v4693_v27  ;;  %v14040_v62 = vsel %vm18070_vm14, %v18069_v24, %v7750_v48  ;;  %v4515_v13 = vrot.slane %v13554_v6, %v8302_v32  ;;  %v14049_v51 = vrot.slane %v4591_v0, 4  ;;  %vm18073_vm4 = vmmov %vm18059_vm5  ;;  %v18100_v24 = vld [vmem:[#allocation57_spill] sm:$0xff]  ;;  %v18197_v49 = vld [vmem:[#allocation172_spill] sm:$0xff] }
 0x828   :  { %7019 = vmatprep.subr.bf16.mxu0 %v7018_v35  ;;  %v7760_v37 = vunpack.i.l.bf16 %v7759_v56  ;;  %v4875_v17 = vrot.slane %v13751_v46, %v8283_v28  ;;  %v4970_v50 = vrot.slane %v13798_v9, %v8283_v28  ;;  %v5139_v8 = vsel %vm14020_vm3, %v5131_v42, 0.0  ;;  %v18090_v42 = vld [vmem:[#allocation182_spill] sm:$0xff] }
 0x829   :  { %7021 = vmatpush1.bf16.msra.mxu0 %v7020_v26  ;;  %v14058_v47 = vsel %vm18071_vm12, %v7750_v48, %v7751_v21  ;;  %v18072_v4 = vsel %vm13873_vm1, %v13879_v25, 0.0  ;;  %vm14065_vm5 = vcmp.eq.s32.totalorder %v5202_v63, 1  ;;  %v5221_v43 = vsel %vm16066_vm0, %v7820_v14, %v7821_v58  ;;  %vm18081_vm1 = vmmov %vm18073_vm4  ;;  %v18085_v21 = vld [vmem:[#allocation137_spill] sm:$0xff]  ;;  %v18097_v26 = vld [vmem:[#allocation191_spill] sm:$0xff] }
 0x82a   :  { %6878 = vmatprep.subr.msk.mxu0 %vm18073_vm4, %v18072_v4  ;;  %vm18077_vm7 = vnez %v18076_v23  ;;  %v7761_v44 = vunpack.i.h.bf16 %v7759_v56  ;;  %vm4885_vm3 = vcmp.eq.s32.totalorder %v4875_v17, 1  ;;  %vm18078_vm2 = vnez %v17990_v7  ;;  %v18087_v56 = vld [vmem:[#allocation139_spill] sm:$0xff]  ;;  %vm18089_vm12 = vmmov %vm18081_vm1  ;;  %v14113_v4 = vpop.permute.xlu1 %7838 }
 0x82b   :  { %v4477_v0 = vsel %vm18077_vm7, %v14040_v62, 0.0  ;;  %v18080_v25 = vsel %vm18078_vm2, %v18079_v41, 0.0  ;;  %vm14081_vm6 = vcmp.eq.s32.totalorder %v4515_v13, 1  ;;  %v4913_v34 = vsel %vm4885_vm3, %v18084_v38, 0.0  ;;  %vm18096_vm3 = vmmov %vm18081_vm1  ;;  %v18102_v62 = vld [vmem:[#allocation94_spill] sm:$0xff] }
 0x82c   :  { %v5323_v48 = vsel %vm18081_vm1, %v18080_v25, %v13766_v54  ;;  %vm4980_vm15 = vcmp.eq.s32.totalorder %v4970_v50, 1  ;;  %vm18086_vm14 = vnez %v17999_v53  ;;  %v5229_v7 = vsel %vm14065_vm5, %v5221_v43, 0.0  ;;  %v18098_v53 = vld [vmem:[#allocation233_spill] sm:$0xff]  ;;  %vm18099_vm2 = vmmov %vm18081_vm1  ;;  %v18105_v25 = vld [vmem:[#allocation52_spill] sm:$0xff] }
 0x82d   :  { %v18088_v35 = vsel %vm18086_vm14, %v18087_v56, 0.0  ;;  %v18091_v54 = vunpack.i.h.bf16 %v18090_v42  ;;  %vm18092_vm4 = vcmask 343040   ;;  %vm18093_vm7 = vnez %v18013_v11  ;;  %vm18103_vm5 = vmmov %vm18099_vm2  ;;  %v18104_v11 = vld [vmem:[#allocation237_spill] sm:$0xff] }
 0x82e   :  { %v5327_v20 = vsel %vm18089_vm12, %v18088_v35, %v18085_v21  ;;  %v18095_v27 = vsel %vm18093_vm7, %v18094_v31, 0.0  ;;  %v5003_v58 = vsel %vm4980_vm15, %v18097_v26, 0.0  ;;  %v5324_v40 = vsel %vm18099_vm2, %v4913_v34, %v18098_v53  ;;  %vm18108_vm12 = vmmov %vm18092_vm4  ;;  %v18125_v21 = vld [vmem:[#allocation162_spill] sm:$0xff] }
 0x82f   :  { %v4537_v15 = vsel %vm18092_vm4, %v18091_v54, %v7760_v37  ;;  %6879 = vmatpush1.msk.msra.mxu0 %vm18096_vm3, %v18095_v27  ;;  %vm18101_vm1 = vcmask 293888   ;;  %v5328_v63 = vsel %vm18103_vm5, %v5003_v58, %v18102_v62  ;;  %v7831_v13 = vunpack.i.h.bf16 %v14047_v61  ;;  %v18109_v54 = vld [vmem:[#allocation69_spill] sm:$0xff] }
 0x830   :  { %6880 = vmatmul.mubr.msk.f32.vlgmr.msra.gmra.mrb[6].mxu0 %vm18101_vm1, %v18100_v24  ;;  %v16072_v17 = vunpack.i.l.bf16 %v14047_v61  ;;  %v4929_v50 = vrot.slane %v18104_v11, %v8302_v32  ;;  %v7030_v57 = vpack.c.bf16 %v5328_v63, %v5324_v40  ;;  %v4933_v43 = vrot.slane %v18104_v11, %v8305_v33  ;;  %v18116_v40 = vld [vmem:[#allocation40_spill] sm:$0xff]  ;;  %v14153_v63 = vpop.permute.xlu1 %7843 }
 0x831   :  { %v7771_v23 = vunpack.i.h.bf16 %v7769_v1  ;;  %v7770_v41 = vunpack.i.l.bf16 %v7769_v1  ;;  %5419 = vmatprep.mubr.f32.mxu0 %v18105_v25  ;;  %v14118_v38 = vrot.slane %v5139_v8, 4  ;;  %v7032_v34 = vpack.c.bf16 %v5327_v20, %v5323_v48  ;;  %v7779_v8 = vpop.permute.xlu0 %7778 }
 0x832   :  { %vm16065_vm15 = vcmask 228352   ;;  %vm14120_vm14 = vcmp.eq.s32.totalorder %v4929_v50, 1  ;;  %v14124_v56 = vrot.slane %v5229_v7, 4  ;;  %v4538_v35 = vsel %vm18108_vm12, %v7760_v37, %v7761_v44  ;;  %7031 = vmatprep.subr.bf16.mxu0 %v7030_v57  ;;  %v18115_v7 = vld [vmem:[#allocation73_spill] sm:$0xff] }
 0x833   :  { %v4545_v42 = vsel %vm14081_vm6, %v4537_v15, 0.0  ;;  %v18110_v1 = vunpack.i.h.bf16 %v18109_v54  ;;  %vm18111_vm4 = vcmask 252928   ;;  %7033 = vmatpush1.bf16.msra.mxu0 %v7032_v34  ;;  %vm14132_vm7 = vcmp.eq.s32.totalorder %v4933_v43, 1 }
 0x834   :  { %vm18114_vm3 = vmmov %vm18111_vm4  ;;  %v5019_v27 = vrot.slane %v18115_v7, %v8302_v32  ;;  %v5023_v37 = vrot.slane %v18115_v7, %v8305_v33  ;;  %v14144_v44 = vsel %vm16065_vm15, %v16072_v17, %v7831_v13  ;;  %v7841_v15 = vunpack.i.h.bf16 %v14113_v4 }
 0x835   :  { %v4951_v31 = vsel %vm18111_vm4, %v18110_v1, %v7770_v41  ;;  %v4952_v20 = vsel %vm18114_vm3, %v7770_v41, %v7771_v23  ;;  %v16070_v26 = vunpack.i.l.bf16 %v14113_v4  ;;  %v7781_v58 = vunpack.i.h.bf16 %v7779_v8  ;;  %vm18126_vm3 = vmmov %vm18103_vm5 }
 0x836   :  { %v4959_v29 = vsel %vm14120_vm14, %v4951_v31, 0.0  ;;  %v7780_v53 = vunpack.i.l.bf16 %v7779_v8  ;;  %vm18117_vm2 = vnez %v18116_v40  ;;  %v4960_v13 = vsel %vm14132_vm7, %v4952_v20, 0.0  ;;  %v18133_v20 = vld [vmem:[#allocation133_spill] sm:$0xff] }
 0x837   :  { %v4478_v62 = vsel %vm18117_vm2, %v14058_v47, 0.0  ;;  %vm14157_vm1 = vcmp.eq.s32.totalorder %v5019_v27, 1  ;;  %v4519_v50 = vrot.slane %v13554_v6, %v8305_v33  ;;  %v4699_v57 = vsel %vm18103_vm5, %v4545_v42, %v14014_v55  ;;  %v18122_v47 = vld [vmem:[#allocation61_spill] sm:$0xff]  ;;  %vm18127_vm2 = vmmov %vm18126_vm3  ;;  %v7789_v55 = vpop.permute.xlu0 %7788 }
 0x838   :  { %v14165_v43 = vrot.slane %v4959_v29, 4  ;;  %vm14167_vm14 = vcmp.eq.s32.totalorder %v5023_v37, 1  ;;  %v18123_v41 = vunpack.i.h.bf16 %v18122_v47  ;;  %vm18124_vm12 = vcmask 236544   ;;  %vm18132_vm0 = vmmov %vm18127_vm2  ;;  %v14206_v29 = vpop.permute.xlu1 %7853 }
 0x839   :  { %vm134_vm4 = vcmp.ge.s32.totalorder %v18125_v21, 4294967293  ;;  %vm4523_vm7 = vcmp.eq.s32.totalorder %v4519_v50, 1  ;;  %v4696_v54 = vsel %vm18126_vm3, %v4478_v62, %v13929_v18  ;;  %v4695_v6 = vsel %vm18127_vm2, %v4477_v0, %v13927_v5  ;;  %vm18128_vm15 = vmmov %vm18124_vm12 }
 0x83a   :  { %v5041_v34 = vsel %vm18124_vm12, %v18123_v41, %v7780_v53  ;;  %vm135_vm5 = vcmp.lt.s32.totalorder %v18125_v21, 13  ;;  %v5042_v42 = vsel %vm18128_vm15, %v7780_v53, %v7781_v58  ;;  %v4546_v31 = vsel %vm4523_vm7, %v4538_v35, 0.0  ;;  %v18137_v53 = vld [vmem:[#allocation12_spill] sm:$0xff] }
 0x83b   :  { %v5049_v1 = vsel %vm14157_vm1, %v5041_v34, 0.0  ;;  %v7028_v8 = vpack.c.bf16 %v4699_v57, %v4695_v6  ;;  %vm14183_vm12 = vmand %vm134_vm4, %vm135_vm5  ;;  %v18129_v48 = vmov 0  ;;  %v4700_v18 = vsel %vm18132_vm0, %v4546_v31, %v14049_v51  ;;  %v18135_v51 = vld [vmem:[#allocation9_spill] sm:$0xff]  ;;  %v18139_v57 = vld [vmem:[#allocation132_spill] sm:$0xff] }
 0x83c   :  { %v18130_v48 = vsel %vm14183_vm12, 4294967295, %v18129_v48  ;;  %vm18134_vm3 = vnez %v18133_v20  ;;  %vm16071_vm6 = vcmask 121856   ;;  %v16068_v5 = vunpack.i.h.bf16 %v14153_v63 }
 0x83d   :  { %18131 = vst [vmem:[#allocation183_spill] sm:$0xff] %v18130_v48  ;;  %vm5553_vm2 = vmand %vm14183_vm12, %vm18134_vm3  ;;  %v7845_v0 = vunpack.i.l.bf16 %v14153_v63  ;;  %v14195_v7 = vrot.slane %v4960_v13, 4  ;;  %v7026_v35 = vpack.c.bf16 %v4700_v18, %v4696_v54  ;;  %v4879_v37 = vrot.slane %v13751_v46, %v8302_v32  ;;  %v7799_v54 = vpop.permute.xlu0 %7798  ;;  %v18149_v18 = vld [vmem:[#allocation54_spill] sm:$0xff] }
 0x83e   :  { %v14198_v27 = vsel %vm5553_vm2, 1, %v17724_v59  ;;  %vm18136_vm0 = vnez %v18135_v51  ;;  %v5050_v58 = vsel %vm14167_vm14, %v5042_v42, 0.0  ;;  %v7790_v13 = vunpack.i.l.bf16 %v7789_v55  ;;  %v14273_v51 = vpop.permute.xlu1 %7863 }
 0x83f   :  { %vm5643_vm15 = vmand %vm14183_vm12, %vm18136_vm0  ;;  %v5558_v40 = vrot.slane %v14198_v27, %v18137_v53  ;;  %v5562_v62 = vrot.slane %v14198_v27, %v8283_v28  ;;  %vm18138_vm1 = vcmask 211968   ;;  %v14219_v50 = vrot.slane %v5049_v1, 4  ;;  %7027 = vmatprep.subr.bf16.mxu1 %v7026_v35 }
 0x840   :  { %v14217_v11 = vsel %vm18138_vm1, %v16070_v26, %v7841_v15  ;;  %v5586_v47 = vsel %vm16071_vm6, %v18139_v57, %v7845_v0  ;;  %v14224_v23 = vsel %vm5643_vm15, 1, %v17724_v59  ;;  %7029 = vmatpush1.bf16.msra.mxu1 %v7028_v8  ;;  %v5587_v15 = vsel %vm16071_vm6, %v7845_v0, %v16068_v5  ;;  %v18147_v8 = vld [vmem:[#allocation125_spill] sm:$0xff] }
 0x841   :  { %vm14226_vm14 = vcmp.eq.s32.totalorder %v5558_v40, 1  ;;  %vm14230_vm4 = vcmp.eq.s32.totalorder %v5562_v62, 1  ;;  %v5648_v21 = vrot.slane %v14224_v23, %v18137_v53  ;;  %v14239_v6 = vrot.slane %v5050_v58, 4 }
 0x842   :  { %vm18144_vm7 = vcmask 1043456   ;;  %vm14246_vm5 = vcmp.eq.s32.totalorder %v4879_v37, 1  ;;  %v7791_v1 = vunpack.i.h.bf16 %v7789_v55  ;;  %v5652_v31 = vrot.slane %v14224_v23, %v8283_v28 }
 0x843   :  { %6881 = vmatprep.subr.msk.mxu1 %vm18144_vm7, %v4636_v16  ;;  %vm18148_vm3 = vnez %v18147_v8  ;;  %v5594_v2 = vsel %vm14226_vm14, %v5586_v47, 0.0  ;;  %v18150_v22 = vunpack.i.h.bf16 %v18149_v18  ;;  %vm18151_vm9 = vcmask 261120   ;;  %vm18154_vm1 = vmmov %vm18144_vm7  ;;  %v18164_v18 = vld [vmem:[#allocation152_spill] sm:$0xff] }
 0x844   :  { %vm5501_vm2 = vmand %vm14183_vm12, %vm18148_vm3  ;;  %vm16069_vm0 = vcmask 105472   ;;  %v16067_v20 = vunpack.i.h.bf16 %v14206_v29  ;;  %v5595_v55 = vsel %vm14230_vm4, %v5587_v15, 0.0  ;;  %vm14266_vm15 = vcmp.eq.s32.totalorder %v5648_v21, 1  ;;  %6882 = vmatpush1.msk.msra.mxu1 %vm18154_vm1, %v4635_v10 }
 0x845   :  { %v14261_v16 = vsel %vm18151_vm9, %v18150_v22, %v7790_v13  ;;  %v7855_v35 = vunpack.i.l.bf16 %v14206_v29  ;;  %v4974_v37 = vrot.slane %v13798_v9, %v8302_v32  ;;  %vm14280_vm14 = vcmp.eq.s32.totalorder %v5652_v31, 1  ;;  %vm18157_vm4 = vmmov %vm18151_vm9 }
 0x846   :  { %v7801_v40 = vunpack.i.h.bf16 %v7799_v54  ;;  %v7800_v62 = vunpack.i.l.bf16 %v7799_v54  ;;  %v14285_v57 = vsel %vm5501_vm2, 1, %v17724_v59  ;;  %v14288_v47 = vsel %vm18157_vm4, %v7790_v13, %v7791_v1  ;;  %v7804_v54 = vpop.permute.xlu0 %7803 }
 0x847   :  { %vm18158_vm8 = vcmask 293888   ;;  %v5676_v10 = vsel %vm16069_vm0, %v18159_v36, %v7855_v35  ;;  %v5677_v41 = vsel %vm16069_vm0, %v7855_v35, %v16067_v20  ;;  %v14300_v34 = vrot.slane %v5594_v2, 4  ;;  %v18162_v2 = vld [vmem:[#allocation135_spill] sm:$0xff] }
 0x848   :  { %6883 = vmatmul.mubr.msk.f32.vlgmr.msra.gmra.mrb[6].mxu1 %vm18158_vm8, %v18100_v24  ;;  %v14302_v15 = vrot.slane %v5595_v55, 4  ;;  %v5684_v13 = vsel %vm14266_vm15, %v5676_v10, 0.0  ;;  %v16073_v21 = vunpack.i.h.bf16 %v14273_v51  ;;  %v5685_v24 = vsel %vm14280_vm14, %v5677_v41, 0.0 }
 0x849   :  { %5490 = vmatprep.mubr.f32.mxu1 %v18105_v25  ;;  %vm14310_vm7 = vcmp.eq.s32.totalorder %v4974_v37, 1  ;;  %v5509_v31 = vrot.slane %v14285_v57, %v18137_v53  ;;  %v7865_v8 = vunpack.i.l.bf16 %v14273_v51  ;;  %vm18163_vm3 = vnez %v18162_v2 }
 0x84a   :  { %vm5598_vm2 = vmand %vm14183_vm12, %vm18163_vm3  ;;  %v18165_v22 = vunpack.i.h.bf16 %v18164_v18  ;;  %vm18166_vm9 = vcmask 244736   ;;  %v5101_v35 = vrot.slane %v13987_v30, %v18137_v53  ;;  %v5105_v37 = vrot.slane %v13987_v30, %v8283_v28  ;;  %v7814_v39 = vpop.permute.xlu0 %7813 }
 0x84b   :  { %vm18167_vm15 = vmmov %vm18166_vm9  ;;  %v14331_v58 = vrot.slane %v5684_v13, 4  ;;  %v5109_v36 = vrot.slane %v13987_v30, %v8302_v32  ;;  %v7806_v10 = vunpack.i.h.bf16 %v7804_v54  ;;  %v7805_v41 = vunpack.i.l.bf16 %v7804_v54  ;;  %v18175_v54 = vld [vmem:[#allocation140_spill] sm:$0xff] }
 0x84c   :  { %v4996_v55 = vsel %vm18166_vm9, %v18165_v22, %v7800_v62  ;;  %v14325_v0 = vsel %vm18167_vm15, %v7800_v62, %v7801_v40  ;;  %v14335_v20 = vrot.slane %v5685_v24, 4  ;;  %vm14337_vm1 = vcmp.eq.s32.totalorder %v5101_v35, 1  ;;  %v14358_v35 = vpop.permute.xlu1 %7873 }
 0x84d   :  { %vm14341_vm14 = vcmp.eq.s32.totalorder %v5105_v37, 1  ;;  %v14346_v62 = vsel %vm5598_vm2, 1, %v17724_v59  ;;  %vm14348_vm4 = vcmp.eq.s32.totalorder %v5109_v36, 1  ;;  %vm18174_vm8 = vcmask 220160   ;;  %18178 = vst [vmem:[#allocation68_spill] sm:$0xff] %v14358_v35  ;;  %v18181_v36 = vld [vmem:[#allocation141_spill] sm:$0xff] }
 0x84e   :  { %v5130_v30 = vsel %vm18174_vm8, %v7806_v10, %v7810_v3  ;;  %vm18176_vm9 = vmmov %vm18174_vm8  ;;  %v5004_v37 = vsel %vm14310_vm7, %v4996_v55, 0.0  ;;  %vm14362_vm2 = vcmp.eq.s32.totalorder %v5509_v31, 1  ;;  %v18179_v5 = vmov 0  ;;  %v18183_v55 = vld [vmem:[#allocation13_spill] sm:$0xff] }
 0x84f   :  { %v5128_v24 = vsel %vm18176_vm9, %v18175_v54, %v7805_v41  ;;  %vm18177_vm15 = vmmov %vm18174_vm8  ;;  %v18180_v5 = vsel %vm14362_vm2, 4294967295, %v18179_v5  ;;  %vm18182_vm0 = vcmask 130048   ;;  %vm16076_vm6 = vcmask 113664  }
 0x850   :  { %v5129_v22 = vsel %vm18177_vm15, %v7805_v41, %v7806_v10  ;;  %v14368_v26 = vsel %vm18182_vm0, %v18181_v36, %v7865_v8  ;;  %v5138_v3 = vsel %vm14348_vm4, %v5130_v30, 0.0  ;;  %v5136_v10 = vsel %vm14337_vm1, %v5128_v24, 0.0 }
 0x851   :  { %v5137_v1 = vsel %vm14341_vm14, %v5129_v22, 0.0  ;;  %v5603_v31 = vrot.slane %v14346_v62, %v18137_v53  ;;  %v7875_v41 = vunpack.i.l.bf16 %v14358_v35  ;;  %v5190_v54 = vrot.slane %v14034_v12, %v18137_v53 }
 0x852   :  { %v5194_v13 = vrot.slane %v14034_v12, %v8283_v28  ;;  %v5198_v18 = vrot.slane %v14034_v12, %v8302_v32  ;;  %v7816_v30 = vunpack.i.h.bf16 %v7814_v39  ;;  %v7815_v24 = vunpack.i.l.bf16 %v7814_v39  ;;  %v18190_v39 = vld [vmem:[#allocation128_spill] sm:$0xff] }
 0x853   :  { %v4883_v40 = vrot.slane %v13751_v46, %v8305_v33  ;;  %v14391_v22 = vsel %vm18182_vm0, %v7865_v8, %v16073_v21  ;;  %v14396_v17 = vrot.slane %v5138_v3, 4  ;;  %v14398_v52 = vrot.slane %v5136_v10, 4  ;;  %v18192_v10 = vld [vmem:[#allocation145_spill] sm:$0xff] }
 0x854   :  { %vm18184_vm7 = vnez %v18183_v55  ;;  %vm14404_vm14 = vcmp.eq.s32.totalorder %v5190_v54, 1  ;;  %vm14408_vm4 = vcmp.eq.s32.totalorder %v5198_v18, 1  ;;  %vm18189_vm8 = vcmask 203776   ;;  %v18196_v18 = vld [vmem:[#allocation174_spill] sm:$0xff] }
 0x855   :  { %v5220_v8 = vsel %vm18189_vm8, %v7816_v30, %v7820_v14  ;;  %vm18191_vm9 = vmmov %vm18189_vm8  ;;  %vm18193_vm15 = vnez %v18192_v10  ;;  %v14421_v54 = vrot.slane %v5137_v1, 4  ;;  %vm14423_vm1 = vcmp.eq.s32.totalorder %v5603_v31, 1 }
 0x856   :  { %v5218_v3 = vsel %vm18191_vm9, %v18190_v39, %v7815_v24  ;;  %v14429_v36 = vsel %vm16076_vm6, %v18196_v18, %v7875_v41  ;;  %vm4887_vm3 = vcmp.eq.s32.totalorder %v4883_v40, 1  ;;  %vm18198_vm8 = vnez %v18197_v49  ;;  %v5255_v40 = vpop.permute.xlu1 %5254 }
 0x857   :  { %vm5230_vm9 = vmand %vm13630_vm11, %vm18198_vm8  ;;  %v18199_v14 = vunpack.i.h.bf16 %v14358_v35  ;;  %vm14440_vm0 = vcmp.eq.s32.totalorder %v5194_v13, 1  ;;  %v5228_v31 = vsel %vm14408_vm4, %v5220_v8, 0.0  ;;  %v4915_v18 = vsel %vm4887_vm3, %v14288_v47, 0.0 }
 0x858   :  { %vm18202_vm2 = vcmask 203776   ;;  %v5226_v2 = vsel %vm14404_vm14, %v5218_v3, 0.0  ;;  %v4978_v35 = vrot.slane %v13798_v9, %v8305_v33  ;;  %vm18205_vm3 = vmand %vm13630_vm11, %vm18184_vm7  ;;  %v5570_v45 = vrot.slane %v14198_v27, %v8305_v33 }
 0x859   :  { %v14438_v39 = vsel %vm16076_vm6, %v7875_v41, %v18199_v14  ;;  %v5219_v49 = vsel %vm18202_vm2, %v7815_v24, %v7816_v30  ;;  %vm18203_vm6 = vcmask 1043456   ;;  %v14462_v47 = vsel %vm18205_vm3, 1, %v17724_v59  ;;  %vm18206_vm2 = vmand %vm13630_vm11, %vm18193_vm15  ;;  %v7824_v30 = vpop.permute.xlu0 %7823 }
 0x85a   :  { %v5326_v41 = vsel %vm18203_vm6, %v4915_v18, %v14195_v7  ;;  %vm18204_vm8 = vmmov %vm18203_vm6  ;;  %v14470_v9 = vsel %vm18206_vm2, 1, %v17724_v59  ;;  %v5231_v7 = vsel %vm5230_vm9, 1, %v17724_v59  ;;  %vm4982_vm6 = vcmp.eq.s32.totalorder %v4978_v35, 1 }
 0x85b   :  { %v5329_v13 = vsel %vm18204_vm8, %v5004_v37, %v14219_v50  ;;  %v18207_v50 = vsel %vm14246_vm5, %v14261_v16, 0.0  ;;  %vm18208_vm14 = vmmov %vm18204_vm8  ;;  %v5068_v24 = vrot.slane %v14462_v47, %v8305_v33  ;;  %v5157_v19 = vrot.slane %v14470_v9, %v8305_v33 }
 0x85c   :  { %v5325_v37 = vsel %vm18208_vm14, %v18207_v50, %v14165_v43  ;;  %v5005_v46 = vsel %vm4982_vm6, %v14325_v0, 0.0  ;;  %v5235_v12 = vrot.slane %v5231_v7, %v18137_v53  ;;  %v5239_v8 = vrot.slane %v5231_v7, %v8283_v28  ;;  %vm18209_vm4 = vmmov %vm18204_vm8  ;;  %v5259_v0 = vpop.permute.xlu1 %5258 }
 0x85d   :  { %vm5262_vm11 = vcmask 195584   ;;  %v5330_v42 = vsel %vm18209_vm4, %v5005_v46, %v14239_v6  ;;  %v7040_v35 = vpack.c.bf16 %v5329_v13, %v5325_v37  ;;  %vm5072_vm5 = vcmp.eq.s32.totalorder %v5068_v24, 1  ;;  %vm18210_vm9 = vmmov %vm18209_vm4  ;;  %v18214_v13 = vld [vmem:[#allocation149_spill] sm:$0xff] }
 0x85e   :  { %vm5161_vm8 = vcmp.eq.s32.totalorder %v5157_v19, 1  ;;  %v5227_v43 = vsel %vm14440_vm0, %v5219_v49, 0.0  ;;  %v7038_v16 = vpack.c.bf16 %v5330_v42, %v5326_v41  ;;  %v5095_v3 = vsel %vm5072_vm5, %v14144_v44, 0.0  ;;  %vm18211_vm3 = vmmov %vm18209_vm4  ;;  %v18217_v41 = vld [vmem:[#allocation160_spill] sm:$0xff] }
 0x85f   :  { %v5184_v14 = vsel %vm5161_vm8, %v14217_v11, 0.0  ;;  %v5334_v18 = vsel %vm18210_vm9, %v5095_v3, %v14118_v38  ;;  %vm14496_vm2 = vcmp.eq.s32.totalorder %v5235_v12, 1  ;;  %v14502_v1 = vsel %vm5262_vm11, %v18214_v13, %v5255_v40  ;;  %vm5733_vm4 = vmand %vm14183_vm12, %vm18050_vm10  ;;  %v18227_v13 = vld [vmem:[#allocation166_spill] sm:$0xff] }
 0x860   :  { %v5338_v50 = vsel %vm18211_vm3, %v5184_v14, %v14124_v56  ;;  %7039 = vmatprep.subr.bf16.mxu1 %v7038_v16  ;;  %vm14507_vm0 = vcmp.eq.s32.totalorder %v5239_v8, 1  ;;  %v5056_v38 = vrot.slane %v14462_v47, %v18137_v53  ;;  %v7834_v56 = vpop.permute.xlu0 %7833  ;;  %v14515_v37 = vsel %vm5262_vm11, %v5255_v40, %v18217_v41 }
 0x861   :  { %v7042_v11 = vpack.c.bf16 %v5338_v50, %v5334_v18  ;;  %7041 = vmatpush1.bf16.msra.mxu1 %v7040_v35  ;;  %v5064_v24 = vrot.slane %v14462_v47, %v8302_v32  ;;  %v7826_v19 = vunpack.i.h.bf16 %v7824_v30  ;;  %v7825_v46 = vunpack.i.l.bf16 %v7824_v30  ;;  %v14558_v18 = vpop.permute.xlu1 %7888 }
 0x862   :  { %v14519_v12 = vrot.slane %v5228_v31, 4  ;;  %v14521_v8 = vrot.slane %v5226_v2, 4  ;;  %v14523_v42 = vrot.slane %v5227_v43, 4  ;;  %v18220_v40 = vunpack.i.l.bf16 %v14047_v61  ;;  %v18224_v61 = vld [vmem:[#allocation148_spill] sm:$0xff] }
 0x863   :  { %7043 = vmatprep.subr.bf16.mxu1 %v7042_v11  ;;  %vm14528_vm6 = vcmp.eq.s32.totalorder %v5064_v24, 1  ;;  %vm18221_vm14 = vcmask 228352   ;;  %v5243_v31 = vrot.slane %v5231_v7, %v8302_v32  ;;  %v5247_v2 = vrot.slane %v5231_v7, %v8305_v33 }
 0x864   :  { %v14535_v3 = vsel %vm18221_vm14, %v7826_v19, %v18220_v40  ;;  %vm14546_vm5 = vcmp.eq.s32.totalorder %v5056_v38, 1  ;;  %vm18225_vm8 = vmmov %vm18221_vm14  ;;  %v14556_v7 = vsel %vm5262_vm11, %v18217_v41, %v5259_v0  ;;  %v14565_v11 = vsel %vm5262_vm11, %v5259_v0, %v18227_v13 }
 0x865   :  { %v14552_v14 = vsel %vm18225_vm8, %v18224_v61, %v7825_v46  ;;  %vm18226_vm9 = vmmov %vm18225_vm8  ;;  %v5145_v38 = vrot.slane %v14470_v9, %v18137_v53  ;;  %v5153_v24 = vrot.slane %v14470_v9, %v8302_v32  ;;  %v7836_v40 = vunpack.i.h.bf16 %v7834_v56 }
 0x866   :  { %v14561_v50 = vsel %vm18226_vm9, %v7825_v46, %v7826_v19  ;;  %v7835_v61 = vunpack.i.l.bf16 %v7834_v56  ;;  %v14575_v35 = vsel %vm5733_vm4, 1, %v17724_v59  ;;  %v7849_v19 = vpop.permute.xlu0 %7848  ;;  %vm14580_vm11 = vcmp.eq.s32.totalorder %v5243_v31, 1  ;;  %vm5823_vm8 = vmand %vm14183_vm12, %vm17717_vm13  ;;  %v18284_v46 = vld [vmem:[#allocation58_spill] sm:$0xff] }
 0x867   :  { %vm14584_vm3 = vcmp.eq.s32.totalorder %v5247_v2, 1  ;;  %vm14588_vm14 = vcmp.eq.s32.totalorder %v5153_v24, 1  ;;  %v18234_v56 = vunpack.i.l.bf16 %v14113_v4  ;;  %vm18235_vm4 = vcmask 211968   ;;  %v18238_v24 = vld [vmem:[#allocation130_spill] sm:$0xff] }
 0x868   :  { %v5750_v41 = vrot.slane %v14575_v35, %v8305_v33  ;;  %v7891_v31 = vunpack.i.h.bf16 %v14558_v18  ;;  %vm14603_vm9 = vcmp.eq.s32.totalorder %v5145_v38, 1  ;;  %vm18239_vm10 = vmmov %vm18235_vm4  ;;  %v7851_v60 = vunpack.i.h.bf16 %v7849_v19  ;;  %v14616_v38 = vpop.permute.xlu1 %7898 }
 0x869   :  { %v5175_v30 = vsel %vm18235_vm4, %v7836_v40, %v18234_v56  ;;  %v5173_v4 = vsel %vm18239_vm10, %v18238_v24, %v7835_v61  ;;  %v5566_v56 = vrot.slane %v14198_v27, %v8302_v32  ;;  %v7850_v10 = vunpack.i.l.bf16 %v7849_v19  ;;  %vm18240_vm10 = vmmov %vm18235_vm4 }
 0x86a   :  { %v5274_v48 = vsel %vm14584_vm3, %v14565_v11, 0.0  ;;  %v5183_v24 = vsel %vm14588_vm14, %v5175_v30, 0.0  ;;  %v5174_v55 = vsel %vm18240_vm10, %v7835_v61, %v7836_v40  ;;  %v14625_v53 = vsel %vm5823_vm8, 1, %v17724_v59  ;;  %v7859_v44 = vpop.permute.xlu0 %7858 }
 0x86b   :  { %18241 = vst [vmem:[#allocation75_spill] sm:$0xff] %v14625_v53  ;;  %v5181_v0 = vsel %vm14603_vm9, %v5173_v4, 0.0  ;;  %vm14629_vm4 = vcmp.eq.s32.totalorder %v5750_v41, 1  ;;  %v18244_v19 = vunpack.i.l.bf16 %v14558_v18  ;;  %vm18245_vm13 = vcmask 89088  }
 0x86c   :  { %vm14636_vm3 = vcmp.eq.s32.totalorder %v5566_v56, 1  ;;  %vm14640_vm14 = vcmp.eq.s32.totalorder %v5570_v45, 1  ;;  %v5840_v40 = vrot.slane %v14625_v53, %v8305_v33  ;;  %vm16089_vm8 = vcmask 72704  }
 0x86d   :  { %v5769_v13 = vsel %vm18245_vm13, %v18244_v19, %v7891_v31  ;;  %v7901_v41 = vunpack.i.h.bf16 %v14616_v38  ;;  %v18250_v61 = vunpack.i.h.bf16 %v14153_v63  ;;  %vm18251_vm9 = vcmask 121856  }
 0x86e   :  { %vm18252_vm13 = vmmov %vm18251_vm9  ;;  %v16091_v4 = vunpack.i.l.bf16 %v14616_v38  ;;  %v5656_v45 = vrot.slane %v14224_v23, %v8302_v32  ;;  %vm14654_vm10 = vcmp.eq.s32.totalorder %v5840_v40, 1  ;;  %v5660_v19 = vrot.slane %v14224_v23, %v8305_v33 }
 0x86f   :  { %v5588_v2 = vsel %vm18251_vm9, %v18250_v61, %v7850_v10  ;;  %v5589_v31 = vsel %vm18252_vm13, %v7850_v10, %v7851_v60  ;;  %v7861_v59 = vunpack.i.h.bf16 %v7859_v44  ;;  %v7860_v53 = vunpack.i.l.bf16 %v7859_v44  ;;  %v14671_v61 = vpop.permute.xlu1 %7908 }
 0x870   :  { %v5859_v63 = vsel %vm16089_vm8, %v16091_v4, %v7901_v41  ;;  %vm14663_vm9 = vcmp.eq.s32.totalorder %v5656_v45, 1  ;;  %v5060_v10 = vrot.slane %v14462_v47, %v8283_v28  ;;  %v5149_v40 = vrot.slane %v14470_v9, %v8283_v28 }
 0x871   :  { %v5777_v23 = vsel %vm14629_vm4, %v5769_v13, 0.0  ;;  %vm14675_vm13 = vcmp.eq.s32.totalorder %v5660_v19, 1  ;;  %v18259_v41 = vunpack.i.h.bf16 %v14206_v29  ;;  %vm18260_vm8 = vcmask 105472  }
 0x872   :  { %vm18261_vm15 = vmmov %vm18260_vm8  ;;  %v5596_v47 = vsel %vm14636_vm3, %v5588_v2, 0.0  ;;  %v5597_v9 = vsel %vm14640_vm14, %v5589_v31, 0.0  ;;  %v5867_v27 = vsel %vm14654_vm10, %v5859_v63, 0.0  ;;  %vm5070_vm4 = vcmp.eq.s32.totalorder %v5060_v10, 1 }
 0x873   :  { %v5678_v45 = vsel %vm18260_vm8, %v18259_v41, %v7860_v53  ;;  %v5679_v4 = vsel %vm18261_vm15, %v7860_v53, %v7861_v59  ;;  %v5093_v19 = vsel %vm5070_vm4, %v14561_v50, 0.0  ;;  %vm5159_vm8 = vcmp.eq.s32.totalorder %v5149_v40, 1  ;;  %v7869_v59 = vpop.permute.xlu0 %7868 }
 0x874   :  { %v5686_v13 = vsel %vm14663_vm9, %v5678_v45, 0.0  ;;  %v5687_v29 = vsel %vm14675_vm13, %v5679_v4, 0.0  ;;  %v5182_v53 = vsel %vm5159_vm8, %v5174_v55, 0.0  ;;  %vm18262_vm15 = vcmask 1043456  }
 0x875   :  { %v5332_v11 = vsel %vm18262_vm15, %v5093_v19, %v14421_v54  ;;  %v18263_v30 = vsel %vm14528_vm6, %v14535_v3, 0.0  ;;  %vm18264_vm3 = vmmov %vm18262_vm15  ;;  %v18267_v55 = vsel %vm14546_vm5, %v14552_v14, 0.0  ;;  %v14714_v3 = vrot.slane %v5777_v23, 4  ;;  %v18291_v19 = vld [vmem:[#allocation170_spill] sm:$0xff] }
 0x876   :  { %v5333_v2 = vsel %vm18264_vm3, %v18263_v30, %v14396_v17  ;;  %vm18265_vm14 = vmmov %vm18264_vm3  ;;  %v14716_v17 = vrot.slane %v5596_v47, 4  ;;  %v14722_v63 = vrot.slane %v5867_v27, 4  ;;  %v14724_v43 = vrot.slane %v5686_v13, 4 }
 0x877   :  { %v5337_v31 = vsel %vm18265_vm14, %v5183_v24, %v14519_v12  ;;  %vm18266_vm10 = vmmov %vm18264_vm3  ;;  %v14718_v24 = vpop.permute.xlu1 %7918  ;;  %v14728_v14 = vrot.slane %v5687_v29, 4  ;;  %v5607_v60 = vrot.slane %v14346_v62, %v8283_v28  ;;  %vm16093_vm5 = vcmask 97280   ;;  %v7879_v44 = vpop.permute.xlu0 %7878 }
 0x878   :  { %v5336_v4 = vsel %vm18266_vm10, %v5182_v53, %v14523_v42  ;;  %v7044_v50 = vpack.c.bf16 %v5337_v31, %v5333_v2  ;;  %vm18268_vm9 = vmmov %vm18264_vm3  ;;  %v14720_v42 = vrot.slane %v5597_v9, 4  ;;  %v7911_v10 = vunpack.i.h.bf16 %v14671_v61 }
 0x879   :  { %v5331_v54 = vsel %vm18268_vm9, %v18267_v55, %v14398_v52  ;;  %vm18269_vm13 = vmmov %vm18264_vm3  ;;  %v7034_v56 = vpack.c.bf16 %v5336_v4, %v5332_v11  ;;  %v5517_v52 = vrot.slane %v14285_v57, %v8302_v32  ;;  %v7910_v40 = vunpack.i.l.bf16 %v14671_v61  ;;  %v18295_v4 = vld [vmem:[#allocation68_spill] sm:$0xff] }
 0x87a   :  { %v5335_v16 = vsel %vm18269_vm13, %v5181_v0, %v14521_v8  ;;  %7045 = vmatpush1.bf16.msra.mxu1 %v7044_v50  ;;  %vm18270_vm6 = vmmov %vm18264_vm3  ;;  %v7870_v8 = vunpack.i.l.bf16 %v7869_v59  ;;  %v5513_v0 = vrot.slane %v14285_v57, %v8283_v28  ;;  %v7871_v23 = vunpack.i.h.bf16 %v7869_v59 }
 0x87b   :  { %v7036_v12 = vpack.c.bf16 %v5335_v16, %v5331_v54  ;;  %7035 = vmatprep.subr.bf16.mxu0 %v7034_v56  ;;  %6887 = vmatprep.subr.msk.mxu1 %vm18270_vm6, %v5274_v48  ;;  %v18271_v41 = vsel %vm14507_vm0, %v14515_v37, 0.0  ;;  %vm18272_vm4 = vmmov %vm18264_vm3  ;;  %vm5617_vm15 = vcmp.eq.s32.totalorder %v5607_v60, 1  ;;  %vm18273_vm3 = vnez %v18180_v5  ;;  %v7884_v2 = vpop.permute.xlu0 %7883 }
 0x87c   :  { %vm5523_vm8 = vcmp.eq.s32.totalorder %v5513_v0, 1  ;;  %v18274_v48 = vsel %vm18273_vm3, %v14368_v26, 0.0  ;;  %vm18275_vm14 = vmmov %vm18272_vm4  ;;  %vm16092_vm10 = vcmask 80896   ;;  %vm14748_vm9 = vcmp.eq.s32.totalorder %v5517_v52, 1 }
 0x87d   :  { %7037 = vmatpush1.bf16.msra.mxu0 %v7036_v12  ;;  %v5961_v45 = vsel %vm18275_vm14, %v18274_v48, %v14300_v34  ;;  %v18278_v49 = vsel %vm14580_vm11, %v14556_v7, 0.0  ;;  %vm18279_vm0 = vmmov %vm18272_vm4  ;;  %v5550_v37 = vsel %vm5523_vm8, %v14391_v22, 0.0  ;;  %v5640_v9 = vsel %vm5617_vm15, %v14438_v39, 0.0  ;;  %v18298_v12 = vld [vmem:[#allocation190_spill] sm:$0xff] }
 0x87e   :  { %6884 = vmatprep.subr.msk.mxu0 %vm18272_vm4, %v18271_v41  ;;  %6888 = vmatpush1.msk.msra.mxu1 %vm18279_vm0, %v18278_v49  ;;  %v18280_v26 = vsel %vm14423_vm1, %v14429_v36, 0.0  ;;  %vm18281_vm13 = vmmov %vm18279_vm0  ;;  %v18282_v34 = vunpack.i.h.bf16 %v14273_v51  ;;  %vm18283_vm6 = vcmask 130048   ;;  %vm18285_vm11 = vcmask 293888   ;;  %v7924_v36 = vpop.permute.xlu1 %7923 }
 0x87f   :  { %v5965_v5 = vsel %vm18281_vm13, %v18280_v26, %v14331_v58  ;;  %6889 = vmatmul.mubr.msk.f32.vlgmr.msra.gmra.mrb[6].mxu1 %vm18285_vm11, %v18284_v46  ;;  %vm18286_vm4 = vmmov %vm18279_vm0  ;;  %v5611_v21 = vrot.slane %v14346_v62, %v8302_v32  ;;  %v18288_v51 = vsel %vm14496_vm2, %v14502_v1, 0.0  ;;  %v7921_v7 = vunpack.i.h.bf16 %v14718_v24 }
 0x880   :  { %v14768_v27 = vsel %vm18283_vm6, %v18282_v34, %v7870_v8  ;;  %v5962_v22 = vsel %vm18286_vm4, %v5550_v37, %v14302_v15  ;;  %vm18287_vm8 = vmmov %vm18279_vm0  ;;  %v7920_v13 = vunpack.i.l.bf16 %v14718_v24  ;;  %v7880_v29 = vunpack.i.l.bf16 %v7879_v44  ;;  %6136 = vmatprep.mubr.f32.mxu1 %v18105_v25 }
 0x881   :  { %v5966_v39 = vsel %vm18287_vm8, %v5640_v9, %v14335_v20  ;;  %vm18289_vm1 = vmmov %vm18279_vm0  ;;  %v7048_v20 = vpack.c.bf16 %v5965_v5, %v5961_v45  ;;  %v7881_v15 = vunpack.i.h.bf16 %v7879_v44  ;;  %v6191_v6 = vrot.slane %v18291_v19, %v8283_v28  ;;  %v18306_v45 = vld [vmem:[#allocation221_spill] sm:$0xff]  ;;  %v18309_v9 = vld [vmem:[#allocation12_spill] sm:$0xff] }
 0x882   :  { %6885 = vmatpush1.msk.msra.mxu0 %vm18289_vm1, %v18288_v51  ;;  %v7046_v58 = vpack.c.bf16 %v5966_v39, %v5962_v22  ;;  %vm18290_vm15 = vmmov %vm18285_vm11  ;;  %v6199_v1 = vrot.slane %v18291_v19, %v8305_v33  ;;  %v14795_v59 = vsel %vm16093_vm5, %v7910_v40, %v7911_v10  ;;  %v6195_v11 = vrot.slane %v18291_v19, %v8302_v32  ;;  %v7929_v5 = vpop.permute.xlu1 %7928 }
 0x883   :  { %6886 = vmatmul.mubr.msk.f32.vlgmr.msra.gmra.mrb[6].mxu0 %vm18290_vm15, %v18284_v46  ;;  %vm18292_vm2 = vmmov %vm18283_vm6  ;;  %v7926_v30 = vunpack.i.h.bf16 %v7924_v36  ;;  %vm14803_vm3 = vcmp.eq.s32.totalorder %v5611_v21, 1  ;;  %v18296_v50 = vunpack.i.h.bf16 %v18295_v4  ;;  %vm18297_vm14 = vcmask 113664   ;;  %v18344_v4 = vld [vmem:[#allocation145_spill] sm:$0xff] }
 0x884   :  { %v14798_v53 = vsel %vm18292_vm2, %v7870_v8, %v7871_v23  ;;  %7047 = vmatprep.subr.bf16.mxu0 %v7046_v58  ;;  %6065 = vmatprep.mubr.f32.mxu0 %v18105_v25  ;;  %vm6203_vm0 = vcmp.eq.s32.totalorder %v6199_v1, 1  ;;  %v7925_v54 = vunpack.i.l.bf16 %v7924_v36  ;;  %v5551_v16 = vsel %vm14748_vm9, %v14768_v27, 0.0  ;;  %vm18301_vm6 = vmmov %vm18297_vm14  ;;  %v18315_v58 = vld [vmem:[#allocation177_spill] sm:$0xff] }
 0x885   :  { %7049 = vmatpush1.bf16.msra.mxu0 %v7048_v20  ;;  %v14810_v55 = vsel %vm18297_vm14, %v18296_v50, %v7880_v29  ;;  %v14818_v56 = vsel %vm16092_vm10, %v7920_v13, %v7921_v7  ;;  %v18299_v52 = vunpack.i.l.bf16 %v18298_v12  ;;  %vm18300_vm13 = vcmask 1039360   ;;  %v18329_v12 = vld [vmem:[#allocation194_spill] sm:$0xff] }
 0x886   :  { %v5746_v0 = vrot.slane %v14575_v35, %v8302_v32  ;;  %v14826_v60 = vsel %vm18301_vm6, %v7880_v29, %v7881_v15  ;;  %vm14828_vm11 = vcmp.eq.s32.totalorder %v6191_v6, 1  ;;  %v7886_v44 = vunpack.i.h.bf16 %v7884_v2  ;;  %vm18308_vm8 = vmmov %vm18300_vm13 }
 0x887   :  { %v6218_v8 = vsel %vm18300_vm13, %v7926_v30, %v18299_v52  ;;  %v5641_v41 = vsel %vm14803_vm3, %v14810_v55, 0.0  ;;  %vm14835_vm4 = vcmp.eq.s32.totalorder %v6195_v11, 1  ;;  %v18307_v49 = vunpack.i.h.bf16 %v18306_v45  ;;  %vm18310_vm1 = vmmov %vm18308_vm8  ;;  %v18318_v11 = vld [vmem:[#allocation180_spill] sm:$0xff] }
 0x888   :  { %v6226_v23 = vsel %vm6203_vm0, %v6218_v8, 0.0  ;;  %v5738_v26 = vrot.slane %v14575_v35, %v18309_v9  ;;  %v6217_v46 = vsel %vm18310_vm1, %v7925_v54, %v7926_v30  ;;  %v5742_v22 = vrot.slane %v14575_v35, %v8283_v28 }
 0x889   :  { %v6216_v37 = vsel %vm18308_vm8, %v18307_v49, %v7925_v54  ;;  %v14844_v34 = vrot.slane %v6226_v23, 4  ;;  %vm14849_vm15 = vcmp.eq.s32.totalorder %v5746_v0, 1  ;;  %v18313_v21 = vunpack.i.l.bf16 %v14558_v18  ;;  %v18332_v0 = vld [vmem:[#allocation230_spill] sm:$0xff] }
 0x88a   :  { %vm18314_vm2 = vcmask 89088   ;;  %v7885_v51 = vunpack.i.l.bf16 %v7884_v2  ;;  %v6280_v7 = vrot.slane %v18315_v58, %v8283_v28  ;;  %v6284_v29 = vrot.slane %v18315_v58, %v8302_v32 }
 0x88b   :  { %v5768_v36 = vsel %vm18314_vm2, %v7886_v44, %v18313_v21  ;;  %v6224_v20 = vsel %vm14828_vm11, %v6216_v37, 0.0  ;;  %v6288_v35 = vrot.slane %v18315_v58, %v8305_v33  ;;  %v7931_v15 = vunpack.i.h.bf16 %v7929_v5  ;;  %vm18319_vm14 = vmmov %vm18314_vm2 }
 0x88c   :  { %v7930_v19 = vunpack.i.l.bf16 %v7929_v5  ;;  %v6225_v18 = vsel %vm14835_vm4, %v6217_v46, 0.0  ;;  %vm14866_vm3 = vcmp.eq.s32.totalorder %v5738_v26, 1  ;;  %v5776_v1 = vsel %vm14849_vm15, %v5768_v36, 0.0  ;;  %vm18322_vm13 = vmmov %vm18314_vm2 }
 0x88d   :  { %v5766_v30 = vsel %vm18319_vm14, %v18318_v11, %v7885_v51  ;;  %vm14874_vm0 = vcmp.eq.s32.totalorder %v5742_v22, 1  ;;  %v5767_v31 = vsel %vm18322_vm13, %v7885_v51, %v7886_v44  ;;  %vm14879_vm6 = vcmp.eq.s32.totalorder %v6280_v7, 1  ;;  %v7894_v44 = vpop.permute.xlu0 %7893  ;;  %v18336_v22 = vld [vmem:[#allocation75_spill] sm:$0xff]  ;;  %v18341_v11 = vld [vmem:[#allocation13_spill] sm:$0xff]  ;;  %vm5688_vm14 = vmand %vm14183_vm12, %vm18184_vm7 }
 0x88e   :  { %vm14883_vm11 = vcmp.eq.s32.totalorder %v6288_v35, 1  ;;  %v14887_v55 = vrot.slane %v6224_v20, 4  ;;  %vm14889_vm4 = vcmp.eq.s32.totalorder %v6284_v29, 1  ;;  %v18330_v52 = vunpack.i.l.bf16 %v18329_v12  ;;  %v18353_v12 = vld [vmem:[#allocation126_spill] sm:$0xff] }
 0x88f   :  { %vm18331_vm8 = vcmask 1022976   ;;  %v18333_v10 = vunpack.i.h.bf16 %v18332_v0  ;;  %v14899_v48 = vrot.slane %v6225_v18, 4  ;;  %v14901_v45 = vrot.slane %v5776_v1, 4  ;;  %v18355_v0 = vld [vmem:[#allocation156_spill] sm:$0xff] }
 0x890   :  { %v6306_v8 = vsel %vm18331_vm8, %v7931_v15, %v18330_v52  ;;  %vm18334_vm1 = vmmov %vm18331_vm8  ;;  %v5774_v49 = vsel %vm14866_vm3, %v5766_v30, 0.0  ;;  %v5775_v26 = vsel %vm14874_vm0, %v5767_v31, 0.0  ;;  %v5828_v39 = vrot.slane %v18336_v22, %v18309_v9 }
 0x891   :  { %v6304_v23 = vsel %vm18334_vm1, %v18333_v10, %v7930_v19  ;;  %vm18335_vm15 = vmmov %vm18334_vm1  ;;  %v6314_v5 = vsel %vm14883_vm11, %v6306_v8, 0.0  ;;  %v5832_v36 = vrot.slane %v18336_v22, %v8283_v28  ;;  %v5836_v51 = vrot.slane %v18336_v22, %v8302_v32  ;;  %v14972_v52 = vpop.permute.xlu0 %7903 }
 0x892   :  { %v6305_v37 = vsel %vm18335_vm15, %v7930_v19, %v7931_v15  ;;  %v6312_v46 = vsel %vm14879_vm6, %v6304_v23, 0.0  ;;  %v7896_v58 = vunpack.i.h.bf16 %v7894_v44  ;;  %v14920_v7 = vrot.slane %v5774_v49, 4 }
 0x893   :  { %v6313_v21 = vsel %vm14889_vm4, %v6305_v37, 0.0  ;;  %v7895_v29 = vunpack.i.l.bf16 %v7894_v44  ;;  %v5521_v20 = vrot.slane %v14285_v57, %v8305_v33  ;;  %v5615_v35 = vrot.slane %v14346_v62, %v8305_v33  ;;  %v14941_v57 = vpop.permute.xlu1 %7933 }
 0x894   :  { %v14926_v15 = vrot.slane %v5775_v26, 4  ;;  %v14928_v19 = vrot.slane %v6314_v5, 4  ;;  %vm14930_vm2 = vcmp.eq.s32.totalorder %v5836_v51, 1  ;;  %v18339_v6 = vunpack.i.l.bf16 %v14616_v38  ;;  %v18366_v38 = vld [vmem:[#allocation167_spill] sm:$0xff] }
 0x895   :  { %vm18340_vm3 = vcmask 72704   ;;  %v14943_v62 = vrot.slane %v6312_v46, 4  ;;  %v14945_v2 = vrot.slane %v6313_v21, 4  ;;  %vm5525_vm0 = vcmp.eq.s32.totalorder %v5521_v20, 1  ;;  %v15019_v20 = vpop.permute.xlu0 %7913 }
 0x896   :  { %v5858_v1 = vsel %vm18340_vm3, %v7896_v58, %v18339_v6  ;;  %vm18343_vm13 = vcmask 1043456   ;;  %vm18345_vm6 = vnez %v18344_v4  ;;  %vm14953_vm4 = vcmp.eq.s32.totalorder %v5828_v39, 1 }
 0x897   :  { %v5967_v31 = vsel %vm18343_vm13, %v5641_v41, %v14724_v43  ;;  %vm5778_vm11 = vmand %vm14183_vm12, %vm18345_vm6  ;;  %vm14957_vm8 = vcmp.eq.s32.totalorder %v5832_v36, 1  ;;  %v5552_v54 = vsel %vm5525_vm0, %v14798_v53, 0.0  ;;  %v18351_v41 = vld [vmem:[#allocation135_spill] sm:$0xff]  ;;  %vm18354_vm3 = vnez %v18353_v12  ;;  %v5893_v22 = vpop.permute.xlu1 %5892 }
 0x898   :  { %vm18350_vm1 = vmmov %vm18343_vm13  ;;  %vm18352_vm15 = vnez %v18351_v41  ;;  %v5866_v8 = vsel %vm14930_vm2, %v5858_v1, 0.0  ;;  %vm18356_vm10 = vcmask 72704   ;;  %vm5619_vm0 = vcmp.eq.s32.totalorder %v5615_v35, 1 }
 0x899   :  { %v5963_v43 = vsel %vm18350_vm1, %v5551_v16, %v14716_v17  ;;  %vm6227_vm13 = vmand %vm18354_vm3, %vm18352_vm15  ;;  %v5856_v53 = vsel %vm18356_vm10, %v18355_v0, %v7895_v29  ;;  %v5642_v27 = vsel %vm5619_vm0, %v14826_v60, 0.0  ;;  %v18358_v16 = vmov 0  }
 0x89a   :  { %vm18357_vm5 = vmmov %vm18350_vm1  ;;  %v7056_v17 = vpack.c.bf16 %v5967_v31, %v5963_v43  ;;  %v14987_v10 = vsel %vm5688_vm14, 1, %v18358_v16  ;;  %v14990_v23 = vsel %vm5778_vm11, 1, %v18358_v16  ;;  %v14999_v49 = vsel %vm6227_vm13, 1, %v18358_v16  ;;  %v18390_v43 = vld [vmem:[#allocation161_spill] sm:$0xff] }
 0x89b   :  { %v5964_v47 = vsel %vm18357_vm5, %v5552_v54, %v14720_v42  ;;  %vm18359_vm10 = vmmov %vm18350_vm1  ;;  %v5705_v42 = vrot.slane %v14987_v10, %v8305_v33  ;;  %v5795_v60 = vrot.slane %v14990_v23, %v8305_v33  ;;  %vm18360_vm5 = vcmask 72704   ;;  %v5897_v0 = vpop.permute.xlu1 %5896 }
 0x89c   :  { %v5968_v44 = vsel %vm18359_vm10, %v5642_v27, %v14728_v14  ;;  %v5857_v37 = vsel %vm18360_vm5, %v7895_v29, %v7896_v58  ;;  %v5864_v26 = vsel %vm14953_vm4, %v5856_v53, 0.0  ;;  %v6232_v46 = vrot.slane %v14999_v49, %v18309_v9  ;;  %v18361_v29 = vld [vmem:[#allocation172_spill] sm:$0xff]  ;;  %vm18363_vm4 = vmmov %vm18350_vm1  ;;  %v18373_v53 = vld [vmem:[#allocation186_spill] sm:$0xff] }
 0x89d   :  { %v7054_v5 = vpack.c.bf16 %v5968_v44, %v5964_v47  ;;  %v15006_v14 = vrot.slane %v5866_v8, 4  ;;  %vm5709_vm9 = vcmp.eq.s32.totalorder %v5705_v42, 1  ;;  %vm5799_vm2 = vcmp.eq.s32.totalorder %v5795_v60, 1  ;;  %v18375_v27 = vld [vmem:[#allocation202_spill] sm:$0xff]  ;;  %v18443_v42 = vld [vmem:[#allocation144_spill] sm:$0xff] }
 0x89e   :  { %v7935_v39 = vunpack.i.l.bf16 %v14941_v57  ;;  %v5732_v21 = vsel %vm5709_vm9, %v14795_v59, 0.0  ;;  %v5822_v36 = vsel %vm5799_vm2, %v14818_v56, 0.0  ;;  %v5693_v51 = vrot.slane %v14987_v10, %v18309_v9 }
 0x89f   :  { %7055 = vmatprep.subr.bf16.mxu1 %v7054_v5  ;;  %v5701_v58 = vrot.slane %v14987_v10, %v8302_v32  ;;  %vm18362_vm14 = vnez %v18361_v29  ;;  %v5865_v35 = vsel %vm14957_vm8, %v5857_v37, 0.0  ;;  %v15023_v18 = vrot.slane %v5864_v26, 4  ;;  %v7939_v26 = vpop.permute.xlu0 %7938 }
 0x8a0   :  { %vm5868_vm11 = vmand %vm14183_vm12, %vm18362_vm14  ;;  %7057 = vmatpush1.bf16.msra.mxu1 %v7056_v17  ;;  %v5972_v59 = vsel %vm18363_vm4, %v5732_v21, %v14714_v3  ;;  %v5976_v56 = vsel %vm18350_vm1, %v5822_v36, %v14722_v63  ;;  %vm15029_vm15 = vcmp.eq.s32.totalorder %v6232_v46, 1  ;;  %v18364_v1 = vmov 0  ;;  %v7944_v63 = vpop.permute.xlu1 %7943 }
 0x8a1   :  { %v7058_v6 = vpack.c.bf16 %v5976_v56, %v5972_v59  ;;  %v18365_v1 = vsel %vm15029_vm15, 4294967295, %v18364_v1  ;;  %v7936_v30 = vunpack.i.h.bf16 %v14941_v57  ;;  %v7906_v31 = vunpack.i.h.bf16 %v14972_v52 }
 0x8a2   :  { %vm18367_vm12 = vcmask 1031168   ;;  %v7905_v54 = vunpack.i.l.bf16 %v14972_v52  ;;  %v5869_v3 = vsel %vm5868_vm11, 1, %v18358_v16  ;;  %vm5900_vm8 = vcmask 64512  }
 0x8a3   :  { %v15037_v50 = vsel %vm18367_vm12, %v18366_v38, %v7935_v39  ;;  %7059 = vmatprep.subr.bf16.mxu1 %v7058_v6  ;;  %vm15041_vm13 = vcmp.eq.s32.totalorder %v5693_v51, 1  ;;  %vm15045_vm0 = vcmp.eq.s32.totalorder %v5701_v58, 1  ;;  %v5873_v41 = vrot.slane %v5869_v3, %v18309_v9  ;;  %vm18381_vm11 = vmmov %vm18367_vm12  ;;  %v18383_v38 = vld [vmem:[#allocation10_spill] sm:$0xff] }
 0x8a4   :  { %v5877_v8 = vrot.slane %v5869_v3, %v8283_v28  ;;  %vm18372_vm10 = vcmask 97280   ;;  %v15062_v17 = vsel %vm5900_vm8, %v18375_v27, %v5893_v22  ;;  %v5783_v44 = vrot.slane %v14990_v23, %v18309_v9 }
 0x8a5   :  { %v15054_v52 = vsel %vm18372_vm10, %v7906_v31, %v7910_v40  ;;  %vm18374_vm5 = vmmov %vm18372_vm10  ;;  %vm15066_vm9 = vcmp.eq.s32.totalorder %v5873_v41, 1  ;;  %v18380_v40 = vld [vmem:[#allocation197_spill] sm:$0xff]  ;;  %v5791_v37 = vrot.slane %v14990_v23, %v8302_v32  ;;  %v15080_v5 = vrot.slane %v5865_v35, 4 }
 0x8a6   :  { %v15058_v47 = vsel %vm18374_vm5, %v18373_v53, %v7905_v54  ;;  %vm15070_vm2 = vcmp.eq.s32.totalorder %v5877_v8, 1  ;;  %v15076_v60 = vsel %vm5900_vm8, %v5893_v22, %v18380_v40  ;;  %v15085_v46 = vsel %vm18381_vm11, %v7935_v39, %v7936_v30  ;;  %vm18382_vm4 = vmmov %vm18374_vm5 }
 0x8a7   :  { %v7916_v36 = vunpack.i.h.bf16 %v15019_v20  ;;  %v5731_v22 = vsel %vm15045_vm0, %v15054_v52, 0.0  ;;  %v7915_v51 = vunpack.i.l.bf16 %v15019_v20  ;;  %v5881_v58 = vrot.slane %v5869_v3, %v8302_v32  ;;  %v18394_v52 = vld [vmem:[#allocation199_spill] sm:$0xff] }
 0x8a8   :  { %v5885_v35 = vrot.slane %v5869_v3, %v8305_v33  ;;  %v5722_v59 = vsel %vm18382_vm4, %v7905_v54, %v7906_v31  ;;  %v5729_v39 = vsel %vm15041_vm13, %v15058_v47, 0.0  ;;  %vm18384_vm1 = vnez %v18383_v38 }
 0x8a9   :  { %vm6359_vm12 = vmand %vm18354_vm3, %vm18384_vm1  ;;  %vm15111_vm0 = vcmp.eq.s32.totalorder %v5783_v44, 1  ;;  %vm15115_vm10 = vcmp.eq.s32.totalorder %v5791_v37, 1  ;;  %vm18389_vm13 = vcmask 80896   ;;  %v15124_v3 = vsel %vm5900_vm8, %v18380_v40, %v5897_v0  ;;  %v7949_v40 = vpop.permute.xlu0 %7948 }
 0x8aa   :  { %v5813_v54 = vsel %vm18389_vm13, %v7916_v36, %v7920_v13  ;;  %vm18391_vm5 = vmmov %vm18389_vm13  ;;  %vm15128_vm11 = vcmp.eq.s32.totalorder %v5881_v58, 1  ;;  %v15134_v53 = vsel %vm5900_vm8, %v5897_v0, %v18394_v52  ;;  %v6240_v24 = vrot.slane %v14999_v49, %v8302_v32 }
 0x8ab   :  { %v5811_v41 = vsel %vm18391_vm5, %v18390_v43, %v7915_v51  ;;  %vm15138_vm4 = vcmp.eq.s32.totalorder %v5885_v35, 1  ;;  %v7941_v47 = vunpack.i.h.bf16 %v7939_v26  ;;  %v7940_v27 = vunpack.i.l.bf16 %v7939_v26  ;;  %vm18397_vm8 = vmmov %vm18391_vm5 }
 0x8ac   :  { %v6360_v44 = vsel %vm6359_vm12, 1, %v18358_v16  ;;  %v7946_v38 = vunpack.i.h.bf16 %v7944_v63  ;;  %v7945_v43 = vunpack.i.l.bf16 %v7944_v63  ;;  %v5821_v0 = vsel %vm15115_vm10, %v5813_v54, 0.0  ;;  %v18400_v63 = vld [vmem:[#allocation175_spill] sm:$0xff] }
 0x8ad   :  { %v6364_v37 = vrot.slane %v6360_v44, %v18309_v9  ;;  %v6368_v58 = vrot.slane %v6360_v44, %v8283_v28  ;;  %v5812_v52 = vsel %vm18397_vm8, %v7915_v51, %v7916_v36  ;;  %v6372_v35 = vrot.slane %v6360_v44, %v8302_v32 }
 0x8ae   :  { %v6376_v21 = vrot.slane %v6360_v44, %v8305_v33  ;;  %v5819_v26 = vsel %vm15111_vm0, %v5811_v41, 0.0  ;;  %v5911_v56 = vsel %vm15128_vm11, %v15124_v3, 0.0  ;;  %vm18401_vm12 = vcmask 1006592  }
 0x8af   :  { %vm15155_vm1 = vcmp.eq.s32.totalorder %v6364_v37, 1  ;;  %v6391_v31 = vsel %vm18401_vm12, %v18400_v63, %v7945_v43  ;;  %v5912_v36 = vsel %vm15138_vm4, %v15134_v53, 0.0  ;;  %vm15164_vm10 = vcmp.eq.s32.totalorder %v6240_v24, 1  ;;  %vm18407_vm5 = vmmov %vm18401_vm12 }
 0x8b0   :  { %vm18404_vm0 = vcmask 1031168   ;;  %vm15173_vm13 = vcmp.eq.s32.totalorder %v6368_v58, 1  ;;  %v6392_v41 = vsel %vm18407_vm5, %v7945_v43, %v7946_v38  ;;  %v6399_v53 = vsel %vm15155_vm1, %v6391_v31, 0.0  ;;  %v7959_v58 = vpop.permute.xlu0 %7958  ;;  %vm18413_vm1 = vmmov %vm18407_vm5 }
 0x8b1   :  { %v15171_v20 = vsel %vm18404_vm0, %v7936_v30, %v7940_v27  ;;  %vm18408_vm8 = vmmov %vm18404_vm0  ;;  %v7951_v24 = vunpack.i.h.bf16 %v7949_v40  ;;  %v7950_v13 = vunpack.i.l.bf16 %v7949_v40  ;;  %vm15183_vm4 = vcmp.eq.s32.totalorder %v6372_v35, 1  ;;  %v18418_v35 = vld [vmem:[#allocation150_spill] sm:$0xff] }
 0x8b2   :  { %v15179_v44 = vsel %vm18408_vm8, %v7940_v27, %v7941_v47  ;;  %vm15187_vm12 = vcmp.eq.s32.totalorder %v6376_v21, 1  ;;  %v5697_v30 = vrot.slane %v14987_v10, %v8283_v28  ;;  %v5787_v47 = vrot.slane %v14990_v23, %v8283_v28  ;;  %v7954_v27 = vpop.permute.xlu1 %7953  ;;  %vm18414_vm0 = vmmov %vm18413_vm1 }
 0x8b3   :  { %v6400_v6 = vsel %vm15173_vm13, %v6392_v41, 0.0  ;;  %v6393_v40 = vsel %vm18413_vm1, %v7946_v38, %v7950_v13  ;;  %v6394_v43 = vsel %vm18414_vm0, %v7950_v13, %v7951_v24  ;;  %vm18415_vm5 = vcmask 1043456  }
 0x8b4   :  { %v5975_v21 = vsel %vm18415_vm5, %v5821_v0, %v15006_v14  ;;  %vm5707_vm8 = vcmp.eq.s32.totalorder %v5697_v30, 1  ;;  %vm5797_vm14 = vcmp.eq.s32.totalorder %v5787_v47, 1  ;;  %vm18416_vm6 = vmmov %vm18415_vm5  ;;  %vm18419_vm7 = vnez %v18418_v35  ;;  %v18469_v47 = vld [vmem:[#allocation79_spill] sm:$0xff] }
 0x8b5   :  { %v5971_v10 = vsel %vm18416_vm6, %v5731_v22, %v14901_v45  ;;  %vm18417_vm15 = vmmov %vm18415_vm5  ;;  %v6401_v38 = vsel %vm15183_vm4, %v6393_v40, 0.0  ;;  %v6402_v63 = vsel %vm15187_vm12, %v6394_v43, 0.0  ;;  %v5730_v14 = vsel %vm5707_vm8, %v5722_v59, 0.0 }
 0x8b6   :  { %v5969_v23 = vsel %vm18417_vm15, %v5729_v39, %v14920_v7  ;;  %vm6447_vm13 = vmand %vm18354_vm3, %vm18419_vm7  ;;  %v5820_v0 = vsel %vm5797_vm14, %v5812_v52, 0.0  ;;  %v7060_v7 = vpack.c.bf16 %v5975_v21, %v5971_v10  ;;  %v7956_v24 = vunpack.i.h.bf16 %v7954_v27  ;;  %v15223_v37 = vpop.permute.xlu1 %7963 }
 0x8b7   :  { %vm18420_vm1 = vmmov %vm18415_vm5  ;;  %v6448_v41 = vsel %vm6447_vm13, 1, %v18358_v16  ;;  %v7955_v52 = vunpack.i.l.bf16 %v7954_v27  ;;  %v7960_v57 = vunpack.i.l.bf16 %v7959_v58  ;;  %v6244_v30 = vrot.slane %v14999_v49, %v8305_v33  ;;  %v18426_v27 = vld [vmem:[#allocation205_spill] sm:$0xff] }
 0x8b8   :  { %v5970_v31 = vsel %vm18420_vm1, %v5730_v14, %v14926_v15  ;;  %vm18421_vm6 = vmmov %vm18420_vm1  ;;  %7061 = vmatpush1.bf16.msra.mxu1 %v7060_v7  ;;  %v6452_v13 = vrot.slane %v6448_v41, %v18309_v9  ;;  %v6456_v59 = vrot.slane %v6448_v41, %v8283_v28  ;;  %v6460_v15 = vrot.slane %v6448_v41, %v8302_v32 }
 0x8b9   :  { %v5974_v45 = vsel %vm18421_vm6, %v5820_v0, %v15080_v5  ;;  %vm18422_vm15 = vmmov %vm18420_vm1  ;;  %v15225_v5 = vpop.permute.xlu0 %7968  ;;  %vm18427_vm12 = vcmask 990208   ;;  %v15241_v21 = vrot.slane %v6399_v53, 4  ;;  %v15250_v35 = vrot.slane %v6400_v6, 4  ;;  %v18437_v53 = vld [vmem:[#allocation136_spill] sm:$0xff] }
 0x8ba   :  { %v5973_v22 = vsel %vm18422_vm15, %v5819_v26, %v15023_v18  ;;  %v7050_v39 = vpack.c.bf16 %v5974_v45, %v5970_v31  ;;  %vm18423_vm7 = vmmov %vm18420_vm1  ;;  %v6464_v18 = vrot.slane %v6448_v41, %v8305_v33  ;;  %v7961_v26 = vunpack.i.h.bf16 %v7959_v58  ;;  %v18453_v41 = vld [vmem:[#allocation104_spill] sm:$0xff] }
 0x8bb   :  { %v7052_v54 = vpack.c.bf16 %v5973_v22, %v5969_v23  ;;  %6893 = vmatprep.subr.msk.mxu1 %vm18423_vm7, %v5912_v36  ;;  %vm6465_vm14 = vcmp.eq.s32.totalorder %v6452_v13, 1  ;;  %vm15231_vm4 = vcmp.eq.s32.totalorder %v6456_v59, 1  ;;  %v6479_v40 = vsel %vm18427_vm12, %v18426_v27, %v7955_v52  ;;  %vm18428_vm0 = vmmov %vm18427_vm12  ;;  %v18457_v59 = vld [vmem:[#allocation151_spill] sm:$0xff] }
 0x8bc   :  { %7051 = vmatprep.subr.bf16.mxu0 %v7050_v39  ;;  %v6480_v43 = vsel %vm18428_vm0, %v7955_v52, %v7956_v24  ;;  %v6269_v36 = vsel %vm15164_vm10, %v15171_v20, 0.0  ;;  %v18429_v58 = vsel %vm15070_vm2, %v15076_v60, 0.0  ;;  %vm18430_vm5 = vmmov %vm18420_vm1  ;;  %v6487_v10 = vsel %vm6465_vm14, %v6479_v40, 0.0 }
 0x8bd   :  { %7053 = vmatpush1.bf16.msra.mxu0 %v7052_v54  ;;  %v6488_v23 = vsel %vm15231_vm4, %v6480_v43, 0.0  ;;  %v15252_v14 = vrot.slane %v6401_v38, 4  ;;  %vm15254_vm8 = vcmp.eq.s32.totalorder %v6460_v15, 1  ;;  %vm18433_vm10 = vmmov %vm18428_vm0  ;;  %v15264_v61 = vrot.slane %v6402_v63, 4  ;;  %v7974_v63 = vpop.permute.xlu1 %7973  ;;  %v15289_v31 = vpop.permute.xlu0 %7978  ;;  %v18451_v54 = vld [vmem:[#allocation142_spill] sm:$0xff] }
 0x8be   :  { %6890 = vmatprep.subr.msk.mxu0 %vm18430_vm5, %v18429_v58  ;;  %v6481_v51 = vsel %vm18433_vm10, %v7956_v24, %v7960_v57  ;;  %vm18434_vm2 = vmmov %vm18420_vm1  ;;  %v15266_v60 = vrot.slane %v6487_v10, 4  ;;  %vm15268_vm13 = vcmp.eq.s32.totalorder %v6464_v18, 1  ;;  %vm18438_vm1 = vcmask 293888   ;;  %v18460_v18 = vld [vmem:[#allocation234_spill] sm:$0xff] }
 0x8bf   :  { %6894 = vmatpush1.msk.msra.mxu1 %vm18434_vm2, %v5911_v56  ;;  %vm6248_vm6 = vcmp.eq.s32.totalorder %v6244_v30, 1  ;;  %v15274_v6 = vrot.slane %v6488_v23, 4  ;;  %vm18439_vm15 = vmmov %vm18428_vm0  ;;  %v18440_v56 = vsel %vm15066_vm9, %v15062_v17, 0.0  ;;  %v6236_v38 = vrot.slane %v14999_v49, %v8283_v28  ;;  %v18467_v30 = vld [vmem:[#allocation165_spill] sm:$0xff] }
 0x8c0   :  { %6895 = vmatmul.mubr.msk.f32.vlgmr.msra.gmra.mrb[6].mxu1 %vm18438_vm1, %v18437_v53  ;;  %v6482_v8 = vsel %vm18439_vm15, %v7960_v57, %v7961_v26  ;;  %vm18441_vm11 = vmmov %vm18434_vm2  ;;  %v6270_v3 = vsel %vm6248_vm6, %v15179_v44, 0.0  ;;  %vm18442_vm7 = vnez %v18341_v11  ;;  %v6489_v17 = vsel %vm15254_vm8, %v6481_v51, 0.0  ;;  %v18445_v44 = vld [vmem:[#allocation154_spill] sm:$0xff]  ;;  %v18466_v11 = vld [vmem:[#allocation59_spill] sm:$0xff] }
 0x8c1   :  { %6891 = vmatpush1.msk.msra.mxu0 %vm18441_vm11, %v18440_v56  ;;  %vm6315_vm14 = vmand %vm18354_vm3, %vm18442_vm7  ;;  %6750 = vmatprep.mubr.f32.mxu1 %v18105_v25  ;;  %vm18444_vm9 = vnez %v18443_v42  ;;  %vm6246_vm10 = vcmp.eq.s32.totalorder %v6236_v38, 1  ;;  %vm18452_vm8 = vnez %v18451_v54  ;;  %vm18461_vm15 = vnez %v18365_v1  ;;  %v15354_v10 = vpop.permute.xlu1 %6515  ;;  %v15360_v23 = vpop.permute.xlu0 %6517  ;;  %v18475_v51 = vld [vmem:[#allocation181_spill] sm:$0xff] }
 0x8c2   :  { %v18446_v45 = vsel %vm18444_vm9, %v18445_v44, 0.0  ;;  %vm18447_vm4 = vmmov %vm18434_vm2  ;;  %v18454_v24 = vsel %vm18452_vm8, %v18453_v41, 0.0  ;;  %v18462_v26 = vsel %vm18461_vm15, %v15037_v50, 0.0  ;;  %vm18464_vm9 = vnez %v18344_v4 }
 0x8c3   :  { %v6586_v49 = vsel %vm18447_vm4, %v18446_v45, %v14844_v34  ;;  %vm18448_vm12 = vmmov %vm18434_vm2  ;;  %v6584_v13 = vsel %vm18434_vm2, %v18454_v24, %v14887_v55  ;;  %v18455_v34 = vld [vmem:[#allocation143_spill] sm:$0xff]  ;;  %v6316_v55 = vsel %vm6315_vm14, 1, %v18358_v16  ;;  %v7966_v1 = vunpack.i.h.bf16 %v15223_v37 }
 0x8c4   :  { %v6590_v7 = vsel %vm18448_vm12, %v6270_v3, %v14928_v19  ;;  %vm18449_vm0 = vmmov %vm18438_vm1  ;;  %vm18456_vm1 = vnez %v18455_v34  ;;  %v7965_v50 = vunpack.i.l.bf16 %v15223_v37  ;;  %vm18468_vm7 = vnez %v18467_v30 }
 0x8c5   :  { %6892 = vmatmul.mubr.msk.f32.vlgmr.msra.gmra.mrb[6].mxu0 %vm18449_vm0, %v18437_v53  ;;  %vm18450_vm5 = vmmov %vm18434_vm2  ;;  %v7070_v39 = vpack.c.bf16 %v6590_v7, %v6586_v49  ;;  %v18458_v19 = vsel %vm18456_vm1, %v18457_v59, 0.0  ;;  %v18470_v4 = vsel %vm18468_vm7, %v18469_v47, 0.0  ;;  %v6328_v40 = vrot.slane %v6316_v55, %v8302_v32  ;;  %v6520_v34 = vpop.permute.xlu1 %6519  ;;  %v6522_v59 = vpop.permute.xlu0 %6521 }
 0x8c6   :  { %v6589_v22 = vsel %vm18450_vm5, %v6269_v36, %v14945_v2  ;;  %vm18459_vm6 = vmmov %vm18434_vm2  ;;  %6679 = vmatprep.mubr.f32.mxu0 %v18105_v25  ;;  %v6268_v2 = vsel %vm6246_vm10, %v15085_v46, 0.0  ;;  %v7970_v43 = vunpack.i.l.bf16 %v15225_v5  ;;  %v15351_v36 = vrot.slane %v6489_v17, 4 }
 0x8c7   :  { %v6585_v52 = vsel %vm18459_vm6, %v18458_v19, %v14899_v48  ;;  %vm18463_vm11 = vmmov %vm18434_vm2  ;;  %7071 = vmatprep.subr.bf16.mxu1 %v7070_v39  ;;  %v6320_v48 = vrot.slane %v6316_v55, %v18309_v9  ;;  %vm18472_vm0 = vnez %v18361_v29  ;;  %vm15368_vm8 = vcmp.eq.s32.totalorder %v6328_v40, 1 }
 0x8c8   :  { %v7072_v15 = vpack.c.bf16 %v6589_v22, %v6585_v52  ;;  %v6587_v57 = vsel %vm18463_vm11, %v18462_v26, %v18460_v18  ;;  %vm6403_vm4 = vmand %vm18354_vm3, %vm18464_vm9  ;;  %v7976_v56 = vunpack.i.h.bf16 %v7974_v63  ;;  %v7975_v3 = vunpack.i.l.bf16 %v7974_v63 }
 0x8c9   :  { %vm18465_vm12 = vmmov %vm18434_vm2  ;;  %v6404_v37 = vsel %vm6403_vm4, 1, %v18358_v16  ;;  %vm15362_vm10 = vcmp.eq.s32.totalorder %v6320_v48, 1  ;;  %v7981_v17 = vunpack.i.h.bf16 %v15289_v31  ;;  %v7980_v42 = vunpack.i.l.bf16 %v15289_v31 }
 0x8ca   :  { %v6588_v25 = vsel %vm18465_vm12, %v6268_v2, %v14943_v62  ;;  %7073 = vmatpush1.bf16.msra.mxu1 %v7072_v15  ;;  %vm18471_vm14 = vmmov %vm18434_vm2  ;;  %v6490_v62 = vsel %vm15268_vm13, %v6482_v8, 0.0  ;;  %vm18476_vm13 = vcmask 1014784   ;;  %v7971_v8 = vunpack.i.h.bf16 %v15225_v5  ;;  %v18482_v5 = vld [vmem:[#allocation210_spill] sm:$0xff] }
 0x8cb   :  { %v7062_v46 = vpack.c.bf16 %v6588_v25, %v6584_v13  ;;  %v6583_v27 = vsel %vm18471_vm14, %v18470_v4, %v18466_v11  ;;  %vm6491_vm5 = vmand %vm18354_vm3, %vm18472_vm0  ;;  %v6347_v20 = vsel %vm18476_vm13, %v18475_v51, %v7965_v50  ;;  %v6408_v29 = vrot.slane %v6404_v37, %v18309_v9 }
 0x8cc   :  { %v7064_v58 = vpack.c.bf16 %v6587_v57, %v6583_v27  ;;  %vm18479_vm2 = vmmov %vm18476_vm13  ;;  %v6416_v38 = vrot.slane %v6404_v37, %v8302_v32  ;;  %v6492_v44 = vsel %vm6491_vm5, 1, %v18358_v16  ;;  %v6578_v45 = vrot.slane %v6490_v62, 4  ;;  %v6514_v27 = vpop.permute.xlu1 %6513 }
 0x8cd   :  { %7063 = vmatprep.subr.bf16.mxu0 %v7062_v46  ;;  %v6349_v12 = vsel %vm18479_vm2, %v7966_v1, %v7970_v43  ;;  %vm15379_vm3 = vcmp.eq.s32.totalorder %v6408_v29, 1  ;;  %vm18483_vm1 = vcmask 998400   ;;  %v6500_v22 = vrot.slane %v6492_v44, %v8283_v28  ;;  %vm18484_vm6 = vmmov %vm18479_vm2 }
 0x8ce   :  { %7065 = vmatpush1.bf16.msra.mxu0 %v7064_v58  ;;  %v6435_v7 = vsel %vm18483_vm1, %v18482_v5, %v7975_v3  ;;  %v6348_v63 = vsel %vm18484_vm6, %v7965_v50, %v7966_v1  ;;  %v6355_v39 = vsel %vm15362_vm10, %v6347_v20, 0.0  ;;  %vm15389_vm15 = vcmp.eq.s32.totalorder %v6416_v38, 1  ;;  %vm18487_vm11 = vmmov %vm18483_vm1 }
 0x8cf   :  { %v6437_v16 = vsel %vm18487_vm11, %v7976_v56, %v7980_v42  ;;  %vm18488_vm9 = vmmov %vm18479_vm2  ;;  %v6357_v41 = vsel %vm15368_vm8, %v6349_v12, 0.0  ;;  %v6443_v13 = vsel %vm15379_vm3, %v6435_v7, 0.0  ;;  %vm15403_vm7 = vcmp.eq.s32.totalorder %v6500_v22, 1 }
 0x8d0   :  { %v6350_v31 = vsel %vm18488_vm9, %v7970_v43, %v7971_v8  ;;  %vm18489_vm4 = vmmov %vm18483_vm1  ;;  %v6445_v52 = vsel %vm15389_vm15, %v6437_v16, 0.0  ;;  %v6508_v15 = vrot.slane %v6492_v44, %v8305_v33  ;;  %vm18493_vm14 = vcmask 982016  }
 0x8d1   :  { %v6436_v24 = vsel %vm18489_vm4, %v7975_v3, %v7976_v56  ;;  %vm18490_vm12 = vmmov %vm18483_vm1  ;;  %v6524_v18 = vsel %vm18493_vm14, %v15354_v10, %v15360_v23  ;;  %v6324_v26 = vrot.slane %v6316_v55, %v8283_v28  ;;  %v6412_v57 = vrot.slane %v6404_v37, %v8283_v28 }
 0x8d2   :  { %v6438_v19 = vsel %vm18490_vm12, %v7980_v42, %v7981_v17  ;;  %v6332_v25 = vrot.slane %v6316_v55, %v8305_v33  ;;  %v6504_v48 = vrot.slane %v6492_v44, %v8302_v32  ;;  %vm15415_vm0 = vcmp.eq.s32.totalorder %v6508_v15, 1  ;;  %vm18496_vm5 = vmmov %vm18493_vm14 }
 0x8d3   :  { %v6526_v50 = vsel %vm18496_vm5, %v6520_v34, %v6522_v59  ;;  %v6420_v46 = vrot.slane %v6404_v37, %v8305_v33  ;;  %vm6334_vm10 = vcmp.eq.s32.totalorder %v6324_v26, 1  ;;  %vm6422_vm13 = vcmp.eq.s32.totalorder %v6412_v57, 1  ;;  %vm18505_vm14 = vmmov %vm18496_vm5 }
 0x8d4   :  { %vm6336_vm8 = vcmp.eq.s32.totalorder %v6332_v25, 1  ;;  %vm18497_vm2 = vcmask 1043456   ;;  %v6356_v30 = vsel %vm6334_vm10, %v6348_v63, 0.0  ;;  %v6444_v28 = vsel %vm6422_vm13, %v6436_v24, 0.0  ;;  %vm18506_vm13 = vmmov %vm18505_vm14 }
 0x8d5   :  { %v6591_v11 = vsel %vm18497_vm2, %v6355_v39, %v15241_v21  ;;  %v6358_v47 = vsel %vm6336_vm8, %v6350_v31, 0.0  ;;  %vm6424_vm3 = vcmp.eq.s32.totalorder %v6420_v46, 1  ;;  %vm18498_vm1 = vmmov %vm18497_vm2  ;;  %v6523_v51 = vsel %vm18505_vm14, %v6514_v27, %v15354_v10 }
 0x8d6   :  { %v6592_v32 = vsel %vm18498_vm1, %v6356_v30, %v15250_v35  ;;  %vm18499_vm6 = vmmov %vm18498_vm1  ;;  %v6446_v4 = vsel %vm6424_vm3, %v6438_v19, 0.0  ;;  %vm6511_vm10 = vcmp.eq.s32.totalorder %v6504_v48, 1  ;;  %v6762_v10 = vstv %s15480_s10  ;;  %v18513_v19 = vld [vmem:[#allocation51_spill] sm:$0xff]  ;;  %s8124_s10 = smov [#allocation6]  }
 0x8d7   :  { %v6596_v55 = vsel %vm18499_vm6, %v6444_v28, %v15274_v6  ;;  %vm18500_vm15 = vmmov %vm18498_vm1  ;;  %v6496_v6 = vrot.slane %v6492_v44, %v18309_v9  ;;  %s6830_s17 = sshll.u32 %s8124_s10, 4  ;;  %s6831_s17 = int_to_ptr.vmem [resolvable:$true] %s6830_s17 }
 0x8d8   :  { %v6594_v33 = vsel %vm18500_vm15, %v6358_v47, %v15264_v61  ;;  %v7066_v40 = vpack.c.bf16 %v6596_v55, %v6592_v32  ;;  %vm18501_vm11 = vmmov %vm18498_vm1  ;;  %v6534_v61 = vsel %vm15415_vm0, %v6526_v50, 0.0  ;;  %s8021_s20 = scalar_lea.vmem %s6831_s17, 64  ;;  %p8026_p1 = scmp.lt.s32.totalorder %s6831_s17, %s6831_s17 }
 0x8d9   :  { %v6598_v43 = vsel %vm18501_vm11, %v6446_v4, %v6578_v45  ;;  %vm18502_vm9 = vmmov %vm18498_vm1  ;;  %vm6509_vm5 = vcmp.eq.s32.totalorder %v6496_v6, 1  ;;  %p8022_p0 = scmp.ne.s32.totalorder %s6831_s17, %s8021_s20  ;;  %p8027_p2 = scmp.lt.s32.totalorder %s8021_s20, %s8021_s20 }
 0x8da   :  { %v6595_v21 = vsel %vm18502_vm9, %v6443_v13, %v15266_v60  ;;  %vm18503_vm4 = vmmov %vm18498_vm1  ;;  %v7074_v58 = vpack.c.bf16 %v6598_v43, %v6594_v33  ;;  %7067 = vmatprep.subr.bf16.mxu0 %v7066_v40  ;;  %v6532_v60 = vsel %vm15403_vm7, %v6524_v18, 0.0  ;;  %v6531_v9 = vsel %vm6509_vm5, %v6523_v51, 0.0 }
 0x8db   :  { %v6593_v62 = vsel %vm18503_vm4, %v6357_v41, %v15252_v14  ;;  %v7068_v37 = vpack.c.bf16 %v6595_v21, %v6591_v11  ;;  %vm18504_vm12 = vmmov %vm18498_vm1  ;;  %v6525_v14 = vsel %vm18506_vm13, %v15360_v23, %v6520_v34  ;;  %vm18511_vm7 = vcmask 293888   ;;  %p8028_p3 = por %p8027_p2, %p8026_p1 }
 0x8dc   :  { %v6597_v35 = vsel %vm18504_vm12, %v6445_v52, %v15351_v36  ;;  %7075 = vmatprep.subr.bf16.mxu1 %v7074_v58  ;;  %vm18507_vm8 = vmmov %vm18498_vm1  ;;  %v6600_v36 = vpop.permute.xlu0 %6599  ;;  %v6533_v20 = vsel %vm6511_vm10, %v6525_v14, 0.0  ;;  %v18514_v18 = vlaneseq }
 0x8dd   :  { %v7076_v0 = vpack.c.bf16 %v6597_v35, %v6593_v62  ;;  %7069 = vmatpush1.bf16.msra.mxu0 %v7068_v37  ;;  %vm18508_vm0 = vmmov %vm18498_vm1  ;;  %p8029_p4 = pnand %p8028_p3, %p8022_p0 }
 0x8de   :  { %6896 = vmatprep.subr.msk.mxu0 %vm18507_vm8, %v6532_v60  ;;  %vm18509_vm2 = vmmov %vm18508_vm0  ;;  %vm6821_vm6 = vcmp.lt.s32.totalorder %v18514_v18, 512 }
 0x8df   :  { %7077 = vmatpush1.bf16.msra.mxu1 %v7076_v0  ;;  %vm18510_vm3 = vmmov %vm18508_vm0 }
 0x8e0   :  { %6899 = vmatprep.subr.msk.mxu1 %vm18508_vm0, %v6534_v61  ;;  %vm18512_vm1 = vmmov %vm18511_vm7 }
 0x8e1   :  { %6897 = vmatpush1.msk.msra.mxu0 %vm18509_vm2, %v6531_v9 }
 0x8e2   :  { %6898 = vmatmul.mubr.msk.f32.vlgmr.msra.gmra.mrb[6].mxu0 %vm18511_vm7, %v6600_v36 }
 0x8e3   :  { %6900 = vmatpush1.msk.msra.mxu1 %vm18510_vm3, %v6533_v20 }
 0x8e4   :  { %6901 = vmatmul.mubr.msk.f32.vlgmr.msra.gmra.mrb[6].mxu1 %vm18512_vm1, %v6600_v36 }
 0x9b5   :  { %v6681_v23 = vpop.f32.mrb[6].mxu0 }
 0x9b6   :  { %v6763_v8 = vadd.f32 %v6762_v10, %v6681_v23  ;;  %v6683_v12 = vpop.f32.mrb[7].mxu0 }
 0x9b7   :  { %v6752_v53 = vpop.f32.mrb[6].mxu1  ;;  %v6764_v3 = vadd.f32 %v6762_v10, %v6683_v12 }
 0x9b8   :  { %v6765_v29 = vadd.f32 %v6762_v10, %v6752_v53  ;;  %v6754_v56 = vpop.f32.mrb[7].mxu1  ;;  %v6902_v17 = vmul.f32 -1.442695, %v6763_v8 }
 0x9b9   :  { %v6766_v38 = vadd.f32 %v6762_v10, %v6754_v56  ;;  %v6903_v44 = vmul.f32 -1.442695, %v6764_v3 }
 0x9ba   :  { %v6904_v42 = vmul.f32 -1.442695, %v6765_v29  ;;  %7997 = vpow2.f32 %v6902_v17 }
 0x9bb   :  { %v6905_v45 = vmul.f32 -1.442695, %v6766_v38 }
 0x9bc   :  { %7999 = vpow2.f32 %v6904_v42 }
 0x9bd   :  { %8001 = vpow2.f32 %v6905_v45 }
 0x9be   :  { %8003 = vpow2.f32 %v6903_v44 }
 0x9c4   :  { %v7998_v49 = vpop.eup %7997 }
 0x9c5   :  { %v6779_v7 = vadd.f32 1.0, %v7998_v49 }
 0x9c6   :  { %v8000_v5 = vpop.eup %7999 }
 0x9c7   :  { %v8002_v22 = vpop.eup %8001  ;;  %v6781_v63 = vadd.f32 1.0, %v8000_v5  ;;  %8005 = vrcp.f32 %v6779_v7 }
 0x9c8   :  { %v8004_v39 = vpop.eup %8003  ;;  %v6782_v54 = vadd.f32 1.0, %v8002_v22 }
 0x9c9   :  { %8007 = vrcp.f32 %v6781_v63  ;;  %v6780_v16 = vadd.f32 1.0, %v8004_v39 }
 0x9ca   :  { %8009 = vrcp.f32 %v6782_v54 }
 0x9cb   :  { %8011 = vrcp.f32 %v6780_v16 }
 0x9d1   :  { %v8006_v31 = vpop.eup %8005 }
 0x9d3   :  { %v8008_v41 = vpop.eup %8007 }
 0x9d4   :  { %v8010_v24 = vpop.eup %8009 }
 0x9d5   :  { %v8012_v13 = vpop.eup %8011  ;;  %v6796_v34 = vcombine.low %v8008_v41, %v8010_v24 }
 0x9d6   :  { %v6795_v59 = vcombine.low %v8006_v31, %v8012_v13 }
 0x9d7   :  { %v6810_v2 = vrot.slane %v6796_v34, %v18513_v19 }
 0x9d8   :  { %v6803_v52 = vrot.slane %v6795_v59, %v18513_v19 }
 0x9da   :  { %v6811_v15 = vcombine.low %v6803_v52, %v6810_v2 }
 0x9dc   :  { %v6818_v26 = vrot.slane %v6811_v15, %v18513_v19 }
 0x9de   :  { %6823 = vst.msk [vmem:[#allocation6] sm:$0xf] %vm6821_vm6, %v6818_v26 }
 0x9df   :  { %8032 = shalt.err (!%p8029_p4)
}
 0x9e0   :  { %s8033_s13 = scalar_lea.hbm %s15481_s11, 64 }
 0x9e1   :  { %p8034_p5 = scmp.ne.s32.totalorder %s15481_s11, %s8033_s13  ;;  %p8037_p6 = scmp.lt.u32.totalorder %s8033_s13, %s15481_s11 }
 0x9e3   :  { %p8039_p7 = pnand %p8037_p6, %p8034_p5 }
 0x9e5   :  { %8042 = shalt.err (!%p8039_p7)
}
 0x9e6   :  { %6833 = dma.vmem_to_hbm [thread:$0]  %s6831_s17, 64, %s15481_s11, [#allocation7]  }
 0x9e7   :  { %8043 = dma.done.wait [#allocation7], 64  }
 0x9e8   :  { %8044 = vsyncadd [#allocation7], 4294967232 }
 0x9e9   :  { %6837 = vsyncpa [#allocation7], 1 }

</bundles_post_ra>
